<compile_context>
chip_gen: v7x
topology: tpu7x:2x2x1
jax: 0.10.0
libtpu: 0.0.40
codegen_flags: <defaults>
</compile_context>

<pallas_src>
import jax
import jax.numpy as jnp
from jax.experimental import pallas as pl
from jax.experimental.pallas import tpu as pltpu

_CHUNK = 128  # lane-width column sub-chunk inside the kernel body


def _linear_gelu_kernel(x_ref, w_ref, b_ref, o_ref):
    # x_ref: (M, K) resident; w_ref: (K, TN); b_ref: (1, TN); o_ref: (M, TN)
    x = x_ref[...]
    tn = w_ref.shape[1]
    inv_sqrt2 = 0.7071067811865476
    # Statically-unrolled sub-chunking over N (2 or 4 chunks): overlaps MXU
    # matmul of the next chunk with the VALU erf polynomial of the current one
    # (different VLIW slots) and keeps VMEM temporaries small. All slices are
    # lane-aligned (multiples of 128), so they are zero-cost ref views.
    for c in range(tn // _CHUNK):
        lo = c * _CHUNK
        acc = jnp.dot(x, w_ref[:, lo:lo + _CHUNK],
                      preferred_element_type=jnp.float32)
        acc = acc + b_ref[:, lo:lo + _CHUNK]            # broadcast bias over rows
        g = 0.5 * acc * (1.0 + jax.lax.erf(acc * inv_sqrt2))  # exact erf GELU
        o_ref[:, lo:lo + _CHUNK] = g.astype(o_ref.dtype)


def _default_tn():
    # v7x: 2 TensorCores -> 4 N-tiles so each core pipelines 2 steps (w DMA /
    # out writeback of one step hides under the other step's compute).
    # v5e / v6e: single TC -> keep 2 tiles to minimize per-step overhead.
    try:
        kind = jax.devices()[0].device_kind.lower()
    except Exception:
        kind = ""
    return 256 if "v7" in kind else 512


def _build_call(M, K, N, tn, dtype, single_buffer_x):
    if single_buffer_x:
        # x's block index is constant -> it stays resident; a second pipeline
        # buffer for it is redundant.
        x_spec = pl.BlockSpec((M, K), lambda j: (0, 0),
                              pipeline_mode=pl.Buffered(1))
    else:
        x_spec = pl.BlockSpec((M, K), lambda j: (0, 0))
    return pl.pallas_call(
        _linear_gelu_kernel,
        out_shape=jax.ShapeDtypeStruct((M, N), dtype),
        grid_spec=pltpu.PrefetchScalarGridSpec(
            num_scalar_prefetch=0,
            grid=(N // tn,),                      # iterate only over N
            in_specs=[
                x_spec,                                        # (M, K) resident
                pl.BlockSpec((K, tn), lambda j: (0, j)),       # w tile per step
                pl.BlockSpec((1, tn), lambda j: (0, j)),       # bias tile
            ],
            out_specs=pl.BlockSpec((M, tn), lambda j: (0, j)),
        ),
        compiler_params=pltpu.CompilerParams(
            dimension_semantics=("parallel",)),    # v7x shards N-tiles across TCs
        cost_estimate=pl.CostEstimate(
            flops=2 * M * K * N,
            transcendentals=M * N,
            bytes_accessed=(M * K + K * N + N + M * N) * 4),
    )


def linear_gelu(x, w, b, *, tn=None):
    """x: (B, S, K) f32, w: (K, N) f32, b: (N,) f32 -> (B, S, N) f32."""
    B, S, K = x.shape
    N = w.shape[1]
    M = B * S
    if tn is None:
        tn = _default_tn()
    assert N % tn == 0 and tn % _CHUNK == 0, "simple tiling requires aligned tn"
    assert M % 8 == 0 and K % 128 == 0, "tile alignment"

    x2d = x.reshape(M, K)
    b2d = b.reshape(1, N)

    try:
        out = _build_call(M, K, N, tn, x.dtype, True)(x2d, w, b2d)
        jax.block_until_ready(out)
    except Exception:
        # Fallback if single-buffered pipeline_mode isn't supported by the
        # installed Pallas version.
        out = _build_call(M, K, N, tn, x.dtype, False)(x2d, w, b2d)
    return out.reshape(B, S, N)


if __name__ == "__main__":
    key = jax.random.PRNGKey(0)
    kx, kw, kb = jax.random.split(key, 3)

    # Shapes implied by the module: Linear(256 -> 1024) on (1, 384, 256).
    B, S, K, N = 1, 384, 256, 1024
    x = jax.random.normal(kx, (B, S, K), dtype=jnp.float32)
    # PyTorch weight is (N, K); we store its transpose (K, N) for the kernel.
    w = jax.random.normal(kw, (K, N), dtype=jnp.float32) * (1.0 / jnp.sqrt(K))
    b = jax.random.normal(kb, (N,), dtype=jnp.float32) * 0.02

    y = linear_gelu(x, w, b)
    jax.block_until_ready(y)

    # Reference check in plain JAX (exact erf GELU).
    ref = x.reshape(-1, K) @ w + b
    ref = 0.5 * ref * (1.0 + jax.lax.erf(ref / jnp.sqrt(2.0)))
    ref = ref.reshape(B, S, N)
    assert jnp.allclose(y, ref, atol=1e-5, rtol=1e-5), "mismatch vs reference"

    print("KERNEL_OK")
</pallas_src>

<mosaic_0001>
module attributes {stable_mosaic.version = 11 : i64} {
  func.func @_linear_gelu_kernel(%arg0: i32, %arg1: memref<384x256xf32, #tpu.memory_space<vmem>>, %arg2: memref<256x512xf32, #tpu.memory_space<vmem>>, %arg3: memref<1x512xf32, #tpu.memory_space<vmem>>, %arg4: memref<384x512xf32, #tpu.memory_space<vmem>>) attributes {dimension_semantics = [#tpu.dimension_semantics<parallel>], iteration_bounds = array<i64: 2>, scalar_prefetch = 0 : i64, scratch_operands = 0 : i64, tpu.core_type = #tpu.core_type<tc>, window_params = [{pipeline_mode = #tpu.pipeline_mode<synchronous>, transform_indices = @transform_0, window_bounds = array<i64: 384, 256>}, {transform_indices = @transform_1, window_bounds = array<i64: 256, 512>}, {transform_indices = @transform_2, window_bounds = array<i64: 1, 512>}, {transform_indices = @transform_3, window_bounds = array<i64: 384, 512>}]} {
    %c0 = arith.constant 0 : index
    %c0_0 = arith.constant 0 : index
    %0 = vector.load %arg1[%c0, %c0_0] : memref<384x256xf32, #tpu.memory_space<vmem>>, vector<384x256xf32>
    %c0_1 = arith.constant 0 : index
    %c0_2 = arith.constant 0 : index
    %1 = vector.load %arg2[%c0_1, %c0_2] : memref<256x512xf32, #tpu.memory_space<vmem>>, vector<256x128xf32>
    %cst = arith.constant dense<0.000000e+00> : vector<384x128xf32>
    %2 = tpu.matmul %0, %1, %cst {dimension_numbers = #tpu.dot_dimension_numbers<[1], [0], [0], [1], [0, 0, 1, 1], [], []>} : vector<384x256xf32>, vector<256x128xf32>, vector<384x128xf32> -> vector<384x128xf32>
    %c0_3 = arith.constant 0 : index
    %c0_4 = arith.constant 0 : index
    %3 = vector.load %arg3[%c0_3, %c0_4] : memref<1x512xf32, #tpu.memory_space<vmem>>, vector<1x128xf32>
    %4 = vector.broadcast %3 : vector<1x128xf32> to vector<384x128xf32>
    %5 = arith.addf %2, %4 : vector<384x128xf32>
    %cst_5 = arith.constant 5.000000e-01 : f32
    %6 = vector.broadcast %cst_5 : f32 to vector<384x128xf32>
    %7 = arith.mulf %6, %5 : vector<384x128xf32>
    %cst_6 = arith.constant 0.707106769 : f32
    %8 = vector.broadcast %cst_6 : f32 to vector<384x128xf32>
    %9 = arith.mulf %5, %8 : vector<384x128xf32>
    %10 = math.erf %9 : vector<384x128xf32>
    %cst_7 = arith.constant 1.000000e+00 : f32
    %11 = vector.broadcast %cst_7 : f32 to vector<384x128xf32>
    %12 = arith.addf %11, %10 : vector<384x128xf32>
    %13 = arith.mulf %7, %12 : vector<384x128xf32>
    %c0_8 = arith.constant 0 : index
    %c0_9 = arith.constant 0 : index
    %14 = vector.load %arg4[%c0_8, %c0_9] : memref<384x512xf32, #tpu.memory_space<vmem>>, vector<384x128xf32>
    tpu.vector_store %arg4[%c0_8, %c0_9], %13 {strides = array<i32>} : memref<384x512xf32, #tpu.memory_space<vmem>>, vector<384x128xf32>,
    %c0_10 = arith.constant 0 : index
    %c128 = arith.constant 128 : index
    %15 = vector.load %arg2[%c0_10, %c128] : memref<256x512xf32, #tpu.memory_space<vmem>>, vector<256x128xf32>
    %cst_11 = arith.constant dense<0.000000e+00> : vector<384x128xf32>
    %16 = tpu.matmul %0, %15, %cst_11 {dimension_numbers = #tpu.dot_dimension_numbers<[1], [0], [0], [1], [0, 0, 1, 1], [], []>} : vector<384x256xf32>, vector<256x128xf32>, vector<384x128xf32> -> vector<384x128xf32>
    %c0_12 = arith.constant 0 : index
    %c128_13 = arith.constant 128 : index
    %17 = vector.load %arg3[%c0_12, %c128_13] : memref<1x512xf32, #tpu.memory_space<vmem>>, vector<1x128xf32>
    %18 = vector.broadcast %17 : vector<1x128xf32> to vector<384x128xf32>
    %19 = arith.addf %16, %18 : vector<384x128xf32>
    %cst_14 = arith.constant 5.000000e-01 : f32
    %20 = vector.broadcast %cst_14 : f32 to vector<384x128xf32>
    %21 = arith.mulf %20, %19 : vector<384x128xf32>
    %cst_15 = arith.constant 0.707106769 : f32
    %22 = vector.broadcast %cst_15 : f32 to vector<384x128xf32>
    %23 = arith.mulf %19, %22 : vector<384x128xf32>
    %24 = math.erf %23 : vector<384x128xf32>
    %cst_16 = arith.constant 1.000000e+00 : f32
    %25 = vector.broadcast %cst_16 : f32 to vector<384x128xf32>
    %26 = arith.addf %25, %24 : vector<384x128xf32>
    %27 = arith.mulf %21, %26 : vector<384x128xf32>
    %c0_17 = arith.constant 0 : index
    %c128_18 = arith.constant 128 : index
    %28 = vector.load %arg4[%c0_17, %c128_18] : memref<384x512xf32, #tpu.memory_space<vmem>>, vector<384x128xf32>
    tpu.vector_store %arg4[%c0_17, %c128_18], %27 {strides = array<i32>} : memref<384x512xf32, #tpu.memory_space<vmem>>, vector<384x128xf32>,
    %c0_19 = arith.constant 0 : index
    %c256 = arith.constant 256 : index
    %29 = vector.load %arg2[%c0_19, %c256] : memref<256x512xf32, #tpu.memory_space<vmem>>, vector<256x128xf32>
    %cst_20 = arith.constant dense<0.000000e+00> : vector<384x128xf32>
    %30 = tpu.matmul %0, %29, %cst_20 {dimension_numbers = #tpu.dot_dimension_numbers<[1], [0], [0], [1], [0, 0, 1, 1], [], []>} : vector<384x256xf32>, vector<256x128xf32>, vector<384x128xf32> -> vector<384x128xf32>
    %c0_21 = arith.constant 0 : index
    %c256_22 = arith.constant 256 : index
    %31 = vector.load %arg3[%c0_21, %c256_22] : memref<1x512xf32, #tpu.memory_space<vmem>>, vector<1x128xf32>
    %32 = vector.broadcast %31 : vector<1x128xf32> to vector<384x128xf32>
    %33 = arith.addf %30, %32 : vector<384x128xf32>
    %cst_23 = arith.constant 5.000000e-01 : f32
    %34 = vector.broadcast %cst_23 : f32 to vector<384x128xf32>
    %35 = arith.mulf %34, %33 : vector<384x128xf32>
    %cst_24 = arith.constant 0.707106769 : f32
    %36 = vector.broadcast %cst_24 : f32 to vector<384x128xf32>
    %37 = arith.mulf %33, %36 : vector<384x128xf32>
    %38 = math.erf %37 : vector<384x128xf32>
    %cst_25 = arith.constant 1.000000e+00 : f32
    %39 = vector.broadcast %cst_25 : f32 to vector<384x128xf32>
    %40 = arith.addf %39, %38 : vector<384x128xf32>
    %41 = arith.mulf %35, %40 : vector<384x128xf32>
    %c0_26 = arith.constant 0 : index
    %c256_27 = arith.constant 256 : index
    %42 = vector.load %arg4[%c0_26, %c256_27] : memref<384x512xf32, #tpu.memory_space<vmem>>, vector<384x128xf32>
    tpu.vector_store %arg4[%c0_26, %c256_27], %41 {strides = array<i32>} : memref<384x512xf32, #tpu.memory_space<vmem>>, vector<384x128xf32>,
    %c0_28 = arith.constant 0 : index
    %c384 = arith.constant 384 : index
    %43 = vector.load %arg2[%c0_28, %c384] : memref<256x512xf32, #tpu.memory_space<vmem>>, vector<256x128xf32>
    %cst_29 = arith.constant dense<0.000000e+00> : vector<384x128xf32>
    %44 = tpu.matmul %0, %43, %cst_29 {dimension_numbers = #tpu.dot_dimension_numbers<[1], [0], [0], [1], [0, 0, 1, 1], [], []>} : vector<384x256xf32>, vector<256x128xf32>, vector<384x128xf32> -> vector<384x128xf32>
    %c0_30 = arith.constant 0 : index
    %c384_31 = arith.constant 384 : index
    %45 = vector.load %arg3[%c0_30, %c384_31] : memref<1x512xf32, #tpu.memory_space<vmem>>, vector<1x128xf32>
    %46 = vector.broadcast %45 : vector<1x128xf32> to vector<384x128xf32>
    %47 = arith.addf %44, %46 : vector<384x128xf32>
    %cst_32 = arith.constant 5.000000e-01 : f32
    %48 = vector.broadcast %cst_32 : f32 to vector<384x128xf32>
    %49 = arith.mulf %48, %47 : vector<384x128xf32>
    %cst_33 = arith.constant 0.707106769 : f32
    %50 = vector.broadcast %cst_33 : f32 to vector<384x128xf32>
    %51 = arith.mulf %47, %50 : vector<384x128xf32>
    %52 = math.erf %51 : vector<384x128xf32>
    %cst_34 = arith.constant 1.000000e+00 : f32
    %53 = vector.broadcast %cst_34 : f32 to vector<384x128xf32>
    %54 = arith.addf %53, %52 : vector<384x128xf32>
    %55 = arith.mulf %49, %54 : vector<384x128xf32>
    %c0_35 = arith.constant 0 : index
    %c384_36 = arith.constant 384 : index
    %56 = vector.load %arg4[%c0_35, %c384_36] : memref<384x512xf32, #tpu.memory_space<vmem>>, vector<384x128xf32>
    tpu.vector_store %arg4[%c0_35, %c384_36], %55 {strides = array<i32>} : memref<384x512xf32, #tpu.memory_space<vmem>>, vector<384x128xf32>,
    return
  }
  func.func @transform_0(%arg0: i32) -> (i32, i32) {
    %c0_i32 = arith.constant 0 : i32
    %c0_i32_0 = arith.constant 0 : i32
    %c0_i32_1 = arith.constant 0 : i32
    return %c0_i32, %c0_i32_0 : i32, i32
  }
  func.func @transform_1(%arg0: i32) -> (i32, i32) {
    %c0_i32 = arith.constant 0 : i32
    %c0_i32_0 = arith.constant 0 : i32
    return %c0_i32, %arg0 : i32, i32
  }
  func.func @transform_2(%arg0: i32) -> (i32, i32) {
    %c0_i32 = arith.constant 0 : i32
    %c0_i32_0 = arith.constant 0 : i32
    return %c0_i32, %arg0 : i32, i32
  }
  func.func @transform_3(%arg0: i32) -> (i32, i32) {
    %c0_i32 = arith.constant 0 : i32
    %c0_i32_0 = arith.constant 0 : i32
    return %c0_i32, %arg0 : i32, i32
  }
}

module attributes {stable_mosaic.version = 11 : i64} {
  func.func @_linear_gelu_kernel(%arg0: i32, %arg1: memref<384x256xf32, #tpu.memory_space<vmem>>, %arg2: memref<256x512xf32, #tpu.memory_space<vmem>>, %arg3: memref<1x512xf32, #tpu.memory_space<vmem>>, %arg4: memref<384x512xf32, #tpu.memory_space<vmem>>) attributes {dimension_semantics = [#tpu.dimension_semantics<parallel>], iteration_bounds = array<i64: 2>, scalar_prefetch = 0 : i64, scratch_operands = 0 : i64, tpu.core_type = #tpu.core_type<tc>, window_params = [{pipeline_mode = #tpu.pipeline_mode<synchronous>, transform_indices = @transform_0, window_bounds = array<i64: 384, 256>}, {transform_indices = @transform_1, window_bounds = array<i64: 256, 512>}, {transform_indices = @transform_2, window_bounds = array<i64: 1, 512>}, {transform_indices = @transform_3, window_bounds = array<i64: 384, 512>}]} {
    %c0 = arith.constant 0 : index
    %c0_0 = arith.constant 0 : index
    %0 = vector.load %arg1[%c0, %c0_0] : memref<384x256xf32, #tpu.memory_space<vmem>>, vector<384x256xf32>
    %c0_1 = arith.constant 0 : index
    %c0_2 = arith.constant 0 : index
    %1 = vector.load %arg2[%c0_1, %c0_2] : memref<256x512xf32, #tpu.memory_space<vmem>>, vector<256x128xf32>
    %cst = arith.constant dense<0.000000e+00> : vector<384x128xf32>
    %2 = tpu.matmul %0, %1, %cst {dimension_numbers = #tpu.dot_dimension_numbers<[1], [0], [0], [1], [0, 0, 1, 1], [], []>} : vector<384x256xf32>, vector<256x128xf32>, vector<384x128xf32> -> vector<384x128xf32>
    %c0_3 = arith.constant 0 : index
    %c0_4 = arith.constant 0 : index
    %3 = vector.load %arg3[%c0_3, %c0_4] : memref<1x512xf32, #tpu.memory_space<vmem>>, vector<1x128xf32>
    %4 = vector.broadcast %3 : vector<1x128xf32> to vector<384x128xf32>
    %5 = arith.addf %2, %4 : vector<384x128xf32>
    %cst_5 = arith.constant 5.000000e-01 : f32
    %6 = vector.broadcast %cst_5 : f32 to vector<384x128xf32>
    %7 = arith.mulf %6, %5 : vector<384x128xf32>
    %cst_6 = arith.constant 0.707106769 : f32
    %8 = vector.broadcast %cst_6 : f32 to vector<384x128xf32>
    %9 = arith.mulf %5, %8 : vector<384x128xf32>
    %10 = math.erf %9 : vector<384x128xf32>
    %cst_7 = arith.constant 1.000000e+00 : f32
    %11 = vector.broadcast %cst_7 : f32 to vector<384x128xf32>
    %12 = arith.addf %11, %10 : vector<384x128xf32>
    %13 = arith.mulf %7, %12 : vector<384x128xf32>
    %c0_8 = arith.constant 0 : index
    %c0_9 = arith.constant 0 : index
    %14 = vector.load %arg4[%c0_8, %c0_9] : memref<384x512xf32, #tpu.memory_space<vmem>>, vector<384x128xf32>
    tpu.vector_store %arg4[%c0_8, %c0_9], %13 {strides = array<i32>} : memref<384x512xf32, #tpu.memory_space<vmem>>, vector<384x128xf32>,
    %c0_10 = arith.constant 0 : index
    %c128 = arith.constant 128 : index
    %15 = vector.load %arg2[%c0_10, %c128] : memref<256x512xf32, #tpu.memory_space<vmem>>, vector<256x128xf32>
    %cst_11 = arith.constant dense<0.000000e+00> : vector<384x128xf32>
    %16 = tpu.matmul %0, %15, %cst_11 {dimension_numbers = #tpu.dot_dimension_numbers<[1], [0], [0], [1], [0, 0, 1, 1], [], []>} : vector<384x256xf32>, vector<256x128xf32>, vector<384x128xf32> -> vector<384x128xf32>
    %c0_12 = arith.constant 0 : index
    %c128_13 = arith.constant 128 : index
    %17 = vector.load %arg3[%c0_12, %c128_13] : memref<1x512xf32, #tpu.memory_space<vmem>>, vector<1x128xf32>
    %18 = vector.broadcast %17 : vector<1x128xf32> to vector<384x128xf32>
    %19 = arith.addf %16, %18 : vector<384x128xf32>
    %cst_14 = arith.constant 5.000000e-01 : f32
    %20 = vector.broadcast %cst_14 : f32 to vector<384x128xf32>
    %21 = arith.mulf %20, %19 : vector<384x128xf32>
    %cst_15 = arith.constant 0.707106769 : f32
    %22 = vector.broadcast %cst_15 : f32 to vector<384x128xf32>
    %23 = arith.mulf %19, %22 : vector<384x128xf32>
    %24 = math.erf %23 : vector<384x128xf32>
    %cst_16 = arith.constant 1.000000e+00 : f32
    %25 = vector.broadcast %cst_16 : f32 to vector<384x128xf32>
    %26 = arith.addf %25, %24 : vector<384x128xf32>
    %27 = arith.mulf %21, %26 : vector<384x128xf32>
    %c0_17 = arith.constant 0 : index
    %c128_18 = arith.constant 128 : index
    %28 = vector.load %arg4[%c0_17, %c128_18] : memref<384x512xf32, #tpu.memory_space<vmem>>, vector<384x128xf32>
    tpu.vector_store %arg4[%c0_17, %c128_18], %27 {strides = array<i32>} : memref<384x512xf32, #tpu.memory_space<vmem>>, vector<384x128xf32>,
    %c0_19 = arith.constant 0 : index
    %c256 = arith.constant 256 : index
    %29 = vector.load %arg2[%c0_19, %c256] : memref<256x512xf32, #tpu.memory_space<vmem>>, vector<256x128xf32>
    %cst_20 = arith.constant dense<0.000000e+00> : vector<384x128xf32>
    %30 = tpu.matmul %0, %29, %cst_20 {dimension_numbers = #tpu.dot_dimension_numbers<[1], [0], [0], [1], [0, 0, 1, 1], [], []>} : vector<384x256xf32>, vector<256x128xf32>, vector<384x128xf32> -> vector<384x128xf32>
    %c0_21 = arith.constant 0 : index
    %c256_22 = arith.constant 256 : index
    %31 = vector.load %arg3[%c0_21, %c256_22] : memref<1x512xf32, #tpu.memory_space<vmem>>, vector<1x128xf32>
    %32 = vector.broadcast %31 : vector<1x128xf32> to vector<384x128xf32>
    %33 = arith.addf %30, %32 : vector<384x128xf32>
    %cst_23 = arith.constant 5.000000e-01 : f32
    %34 = vector.broadcast %cst_23 : f32 to vector<384x128xf32>
    %35 = arith.mulf %34, %33 : vector<384x128xf32>
    %cst_24 = arith.constant 0.707106769 : f32
    %36 = vector.broadcast %cst_24 : f32 to vector<384x128xf32>
    %37 = arith.mulf %33, %36 : vector<384x128xf32>
    %38 = math.erf %37 : vector<384x128xf32>
    %cst_25 = arith.constant 1.000000e+00 : f32
    %39 = vector.broadcast %cst_25 : f32 to vector<384x128xf32>
    %40 = arith.addf %39, %38 : vector<384x128xf32>
    %41 = arith.mulf %35, %40 : vector<384x128xf32>
    %c0_26 = arith.constant 0 : index
    %c256_27 = arith.constant 256 : index
    %42 = vector.load %arg4[%c0_26, %c256_27] : memref<384x512xf32, #tpu.memory_space<vmem>>, vector<384x128xf32>
    tpu.vector_store %arg4[%c0_26, %c256_27], %41 {strides = array<i32>} : memref<384x512xf32, #tpu.memory_space<vmem>>, vector<384x128xf32>,
    %c0_28 = arith.constant 0 : index
    %c384 = arith.constant 384 : index
    %43 = vector.load %arg2[%c0_28, %c384] : memref<256x512xf32, #tpu.memory_space<vmem>>, vector<256x128xf32>
    %cst_29 = arith.constant dense<0.000000e+00> : vector<384x128xf32>
    %44 = tpu.matmul %0, %43, %cst_29 {dimension_numbers = #tpu.dot_dimension_numbers<[1], [0], [0], [1], [0, 0, 1, 1], [], []>} : vector<384x256xf32>, vector<256x128xf32>, vector<384x128xf32> -> vector<384x128xf32>
    %c0_30 = arith.constant 0 : index
    %c384_31 = arith.constant 384 : index
    %45 = vector.load %arg3[%c0_30, %c384_31] : memref<1x512xf32, #tpu.memory_space<vmem>>, vector<1x128xf32>
    %46 = vector.broadcast %45 : vector<1x128xf32> to vector<384x128xf32>
    %47 = arith.addf %44, %46 : vector<384x128xf32>
    %cst_32 = arith.constant 5.000000e-01 : f32
    %48 = vector.broadcast %cst_32 : f32 to vector<384x128xf32>
    %49 = arith.mulf %48, %47 : vector<384x128xf32>
    %cst_33 = arith.constant 0.707106769 : f32
    %50 = vector.broadcast %cst_33 : f32 to vector<384x128xf32>
    %51 = arith.mulf %47, %50 : vector<384x128xf32>
    %52 = math.erf %51 : vector<384x128xf32>
    %cst_34 = arith.constant 1.000000e+00 : f32
    %53 = vector.broadcast %cst_34 : f32 to vector<384x128xf32>
    %54 = arith.addf %53, %52 : vector<384x128xf32>
    %55 = arith.mulf %49, %54 : vector<384x128xf32>
    %c0_35 = arith.constant 0 : index
    %c384_36 = arith.constant 384 : index
    %56 = vector.load %arg4[%c0_35, %c384_36] : memref<384x512xf32, #tpu.memory_space<vmem>>, vector<384x128xf32>
    tpu.vector_store %arg4[%c0_35, %c384_36], %55 {strides = array<i32>} : memref<384x512xf32, #tpu.memory_space<vmem>>, vector<384x128xf32>,
    return
  }
  func.func @transform_0(%arg0: i32) -> (i32, i32) {
    %c0_i32 = arith.constant 0 : i32
    %c0_i32_0 = arith.constant 0 : i32
    %c0_i32_1 = arith.constant 0 : i32
    return %c0_i32, %c0_i32_0 : i32, i32
  }
  func.func @transform_1(%arg0: i32) -> (i32, i32) {
    %c0_i32 = arith.constant 0 : i32
    %c0_i32_0 = arith.constant 0 : i32
    return %c0_i32, %arg0 : i32, i32
  }
  func.func @transform_2(%arg0: i32) -> (i32, i32) {
    %c0_i32 = arith.constant 0 : i32
    %c0_i32_0 = arith.constant 0 : i32
    return %c0_i32, %arg0 : i32, i32
  }
  func.func @transform_3(%arg0: i32) -> (i32, i32) {
    %c0_i32 = arith.constant 0 : i32
    %c0_i32_0 = arith.constant 0 : i32
    return %c0_i32, %arg0 : i32, i32
  }
}

</mosaic_0001>

<bundles_post_ra>
// kernel: tpu_custom_call.1
= control target key start
LH: loop header
LB: loop body
LE: loop exit
PB: predicated region body
PF: predicated region fallthrough
CT: control target
= control target key end

     0   :  { %8 = vsyncpa [#allocation3], 0  ;;  %s5742_s0 = inlined_call_operand.hbm [shape: f32[384,256], index: 0, kind: input, shape index: {}]   ;;  %s5743_s1 = inlined_call_operand.hbm [shape: f32[256,1024], index: 1, kind: input, shape index: {}]   ;;  %s5744_s2 = inlined_call_operand.hbm [shape: f32[1,1024], index: 2, kind: input, shape index: {}]   ;;  %s5745_s3 = inlined_call_operand.hbm [shape: f32[384,1024], index: 3, kind: output, shape index: {}]  }
   0x1   :  { %9 = vsyncpa [#allocation6], 0 }
   0x2   :  { %11 = vsyncpa [#allocation6 + $0x1], 0 }
   0x3   :  { %12 = vsyncpa [#allocation4], 0 }
   0x4   :  { %14 = vsyncpa [#allocation4 + $0x1], 0  ;;  %s3914_s12 = smov 0   ;;  %s3916_s13 = smov 0  }
   0x5   :  { %s3918_s14 = smov 0   ;;  %s3920_s15 = smov 0  }
   0x6 LB: > { %s3935_s16 = sadd.s32 1, %s3879_s15   ;;  %s48_s17 = sadd.s32 1, %s3875_s14  ;;  %s3879_s15 = sphi %s3920_s15, %s5772_s15   ;;  %s3875_s14 = sphi %s3918_s14, %s5771_s14   ;;  %s3871_s13 = sphi %s3916_s13, %s5770_s13   ;;  %s3867_s12 = sphi %s3914_s12, %s5769_s12  }
   0x7   : > { %s45_s18 = ssub.s32 %s3879_s15, %s3935_s16  ;;  %p55_p0 = scmp.ne.s32.totalorder %s3875_s14, %s3871_s13 }
   0x8   : > { %p46_p1 = scmp.eq.s32.totalorder %s45_s18, 0  ;;  %p56_p2 = scmp.eq.s32.totalorder %s3879_s15, 0 }
   0x9   : > { %p3229_p4 = scmp.lt.s32.totalorder %s3879_s15, 2  ;;  %s150_s20 = sand.u32 1, %s3879_s15  }
   0xa   : > { %s3946_s19 = scalar_select %p46_p1, %s3875_s14, %s48_s17  }
   0xb   : > { %p57_p5 = por %p56_p2, %p55_p0  ;;  %s152_s21 = sand.u32 1, %s3875_s14  }
   0xc   : > { %s2989_s22 = sshll.u32 %s152_s21, 10  ;;  %s3007_s23 = sshll.u32 %s3879_s15, 9 }
   0xd   : > { %s3959_s26 = scalar_lea.hbm %s5743_s1, %s3007_s23  ;;  %s154_s27 = scalar_lea.vmem [#allocation5], %s2989_s22 }
   0xe   : > { %s161_s28 = sshll.u32 %s154_s27, 4  ;;  %p3961_p6 = pnand %p3229_p4, %p57_p5  ;;  %s3965_s28 = int_to_ptr.vmem [resolvable:$true] %s161_s28 }
   0xf   : > { %s3967_s30 = scalar_lea.sflag [#allocation6], %s150_s20  ;;  %s3721_s4 = scalar_lea.hbm %s3959_s26, 16384 }
  0x10   : > { %s5753_s29 = scalar_select %p3961_p6, 1, 0 }
  0x11   : > { %p3722_p7 = scmp.ne.s32.totalorder %s3959_s26, %s3721_s4  ;;  %p5747_p8 = pneg %p3961_p6 }
  0x12   : > { %s3726_s7 = scalar_lea.hbm %s5743_s1, 32768  ;;  %p3727_p11 = scmp.lt.u32.totalorder %s3959_s26, %s5743_s1 }
  0x13   : > { %p3724_p9 = pnand %p5747_p8, %p3722_p7  ;;  %p3728_p12 = scmp.lt.u32.totalorder %s3726_s7, %s3721_s4 }
  0x14   : > { %p3730_p1 = scmp.lt.u32.totalorder %s3721_s4, %s3959_s26 }
  0x15   : > { %p3725_p10 = pneg %p3724_p9  ;;  %p3729_p13 = por %p3728_p12, %p3727_p11 }
  0x17   : > { %p3731_p2 = por %p3730_p1, %p3729_p13 }
  0x19   : > { %p3732_p4 = pnand %p3731_p2, %p3725_p10 }
  0x1b   : > { %3735 = shalt.err (!%p3732_p4)
}
  0x1c   : > { %s3736_s10 = scalar_lea.vmem %s3965_s28, 16384  ;;  %s3881_s11 = smov [#allocation5]  }
  0x1d   : > { %p3737_p5 = scmp.ne.s32.totalorder %s3965_s28, %s3736_s10  ;;  %s3741_s17 = sshll.u32 %s3881_s11, 4  ;;  %s3742_s17 = int_to_ptr.vmem [resolvable:$false] %s3741_s17 }
  0x1e   : > { %s3743_s18 = scalar_lea.vmem %s3742_s17, 32768  ;;  %p3744_p3 = scmp.lt.s32.totalorder %s3965_s28, %s3742_s17 }
  0x1f   : > { %p3739_p7 = pnand %p3737_p5, %p5747_p8  ;;  %p3745_p11 = scmp.lt.s32.totalorder %s3743_s18, %s3736_s10 }
  0x21   : > { %p3740_p9 = pneg %p3739_p7  ;;  %p3746_p12 = por %p3745_p11, %p3744_p3 }
  0x23   : > { %p3747_p13 = pnand %p3746_p12, %p3740_p9 }
  0x25   : > { %3750 = shalt.err (!%p3747_p13)
}
  0x26   : > { %s3882_s20 = smov 1024   ;;  %s3883_s22 = smov 512  }
  0x27   : > { %s3884_s23 = smov 32   ;;  %s3996_s24 = sadd.s32 4294967295, %s3879_s15  }
  0x28   : > { %3220 = dma.hbm_to_vmem [thread:$0]  (!%p3961_p6), %s3959_s26, 16384, %s3965_s28, %s3967_s30, %s3882_s20, %s3883_s22, %s3884_s23  }
  0x29   : > { %s2985_s25 = sadd.s32 4294967294, %s3879_s15   ;;  %p61_p3 = scmp.ne.s32.totalorder %s3871_s13, %s3867_s12 }
  0x2a   : > { %p5746_p10 = scmp.eq.s32.totalorder %s3996_s24, 0  ;;  %p111_p1 = scmp.eq.s32.totalorder %s3996_s24, 1 }
  0x2b   : > { %p117_p2 = scmp.eq.s32.totalorder %s2985_s25, 1  ;;  %p2986_p4 = scmp.ge.s32.totalorder %s3879_s15, 1 }
  0x2c   : > { %p4006_p5 = por %p5746_p10, %p61_p3  ;;  %p4013_p7 = por %p111_p1, %p55_p0 }
  0x2d   : > { %p4017_p9 = por %p117_p2, %p61_p3  ;;  %p124_p11 = scmp.lt.s32.totalorder %s3879_s15, 3 }
  0x2e   : > { %s5754_s27 = scalar_select %p4006_p5, 1, 0 }
  0x2f   : > { %s5755_s26 = scalar_select %p4013_p7, 1, 0 }
  0x30   : > { %s5756_s28 = scalar_select %p4017_p9, 1, 0 }
  0x31   : > { %p4022_p12 = pnand %p2986_p4, %p124_p11  ;;  %s3885_s5 = smov [#allocation2]  }
  0x32   : > { %s136_s6 = sshll.u32 %s3885_s5, 4  ;;  %s2992_s7 = sshll.u32 %s152_s21, 2  ;;  %s4026_s6 = int_to_ptr.vmem [resolvable:$true] %s136_s6 }
  0x33   : > { %s5757_s4 = scalar_select %p4022_p12, 1, 0 }
  0x34   : > { %p3213_p13 = pneg %p4022_p12  ;;  %s3008_s8 = sshll.u32 %s3879_s15, 6 }
  0x35   : > { %s4042_s17 = scalar_lea.hbm %s5744_s2, %s3008_s8  ;;  %s175_s18 = scalar_lea.vmem [#allocation7], %s2992_s7 }
  0x36   : > { %p4035_p0 = pnand %p3213_p13, %p5746_p10  ;;  %s183_s20 = sshll.u32 %s175_s18, 4  ;;  %s4044_s20 = int_to_ptr.vmem [resolvable:$true] %s183_s20 }
  0x37   : > { %s3751_s21 = scalar_lea.hbm %s5742_s0, 12288 }
  0x38   : > { %p3752_p3 = scmp.ne.s32.totalorder %s5742_s0, %s3751_s21  ;;  %p3753_p1 = pneg %p4035_p0 }
  0x39   : > { %p3758_p11 = scmp.lt.u32.totalorder %s3751_s21, %s5742_s0 }
  0x3a   : > { %p3754_p2 = pnand %p3753_p1, %p3752_p3 }
  0x3c   : > { %p3755_p4 = pneg %p3754_p2 }
  0x3e   : > { %p3760_p13 = pnand %p3758_p11, %p3755_p4 }
  0x40   : > { %3763 = shalt.err (!%p3760_p13)
}
  0x41   : > { %s3764_s7 = scalar_lea.vmem %s4026_s6, 12288  ;;  %p3772_p7 = scmp.lt.s32.totalorder %s4026_s6, %s4026_s6 }
  0x42   : > { %p3765_p10 = scmp.ne.s32.totalorder %s4026_s6, %s3764_s7  ;;  %p3773_p5 = scmp.lt.s32.totalorder %s3764_s7, %s3764_s7 }
  0x44   : > { %p3767_p8 = pnand %p3765_p10, %p3753_p1  ;;  %p3774_p12 = por %p3773_p5, %p3772_p7 }
  0x46   : > { %p3768_p9 = pneg %p3767_p8 }
  0x48   : > { %p3775_p6 = pnand %p3774_p12, %p3768_p9 }
  0x4a   : > { %3778 = shalt.err (!%p3775_p6)
}
  0x4b   : > { %s3886_s8 = smov 256   ;;  %s3887_s18 = smov 16  }
  0x4c   : > { %3216 = dma.hbm_to_vmem [thread:$0]  (!%p4035_p0), %s5742_s0, 12288, %s4026_s6, [#allocation3], %s3886_s8, %s3886_s8, %s3887_s18  }
  0x4d   : > { %s3779_s21 = scalar_lea.hbm %s4042_s17, 64  ;;  %p5759_p10 = scmp.ne.s32.totalorder %s5753_s29, 0 }
  0x4e   : > { %p3780_p8 = scmp.ne.s32.totalorder %s4042_s17, %s3779_s21  ;;  %s3784_s10 = scalar_lea.hbm %s5744_s2, 128 }
  0x4f   : > { %p5760_p5 = pneg %p5759_p10  ;;  %p3785_p9 = scmp.lt.u32.totalorder %s4042_s17, %s5744_s2 }
  0x50   : > { %p3786_p12 = scmp.lt.u32.totalorder %s3784_s10, %s3779_s21  ;;  %p3788_p1 = scmp.lt.u32.totalorder %s3779_s21, %s4042_s17 }
  0x51   : > { %p3782_p7 = pnand %p3780_p8, %p5760_p5 }
  0x52   : > { %p3787_p3 = por %p3786_p12, %p3785_p9 }
  0x53   : > { %p3783_p6 = pneg %p3782_p7 }
  0x54   : > { %p3789_p2 = por %p3788_p1, %p3787_p3 }
  0x56   : > { %p3790_p4 = pnand %p3789_p2, %p3783_p6 }
  0x58   : > { %3793 = shalt.err (!%p3790_p4)
}
  0x59   : > { %s3794_s6 = scalar_lea.vmem %s4044_s20, 64  ;;  %p5761_p11 = pmov %p5760_p5 }
  0x5a   : > { %p3795_p0 = scmp.ne.s32.totalorder %s4044_s20, %s3794_s6  ;;  %s3888_s9 = smov [#allocation7]  }
  0x5b   : > { %s3799_s8 = sshll.u32 %s3888_s9, 4  ;;  %s3800_s8 = int_to_ptr.vmem [resolvable:$false] %s3799_s8 }
  0x5c   : > { %p3797_p13 = pnand %p3795_p0, %p5761_p11  ;;  %s3801_s18 = scalar_lea.vmem %s3800_s8, 128 }
  0x5d   : > { %p3802_p5 = scmp.lt.s32.totalorder %s4044_s20, %s3800_s8  ;;  %p3803_p7 = scmp.lt.s32.totalorder %s3801_s18, %s3794_s6 }
  0x5e   : > { %p3798_p8 = pneg %p3797_p13 }
  0x5f   : > { %p3804_p9 = por %p3803_p7, %p3802_p5 }
  0x61   : > { %p3805_p12 = pnand %p3804_p9, %p3798_p8 }
  0x63   : > { %3808 = shalt.err (!%p3805_p12)
}
  0x64   : > { %3223 = dma.hbm_to_vmem [thread:$0]  (!%p5759_p10), %s4042_s17, 64, %s4044_s20, %s3967_s30  }
  0x65   : > { %p5762_p6 = scmp.ne.s32.totalorder %s5757_s4, 0 }
  0x66   : > { %p5763_p3 = scmp.eq.s32.totalorder (!%p5762_p6), %s3996_s24, 0 }
  0x67   : > { %192 = sbr.rel (%p5762_p6) target bundleno = 811 (0x32b), region = 32 }
  0x6e   : > { %3854 = dma.done.wait (%p5763_p3), [#allocation3], 12288   ;;  %p5764_p1 = pmov %p5763_p3 }
  0x6f   : > { %s198_s22 = sand.u32 1, %s3996_s24   ;;  %s4099_s23 = sand.u32 1, %s3871_s13  }
  0x70   : > { %3856 = vsyncadd (%p5764_p1), [#allocation3], 4294955008  ;;  %s2997_s29 = sshll.u32 %s4099_s23, 10  ;;  %s199_s21 = scalar_lea.sflag [#allocation6], %s198_s22 }
  0x71   : > { %s4102_s25 = scalar_lea.vmem [#allocation5], %s2997_s29  ;;  %p5765_p10 = scmp.ne.s32.totalorder %s5754_s27, 0 }
  0x73   : > { %3858 = dma.done.wait (%p5765_p10), %s199_s21, 16448  }
  0x74   : > { %3860 = vsyncadd (%p5765_p10), %s199_s21, 4294950848  ;;  %v3889_v0 = vmov 0.0|0.0   ;;  %v338_v1 = vld [vmem:[%s4102_s25] sm:$0xff]  ;;  %v970_v3 = vld [vmem:[%s4102_s25 + $0x8] sm:$0xff]  ;;  %s2998_s30 = sshll.u32 %s4099_s23, 2  ;;  %s3202_s4 = smul.u32 1536, %s4099_s23 }
  0x75   : > { %3010 = vmatprep.subr.bf16.mxu0 %v3889_v0  ;;  %3058 = vmatprep.subr.bf16.mxu1 %v3889_v0  ;;  %v339_v2 = vld [vmem:[%s4102_s25 + $0x20] sm:$0xff]  ;;  %v971_v5 = vld [vmem:[%s4102_s25 + $0x28] sm:$0xff]  ;;  %s4479_s27 = scalar_lea.vmem [#allocation7], %s2998_s30  ;;  %s3009_s20 = sshll.u32 %s3996_s24, 9 }
  0x76   : > { %v3011_v4 = vpack.c.bf16 %v339_v2, %v338_v1  ;;  %v340_v6 = vld [vmem:[%s4102_s25 + $0x40] sm:$0xff]  ;;  %v3059_v8 = vpack.c.bf16 %v971_v5, %v970_v3  ;;  %v972_v9 = vld [vmem:[%s4102_s25 + $0x48] sm:$0xff]  ;;  %s4545_s17 = scalar_lea.vmem [#allocation8], %s3202_s4  ;;  %s5694_s7 = scalar_lea.hbm %s5745_s3, %s3009_s20 }
  0x77   : > { %v341_v7 = vld [vmem:[%s4102_s25 + $0x60] sm:$0xff]  ;;  %v973_v10 = vld [vmem:[%s4102_s25 + $0x68] sm:$0xff]  ;;  %s2880_s5 = sshll.u32 %s4545_s17, 4  ;;  %s2867_s24 = scalar_lea.sflag [#allocation4], %s4099_s23  ;;  %s5696_s5 = int_to_ptr.vmem [resolvable:$true] %s2880_s5 }
  0x78   : > { %3012 = vmatpush1.bf16.msra.mxu0 %v3011_v4  ;;  %v3014_v11 = vpack.c.bf16 %v341_v7, %v340_v6  ;;  %3060 = vmatpush1.bf16.msra.mxu1 %v3059_v8  ;;  %v3062_v12 = vpack.c.bf16 %v973_v10, %v972_v9  ;;  %v342_v13 = vld [vmem:[%s4102_s25 + $0x80] sm:$0xff]  ;;  %v974_v15 = vld [vmem:[%s4102_s25 + $0x88] sm:$0xff]  ;;  %s3809_s6 = scalar_lea.vmem %s5696_s5, 24576  ;;  %p5766_p4 = scmp.ne.s32.totalorder %s5755_s26, 0 }
  0x79   : > { %3013 = vmatprep.subr.bf16.mxu0 %v3889_v0  ;;  %v343_v14 = vld [vmem:[%s4102_s25 + $0xa0] sm:$0xff]  ;;  %3061 = vmatprep.subr.bf16.mxu1 %v3889_v0  ;;  %v975_v16 = vld [vmem:[%s4102_s25 + $0xa8] sm:$0xff]  ;;  %p3810_p2 = scmp.ne.s32.totalorder %s5696_s5, %s3809_s6  ;;  %s3890_s9 = smov [#allocation8]  }
  0x7a   : > { %v3017_v17 = vpack.c.bf16 %v343_v14, %v342_v13  ;;  %v3065_v18 = vpack.c.bf16 %v975_v16, %v974_v15  ;;  %v344_v19 = vld [vmem:[%s4102_s25 + $0xc0] sm:$0xff]  ;;  %v976_v21 = vld [vmem:[%s4102_s25 + $0xc8] sm:$0xff]  ;;  %s3813_s8 = sshll.u32 %s3890_s9, 4  ;;  %s3814_s8 = int_to_ptr.vmem [resolvable:$false] %s3813_s8 }
  0x7b   : > { %v345_v20 = vld [vmem:[%s4102_s25 + $0xe0] sm:$0xff]  ;;  %v977_v22 = vld [vmem:[%s4102_s25 + $0xe8] sm:$0xff]  ;;  %p3811_p0 = pnand %p3810_p2, %p5766_p4  ;;  %s3815_s18 = scalar_lea.vmem %s3814_s8, 49152 }
  0x7c   : > { %3015 = vmatpush1.bf16.msra.mxu0 %v3014_v11  ;;  %3063 = vmatpush1.bf16.msra.mxu1 %v3062_v12  ;;  %v3020_v23 = vpack.c.bf16 %v345_v20, %v344_v19  ;;  %v3068_v24 = vpack.c.bf16 %v977_v22, %v976_v21  ;;  %v346_v25 = vld [vmem:[%s4102_s25 + $0x100] sm:$0xff]  ;;  %v978_v27 = vld [vmem:[%s4102_s25 + $0x108] sm:$0xff]  ;;  %p3816_p13 = scmp.lt.s32.totalorder %s5696_s5, %s3814_s8  ;;  %p3817_p8 = scmp.lt.s32.totalorder %s3815_s18, %s3809_s6 }
  0x7d   : > { %3016 = vmatprep.subr.bf16.mxu0 %v3889_v0  ;;  %3064 = vmatprep.subr.bf16.mxu1 %v3889_v0  ;;  %v347_v26 = vld [vmem:[%s4102_s25 + $0x120] sm:$0xff]  ;;  %v979_v28 = vld [vmem:[%s4102_s25 + $0x128] sm:$0xff]  ;;  %p3812_p11 = pneg %p3811_p0 }
  0x7e   : > { %v3023_v29 = vpack.c.bf16 %v347_v26, %v346_v25  ;;  %v3071_v30 = vpack.c.bf16 %v979_v28, %v978_v27  ;;  %v348_v31 = vld [vmem:[%s4102_s25 + $0x140] sm:$0xff]  ;;  %v980_v33 = vld [vmem:[%s4102_s25 + $0x148] sm:$0xff]  ;;  %p3818_p5 = por %p3817_p8, %p3816_p13 }
  0x7f   : > { %v349_v32 = vld [vmem:[%s4102_s25 + $0x160] sm:$0xff]  ;;  %v981_v34 = vld [vmem:[%s4102_s25 + $0x168] sm:$0xff] }
  0x80   : > { %3018 = vmatpush1.bf16.msra.mxu0 %v3017_v17  ;;  %3066 = vmatpush1.bf16.msra.mxu1 %v3065_v18  ;;  %v3026_v35 = vpack.c.bf16 %v349_v32, %v348_v31  ;;  %v3074_v36 = vpack.c.bf16 %v981_v34, %v980_v33  ;;  %v350_v37 = vld [vmem:[%s4102_s25 + $0x180] sm:$0xff]  ;;  %v982_v39 = vld [vmem:[%s4102_s25 + $0x188] sm:$0xff]  ;;  %p3819_p7 = pnand %p3818_p5, %p3812_p11 }
  0x81   : > { %3019 = vmatprep.subr.bf16.mxu0 %v3889_v0  ;;  %3067 = vmatprep.subr.bf16.mxu1 %v3889_v0  ;;  %v351_v38 = vld [vmem:[%s4102_s25 + $0x1a0] sm:$0xff]  ;;  %v983_v40 = vld [vmem:[%s4102_s25 + $0x1a8] sm:$0xff] }
  0x82   : > { %v243_v41 = vld [vmem:[#allocation2 + $0x8] sm:$0xff]  ;;  %v3029_v42 = vpack.c.bf16 %v351_v38, %v350_v37  ;;  %v3077_v43 = vpack.c.bf16 %v983_v40, %v982_v39  ;;  %v352_v44 = vld [vmem:[%s4102_s25 + $0x1c0] sm:$0xff]  ;;  %v2234_v37 = vld [vmem:[%s4102_s25 + $0x18] sm:$0xff] }
  0x83   : > { %441 = vmatprep.mubr.f32.mxu0 %v243_v41  ;;  %1073 = vmatprep.mubr.f32.mxu1 %v243_v41  ;;  %v353_v45 = vld [vmem:[%s4102_s25 + $0x1e0] sm:$0xff]  ;;  %v984_v46 = vld [vmem:[%s4102_s25 + $0x1c8] sm:$0xff]  ;;  %v2235_v38 = vld [vmem:[%s4102_s25 + $0x38] sm:$0xff] }
  0x84   : > { %3021 = vmatpush1.bf16.msra.mxu0 %v3020_v23  ;;  %3069 = vmatpush1.bf16.msra.mxu1 %v3068_v24  ;;  %v985_v47 = vld [vmem:[%s4102_s25 + $0x1e8] sm:$0xff]  ;;  %v3032_v48 = vpack.c.bf16 %v353_v45, %v352_v44  ;;  %v354_v50 = vld [vmem:[%s4102_s25 + $0x200] sm:$0xff]  ;;  %v3155_v41 = vpack.c.bf16 %v2235_v38, %v2234_v37  ;;  %v1605_v44 = vld [vmem:[%s4102_s25 + $0x70] sm:$0xff] }
  0x85   : > { %3022 = vmatprep.subr.bf16.mxu0 %v3889_v0  ;;  %3070 = vmatprep.subr.bf16.mxu1 %v3889_v0  ;;  %v3080_v49 = vpack.c.bf16 %v985_v47, %v984_v46  ;;  %v355_v51 = vld [vmem:[%s4102_s25 + $0x220] sm:$0xff]  ;;  %v986_v52 = vld [vmem:[%s4102_s25 + $0x208] sm:$0xff]  ;;  %v2236_v45 = vld [vmem:[%s4102_s25 + $0x58] sm:$0xff] }
  0x86   : > { %v987_v53 = vld [vmem:[%s4102_s25 + $0x228] sm:$0xff]  ;;  %v3035_v54 = vpack.c.bf16 %v355_v51, %v354_v50  ;;  %v356_v56 = vld [vmem:[%s4102_s25 + $0x240] sm:$0xff]  ;;  %v2237_v46 = vld [vmem:[%s4102_s25 + $0x78] sm:$0xff] }
  0x87   : > { %v3083_v55 = vpack.c.bf16 %v987_v53, %v986_v52  ;;  %v357_v57 = vld [vmem:[%s4102_s25 + $0x260] sm:$0xff]  ;;  %v988_v58 = vld [vmem:[%s4102_s25 + $0x248] sm:$0xff]  ;;  %v4220_v47 = vld [vmem:[#allocation2 + $0x10] sm:$0xff]  ;;  %v3158_v50 = vpack.c.bf16 %v2237_v46, %v2236_v45 }
  0x88   : > { %3024 = vmatpush1.bf16.msra.mxu0 %v3023_v29  ;;  %3072 = vmatpush1.bf16.msra.mxu1 %v3071_v30  ;;  %v989_v59 = vld [vmem:[%s4102_s25 + $0x268] sm:$0xff]  ;;  %v3038_v60 = vpack.c.bf16 %v357_v57, %v356_v56  ;;  %v358_v62 = vld [vmem:[%s4102_s25 + $0x280] sm:$0xff]  ;;  %v1606_v51 = vld [vmem:[%s4102_s25 + $0x90] sm:$0xff] }
  0x89   : > { %3025 = vmatprep.subr.bf16.mxu0 %v3889_v0  ;;  %3073 = vmatprep.subr.bf16.mxu1 %v3889_v0  ;;  %v3086_v61 = vpack.c.bf16 %v989_v59, %v988_v58  ;;  %v359_v63 = vld [vmem:[%s4102_s25 + $0x2a0] sm:$0xff]  ;;  %v990_v1 = vld [vmem:[%s4102_s25 + $0x288] sm:$0xff]  ;;  %v1607_v52 = vld [vmem:[%s4102_s25 + $0xb0] sm:$0xff] }
  0x8a   : > { %v991_v2 = vld [vmem:[%s4102_s25 + $0x2a8] sm:$0xff]  ;;  %v3041_v3 = vpack.c.bf16 %v359_v63, %v358_v62  ;;  %v360_v5 = vld [vmem:[%s4102_s25 + $0x2c0] sm:$0xff]  ;;  %v2238_v53 = vld [vmem:[%s4102_s25 + $0x98] sm:$0xff]  ;;  %v3113_v57 = vpack.c.bf16 %v1607_v52, %v1606_v51 }
  0x8b   : > { %v3089_v4 = vpack.c.bf16 %v991_v2, %v990_v1  ;;  %v361_v6 = vld [vmem:[%s4102_s25 + $0x2e0] sm:$0xff]  ;;  %v992_v7 = vld [vmem:[%s4102_s25 + $0x2c8] sm:$0xff]  ;;  %v4238_v56 = vld [vmem:[#allocation2 + $0x38] sm:$0xff] }
  0x8c   : > { %3027 = vmatpush1.bf16.msra.mxu0 %v3026_v35  ;;  %3075 = vmatpush1.bf16.msra.mxu1 %v3074_v36  ;;  %v993_v8 = vld [vmem:[%s4102_s25 + $0x2e8] sm:$0xff]  ;;  %v3044_v9 = vpack.c.bf16 %v361_v6, %v360_v5  ;;  %v362_v11 = vld [vmem:[%s4102_s25 + $0x300] sm:$0xff]  ;;  %v1602_v35 = vld [vmem:[%s4102_s25 + $0x10] sm:$0xff] }
  0x8d   : > { %3028 = vmatprep.subr.bf16.mxu0 %v3889_v0  ;;  %3076 = vmatprep.subr.bf16.mxu1 %v3889_v0  ;;  %v3092_v10 = vpack.c.bf16 %v993_v8, %v992_v7  ;;  %v363_v12 = vld [vmem:[%s4102_s25 + $0x320] sm:$0xff]  ;;  %v994_v13 = vld [vmem:[%s4102_s25 + $0x308] sm:$0xff]  ;;  %v1603_v36 = vld [vmem:[%s4102_s25 + $0x30] sm:$0xff] }
  0x8e   : > { %v995_v14 = vld [vmem:[%s4102_s25 + $0x328] sm:$0xff]  ;;  %v3047_v15 = vpack.c.bf16 %v363_v12, %v362_v11  ;;  %v364_v17 = vld [vmem:[%s4102_s25 + $0x340] sm:$0xff]  ;;  %v3107_v40 = vpack.c.bf16 %v1603_v36, %v1602_v35  ;;  %v1608_v59 = vld [vmem:[%s4102_s25 + $0xd0] sm:$0xff] }
  0x8f   : > { %v3095_v16 = vpack.c.bf16 %v995_v14, %v994_v13  ;;  %v365_v18 = vld [vmem:[%s4102_s25 + $0x360] sm:$0xff]  ;;  %v996_v19 = vld [vmem:[%s4102_s25 + $0x348] sm:$0xff]  ;;  %v2241_v62 = vld [vmem:[%s4102_s25 + $0xf8] sm:$0xff] }
  0x90   : > { %3030 = vmatpush1.bf16.msra.mxu0 %v3029_v42  ;;  %3078 = vmatpush1.bf16.msra.mxu1 %v3077_v43  ;;  %v997_v20 = vld [vmem:[%s4102_s25 + $0x368] sm:$0xff]  ;;  %v3050_v21 = vpack.c.bf16 %v365_v18, %v364_v17  ;;  %v366_v23 = vld [vmem:[%s4102_s25 + $0x380] sm:$0xff]  ;;  %v4212_v42 = vld [vmem:[#allocation2 + $0x18] sm:$0xff] }
  0x91   : > { %3031 = vmatprep.subr.bf16.mxu0 %v3889_v0  ;;  %3079 = vmatprep.subr.bf16.mxu1 %v3889_v0  ;;  %v3098_v22 = vpack.c.bf16 %v997_v20, %v996_v19  ;;  %v367_v24 = vld [vmem:[%s4102_s25 + $0x3a0] sm:$0xff]  ;;  %v998_v25 = vld [vmem:[%s4102_s25 + $0x388] sm:$0xff]  ;;  %v1604_v43 = vld [vmem:[%s4102_s25 + $0x50] sm:$0xff] }
  0x92   : > { %v999_v26 = vld [vmem:[%s4102_s25 + $0x3a8] sm:$0xff]  ;;  %v3053_v27 = vpack.c.bf16 %v367_v24, %v366_v23  ;;  %v368_v29 = vld [vmem:[%s4102_s25 + $0x3c0] sm:$0xff]  ;;  %v4249_v63 = vld [vmem:[#allocation2 + $0x30] sm:$0xff] }
  0x93   : > { %v3101_v28 = vpack.c.bf16 %v999_v26, %v998_v25  ;;  %v369_v30 = vld [vmem:[%s4102_s25 + $0x3e0] sm:$0xff]  ;;  %v1000_v31 = vld [vmem:[%s4102_s25 + $0x3c8] sm:$0xff]  ;;  %v1611_v5 = vld [vmem:[%s4102_s25 + $0x130] sm:$0xff] }
  0x94   : > { %3033 = vmatpush1.bf16.msra.mxu0 %v3032_v48  ;;  %3081 = vmatpush1.bf16.msra.mxu1 %v3080_v49  ;;  %v1001_v32 = vld [vmem:[%s4102_s25 + $0x3e8] sm:$0xff]  ;;  %v3056_v33 = vpack.c.bf16 %v369_v30, %v368_v29  ;;  %v4208_v39 = vld [vmem:[#allocation2] sm:$0xff]  ;;  %v3110_v49 = vpack.c.bf16 %v1605_v44, %v1604_v43  ;;  %v2242_v6 = vld [vmem:[%s4102_s25 + $0x118] sm:$0xff] }
  0x95   : > { %3034 = vmatprep.subr.bf16.mxu0 %v3889_v0  ;;  %3082 = vmatprep.subr.bf16.mxu1 %v3889_v0  ;;  %v3104_v34 = vpack.c.bf16 %v1001_v32, %v1000_v31  ;;  %v4223_v48 = vld [vmem:[#allocation2 + $0x28] sm:$0xff]  ;;  %v2243_v7 = vld [vmem:[%s4102_s25 + $0x138] sm:$0xff]  ;;  %v4263_v8 = vld [vmem:[#allocation2 + $0x40] sm:$0xff] }
  0x96   : > { %v4252_v1 = vld [vmem:[#allocation2 + $0x48] sm:$0xff]  ;;  %v3167_v11 = vpack.c.bf16 %v2243_v7, %v2242_v6  ;;  %v1612_v12 = vld [vmem:[%s4102_s25 + $0x150] sm:$0xff]  ;;  %v2244_v14 = vld [vmem:[%s4102_s25 + $0x158] sm:$0xff] }
  0x97   : > { %v1613_v13 = vld [vmem:[%s4102_s25 + $0x170] sm:$0xff]  ;;  %v4280_v17 = vld [vmem:[#allocation2 + $0x68] sm:$0xff]  ;;  %v2247_v23 = vld [vmem:[%s4102_s25 + $0x1b8] sm:$0xff] }
  0x98   : > { %3036 = vmatpush1.bf16.msra.mxu0 %v3035_v54  ;;  %3084 = vmatpush1.bf16.msra.mxu1 %v3083_v55  ;;  %v2239_v54 = vld [vmem:[%s4102_s25 + $0xb8] sm:$0xff]  ;;  %v4235_v55 = vld [vmem:[#allocation2 + $0x20] sm:$0xff]  ;;  %v3122_v18 = vpack.c.bf16 %v1613_v13, %v1612_v12  ;;  %v1614_v20 = vld [vmem:[%s4102_s25 + $0x190] sm:$0xff] }
  0x99   : > { %3037 = vmatprep.subr.bf16.mxu0 %v3889_v0  ;;  %3085 = vmatprep.subr.bf16.mxu1 %v3889_v0  ;;  %v3161_v58 = vpack.c.bf16 %v2239_v54, %v2238_v53  ;;  %v4291_v24 = vld [vmem:[#allocation2 + $0x60] sm:$0xff]  ;;  %v4294_v25 = vld [vmem:[#allocation2 + $0x78] sm:$0xff]  ;;  %v1617_v29 = vld [vmem:[%s4102_s25 + $0x1f0] sm:$0xff] }
  0x9a   : > { %v2248_v30 = vld [vmem:[%s4102_s25 + $0x1d8] sm:$0xff]  ;;  %v4305_v32 = vld [vmem:[#allocation2 + $0x70] sm:$0xff]  ;;  %v4336_v53 = vld [vmem:[#allocation2 + $0xa8] sm:$0xff] }
  0x9b   : > { %v2249_v31 = vld [vmem:[%s4102_s25 + $0x1f8] sm:$0xff]  ;;  %v1618_v36 = vld [vmem:[%s4102_s25 + $0x210] sm:$0xff]  ;;  %v4364_v12 = vld [vmem:[#allocation2 + $0xc8] sm:$0xff] }
  0x9c   : > { %3039 = vmatpush1.bf16.msra.mxu0 %v3038_v60  ;;  %3087 = vmatpush1.bf16.msra.mxu1 %v3086_v61  ;;  %v1609_v60 = vld [vmem:[%s4102_s25 + $0xf0] sm:$0xff]  ;;  %v2240_v61 = vld [vmem:[%s4102_s25 + $0xd8] sm:$0xff]  ;;  %v3176_v35 = vpack.c.bf16 %v2249_v31, %v2248_v30 }
  0x9d   : > { %3040 = vmatprep.subr.bf16.mxu0 %v3889_v0  ;;  %3088 = vmatprep.subr.bf16.mxu1 %v3889_v0  ;;  %v3116_v2 = vpack.c.bf16 %v1609_v60, %v1608_v59  ;;  %v1619_v37 = vld [vmem:[%s4102_s25 + $0x230] sm:$0xff]  ;;  %v2250_v38 = vld [vmem:[%s4102_s25 + $0x218] sm:$0xff] }
  0x9e   : > { %v4322_v43 = vld [vmem:[#allocation2 + $0x98] sm:$0xff]  ;;  %v3131_v44 = vpack.c.bf16 %v1619_v37, %v1618_v36  ;;  %v1620_v46 = vld [vmem:[%s4102_s25 + $0x250] sm:$0xff] }
  0x9f   : > { %v2253_v51 = vld [vmem:[%s4102_s25 + $0x278] sm:$0xff]  ;;  %v4333_v52 = vld [vmem:[#allocation2 + $0x90] sm:$0xff] }
  0xa0   : > { %3042 = vmatpush1.bf16.msra.mxu0 %v3041_v3  ;;  %3090 = vmatpush1.bf16.msra.mxu1 %v3089_v4  ;;  %v3164_v3 = vpack.c.bf16 %v2241_v62, %v2240_v61  ;;  %v1610_v4 = vld [vmem:[%s4102_s25 + $0x110] sm:$0xff]  ;;  %v2254_v60 = vld [vmem:[%s4102_s25 + $0x298] sm:$0xff]  ;;  %v4347_v62 = vld [vmem:[#allocation2 + $0xa0] sm:$0xff] }
  0xa1   : > { %3043 = vmatprep.subr.bf16.mxu0 %v3889_v0  ;;  %3091 = vmatprep.subr.bf16.mxu1 %v3889_v0  ;;  %v1623_v59 = vld [vmem:[%s4102_s25 + $0x2b0] sm:$0xff]  ;;  %v2255_v61 = vld [vmem:[%s4102_s25 + $0x2b8] sm:$0xff] }
  0xa2   : > { %v1625_v6 = vld [vmem:[%s4102_s25 + $0x2f0] sm:$0xff]  ;;  %v2256_v7 = vld [vmem:[%s4102_s25 + $0x2d8] sm:$0xff] }
  0xa3   : > { %v2261_v30 = vld [vmem:[%s4102_s25 + $0x378] sm:$0xff]  ;;  %v4389_v31 = vld [vmem:[#allocation2 + $0xd0] sm:$0xff] }
  0xa4   : > { %3045 = vmatpush1.bf16.msra.mxu0 %v3044_v9  ;;  %3093 = vmatpush1.bf16.msra.mxu1 %v3092_v10  ;;  %v4266_v9 = vld [vmem:[#allocation2 + $0x58] sm:$0xff]  ;;  %v3119_v10 = vpack.c.bf16 %v1611_v5, %v1610_v4  ;;  %v3185_v4 = vpack.c.bf16 %v2255_v61, %v2254_v60  ;;  %v1624_v5 = vld [vmem:[%s4102_s25 + $0x2d0] sm:$0xff]  ;;  %v4420_v60 = vld [vmem:[#allocation2 + $0x108] sm:$0xff] }
  0xa5   : > { %3046 = vmatprep.subr.bf16.mxu0 %v3889_v0  ;;  %3094 = vmatprep.subr.bf16.mxu1 %v3889_v0  ;;  %v3140_v13 = vpack.c.bf16 %v1625_v6, %v1624_v5  ;;  %v1630_v37 = vld [vmem:[%s4102_s25 + $0x390] sm:$0xff]  ;;  %v4430_v5 = vld [vmem:[#allocation2 + $0x118] sm:$0xff] }
  0xa6   : > { %v4435_v6 = vld [vmem:[#allocation2 + $0x110] sm:$0xff] }
  0xa8   : > { %3048 = vmatpush1.bf16.msra.mxu0 %v3047_v15  ;;  %3096 = vmatpush1.bf16.msra.mxu1 %v3095_v16  ;;  %v2245_v15 = vld [vmem:[%s4102_s25 + $0x178] sm:$0xff]  ;;  %v4277_v16 = vld [vmem:[#allocation2 + $0x50] sm:$0xff] }
  0xa9   : > { %3049 = vmatprep.subr.bf16.mxu0 %v3889_v0  ;;  %3097 = vmatprep.subr.bf16.mxu1 %v3889_v0  ;;  %v3170_v19 = vpack.c.bf16 %v2245_v15, %v2244_v14  ;;  %v1626_v15 = vld [vmem:[%s4102_s25 + $0x310] sm:$0xff] }
  0xac   : > { %3051 = vmatpush1.bf16.msra.mxu0 %v3050_v21  ;;  %3099 = vmatpush1.bf16.msra.mxu1 %v3098_v22  ;;  %v1615_v21 = vld [vmem:[%s4102_s25 + $0x1b0] sm:$0xff]  ;;  %v2246_v22 = vld [vmem:[%s4102_s25 + $0x198] sm:$0xff] }
  0xad   : > { %3052 = vmatprep.subr.bf16.mxu0 %v3889_v0  ;;  %3100 = vmatprep.subr.bf16.mxu1 %v3889_v0  ;;  %v3125_v26 = vpack.c.bf16 %v1615_v21, %v1614_v20  ;;  %v2259_v20 = vld [vmem:[%s4102_s25 + $0x338] sm:$0xff]  ;;  %v4375_v21 = vld [vmem:[#allocation2 + $0xc0] sm:$0xff] }
  0xb0   : > { %3054 = vmatpush1.bf16.msra.mxu0 %v3053_v27  ;;  %3102 = vmatpush1.bf16.msra.mxu1 %v3101_v28  ;;  %v3173_v27 = vpack.c.bf16 %v2247_v23, %v2246_v22  ;;  %v1616_v28 = vld [vmem:[%s4102_s25 + $0x1d0] sm:$0xff]  ;;  %v4378_v22 = vld [vmem:[#allocation2 + $0xd8] sm:$0xff] }
  0xb1   : > { %3055 = vmatprep.subr.bf16.mxu0 %v3889_v0  ;;  %3103 = vmatprep.subr.bf16.mxu1 %v3889_v0 }
  0xb4   : > { %3057 = vmatpush1.bf16.msra.mxu0 %v3056_v33  ;;  %3105 = vmatpush1.bf16.msra.mxu1 %v3104_v34  ;;  %v4308_v33 = vld [vmem:[#allocation2 + $0x88] sm:$0xff]  ;;  %v3128_v34 = vpack.c.bf16 %v1617_v29, %v1616_v28  ;;  %v1629_v28 = vld [vmem:[%s4102_s25 + $0x370] sm:$0xff]  ;;  %v2260_v29 = vld [vmem:[%s4102_s25 + $0x358] sm:$0xff] }
  0xb5   : > { %3106 = vmatprep.subr.bf16.mxu0 %v3889_v0  ;;  %3154 = vmatprep.subr.bf16.mxu1 %v3889_v0  ;;  %v3194_v36 = vpack.c.bf16 %v2261_v30, %v2260_v29  ;;  %v290_v29 = vld [vmem:[#allocation2 + $0x180] sm:$0xff]  ;;  %v293_v30 = vld [vmem:[#allocation2 + $0x198] sm:$0xff] }
  0xb7   : > { %442 = vmatmul.mubr.f32.vlgmr.msra.gmra.mrb[0].mxu0 %v4208_v39  ;;  %1074 = vmatmul.mubr.f32.vlgmr.msra.gmra.mrb[0].mxu1 %v4208_v39 }
  0xb8   : > { %3108 = vmatpush1.bf16.msra.mxu0 %v3107_v40  ;;  %3156 = vmatpush1.bf16.msra.mxu1 %v3155_v41  ;;  %v2251_v40 = vld [vmem:[%s4102_s25 + $0x238] sm:$0xff]  ;;  %v4319_v41 = vld [vmem:[#allocation2 + $0x80] sm:$0xff] }
  0xb9   : > { %446 = vmatprep.mubr.f32.mxu0 %v4212_v42  ;;  %1078 = vmatprep.mubr.f32.mxu1 %v4212_v42  ;;  %v3179_v45 = vpack.c.bf16 %v2251_v40, %v2250_v38  ;;  %v1631_v38 = vld [vmem:[%s4102_s25 + $0x3b0] sm:$0xff]  ;;  %v2262_v40 = vld [vmem:[%s4102_s25 + $0x398] sm:$0xff] }
  0xba   : > { %3109 = vmatprep.subr.bf16.mxu0 %v3889_v0  ;;  %3157 = vmatprep.subr.bf16.mxu1 %v3889_v0 }
  0xbb   : > { %447 = vmatmul.mubr.f32.gmra.mrb[2].mxu0 %v4220_v47  ;;  %1079 = vmatmul.mubr.f32.gmra.mrb[2].mxu1 %v4220_v47 }
  0xbc   : > { %451 = vmatprep.mubr.f32.mxu0 %v4223_v48  ;;  %1083 = vmatprep.mubr.f32.mxu1 %v4223_v48 }
  0xbd   : > { %3111 = vmatpush1.bf16.msra.mxu0 %v3110_v49  ;;  %3159 = vmatpush1.bf16.msra.mxu1 %v3158_v50  ;;  %v1621_v49 = vld [vmem:[%s4102_s25 + $0x270] sm:$0xff]  ;;  %v2252_v50 = vld [vmem:[%s4102_s25 + $0x258] sm:$0xff] }
  0xbe   : > { %3112 = vmatprep.subr.bf16.mxu0 %v3889_v0  ;;  %3160 = vmatprep.subr.bf16.mxu1 %v3889_v0  ;;  %v3134_v54 = vpack.c.bf16 %v1621_v49, %v1620_v46  ;;  %v4406_v46 = vld [vmem:[#allocation2 + $0xf8] sm:$0xff]  ;;  %v3149_v49 = vpack.c.bf16 %v1631_v38, %v1630_v37  ;;  %v294_v37 = vld [vmem:[#allocation2 + $0x1a0] sm:$0xff] }
  0xbf   : > { %452 = vmatmul.mubr.f32.gmra.mrb[4].mxu0 %v4235_v55  ;;  %1084 = vmatmul.mubr.f32.gmra.mrb[4].mxu1 %v4235_v55  ;;  %v297_v38 = vld [vmem:[#allocation2 + $0x1b8] sm:$0xff] }
  0xc0   : > { %456 = vmatprep.mubr.f32.mxu0 %v4238_v56  ;;  %1088 = vmatprep.mubr.f32.mxu1 %v4238_v56 }
  0xc1   : > { %3114 = vmatpush1.bf16.msra.mxu0 %v3113_v57  ;;  %3162 = vmatpush1.bf16.msra.mxu1 %v3161_v58  ;;  %v3182_v57 = vpack.c.bf16 %v2253_v51, %v2252_v50  ;;  %v1622_v58 = vld [vmem:[%s4102_s25 + $0x290] sm:$0xff] }
  0xc2   : > { %3115 = vmatprep.subr.bf16.mxu0 %v3889_v0  ;;  %3163 = vmatprep.subr.bf16.mxu1 %v3889_v0  ;;  %v1632_v51 = vld [vmem:[%s4102_s25 + $0x3d0] sm:$0xff] }
  0xc3   : > { %457 = vmatmul.mubr.f32.gmra.mrb[6].mxu0 %v4249_v63  ;;  %1089 = vmatmul.mubr.f32.gmra.mrb[6].mxu1 %v4249_v63 }
  0xc4   : > { %461 = vmatprep.mubr.f32.mxu0 %v4252_v1  ;;  %1093 = vmatprep.mubr.f32.mxu1 %v4252_v1 }
  0xc5   : > { %3117 = vmatpush1.bf16.msra.mxu0 %v3116_v2  ;;  %3165 = vmatpush1.bf16.msra.mxu1 %v3164_v3  ;;  %v4350_v2 = vld [vmem:[#allocation2 + $0xb8] sm:$0xff]  ;;  %v3137_v3 = vpack.c.bf16 %v1623_v59, %v1622_v58  ;;  %v4417_v59 = vld [vmem:[#allocation2 + $0xf0] sm:$0xff] }
  0xc6   : > { %3118 = vmatprep.subr.bf16.mxu0 %v3889_v0  ;;  %3166 = vmatprep.subr.bf16.mxu1 %v3889_v0  ;;  %v2265_v58 = vld [vmem:[%s4102_s25 + $0x3f8] sm:$0xff] }
  0xc7   : > { %462 = vmatmul.mubr.f32.gmra.mrb[8].mxu0 %v4263_v8  ;;  %1094 = vmatmul.mubr.f32.gmra.mrb[8].mxu1 %v4263_v8 }
  0xc8   : > { %466 = vmatprep.mubr.f32.mxu0 %v4266_v9  ;;  %1098 = vmatprep.mubr.f32.mxu1 %v4266_v9 }
  0xc9   : > { %3120 = vmatpush1.bf16.msra.mxu0 %v3119_v10  ;;  %3168 = vmatpush1.bf16.msra.mxu1 %v3167_v11  ;;  %v2257_v10 = vld [vmem:[%s4102_s25 + $0x2f8] sm:$0xff]  ;;  %v4361_v11 = vld [vmem:[#allocation2 + $0xb0] sm:$0xff] }
  0xca   : > { %3121 = vmatprep.subr.bf16.mxu0 %v3889_v0  ;;  %3169 = vmatprep.subr.bf16.mxu1 %v3889_v0  ;;  %v3188_v14 = vpack.c.bf16 %v2257_v10, %v2256_v7  ;;  %v4443_v7 = vld [vmem:[#allocation2 + $0x120] sm:$0xff]  ;;  %v4446_v10 = vld [vmem:[#allocation2 + $0x138] sm:$0xff] }
  0xcb   : > { %467 = vmatmul.mubr.f32.gmra.mrb[10].mxu0 %v4277_v16  ;;  %1099 = vmatmul.mubr.f32.gmra.mrb[10].mxu1 %v4277_v16 }
  0xcc   : > { %471 = vmatprep.mubr.f32.mxu0 %v4280_v17  ;;  %1103 = vmatprep.mubr.f32.mxu1 %v4280_v17 }
  0xcd   : > { %3123 = vmatpush1.bf16.msra.mxu0 %v3122_v18  ;;  %3171 = vmatpush1.bf16.msra.mxu1 %v3170_v19  ;;  %v1627_v18 = vld [vmem:[%s4102_s25 + $0x330] sm:$0xff]  ;;  %v2258_v19 = vld [vmem:[%s4102_s25 + $0x318] sm:$0xff] }
  0xce   : > { %3124 = vmatprep.subr.bf16.mxu0 %v3889_v0  ;;  %3172 = vmatprep.subr.bf16.mxu1 %v3889_v0  ;;  %v3143_v23 = vpack.c.bf16 %v1627_v18, %v1626_v15  ;;  %v282_v15 = vld [vmem:[#allocation2 + $0x140] sm:$0xff]  ;;  %v285_v18 = vld [vmem:[#allocation2 + $0x158] sm:$0xff] }
  0xcf   : > { %472 = vmatmul.mubr.f32.gmra.mrb[12].mxu0 %v4291_v24  ;;  %1104 = vmatmul.mubr.f32.gmra.mrb[12].mxu1 %v4291_v24 }
  0xd0   : > { %476 = vmatprep.mubr.f32.mxu0 %v4294_v25  ;;  %1108 = vmatprep.mubr.f32.mxu1 %v4294_v25 }
  0xd1   : > { %3126 = vmatpush1.bf16.msra.mxu0 %v3125_v26  ;;  %3174 = vmatpush1.bf16.msra.mxu1 %v3173_v27  ;;  %v3191_v26 = vpack.c.bf16 %v2259_v20, %v2258_v19  ;;  %v1628_v27 = vld [vmem:[%s4102_s25 + $0x350] sm:$0xff]  ;;  %v287_v20 = vld [vmem:[#allocation2 + $0x168] sm:$0xff] }
  0xd2   : > { %3127 = vmatprep.subr.bf16.mxu0 %v3889_v0  ;;  %3175 = vmatprep.subr.bf16.mxu1 %v3889_v0  ;;  %v284_v19 = vld [vmem:[#allocation2 + $0x150] sm:$0xff] }
  0xd3   : > { %477 = vmatmul.mubr.f32.gmra.mrb[14].mxu0 %v4305_v32  ;;  %1109 = vmatmul.mubr.f32.gmra.mrb[14].mxu1 %v4305_v32 }
  0xd4   : > { %481 = vmatprep.mubr.f32.mxu0 %v4308_v33  ;;  %1113 = vmatprep.mubr.f32.mxu1 %v4308_v33 }
  0xd5   : > { %3129 = vmatpush1.bf16.msra.mxu0 %v3128_v34  ;;  %3177 = vmatpush1.bf16.msra.mxu1 %v3176_v35  ;;  %v4392_v34 = vld [vmem:[#allocation2 + $0xe8] sm:$0xff]  ;;  %v3146_v35 = vpack.c.bf16 %v1629_v28, %v1628_v27  ;;  %v288_v27 = vld [vmem:[#allocation2 + $0x170] sm:$0xff] }
  0xd6   : > { %3130 = vmatprep.subr.bf16.mxu0 %v3889_v0  ;;  %3178 = vmatprep.subr.bf16.mxu1 %v3889_v0  ;;  %v291_v28 = vld [vmem:[#allocation2 + $0x188] sm:$0xff] }
  0xd7   : > { %482 = vmatmul.mubr.f32.gmra.mrb[16].mxu0 %v4319_v41  ;;  %1114 = vmatmul.mubr.f32.gmra.mrb[16].mxu1 %v4319_v41 }
  0xd8   : > { %486 = vmatprep.mubr.f32.mxu0 %v4322_v43  ;;  %1118 = vmatprep.mubr.f32.mxu1 %v4322_v43 }
  0xd9   : > { %3132 = vmatpush1.bf16.msra.mxu0 %v3131_v44  ;;  %3180 = vmatpush1.bf16.msra.mxu1 %v3179_v45  ;;  %v2263_v44 = vld [vmem:[%s4102_s25 + $0x3b8] sm:$0xff]  ;;  %v4403_v45 = vld [vmem:[#allocation2 + $0xe0] sm:$0xff] }
  0xda   : > { %3133 = vmatprep.subr.bf16.mxu0 %v3889_v0  ;;  %3181 = vmatprep.subr.bf16.mxu1 %v3889_v0  ;;  %v3197_v50 = vpack.c.bf16 %v2263_v44, %v2262_v40  ;;  %v296_v40 = vld [vmem:[#allocation2 + $0x1b0] sm:$0xff]  ;;  %v299_v44 = vld [vmem:[#allocation2 + $0x1c8] sm:$0xff] }
  0xdb   : > { %487 = vmatmul.mubr.f32.gmra.mrb[18].mxu0 %v4333_v52  ;;  %1119 = vmatmul.mubr.f32.gmra.mrb[18].mxu1 %v4333_v52 }
  0xdc   : > { %491 = vmatprep.mubr.f32.mxu0 %v4336_v53  ;;  %1123 = vmatprep.mubr.f32.mxu1 %v4336_v53 }
  0xdd   : > { %3135 = vmatpush1.bf16.msra.mxu0 %v3134_v54  ;;  %3183 = vmatpush1.bf16.msra.mxu1 %v3182_v57  ;;  %v1633_v54 = vld [vmem:[%s4102_s25 + $0x3f0] sm:$0xff]  ;;  %v2264_v57 = vld [vmem:[%s4102_s25 + $0x3d8] sm:$0xff] }
  0xde   : > { %3136 = vmatprep.subr.bf16.mxu0 %v3889_v0  ;;  %3184 = vmatprep.subr.bf16.mxu1 %v3889_v0  ;;  %v3152_v61 = vpack.c.bf16 %v1633_v54, %v1632_v51  ;;  %v300_v51 = vld [vmem:[#allocation2 + $0x1d0] sm:$0xff]  ;;  %v303_v54 = vld [vmem:[#allocation2 + $0x1e8] sm:$0xff] }
  0xdf   : > { %492 = vmatmul.mubr.f32.gmra.mrb[20].mxu0 %v4347_v62  ;;  %1124 = vmatmul.mubr.f32.gmra.mrb[20].mxu1 %v4347_v62 }
  0xe0   : > { %496 = vmatprep.mubr.f32.mxu0 %v4350_v2  ;;  %1128 = vmatprep.mubr.f32.mxu1 %v4350_v2 }
  0xe1   : > { %3138 = vmatpush1.bf16.msra.mxu0 %v3137_v3  ;;  %3186 = vmatpush1.bf16.msra.mxu1 %v3185_v4  ;;  %v3200_v3 = vpack.c.bf16 %v2265_v58, %v2264_v57  ;;  %v4427_v4 = vld [vmem:[#allocation2 + $0x100] sm:$0xff]  ;;  %v305_v58 = vld [vmem:[#allocation2 + $0x1f8] sm:$0xff] }
  0xe2   : > { %3139 = vmatprep.subr.bf16.mxu0 %v3889_v0  ;;  %3187 = vmatprep.subr.bf16.mxu1 %v3889_v0  ;;  %v302_v57 = vld [vmem:[#allocation2 + $0x1e0] sm:$0xff] }
  0xe3   : > { %497 = vmatmul.mubr.f32.gmra.mrb[22].mxu0 %v4361_v11  ;;  %1129 = vmatmul.mubr.f32.gmra.mrb[22].mxu1 %v4361_v11 }
  0xe4   : > { %501 = vmatprep.mubr.f32.mxu0 %v4364_v12  ;;  %1133 = vmatprep.mubr.f32.mxu1 %v4364_v12 }
  0xe5   : > { %3141 = vmatpush1.bf16.msra.mxu0 %v3140_v13  ;;  %3189 = vmatpush1.bf16.msra.mxu1 %v3188_v14  ;;  %v4451_v13 = vld [vmem:[#allocation2 + $0x130] sm:$0xff]  ;;  %v4454_v14 = vld [vmem:[#allocation2 + $0x148] sm:$0xff] }
  0xe6   : > { %3142 = vmatprep.subr.bf16.mxu0 %v3889_v0  ;;  %3190 = vmatprep.subr.bf16.mxu1 %v3889_v0 }
  0xe7   : > { %502 = vmatmul.mubr.f32.gmra.mrb[24].mxu0 %v4375_v21  ;;  %1134 = vmatmul.mubr.f32.gmra.mrb[24].mxu1 %v4375_v21 }
  0xe8   : > { %506 = vmatprep.mubr.f32.mxu0 %v4378_v22  ;;  %1138 = vmatprep.mubr.f32.mxu1 %v4378_v22 }
  0xe9   : > { %3144 = vmatpush1.bf16.msra.mxu0 %v3143_v23  ;;  %3192 = vmatpush1.bf16.msra.mxu1 %v3191_v26  ;;  %v286_v23 = vld [vmem:[#allocation2 + $0x160] sm:$0xff]  ;;  %v289_v26 = vld [vmem:[#allocation2 + $0x178] sm:$0xff] }
  0xea   : > { %3145 = vmatprep.subr.bf16.mxu0 %v3889_v0  ;;  %3193 = vmatprep.subr.bf16.mxu1 %v3889_v0 }
  0xeb   : > { %507 = vmatmul.mubr.f32.gmra.mrb[26].mxu0 %v4389_v31  ;;  %1139 = vmatmul.mubr.f32.gmra.mrb[26].mxu1 %v4389_v31 }
  0xec   : > { %511 = vmatprep.mubr.f32.mxu0 %v4392_v34  ;;  %1143 = vmatprep.mubr.f32.mxu1 %v4392_v34 }
  0xed   : > { %3147 = vmatpush1.bf16.msra.mxu0 %v3146_v35  ;;  %3195 = vmatpush1.bf16.msra.mxu1 %v3194_v36  ;;  %v292_v35 = vld [vmem:[#allocation2 + $0x190] sm:$0xff]  ;;  %v295_v36 = vld [vmem:[#allocation2 + $0x1a8] sm:$0xff] }
  0xee   : > { %3148 = vmatprep.subr.bf16.mxu0 %v3889_v0  ;;  %3196 = vmatprep.subr.bf16.mxu1 %v3889_v0 }
  0xef   : > { %512 = vmatmul.mubr.f32.gmra.mrb[28].mxu0 %v4403_v45  ;;  %1144 = vmatmul.mubr.f32.gmra.mrb[28].mxu1 %v4403_v45 }
  0xf0   : > { %516 = vmatprep.mubr.f32.mxu0 %v4406_v46  ;;  %1148 = vmatprep.mubr.f32.mxu1 %v4406_v46 }
  0xf1   : > { %3150 = vmatpush1.bf16.msra.mxu0 %v3149_v49  ;;  %3198 = vmatpush1.bf16.msra.mxu1 %v3197_v50  ;;  %v298_v49 = vld [vmem:[#allocation2 + $0x1c0] sm:$0xff]  ;;  %v301_v50 = vld [vmem:[#allocation2 + $0x1d8] sm:$0xff] }
  0xf2   : > { %3151 = vmatprep.subr.bf16.mxu0 %v3889_v0  ;;  %3199 = vmatprep.subr.bf16.mxu1 %v3889_v0  ;;  %v4438_v0 = vld [vmem:[#allocation2 + $0x128] sm:$0xff] }
  0xf3   : > { %517 = vmatmul.mubr.f32.gmra.mrb[30].mxu0 %v4417_v59  ;;  %1149 = vmatmul.mubr.f32.gmra.mrb[30].mxu1 %v4417_v59 }
  0xf4   : > { %521 = vmatprep.mubr.f32.mxu0 %v4420_v60  ;;  %1153 = vmatprep.mubr.f32.mxu1 %v4420_v60 }
  0xf5   : > { %3153 = vmatpush1.bf16.msra.mxu0 %v3152_v61  ;;  %3201 = vmatpush1.bf16.msra.mxu1 %v3200_v3  ;;  %v304_v61 = vld [vmem:[#allocation2 + $0x1f0] sm:$0xff]  ;;  %v307_v3 = vld [vmem:[#allocation2 + $0x208] sm:$0xff] }
  0xf7   : > { %522 = vmatmul.mubr.f32.gmra.mrb[32].mxu0 %v4427_v4  ;;  %1154 = vmatmul.mubr.f32.gmra.mrb[32].mxu1 %v4427_v4 }
  0xf8   : > { %526 = vmatprep.mubr.f32.mxu0 %v4430_v5  ;;  %1158 = vmatprep.mubr.f32.mxu1 %v4430_v5 }
  0xfb   : > { %527 = vmatmul.mubr.f32.gmra.mrb[34].mxu0 %v4435_v6  ;;  %1159 = vmatmul.mubr.f32.gmra.mrb[34].mxu1 %v4435_v6 }
  0xfc   : > { %531 = vmatprep.mubr.f32.mxu0 %v4438_v0  ;;  %1163 = vmatprep.mubr.f32.mxu1 %v4438_v0 }
  0xff   : > { %532 = vmatmul.mubr.f32.gmra.mrb[36].mxu0 %v4443_v7  ;;  %1164 = vmatmul.mubr.f32.gmra.mrb[36].mxu1 %v4443_v7 }
 0x100   : > { %536 = vmatprep.mubr.f32.mxu0 %v4446_v10  ;;  %1168 = vmatprep.mubr.f32.mxu1 %v4446_v10 }
 0x103   : > { %537 = vmatmul.mubr.f32.gmra.mrb[38].mxu0 %v4451_v13  ;;  %1169 = vmatmul.mubr.f32.gmra.mrb[38].mxu1 %v4451_v13 }
 0x104   : > { %541 = vmatprep.mubr.f32.mxu0 %v4454_v14  ;;  %1173 = vmatprep.mubr.f32.mxu1 %v4454_v14 }
 0x107   : > { %542 = vmatmul.mubr.f32.gmra.mrb[40].mxu0 %v282_v15  ;;  %1174 = vmatmul.mubr.f32.gmra.mrb[40].mxu1 %v282_v15  ;;  %v306_v15 = vld [vmem:[#allocation2 + $0x200] sm:$0xff] }
 0x108   : > { %546 = vmatprep.mubr.f32.mxu0 %v285_v18  ;;  %1178 = vmatprep.mubr.f32.mxu1 %v285_v18  ;;  %v309_v18 = vld [vmem:[#allocation2 + $0x218] sm:$0xff] }
 0x10b   : > { %547 = vmatmul.mubr.f32.gmra.mrb[42].mxu0 %v284_v19  ;;  %1179 = vmatmul.mubr.f32.gmra.mrb[42].mxu1 %v284_v19  ;;  %v308_v19 = vld [vmem:[#allocation2 + $0x210] sm:$0xff] }
 0x10c   : > { %551 = vmatprep.mubr.f32.mxu0 %v287_v20  ;;  %1183 = vmatprep.mubr.f32.mxu1 %v287_v20  ;;  %v311_v20 = vld [vmem:[#allocation2 + $0x228] sm:$0xff] }
 0x10f   : > { %552 = vmatmul.mubr.f32.gmra.mrb[44].mxu0 %v286_v23  ;;  %1184 = vmatmul.mubr.f32.gmra.mrb[44].mxu1 %v286_v23  ;;  %v310_v23 = vld [vmem:[#allocation2 + $0x220] sm:$0xff] }
 0x110   : > { %556 = vmatprep.mubr.f32.mxu0 %v289_v26  ;;  %1188 = vmatprep.mubr.f32.mxu1 %v289_v26  ;;  %v313_v26 = vld [vmem:[#allocation2 + $0x238] sm:$0xff] }
 0x113   : > { %557 = vmatmul.mubr.f32.gmra.mrb[46].mxu0 %v288_v27  ;;  %1189 = vmatmul.mubr.f32.gmra.mrb[46].mxu1 %v288_v27  ;;  %v312_v27 = vld [vmem:[#allocation2 + $0x230] sm:$0xff] }
 0x114   : > { %561 = vmatprep.mubr.f32.mxu0 %v291_v28  ;;  %1193 = vmatprep.mubr.f32.mxu1 %v291_v28  ;;  %v315_v28 = vld [vmem:[#allocation2 + $0x248] sm:$0xff] }
 0x117   : > { %562 = vmatmul.mubr.f32.gmra.mrb[48].mxu0 %v290_v29  ;;  %1194 = vmatmul.mubr.f32.gmra.mrb[48].mxu1 %v290_v29  ;;  %v314_v29 = vld [vmem:[#allocation2 + $0x240] sm:$0xff] }
 0x118   : > { %566 = vmatprep.mubr.f32.mxu0 %v293_v30  ;;  %1198 = vmatprep.mubr.f32.mxu1 %v293_v30  ;;  %v317_v30 = vld [vmem:[#allocation2 + $0x258] sm:$0xff] }
 0x11b   : > { %567 = vmatmul.mubr.f32.gmra.mrb[50].mxu0 %v292_v35  ;;  %1199 = vmatmul.mubr.f32.gmra.mrb[50].mxu1 %v292_v35  ;;  %v316_v35 = vld [vmem:[#allocation2 + $0x250] sm:$0xff] }
 0x11c   : > { %571 = vmatprep.mubr.f32.mxu0 %v295_v36  ;;  %1203 = vmatprep.mubr.f32.mxu1 %v295_v36  ;;  %v319_v36 = vld [vmem:[#allocation2 + $0x268] sm:$0xff] }
 0x11f   : > { %572 = vmatmul.mubr.f32.gmra.mrb[52].mxu0 %v294_v37  ;;  %1204 = vmatmul.mubr.f32.gmra.mrb[52].mxu1 %v294_v37  ;;  %v318_v37 = vld [vmem:[#allocation2 + $0x260] sm:$0xff] }
 0x120   : > { %576 = vmatprep.mubr.f32.mxu0 %v297_v38  ;;  %1208 = vmatprep.mubr.f32.mxu1 %v297_v38  ;;  %v321_v38 = vld [vmem:[#allocation2 + $0x278] sm:$0xff] }
 0x123   : > { %577 = vmatmul.mubr.f32.gmra.mrb[54].mxu0 %v296_v40  ;;  %1209 = vmatmul.mubr.f32.gmra.mrb[54].mxu1 %v296_v40  ;;  %v320_v40 = vld [vmem:[#allocation2 + $0x270] sm:$0xff] }
 0x124   : > { %581 = vmatprep.mubr.f32.mxu0 %v299_v44  ;;  %1213 = vmatprep.mubr.f32.mxu1 %v299_v44  ;;  %v323_v44 = vld [vmem:[#allocation2 + $0x288] sm:$0xff] }
 0x127   : > { %582 = vmatmul.mubr.f32.gmra.mrb[56].mxu0 %v298_v49  ;;  %1214 = vmatmul.mubr.f32.gmra.mrb[56].mxu1 %v298_v49  ;;  %v322_v49 = vld [vmem:[#allocation2 + $0x280] sm:$0xff] }
 0x128   : > { %586 = vmatprep.mubr.f32.mxu0 %v301_v50  ;;  %1218 = vmatprep.mubr.f32.mxu1 %v301_v50  ;;  %v325_v50 = vld [vmem:[#allocation2 + $0x298] sm:$0xff] }
 0x12b   : > { %587 = vmatmul.mubr.f32.gmra.mrb[58].mxu0 %v300_v51  ;;  %1219 = vmatmul.mubr.f32.gmra.mrb[58].mxu1 %v300_v51  ;;  %v324_v51 = vld [vmem:[#allocation2 + $0x290] sm:$0xff] }
 0x12c   : > { %591 = vmatprep.mubr.f32.mxu0 %v303_v54  ;;  %1223 = vmatprep.mubr.f32.mxu1 %v303_v54  ;;  %v327_v54 = vld [vmem:[#allocation2 + $0x2a8] sm:$0xff] }
 0x12f   : > { %592 = vmatmul.mubr.f32.gmra.mrb[60].mxu0 %v302_v57  ;;  %1224 = vmatmul.mubr.f32.gmra.mrb[60].mxu1 %v302_v57  ;;  %v326_v57 = vld [vmem:[#allocation2 + $0x2a0] sm:$0xff] }
 0x130   : > { %596 = vmatprep.mubr.f32.mxu0 %v305_v58  ;;  %1228 = vmatprep.mubr.f32.mxu1 %v305_v58  ;;  %v329_v58 = vld [vmem:[#allocation2 + $0x2b8] sm:$0xff] }
 0x133   : > { %597 = vmatmul.mubr.f32.gmra.mrb[62].mxu0 %v304_v61  ;;  %1229 = vmatmul.mubr.f32.gmra.mrb[62].mxu1 %v304_v61  ;;  %v328_v61 = vld [vmem:[#allocation2 + $0x2b0] sm:$0xff] }
 0x134   : > { %601 = vmatprep.mubr.f32.mxu0 %v307_v3  ;;  %1233 = vmatprep.mubr.f32.mxu1 %v307_v3  ;;  %v331_v3 = vld [vmem:[#allocation2 + $0x2c8] sm:$0xff] }
 0x137   : > { %602 = vmatmul.mubr.f32.gmra.mrb[64].mxu0 %v306_v15  ;;  %1234 = vmatmul.mubr.f32.gmra.mrb[64].mxu1 %v306_v15  ;;  %v330_v15 = vld [vmem:[#allocation2 + $0x2c0] sm:$0xff] }
 0x138   : > { %606 = vmatprep.mubr.f32.mxu0 %v309_v18  ;;  %1238 = vmatprep.mubr.f32.mxu1 %v309_v18  ;;  %v333_v18 = vld [vmem:[#allocation2 + $0x2d8] sm:$0xff] }
 0x13b   : > { %607 = vmatmul.mubr.f32.gmra.mrb[66].mxu0 %v308_v19  ;;  %1239 = vmatmul.mubr.f32.gmra.mrb[66].mxu1 %v308_v19  ;;  %v332_v19 = vld [vmem:[#allocation2 + $0x2d0] sm:$0xff] }
 0x13c   : > { %611 = vmatprep.mubr.f32.mxu0 %v311_v20  ;;  %1243 = vmatprep.mubr.f32.mxu1 %v311_v20  ;;  %v335_v20 = vld [vmem:[#allocation2 + $0x2e8] sm:$0xff] }
 0x13f   : > { %612 = vmatmul.mubr.f32.gmra.mrb[68].mxu0 %v310_v23  ;;  %1244 = vmatmul.mubr.f32.gmra.mrb[68].mxu1 %v310_v23  ;;  %v334_v23 = vld [vmem:[#allocation2 + $0x2e0] sm:$0xff] }
 0x140   : > { %616 = vmatprep.mubr.f32.mxu0 %v313_v26  ;;  %1248 = vmatprep.mubr.f32.mxu1 %v313_v26  ;;  %v337_v26 = vld [vmem:[#allocation2 + $0x2f8] sm:$0xff] }
 0x143   : > { %617 = vmatmul.mubr.f32.gmra.mrb[70].mxu0 %v312_v27  ;;  %1249 = vmatmul.mubr.f32.gmra.mrb[70].mxu1 %v312_v27  ;;  %v336_v27 = vld [vmem:[#allocation2 + $0x2f0] sm:$0xff] }
 0x144   : > { %621 = vmatprep.mubr.f32.mxu0 %v315_v28  ;;  %1253 = vmatprep.mubr.f32.mxu1 %v315_v28  ;;  %v3658_v28 = vld [vmem:[#allocation2 + $0x8] sm:$0xff] }
 0x147   : > { %622 = vmatmul.mubr.f32.gmra.mrb[72].mxu0 %v314_v29  ;;  %1254 = vmatmul.mubr.f32.gmra.mrb[72].mxu1 %v314_v29 }
 0x148   : > { %626 = vmatprep.mubr.f32.mxu0 %v317_v30  ;;  %1258 = vmatprep.mubr.f32.mxu1 %v317_v30 }
 0x14b   : > { %627 = vmatmul.mubr.f32.gmra.mrb[74].mxu0 %v316_v35  ;;  %1259 = vmatmul.mubr.f32.gmra.mrb[74].mxu1 %v316_v35 }
 0x14c   : > { %631 = vmatprep.mubr.f32.mxu0 %v319_v36  ;;  %1263 = vmatprep.mubr.f32.mxu1 %v319_v36 }
 0x14f   : > { %632 = vmatmul.mubr.f32.gmra.mrb[76].mxu0 %v318_v37  ;;  %1264 = vmatmul.mubr.f32.gmra.mrb[76].mxu1 %v318_v37 }
 0x150   : > { %636 = vmatprep.mubr.f32.mxu0 %v321_v38  ;;  %1268 = vmatprep.mubr.f32.mxu1 %v321_v38 }
 0x153   : > { %637 = vmatmul.mubr.f32.gmra.mrb[78].mxu0 %v320_v40  ;;  %1269 = vmatmul.mubr.f32.gmra.mrb[78].mxu1 %v320_v40 }
 0x154   : > { %641 = vmatprep.mubr.f32.mxu0 %v323_v44  ;;  %1273 = vmatprep.mubr.f32.mxu1 %v323_v44 }
 0x157   : > { %642 = vmatmul.mubr.f32.gmra.mrb[80].mxu0 %v322_v49  ;;  %1274 = vmatmul.mubr.f32.gmra.mrb[80].mxu1 %v322_v49 }
 0x158   : > { %646 = vmatprep.mubr.f32.mxu0 %v325_v50  ;;  %1278 = vmatprep.mubr.f32.mxu1 %v325_v50 }
 0x15b   : > { %647 = vmatmul.mubr.f32.gmra.mrb[82].mxu0 %v324_v51  ;;  %1279 = vmatmul.mubr.f32.gmra.mrb[82].mxu1 %v324_v51 }
 0x15c   : > { %651 = vmatprep.mubr.f32.mxu0 %v327_v54  ;;  %1283 = vmatprep.mubr.f32.mxu1 %v327_v54 }
 0x15f   : > { %652 = vmatmul.mubr.f32.gmra.mrb[84].mxu0 %v326_v57  ;;  %1284 = vmatmul.mubr.f32.gmra.mrb[84].mxu1 %v326_v57 }
 0x160   : > { %656 = vmatprep.mubr.f32.mxu0 %v329_v58  ;;  %1288 = vmatprep.mubr.f32.mxu1 %v329_v58 }
 0x163   : > { %657 = vmatmul.mubr.f32.gmra.mrb[86].mxu0 %v328_v61  ;;  %1289 = vmatmul.mubr.f32.gmra.mrb[86].mxu1 %v328_v61 }
 0x164   : > { %661 = vmatprep.mubr.f32.mxu0 %v331_v3  ;;  %1293 = vmatprep.mubr.f32.mxu1 %v331_v3 }
 0x167   : > { %662 = vmatmul.mubr.f32.gmra.mrb[88].mxu0 %v330_v15  ;;  %1294 = vmatmul.mubr.f32.gmra.mrb[88].mxu1 %v330_v15 }
 0x168   : > { %666 = vmatprep.mubr.f32.mxu0 %v333_v18  ;;  %1298 = vmatprep.mubr.f32.mxu1 %v333_v18 }
 0x16b   : > { %667 = vmatmul.mubr.f32.gmra.mrb[90].mxu0 %v332_v19  ;;  %1299 = vmatmul.mubr.f32.gmra.mrb[90].mxu1 %v332_v19 }
 0x16c   : > { %671 = vmatprep.mubr.f32.mxu0 %v335_v20  ;;  %1303 = vmatprep.mubr.f32.mxu1 %v335_v20 }
 0x16f   : > { %672 = vmatmul.mubr.f32.gmra.mrb[92].mxu0 %v334_v23  ;;  %1304 = vmatmul.mubr.f32.gmra.mrb[92].mxu1 %v334_v23 }
 0x170   : > { %676 = vmatprep.mubr.f32.mxu0 %v337_v26  ;;  %1308 = vmatprep.mubr.f32.mxu1 %v337_v26 }
 0x173   : > { %677 = vmatmul.mubr.f32.gmra.mrb[94].mxu0 %v336_v27  ;;  %1309 = vmatmul.mubr.f32.gmra.mrb[94].mxu1 %v336_v27 }
 0x174   : > { %1705 = vmatprep.mubr.f32.mxu0 %v3658_v28  ;;  %2337 = vmatprep.mubr.f32.mxu1 %v3658_v28 }
 0x177   : > { %1706 = vmatmul.mubr.f32.vlgmr.msra.gmra.mrb[96].mxu0 %v4208_v39  ;;  %2338 = vmatmul.mubr.f32.vlgmr.msra.gmra.mrb[96].mxu1 %v4208_v39  ;;  %v4482_v39 = vld [vmem:[%s4479_s27] ss:$0 sm:$0xff] }
 0x178   : > { %1710 = vmatprep.mubr.f32.mxu0 %v4212_v42  ;;  %2342 = vmatprep.mubr.f32.mxu1 %v4212_v42  ;;  %v4486_v42 = vld [vmem:[%s4479_s27 + $0x1] ss:$0 sm:$0xff] }
 0x17b   : > { %1711 = vmatmul.mubr.f32.gmra.mrb[98].mxu0 %v4220_v47  ;;  %2343 = vmatmul.mubr.f32.gmra.mrb[98].mxu1 %v4220_v47 }
 0x17c   : > { %1715 = vmatprep.mubr.f32.mxu0 %v4223_v48  ;;  %2347 = vmatprep.mubr.f32.mxu1 %v4223_v48 }
 0x17f   : > { %1716 = vmatmul.mubr.f32.gmra.mrb[100].mxu0 %v4235_v55  ;;  %2348 = vmatmul.mubr.f32.gmra.mrb[100].mxu1 %v4235_v55 }
 0x180   : > { %1720 = vmatprep.mubr.f32.mxu0 %v4238_v56  ;;  %2352 = vmatprep.mubr.f32.mxu1 %v4238_v56 }
 0x183   : > { %1721 = vmatmul.mubr.f32.gmra.mrb[102].mxu0 %v4249_v63  ;;  %2353 = vmatmul.mubr.f32.gmra.mrb[102].mxu1 %v4249_v63 }
 0x184   : > { %1725 = vmatprep.mubr.f32.mxu0 %v4252_v1  ;;  %2357 = vmatprep.mubr.f32.mxu1 %v4252_v1 }
 0x187   : > { %1726 = vmatmul.mubr.f32.gmra.mrb[104].mxu0 %v4263_v8  ;;  %2358 = vmatmul.mubr.f32.gmra.mrb[104].mxu1 %v4263_v8 }
 0x188   : > { %1730 = vmatprep.mubr.f32.mxu0 %v4266_v9  ;;  %2362 = vmatprep.mubr.f32.mxu1 %v4266_v9 }
 0x18a   : > { %v443_v47 = vpop.f32.mrb[0].mxu0  ;;  %v1075_v55 = vpop.f32.mrb[0].mxu1 }
 0x18b   : > { %v444_v48 = vadd.f32 %v4482_v39, %v443_v47  ;;  %v445_v56 = vpop.f32.mrb[1].mxu0  ;;  %1731 = vmatmul.mubr.f32.gmra.mrb[106].mxu0 %v4277_v16  ;;  %v1076_v63 = vadd.f32 %v4486_v42, %v1075_v55  ;;  %v1077_v1 = vpop.f32.mrb[1].mxu1  ;;  %2363 = vmatmul.mubr.f32.gmra.mrb[106].mxu1 %v4277_v16 }
 0x18c   : > { %1735 = vmatprep.mubr.f32.mxu0 %v4280_v17  ;;  %2367 = vmatprep.mubr.f32.mxu1 %v4280_v17 }
 0x18d   : > { %v730_v8 = vmul.f32 0.70710677, %v444_v48  ;;  %v1362_v29 = vmul.f32 0.70710677, %v1076_v63  ;;  %v682_v20 = vmul.f32 0.5, %v444_v48  ;;  %v1314_v28 = vmul.f32 0.5, %v1076_v63 }
 0x18e   : > { %v448_v30 = vpop.f32.mrb[2].mxu0  ;;  %v1080_v35 = vpop.f32.mrb[2].mxu1 }
 0x18f   : > { %3274 = verf.f32 %v730_v8  ;;  %v4496_v9 = vadd.f32 %v4482_v39, %v448_v30  ;;  %v450_v36 = vpop.f32.mrb[3].mxu0  ;;  %1736 = vmatmul.mubr.f32.gmra.mrb[108].mxu0 %v4291_v24  ;;  %v4500_v37 = vadd.f32 %v4486_v42, %v1080_v35  ;;  %v1082_v16 = vpop.f32.mrb[3].mxu1  ;;  %2368 = vmatmul.mubr.f32.gmra.mrb[108].mxu1 %v4291_v24 }
 0x190   : > { %3276 = verf.f32 %v1362_v29  ;;  %1740 = vmatprep.mubr.f32.mxu0 %v4294_v25  ;;  %2372 = vmatprep.mubr.f32.mxu1 %v4294_v25 }
 0x191   : > { %v731_v17 = vmul.f32 0.70710677, %v4496_v9  ;;  %v1363_v38 = vmul.f32 0.70710677, %v4500_v37  ;;  %v683_v35 = vmul.f32 0.5, %v4496_v9 }
 0x192   : > { %v453_v40 = vpop.f32.mrb[4].mxu0  ;;  %v1085_v49 = vpop.f32.mrb[4].mxu1 }
 0x193   : > { %3278 = verf.f32 %v731_v17  ;;  %v4508_v44 = vadd.f32 %v4482_v39, %v453_v40  ;;  %v455_v50 = vpop.f32.mrb[5].mxu0  ;;  %1741 = vmatmul.mubr.f32.gmra.mrb[110].mxu0 %v4305_v32  ;;  %v4512_v24 = vadd.f32 %v4486_v42, %v1085_v49  ;;  %v1087_v51 = vpop.f32.mrb[5].mxu1  ;;  %2373 = vmatmul.mubr.f32.gmra.mrb[110].mxu1 %v4305_v32  ;;  %v1315_v17 = vmul.f32 0.5, %v4500_v37 }
 0x194   : > { %3280 = verf.f32 %v1363_v38  ;;  %1745 = vmatprep.mubr.f32.mxu0 %v4308_v33  ;;  %2377 = vmatprep.mubr.f32.mxu1 %v4308_v33 }
 0x195   : > { %v732_v25 = vmul.f32 0.70710677, %v4508_v44  ;;  %v1364_v54 = vmul.f32 0.70710677, %v4512_v24 }
 0x196   : > { %v458_v57 = vpop.f32.mrb[6].mxu0  ;;  %v1090_v61 = vpop.f32.mrb[6].mxu1 }
 0x197   : > { %3282 = verf.f32 %v732_v25  ;;  %v4521_v58 = vadd.f32 %v4482_v39, %v458_v57  ;;  %v460_v3 = vpop.f32.mrb[7].mxu0  ;;  %1746 = vmatmul.mubr.f32.gmra.mrb[112].mxu0 %v4319_v41  ;;  %v4525_v32 = vadd.f32 %v4486_v42, %v1090_v61  ;;  %v1092_v15 = vpop.f32.mrb[7].mxu1  ;;  %2378 = vmatmul.mubr.f32.gmra.mrb[112].mxu1 %v4319_v41  ;;  %v684_v61 = vmul.f32 0.5, %v4508_v44 }
 0x198   : > { %3284 = verf.f32 %v1364_v54  ;;  %1750 = vmatprep.mubr.f32.mxu0 %v4322_v43  ;;  %2382 = vmatprep.mubr.f32.mxu1 %v4322_v43 }
 0x199   : > { %v3275_v33 = vpop.eup %3274  ;;  %v733_v18 = vmul.f32 0.70710677, %v4521_v58  ;;  %v1365_v26 = vmul.f32 0.70710677, %v4525_v32 }
 0x19a   : > { %v3277_v19 = vpop.eup %3276  ;;  %v826_v23 = vadd.f32 1.0, %v3275_v33  ;;  %v463_v27 = vpop.f32.mrb[8].mxu0 }
 0x19b   : > { %v1458_v47 = vadd.f32 1.0, %v3277_v19  ;;  %3286 = verf.f32 %v733_v18  ;;  %v4533_v55 = vadd.f32 %v4482_v39, %v463_v27  ;;  %v1095_v41 = vpop.f32.mrb[8].mxu1  ;;  %v465_v56 = vpop.f32.mrb[9].mxu0  ;;  %1751 = vmatmul.mubr.f32.gmra.mrb[114].mxu0 %v4333_v52  ;;  %2383 = vmatmul.mubr.f32.gmra.mrb[114].mxu1 %v4333_v52  ;;  %v1316_v18 = vmul.f32 0.5, %v4512_v24 }
 0x19c   : > { %v874_v1 = vmul.f32 %v826_v23, %v682_v20  ;;  %3288 = verf.f32 %v1365_v26  ;;  %v4537_v43 = vadd.f32 %v4486_v42, %v1095_v41  ;;  %v1097_v48 = vpop.f32.mrb[9].mxu1  ;;  %1755 = vmatprep.mubr.f32.mxu0 %v4336_v53  ;;  %2387 = vmatprep.mubr.f32.mxu1 %v4336_v53  ;;  %v685_v41 = vmul.f32 0.5, %v4521_v58 }
 0x19d   : > { %v3279_v63 = vpop.eup %3278  ;;  %v1506_v8 = vmul.f32 %v1458_v47, %v1314_v28  ;;  %v734_v29 = vmul.f32 0.70710677, %v4533_v55 }
 0x19e   : > { %v3281_v30 = vpop.eup %3280  ;;  %922 = vst [vmem:[%s4545_s17] sm:$0xff] %v874_v1  ;;  %v827_v36 = vadd.f32 1.0, %v3279_v63  ;;  %v1366_v52 = vmul.f32 0.70710677, %v4537_v43  ;;  %v468_v16 = vpop.f32.mrb[10].mxu0  ;;  %v1317_v63 = vmul.f32 0.5, %v4525_v32 }
 0x19f   : > { %1554 = vst [vmem:[%s4545_s17 + $0x8] sm:$0xff] %v1506_v8  ;;  %v1459_v38 = vadd.f32 1.0, %v3281_v30  ;;  %3290 = verf.f32 %v734_v29  ;;  %v4553_v53 = vadd.f32 %v4482_v39, %v468_v16  ;;  %v1100_v40 = vpop.f32.mrb[10].mxu1  ;;  %v470_v49 = vpop.f32.mrb[11].mxu0  ;;  %1756 = vmatmul.mubr.f32.gmra.mrb[116].mxu0 %v4347_v62  ;;  %2388 = vmatmul.mubr.f32.gmra.mrb[116].mxu1 %v4347_v62 }
 0x1a0   : > { %v875_v50 = vmul.f32 %v827_v36, %v683_v35  ;;  %3292 = verf.f32 %v1366_v52  ;;  %v4557_v9 = vadd.f32 %v4486_v42, %v1100_v40  ;;  %v1102_v51 = vpop.f32.mrb[11].mxu1  ;;  %1760 = vmatprep.mubr.f32.mxu0 %v4350_v2  ;;  %2392 = vmatprep.mubr.f32.mxu1 %v4350_v2 }
 0x1a1   : > { %v3283_v37 = vpop.eup %3282  ;;  %v1507_v25 = vmul.f32 %v1459_v38, %v1315_v17  ;;  %v735_v54 = vmul.f32 0.70710677, %v4553_v53  ;;  %v686_v17 = vmul.f32 0.5, %v4533_v55 }
 0x1a2   : > { %v3285_v57 = vpop.eup %3284  ;;  %923 = vst [vmem:[%s4545_s17 + $0x20] sm:$0xff] %v875_v50  ;;  %v828_v3 = vadd.f32 1.0, %v3283_v37  ;;  %v1367_v15 = vmul.f32 0.70710677, %v4557_v9  ;;  %v473_v33 = vpop.f32.mrb[12].mxu0  ;;  %v1318_v50 = vmul.f32 0.5, %v4537_v43 }
 0x1a3   : > { %1555 = vst [vmem:[%s4545_s17 + $0x28] sm:$0xff] %v1507_v25  ;;  %v1460_v62 = vadd.f32 1.0, %v3285_v57  ;;  %3294 = verf.f32 %v735_v54  ;;  %v4569_v19 = vadd.f32 %v4482_v39, %v473_v33  ;;  %v1105_v20 = vpop.f32.mrb[12].mxu1  ;;  %v475_v23 = vpop.f32.mrb[13].mxu0  ;;  %1761 = vmatmul.mubr.f32.gmra.mrb[118].mxu0 %v4361_v11  ;;  %2393 = vmatmul.mubr.f32.gmra.mrb[118].mxu1 %v4361_v11 }
 0x1a4   : > { %v876_v2 = vmul.f32 %v828_v3, %v684_v61  ;;  %3296 = verf.f32 %v1367_v15  ;;  %v4573_v44 = vadd.f32 %v4486_v42, %v1105_v20  ;;  %v1107_v26 = vpop.f32.mrb[13].mxu1  ;;  %1765 = vmatprep.mubr.f32.mxu0 %v4364_v12  ;;  %2397 = vmatprep.mubr.f32.mxu1 %v4364_v12  ;;  %v687_v15 = vmul.f32 0.5, %v4553_v53 }
 0x1a5   : > { %v3287_v24 = vpop.eup %3286  ;;  %v1508_v27 = vmul.f32 %v1460_v62, %v1316_v18  ;;  %v736_v28 = vmul.f32 0.70710677, %v4569_v19  ;;  %v1319_v20 = vmul.f32 0.5, %v4557_v9 }
 0x1a6   : > { %v3289_v47 = vpop.eup %3288  ;;  %924 = vst [vmem:[%s4545_s17 + $0x40] sm:$0xff] %v876_v2  ;;  %v829_v56 = vadd.f32 1.0, %v3287_v24  ;;  %v1368_v1 = vmul.f32 0.70710677, %v4573_v44  ;;  %v478_v48 = vpop.f32.mrb[14].mxu0 }
 0x1a7   : > { %1556 = vst [vmem:[%s4545_s17 + $0x48] sm:$0xff] %v1508_v27  ;;  %v1461_v11 = vadd.f32 1.0, %v3289_v47  ;;  %3298 = verf.f32 %v736_v28  ;;  %v4585_v8 = vadd.f32 %v4482_v39, %v478_v48  ;;  %v1110_v29 = vpop.f32.mrb[14].mxu1  ;;  %v480_v30 = vpop.f32.mrb[15].mxu0  ;;  %1766 = vmatmul.mubr.f32.gmra.mrb[120].mxu0 %v4375_v21  ;;  %2398 = vmatmul.mubr.f32.gmra.mrb[120].mxu1 %v4375_v21 }
 0x1a8   : > { %v877_v12 = vmul.f32 %v829_v56, %v685_v41  ;;  %3300 = verf.f32 %v1368_v1  ;;  %v4589_v58 = vadd.f32 %v4486_v42, %v1110_v29  ;;  %v1112_v35 = vpop.f32.mrb[15].mxu1  ;;  %1770 = vmatprep.mubr.f32.mxu0 %v4378_v22  ;;  %2402 = vmatprep.mubr.f32.mxu1 %v4378_v22  ;;  %v688_v41 = vmul.f32 0.5, %v4569_v19 }
 0x1a9   : > { %v3291_v32 = vpop.eup %3290  ;;  %v1509_v36 = vmul.f32 %v1461_v11, %v1317_v63  ;;  %v737_v52 = vmul.f32 0.70710677, %v4585_v8  ;;  %v1320_v63 = vmul.f32 0.5, %v4573_v44 }
 0x1aa   : > { %v3293_v16 = vpop.eup %3292  ;;  %925 = vst [vmem:[%s4545_s17 + $0x60] sm:$0xff] %v877_v12  ;;  %v830_v38 = vadd.f32 1.0, %v3291_v32  ;;  %v1369_v40 = vmul.f32 0.70710677, %v4589_v58  ;;  %v483_v49 = vpop.f32.mrb[16].mxu0 }
 0x1ab   : > { %1557 = vst [vmem:[%s4545_s17 + $0x68] sm:$0xff] %v1509_v36  ;;  %v1462_v21 = vadd.f32 1.0, %v3293_v16  ;;  %3302 = verf.f32 %v737_v52  ;;  %v4601_v51 = vadd.f32 %v4482_v39, %v483_v49  ;;  %v1115_v37 = vpop.f32.mrb[16].mxu1  ;;  %v485_v25 = vpop.f32.mrb[17].mxu0  ;;  %1771 = vmatmul.mubr.f32.gmra.mrb[122].mxu0 %v4389_v31  ;;  %2403 = vmatmul.mubr.f32.gmra.mrb[122].mxu1 %v4389_v31  ;;  %v689_v52 = vmul.f32 0.5, %v4585_v8 }
 0x1ac   : > { %v878_v22 = vmul.f32 %v830_v38, %v686_v17  ;;  %3304 = verf.f32 %v1369_v40  ;;  %v4605_v55 = vadd.f32 %v4486_v42, %v1115_v37  ;;  %v1117_v54 = vpop.f32.mrb[17].mxu1  ;;  %1775 = vmatprep.mubr.f32.mxu0 %v4392_v34  ;;  %2407 = vmatprep.mubr.f32.mxu1 %v4392_v34  ;;  %v1321_v40 = vmul.f32 0.5, %v4589_v58 }
 0x1ad   : > { %v3295_v43 = vpop.eup %3294  ;;  %v1510_v57 = vmul.f32 %v1462_v21, %v1318_v50  ;;  %v738_v61 = vmul.f32 0.70710677, %v4601_v51 }
 0x1ae   : > { %v3297_v3 = vpop.eup %3296  ;;  %926 = vst [vmem:[%s4545_s17 + $0x80] sm:$0xff] %v878_v22  ;;  %v831_v33 = vadd.f32 1.0, %v3295_v43  ;;  %v1370_v18 = vmul.f32 0.70710677, %v4605_v55  ;;  %v488_v62 = vpop.f32.mrb[18].mxu0  ;;  %v690_v43 = vmul.f32 0.5, %v4601_v51 }
 0x1af   : > { %1558 = vst [vmem:[%s4545_s17 + $0x88] sm:$0xff] %v1510_v57  ;;  %v1463_v31 = vadd.f32 1.0, %v3297_v3  ;;  %3306 = verf.f32 %v738_v61  ;;  %v4617_v23 = vadd.f32 %v4482_v39, %v488_v62  ;;  %v1120_v2 = vpop.f32.mrb[18].mxu1  ;;  %v490_v26 = vpop.f32.mrb[19].mxu0  ;;  %1776 = vmatmul.mubr.f32.gmra.mrb[124].mxu0 %v4403_v45  ;;  %2408 = vmatmul.mubr.f32.gmra.mrb[124].mxu1 %v4403_v45 }
 0x1b0   : > { %v879_v34 = vmul.f32 %v831_v33, %v687_v15  ;;  %3308 = verf.f32 %v1370_v18  ;;  %v4621_v53 = vadd.f32 %v4486_v42, %v1120_v2  ;;  %v1122_v24 = vpop.f32.mrb[19].mxu1  ;;  %1780 = vmatprep.mubr.f32.mxu0 %v4406_v46  ;;  %2412 = vmatprep.mubr.f32.mxu1 %v4406_v46  ;;  %v1322_v15 = vmul.f32 0.5, %v4605_v55 }
 0x1b1   : > { %v3299_v9 = vpop.eup %3298  ;;  %v1511_v27 = vmul.f32 %v1463_v31, %v1319_v20  ;;  %v739_v28 = vmul.f32 0.70710677, %v4617_v23 }
 0x1b2   : > { %v3301_v47 = vpop.eup %3300  ;;  %927 = vst [vmem:[%s4545_s17 + $0xa0] sm:$0xff] %v879_v34  ;;  %v832_v56 = vadd.f32 1.0, %v3299_v9  ;;  %v1371_v1 = vmul.f32 0.70710677, %v4621_v53  ;;  %v493_v48 = vpop.f32.mrb[20].mxu0  ;;  %v691_v34 = vmul.f32 0.5, %v4617_v23 }
 0x1b3   : > { %1559 = vst [vmem:[%s4545_s17 + $0xa8] sm:$0xff] %v1511_v27  ;;  %v1464_v45 = vadd.f32 1.0, %v3301_v47  ;;  %3310 = verf.f32 %v739_v28  ;;  %v4633_v11 = vadd.f32 %v4482_v39, %v493_v48  ;;  %v1125_v29 = vpop.f32.mrb[20].mxu1  ;;  %v495_v30 = vpop.f32.mrb[21].mxu0  ;;  %1781 = vmatmul.mubr.f32.gmra.mrb[126].mxu0 %v4417_v59  ;;  %2413 = vmatmul.mubr.f32.gmra.mrb[126].mxu1 %v4417_v59  ;;  %v1323_v28 = vmul.f32 0.5, %v4621_v53 }
 0x1b4   : > { %v880_v46 = vmul.f32 %v832_v56, %v688_v41  ;;  %3312 = verf.f32 %v1371_v1  ;;  %v4637_v19 = vadd.f32 %v4486_v42, %v1125_v29  ;;  %v1127_v12 = vpop.f32.mrb[21].mxu1  ;;  %1785 = vmatprep.mubr.f32.mxu0 %v4420_v60  ;;  %2417 = vmatprep.mubr.f32.mxu1 %v4420_v60 }
 0x1b5   : > { %v3303_v44 = vpop.eup %3302  ;;  %v1512_v35 = vmul.f32 %v1464_v45, %v1320_v63  ;;  %v740_v32 = vmul.f32 0.70710677, %v4633_v11  ;;  %v692_v29 = vmul.f32 0.5, %v4633_v11 }
 0x1b6   : > { %v3305_v36 = vpop.eup %3304  ;;  %928 = vst [vmem:[%s4545_s17 + $0xc0] sm:$0xff] %v880_v46  ;;  %v833_v16 = vadd.f32 1.0, %v3303_v44  ;;  %v1372_v17 = vmul.f32 0.70710677, %v4637_v19  ;;  %v498_v38 = vpop.f32.mrb[22].mxu0  ;;  %v1324_v44 = vmul.f32 0.5, %v4637_v19 }
 0x1b7   : > { %1560 = vst [vmem:[%s4545_s17 + $0xc8] sm:$0xff] %v1512_v35  ;;  %v1465_v59 = vadd.f32 1.0, %v3305_v36  ;;  %3314 = verf.f32 %v740_v32  ;;  %v4649_v49 = vadd.f32 %v4482_v39, %v498_v38  ;;  %v1130_v50 = vpop.f32.mrb[22].mxu1  ;;  %v500_v21 = vpop.f32.mrb[23].mxu0  ;;  %1786 = vmatmul.mubr.f32.gmra.mrb[128].mxu0 %v4427_v4  ;;  %2418 = vmatmul.mubr.f32.gmra.mrb[128].mxu1 %v4427_v4  ;;  %v3659_v38 = vld [vmem:[#allocation2 + $0x148] sm:$0xff] }
 0x1b8   : > { %v881_v60 = vmul.f32 %v833_v16, %v689_v52  ;;  %3316 = verf.f32 %v1372_v17  ;;  %v4653_v8 = vadd.f32 %v4486_v42, %v1130_v50  ;;  %v1132_v37 = vpop.f32.mrb[23].mxu1  ;;  %1790 = vmatprep.mubr.f32.mxu0 %v4430_v5  ;;  %2422 = vmatprep.mubr.f32.mxu1 %v4430_v5 }
 0x1b9   : > { %v3307_v58 = vpop.eup %3306  ;;  %v1513_v25 = vmul.f32 %v1465_v59, %v1321_v40  ;;  %v741_v22 = vmul.f32 0.70710677, %v4649_v49  ;;  %v693_v59 = vmul.f32 0.5, %v4649_v49 }
 0x1ba   : > { %v3309_v54 = vpop.eup %3308  ;;  %929 = vst [vmem:[%s4545_s17 + $0xe0] sm:$0xff] %v881_v60  ;;  %v834_v57 = vadd.f32 1.0, %v3307_v58  ;;  %v1373_v61 = vmul.f32 0.70710677, %v4653_v8  ;;  %v503_v3 = vpop.f32.mrb[24].mxu0  ;;  %v1325_v37 = vmul.f32 0.5, %v4653_v8 }
 0x1bb   : > { %1561 = vst [vmem:[%s4545_s17 + $0xe8] sm:$0xff] %v1513_v25  ;;  %v1466_v4 = vadd.f32 1.0, %v3309_v54  ;;  %3318 = verf.f32 %v741_v22  ;;  %v4665_v33 = vadd.f32 %v4482_v39, %v503_v3  ;;  %v1135_v18 = vpop.f32.mrb[24].mxu1  ;;  %v505_v62 = vpop.f32.mrb[25].mxu0  ;;  %1791 = vmatmul.mubr.f32.gmra.mrb[130].mxu0 %v4435_v6  ;;  %2423 = vmatmul.mubr.f32.gmra.mrb[130].mxu1 %v4435_v6  ;;  %v3660_v22 = vld [vmem:[#allocation2 + $0x140] sm:$0xff] }
 0x1bc   : > { %v882_v5 = vmul.f32 %v834_v57, %v690_v43  ;;  %3320 = verf.f32 %v1373_v61  ;;  %v4669_v51 = vadd.f32 %v4486_v42, %v1135_v18  ;;  %v1137_v20 = vpop.f32.mrb[25].mxu1  ;;  %1795 = vmatprep.mubr.f32.mxu0 %v4438_v0  ;;  %2427 = vmatprep.mubr.f32.mxu1 %v4438_v0  ;;  %v3661_v57 = vld [vmem:[#allocation2 + $0x158] sm:$0xff] }
 0x1bd   : > { %v3311_v55 = vpop.eup %3310  ;;  %v1514_v31 = vmul.f32 %v1466_v4, %v1322_v15  ;;  %v742_v2 = vmul.f32 0.70710677, %v4665_v33  ;;  %v694_v4 = vmul.f32 0.5, %v4665_v33 }
 0x1be   : > { %v3313_v26 = vpop.eup %3312  ;;  %930 = vst [vmem:[%s4545_s17 + $0x100] sm:$0xff] %v882_v5  ;;  %v835_v24 = vadd.f32 1.0, %v3311_v55  ;;  %v1374_v9 = vmul.f32 0.70710677, %v4669_v51  ;;  %v508_v27 = vpop.f32.mrb[26].mxu0  ;;  %v1326_v20 = vmul.f32 0.5, %v4669_v51 }
 0x1bf   : > { %1562 = vst [vmem:[%s4545_s17 + $0x108] sm:$0xff] %v1514_v31  ;;  %v1467_v6 = vadd.f32 1.0, %v3313_v26  ;;  %3322 = verf.f32 %v742_v2  ;;  %v4681_v47 = vadd.f32 %v4482_v39, %v508_v27  ;;  %v1140_v41 = vpop.f32.mrb[26].mxu1  ;;  %v510_v56 = vpop.f32.mrb[27].mxu0  ;;  %1796 = vmatmul.mubr.f32.gmra.mrb[132].mxu0 %v4443_v7  ;;  %2428 = vmatmul.mubr.f32.gmra.mrb[132].mxu1 %v4443_v7  ;;  %v3663_v27 = vld [vmem:[#allocation2 + $0x168] sm:$0xff] }
 0x1c0   : > { %v883_v0 = vmul.f32 %v835_v24, %v691_v34  ;;  %3324 = verf.f32 %v1374_v9  ;;  %v4685_v23 = vadd.f32 %v4486_v42, %v1140_v41  ;;  %v1142_v1 = vpop.f32.mrb[27].mxu1  ;;  %1800 = vmatprep.mubr.f32.mxu0 %v4446_v10  ;;  %2432 = vmatprep.mubr.f32.mxu1 %v4446_v10  ;;  %v3662_v34 = vld [vmem:[#allocation2 + $0x150] sm:$0xff] }
 0x1c1   : > { %v3315_v53 = vpop.eup %3314  ;;  %v1515_v48 = vmul.f32 %v1467_v6, %v1323_v28  ;;  %v743_v63 = vmul.f32 0.70710677, %v4681_v47  ;;  %v695_v56 = vmul.f32 0.5, %v4681_v47 }
 0x1c2   : > { %v3317_v45 = vpop.eup %3316  ;;  %931 = vst [vmem:[%s4545_s17 + $0x120] sm:$0xff] %v883_v0  ;;  %v836_v30 = vadd.f32 1.0, %v3315_v53  ;;  %v1375_v46 = vmul.f32 0.70710677, %v4685_v23  ;;  %v513_v12 = vpop.f32.mrb[28].mxu0 }
 0x1c3   : > { %1563 = vst [vmem:[%s4545_s17 + $0x128] sm:$0xff] %v1515_v48  ;;  %v1468_v7 = vadd.f32 1.0, %v3317_v45  ;;  %3326 = verf.f32 %v743_v63  ;;  %v4697_v35 = vadd.f32 %v4482_v39, %v513_v12  ;;  %v1145_v32 = vpop.f32.mrb[28].mxu1  ;;  %v515_v36 = vpop.f32.mrb[29].mxu0  ;;  %1801 = vmatmul.mubr.f32.gmra.mrb[134].mxu0 %v4451_v13  ;;  %2433 = vmatmul.mubr.f32.gmra.mrb[134].mxu1 %v4451_v13  ;;  %v1327_v48 = vmul.f32 0.5, %v4685_v23 }
 0x1c4   : > { %v884_v10 = vmul.f32 %v836_v30, %v692_v29  ;;  %3328 = verf.f32 %v1375_v46  ;;  %v4701_v11 = vadd.f32 %v4486_v42, %v1145_v32  ;;  %v1147_v52 = vpop.f32.mrb[29].mxu1  ;;  %1805 = vmatprep.mubr.f32.mxu0 %v4454_v14  ;;  %2437 = vmatprep.mubr.f32.mxu1 %v3659_v38  ;;  %v3664_v46 = vld [vmem:[#allocation2 + $0x160] sm:$0xff] }
 0x1c5   : > { %v3319_v19 = vpop.eup %3318  ;;  %v1516_v16 = vmul.f32 %v1468_v7, %v1324_v44  ;;  %v744_v17 = vmul.f32 0.70710677, %v4697_v35  ;;  %v3665_v7 = vld [vmem:[#allocation2 + $0x178] sm:$0xff]  ;;  %v696_v52 = vmul.f32 0.5, %v4697_v35 }
 0x1c6   : > { %v3321_v40 = vpop.eup %3320  ;;  %932 = vst [vmem:[%s4545_s17 + $0x140] sm:$0xff] %v884_v10  ;;  %v837_v50 = vadd.f32 1.0, %v3319_v19  ;;  %v1376_v21 = vmul.f32 0.70710677, %v4701_v11  ;;  %v518_v60 = vpop.f32.mrb[30].mxu0  ;;  %v1328_v38 = vmul.f32 0.5, %v4701_v11 }
 0x1c7   : > { %1564 = vst [vmem:[%s4545_s17 + $0x148] sm:$0xff] %v1516_v16  ;;  %v1469_v13 = vadd.f32 1.0, %v3321_v40  ;;  %3330 = verf.f32 %v744_v17  ;;  %v4712_v14 = vadd.f32 %v4482_v39, %v518_v60  ;;  %v1150_v58 = vpop.f32.mrb[30].mxu1  ;;  %v520_v25 = vpop.f32.mrb[31].mxu0  ;;  %1806 = vmatmul.mubr.f32.gmra.mrb[136].mxu0 %v3660_v22  ;;  %2438 = vmatmul.mubr.f32.gmra.mrb[136].mxu1 %v3660_v22  ;;  %v3666_v60 = vld [vmem:[#allocation2 + $0x170] sm:$0xff] }
 0x1c8   : > { %v885_v54 = vmul.f32 %v837_v50, %v693_v59  ;;  %3332 = verf.f32 %v1376_v21  ;;  %v4715_v49 = vadd.f32 %v4486_v42, %v1150_v58  ;;  %v1152_v43 = vpop.f32.mrb[31].mxu1  ;;  %1810 = vmatprep.mubr.f32.mxu0 %v3661_v57  ;;  %2442 = vmatprep.mubr.f32.mxu1 %v3661_v57  ;;  %v3667_v58 = vld [vmem:[#allocation2 + $0x188] sm:$0xff] }
 0x1c9   : > { %v3323_v8 = vpop.eup %3322  ;;  %v1517_v61 = vmul.f32 %v1469_v13, %v1325_v37  ;;  %v745_v3 = vmul.f32 0.70710677, %v4712_v14  ;;  %v697_v43 = vmul.f32 0.5, %v4712_v14 }
 0x1ca   : > { %v3325_v15 = vpop.eup %3324  ;;  %933 = vst [vmem:[%s4545_s17 + $0x160] sm:$0xff] %v885_v54  ;;  %v838_v18 = vadd.f32 1.0, %v3323_v8  ;;  %v1377_v62 = vmul.f32 0.70710677, %v4715_v49  ;;  %v523_v5 = vpop.f32.mrb[32].mxu0 }
 0x1cb   : > { %1565 = vst [vmem:[%s4545_s17 + $0x168] sm:$0xff] %v1517_v61  ;;  %v1470_v55 = vadd.f32 1.0, %v3325_v15  ;;  %3334 = verf.f32 %v745_v3  ;;  %v4724_v31 = vadd.f32 %v4482_v39, %v523_v5  ;;  %v1155_v2 = vpop.f32.mrb[32].mxu1  ;;  %v525_v26 = vpop.f32.mrb[33].mxu0  ;;  %1811 = vmatmul.mubr.f32.gmra.mrb[138].mxu0 %v3662_v34  ;;  %2443 = vmatmul.mubr.f32.gmra.mrb[138].mxu1 %v3662_v34  ;;  %v1329_v3 = vmul.f32 0.5, %v4715_v49  ;;  %v3668_v5 = vld [vmem:[#allocation2 + $0x180] sm:$0xff] }
 0x1cc   : > { %v886_v24 = vmul.f32 %v838_v18, %v694_v4  ;;  %3336 = verf.f32 %v1377_v62  ;;  %v4727_v33 = vadd.f32 %v4486_v42, %v1155_v2  ;;  %v1157_v9 = vpop.f32.mrb[33].mxu1  ;;  %1815 = vmatprep.mubr.f32.mxu0 %v3663_v27  ;;  %2447 = vmatprep.mubr.f32.mxu1 %v3663_v27  ;;  %v3669_v2 = vld [vmem:[#allocation2 + $0x198] sm:$0xff] }
 0x1cd   : > { %v3327_v51 = vpop.eup %3326  ;;  %v1518_v28 = vmul.f32 %v1470_v55, %v1326_v20  ;;  %v746_v6 = vmul.f32 0.70710677, %v4724_v31  ;;  %v698_v9 = vmul.f32 0.5, %v4724_v31 }
 0x1ce   : > { %v3329_v41 = vpop.eup %3328  ;;  %934 = vst [vmem:[%s4545_s17 + $0x180] sm:$0xff] %v886_v24  ;;  %v839_v0 = vadd.f32 1.0, %v3327_v51  ;;  %v1378_v1 = vmul.f32 0.70710677, %v4727_v33  ;;  %v528_v53 = vpop.f32.mrb[34].mxu0 }
 0x1cf   : > { %1566 = vst [vmem:[%s4545_s17 + $0x188] sm:$0xff] %v1518_v28  ;;  %v1471_v63 = vadd.f32 1.0, %v3329_v41  ;;  %3338 = verf.f32 %v746_v6  ;;  %v4736_v45 = vadd.f32 %v4482_v39, %v528_v53  ;;  %v1160_v29 = vpop.f32.mrb[34].mxu1  ;;  %v530_v30 = vpop.f32.mrb[35].mxu0  ;;  %1816 = vmatmul.mubr.f32.gmra.mrb[140].mxu0 %v3664_v46  ;;  %2448 = vmatmul.mubr.f32.gmra.mrb[140].mxu1 %v3664_v46  ;;  %v1330_v6 = vmul.f32 0.5, %v4727_v33  ;;  %v3670_v53 = vld [vmem:[#allocation2 + $0x190] sm:$0xff] }
 0x1d0   : > { %v887_v12 = vmul.f32 %v839_v0, %v695_v56  ;;  %3340 = verf.f32 %v1378_v1  ;;  %v4739_v47 = vadd.f32 %v4486_v42, %v1160_v29  ;;  %v1162_v44 = vpop.f32.mrb[35].mxu1  ;;  %1820 = vmatprep.mubr.f32.mxu0 %v3665_v7  ;;  %2452 = vmatprep.mubr.f32.mxu1 %v3665_v7  ;;  %v3671_v29 = vld [vmem:[#allocation2 + $0x1a8] sm:$0xff] }
 0x1d1   : > { %v3331_v23 = vpop.eup %3330  ;;  %v1519_v32 = vmul.f32 %v1471_v63, %v1327_v48  ;;  %v747_v36 = vmul.f32 0.70710677, %v4736_v45  ;;  %v699_v44 = vmul.f32 0.5, %v4736_v45 }
 0x1d2   : > { %v3333_v10 = vpop.eup %3332  ;;  %935 = vst [vmem:[%s4545_s17 + $0x1a0] sm:$0xff] %v887_v12  ;;  %v840_v19 = vadd.f32 1.0, %v3331_v23  ;;  %v1379_v16 = vmul.f32 0.70710677, %v4739_v47  ;;  %v533_v17 = vpop.f32.mrb[36].mxu0 }
 0x1d3   : > { %1567 = vst [vmem:[%s4545_s17 + $0x1a8] sm:$0xff] %v1519_v32  ;;  %v1472_v40 = vadd.f32 1.0, %v3333_v10  ;;  %3342 = verf.f32 %v747_v36  ;;  %v4748_v59 = vadd.f32 %v4482_v39, %v533_v17  ;;  %v1165_v50 = vpop.f32.mrb[36].mxu1  ;;  %v535_v21 = vpop.f32.mrb[37].mxu0  ;;  %1821 = vmatmul.mubr.f32.gmra.mrb[142].mxu0 %v3666_v60  ;;  %2453 = vmatmul.mubr.f32.gmra.mrb[142].mxu1 %v3666_v60  ;;  %v1331_v36 = vmul.f32 0.5, %v4739_v47  ;;  %v3672_v17 = vld [vmem:[#allocation2 + $0x1a0] sm:$0xff] }
 0x1d4   : > { %v888_v37 = vmul.f32 %v840_v19, %v696_v52  ;;  %3344 = verf.f32 %v1379_v16  ;;  %v4751_v35 = vadd.f32 %v4486_v42, %v1165_v50  ;;  %v1167_v13 = vpop.f32.mrb[37].mxu1  ;;  %1825 = vmatprep.mubr.f32.mxu0 %v3667_v58  ;;  %2457 = vmatprep.mubr.f32.mxu1 %v3667_v58  ;;  %v3673_v50 = vld [vmem:[#allocation2 + $0x1b8] sm:$0xff] }
 0x1d5   : > { %v3335_v11 = vpop.eup %3334  ;;  %v1520_v25 = vmul.f32 %v1472_v40, %v1328_v38  ;;  %v748_v22 = vmul.f32 0.70710677, %v4748_v59  ;;  %v700_v13 = vmul.f32 0.5, %v4748_v59 }
 0x1d6   : > { %v3337_v54 = vpop.eup %3336  ;;  %936 = vst [vmem:[%s4545_s17 + $0x1c0] sm:$0xff] %v888_v37  ;;  %v841_v57 = vadd.f32 1.0, %v3335_v11  ;;  %v1380_v8 = vmul.f32 0.70710677, %v4751_v35  ;;  %v538_v61 = vpop.f32.mrb[38].mxu0 }
 0x1d7   : > { %1568 = vst [vmem:[%s4545_s17 + $0x1c8] sm:$0xff] %v1520_v25  ;;  %v1473_v15 = vadd.f32 1.0, %v3337_v54  ;;  %3346 = verf.f32 %v748_v22  ;;  %v4760_v4 = vadd.f32 %v4482_v39, %v538_v61  ;;  %v1170_v18 = vpop.f32.mrb[38].mxu1  ;;  %v540_v62 = vpop.f32.mrb[39].mxu0  ;;  %1826 = vmatmul.mubr.f32.gmra.mrb[144].mxu0 %v3668_v5  ;;  %2458 = vmatmul.mubr.f32.gmra.mrb[144].mxu1 %v3668_v5  ;;  %v1332_v22 = vmul.f32 0.5, %v4751_v35  ;;  %v3674_v61 = vld [vmem:[#allocation2 + $0x1b0] sm:$0xff] }
 0x1d8   : > { %v889_v20 = vmul.f32 %v841_v57, %v697_v43  ;;  %3348 = verf.f32 %v1380_v8  ;;  %v4763_v14 = vadd.f32 %v4486_v42, %v1170_v18  ;;  %v1172_v55 = vpop.f32.mrb[39].mxu1  ;;  %1830 = vmatprep.mubr.f32.mxu0 %v3669_v2  ;;  %2462 = vmatprep.mubr.f32.mxu1 %v3669_v2  ;;  %v3675_v18 = vld [vmem:[#allocation2 + $0x1c8] sm:$0xff] }
 0x1d9   : > { %v3339_v49 = vpop.eup %3338  ;;  %v1521_v26 = vmul.f32 %v1473_v15, %v1329_v3  ;;  %v749_v34 = vmul.f32 0.70710677, %v4760_v4 }
 0x1da   : > { %v3341_v24 = vpop.eup %3340  ;;  %937 = vst [vmem:[%s4545_s17 + $0x1e0] sm:$0xff] %v889_v20  ;;  %v842_v27 = vadd.f32 1.0, %v3339_v49  ;;  %v1381_v51 = vmul.f32 0.70710677, %v4763_v14  ;;  %v543_v28 = vpop.f32.mrb[40].mxu0  ;;  %v701_v20 = vmul.f32 0.5, %v4760_v4 }
 0x1db   : > { %1569 = vst [vmem:[%s4545_s17 + $0x1e8] sm:$0xff] %v1521_v26  ;;  %v1474_v41 = vadd.f32 1.0, %v3341_v24  ;;  %3350 = verf.f32 %v749_v34  ;;  %v4772_v56 = vadd.f32 %v4482_v39, %v543_v28  ;;  %v1175_v0 = vpop.f32.mrb[40].mxu1  ;;  %v545_v1 = vpop.f32.mrb[41].mxu0  ;;  %1831 = vmatmul.mubr.f32.gmra.mrb[146].mxu0 %v3670_v53  ;;  %2463 = vmatmul.mubr.f32.gmra.mrb[146].mxu1 %v3670_v53  ;;  %v1333_v49 = vmul.f32 0.5, %v4763_v14 }
 0x1dc   : > { %v890_v48 = vmul.f32 %v842_v27, %v698_v9  ;;  %3352 = verf.f32 %v1381_v51  ;;  %v4775_v31 = vadd.f32 %v4486_v42, %v1175_v0  ;;  %v1177_v63 = vpop.f32.mrb[41].mxu1  ;;  %1835 = vmatprep.mubr.f32.mxu0 %v3671_v29  ;;  %2467 = vmatprep.mubr.f32.mxu1 %v3671_v29  ;;  %v4808_v34 = vld [vmem:[%s4479_s27] ss:$0 sm:$0xff]  ;;  %v4814_v28 = vld [vmem:[%s4479_s27 + $0x1] ss:$0 sm:$0xff] }
 0x1dd   : > { %v3343_v33 = vpop.eup %3342  ;;  %v1522_v30 = vmul.f32 %v1474_v41, %v1330_v6  ;;  %v750_v46 = vmul.f32 0.70710677, %v4772_v56  ;;  %v3677_v51 = vld [vmem:[#allocation2 + $0x1c0] sm:$0xff]  ;;  %v3679_v41 = vld [vmem:[#allocation2 + $0x1d8] sm:$0xff]  ;;  %v702_v63 = vmul.f32 0.5, %v4772_v56 }
 0x1de   : > { %v3345_v12 = vpop.eup %3344  ;;  %938 = vst [vmem:[%s4545_s17 + $0x200] sm:$0xff] %v890_v48  ;;  %v843_v7 = vadd.f32 1.0, %v3343_v33  ;;  %v1382_v23 = vmul.f32 0.70710677, %v4775_v31  ;;  %v548_v32 = vpop.f32.mrb[42].mxu0 }
 0x1df   : > { %1570 = vst [vmem:[%s4545_s17 + $0x208] sm:$0xff] %v1522_v30  ;;  %v1475_v10 = vadd.f32 1.0, %v3345_v12  ;;  %3354 = verf.f32 %v750_v46  ;;  %v4784_v52 = vadd.f32 %v4482_v39, %v548_v32  ;;  %v1180_v19 = vpop.f32.mrb[42].mxu1  ;;  %v550_v16 = vpop.f32.mrb[43].mxu0  ;;  %1836 = vmatmul.mubr.f32.gmra.mrb[148].mxu0 %v3672_v17  ;;  %2468 = vmatmul.mubr.f32.gmra.mrb[148].mxu1 %v3672_v17  ;;  %v1334_v46 = vmul.f32 0.5, %v4775_v31  ;;  %v3680_v32 = vld [vmem:[#allocation2 + $0x1d0] sm:$0xff] }
 0x1e0   : > { %v891_v38 = vmul.f32 %v843_v7, %v699_v44  ;;  %3356 = verf.f32 %v1382_v23  ;;  %v4787_v45 = vadd.f32 %v4486_v42, %v1180_v19  ;;  %v1182_v40 = vpop.f32.mrb[43].mxu1  ;;  %1840 = vmatprep.mubr.f32.mxu0 %v3673_v50  ;;  %2472 = vmatprep.mubr.f32.mxu1 %v3673_v50  ;;  %v3681_v19 = vld [vmem:[#allocation2 + $0x1e8] sm:$0xff] }
 0x1e1   : > { %v3347_v47 = vpop.eup %3346  ;;  %v1523_v21 = vmul.f32 %v1475_v10, %v1331_v36  ;;  %v751_v60 = vmul.f32 0.70710677, %v4784_v52  ;;  %v703_v40 = vmul.f32 0.5, %v4784_v52 }
 0x1e2   : > { %v3349_v37 = vpop.eup %3348  ;;  %939 = vst [vmem:[%s4545_s17 + $0x220] sm:$0xff] %v891_v38  ;;  %v844_v58 = vadd.f32 1.0, %v3347_v47  ;;  %v1383_v11 = vmul.f32 0.70710677, %v4787_v45  ;;  %v553_v25 = vpop.f32.mrb[44].mxu0 }
 0x1e3   : > { %1571 = vst [vmem:[%s4545_s17 + $0x228] sm:$0xff] %v1523_v21  ;;  %v1476_v54 = vadd.f32 1.0, %v3349_v37  ;;  %3358 = verf.f32 %v751_v60  ;;  %v4796_v43 = vadd.f32 %v4482_v39, %v553_v25  ;;  %v1185_v57 = vpop.f32.mrb[44].mxu1  ;;  %v555_v8 = vpop.f32.mrb[45].mxu0  ;;  %1841 = vmatmul.mubr.f32.gmra.mrb[150].mxu0 %v3674_v61  ;;  %2473 = vmatmul.mubr.f32.gmra.mrb[150].mxu1 %v3674_v61  ;;  %v1335_v60 = vmul.f32 0.5, %v4787_v45  ;;  %v3682_v25 = vld [vmem:[#allocation2 + $0x1e0] sm:$0xff] }
 0x1e4   : > { %v892_v3 = vmul.f32 %v844_v58, %v700_v13  ;;  %3360 = verf.f32 %v1383_v11  ;;  %v4799_v59 = vadd.f32 %v4486_v42, %v1185_v57  ;;  %v1187_v15 = vpop.f32.mrb[45].mxu1  ;;  %1845 = vmatprep.mubr.f32.mxu0 %v3675_v18  ;;  %2477 = vmatprep.mubr.f32.mxu1 %v3675_v18  ;;  %v3683_v57 = vld [vmem:[#allocation2 + $0x1f8] sm:$0xff] }
 0x1e5   : > { %v3351_v35 = vpop.eup %3350  ;;  %v1524_v62 = vmul.f32 %v1476_v54, %v1332_v22  ;;  %v752_v39 = vmul.f32 0.70710677, %v4796_v43  ;;  %v704_v15 = vmul.f32 0.5, %v4796_v43 }
 0x1e6   : > { %v3353_v5 = vpop.eup %3352  ;;  %940 = vst [vmem:[%s4545_s17 + $0x240] sm:$0xff] %v892_v3  ;;  %v845_v55 = vadd.f32 1.0, %v3351_v35  ;;  %v1384_v2 = vmul.f32 0.70710677, %v4799_v59  ;;  %v558_v42 = vpop.f32.mrb[46].mxu0 }
 0x1e7   : > { %1572 = vst [vmem:[%s4545_s17 + $0x248] sm:$0xff] %v1524_v62  ;;  %v1477_v26 = vadd.f32 1.0, %v3353_v5  ;;  %3362 = verf.f32 %v752_v39  ;;  %v4811_v24 = vadd.f32 %v4808_v34, %v558_v42  ;;  %v1190_v9 = vpop.f32.mrb[46].mxu1  ;;  %v560_v27 = vpop.f32.mrb[47].mxu0  ;;  %1846 = vmatmul.mubr.f32.gmra.mrb[152].mxu0 %v3677_v51  ;;  %2478 = vmatmul.mubr.f32.gmra.mrb[152].mxu1 %v3677_v51  ;;  %v1336_v39 = vmul.f32 0.5, %v4799_v59  ;;  %v3684_v42 = vld [vmem:[#allocation2 + $0x1f0] sm:$0xff] }
 0x1e8   : > { %v893_v4 = vmul.f32 %v845_v55, %v701_v20  ;;  %3364 = verf.f32 %v1384_v2  ;;  %v4817_v6 = vadd.f32 %v4814_v28, %v1190_v9  ;;  %v1192_v14 = vpop.f32.mrb[47].mxu1  ;;  %1850 = vmatprep.mubr.f32.mxu0 %v3679_v41  ;;  %2482 = vmatprep.mubr.f32.mxu1 %v3679_v41  ;;  %v3685_v9 = vld [vmem:[#allocation2 + $0x208] sm:$0xff] }
 0x1e9   : > { %v3355_v0 = vpop.eup %3354  ;;  %v1525_v1 = vmul.f32 %v1477_v26, %v1333_v49  ;;  %v753_v53 = vmul.f32 0.70710677, %v4811_v24  ;;  %v705_v14 = vmul.f32 0.5, %v4811_v24 }
 0x1ea   : > { %v3357_v48 = vpop.eup %3356  ;;  %941 = vst [vmem:[%s4545_s17 + $0x260] sm:$0xff] %v893_v4  ;;  %v846_v29 = vadd.f32 1.0, %v3355_v0  ;;  %v1385_v33 = vmul.f32 0.70710677, %v4817_v6  ;;  %v563_v30 = vpop.f32.mrb[48].mxu0 }
 0x1eb   : > { %1573 = vst [vmem:[%s4545_s17 + $0x268] sm:$0xff] %v1525_v1  ;;  %v1478_v12 = vadd.f32 1.0, %v3357_v48  ;;  %3366 = verf.f32 %v753_v53  ;;  %v4826_v44 = vadd.f32 %v4808_v34, %v563_v30  ;;  %v1195_v7 = vpop.f32.mrb[48].mxu1  ;;  %v565_v23 = vpop.f32.mrb[49].mxu0  ;;  %1851 = vmatmul.mubr.f32.gmra.mrb[154].mxu0 %v3680_v32  ;;  %2483 = vmatmul.mubr.f32.gmra.mrb[154].mxu1 %v3680_v32  ;;  %v1337_v53 = vmul.f32 0.5, %v4817_v6  ;;  %v3686_v30 = vld [vmem:[#allocation2 + $0x200] sm:$0xff] }
 0x1ec   : > { %v894_v36 = vmul.f32 %v846_v29, %v702_v63  ;;  %3368 = verf.f32 %v1385_v33  ;;  %v4829_v56 = vadd.f32 %v4814_v28, %v1195_v7  ;;  %v1197_v10 = vpop.f32.mrb[49].mxu1  ;;  %1855 = vmatprep.mubr.f32.mxu0 %v3681_v19  ;;  %2487 = vmatprep.mubr.f32.mxu1 %v3681_v19  ;;  %v3687_v7 = vld [vmem:[#allocation2 + $0x218] sm:$0xff] }
 0x1ed   : > { %v3359_v31 = vpop.eup %3358  ;;  %v1526_v16 = vmul.f32 %v1478_v12, %v1334_v46  ;;  %v754_v17 = vmul.f32 0.70710677, %v4826_v44  ;;  %v706_v10 = vmul.f32 0.5, %v4826_v44 }
 0x1ee   : > { %v3361_v38 = vpop.eup %3360  ;;  %942 = vst [vmem:[%s4545_s17 + $0x280] sm:$0xff] %v894_v36  ;;  %v847_v50 = vadd.f32 1.0, %v3359_v31  ;;  %v1386_v47 = vmul.f32 0.70710677, %v4829_v56  ;;  %v568_v21 = vpop.f32.mrb[50].mxu0 }
 0x1ef   : > { %1574 = vst [vmem:[%s4545_s17 + $0x288] sm:$0xff] %v1526_v16  ;;  %v1479_v37 = vadd.f32 1.0, %v3361_v38  ;;  %3370 = verf.f32 %v754_v17  ;;  %v4838_v13 = vadd.f32 %v4808_v34, %v568_v21  ;;  %v1200_v58 = vpop.f32.mrb[50].mxu1  ;;  %v570_v11 = vpop.f32.mrb[51].mxu0  ;;  %1856 = vmatmul.mubr.f32.gmra.mrb[156].mxu0 %v3682_v25  ;;  %2488 = vmatmul.mubr.f32.gmra.mrb[156].mxu1 %v3682_v25  ;;  %v1338_v17 = vmul.f32 0.5, %v4829_v56  ;;  %v3688_v21 = vld [vmem:[#allocation2 + $0x210] sm:$0xff] }
 0x1f0   : > { %v895_v22 = vmul.f32 %v847_v50, %v703_v40  ;;  %3372 = verf.f32 %v1386_v47  ;;  %v4841_v52 = vadd.f32 %v4814_v28, %v1200_v58  ;;  %v1202_v54 = vpop.f32.mrb[51].mxu1  ;;  %1860 = vmatprep.mubr.f32.mxu0 %v3683_v57  ;;  %2492 = vmatprep.mubr.f32.mxu1 %v3683_v57  ;;  %v3689_v58 = vld [vmem:[#allocation2 + $0x228] sm:$0xff] }
 0x1f1   : > { %v3363_v45 = vpop.eup %3362  ;;  %v1527_v8 = vmul.f32 %v1479_v37, %v1335_v60  ;;  %v755_v61 = vmul.f32 0.70710677, %v4838_v13  ;;  %v707_v54 = vmul.f32 0.5, %v4838_v13 }
 0x1f2   : > { %v3365_v3 = vpop.eup %3364  ;;  %943 = vst [vmem:[%s4545_s17 + $0x2a0] sm:$0xff] %v895_v22  ;;  %v848_v18 = vadd.f32 1.0, %v3363_v45  ;;  %v1387_v35 = vmul.f32 0.70710677, %v4841_v52  ;;  %v573_v62 = vpop.f32.mrb[52].mxu0 }
 0x1f3   : > { %1575 = vst [vmem:[%s4545_s17 + $0x2a8] sm:$0xff] %v1527_v8  ;;  %v1480_v5 = vadd.f32 1.0, %v3365_v3  ;;  %3374 = verf.f32 %v755_v61  ;;  %v4850_v20 = vadd.f32 %v4808_v34, %v573_v62  ;;  %v1205_v55 = vpop.f32.mrb[52].mxu1  ;;  %v575_v2 = vpop.f32.mrb[53].mxu0  ;;  %1861 = vmatmul.mubr.f32.gmra.mrb[158].mxu0 %v3684_v42  ;;  %2493 = vmatmul.mubr.f32.gmra.mrb[158].mxu1 %v3684_v42  ;;  %v1339_v61 = vmul.f32 0.5, %v4841_v52  ;;  %v3690_v62 = vld [vmem:[#allocation2 + $0x220] sm:$0xff] }
 0x1f4   : > { %v896_v49 = vmul.f32 %v848_v18, %v704_v15  ;;  %3376 = verf.f32 %v1387_v35  ;;  %v4853_v43 = vadd.f32 %v4814_v28, %v1205_v55  ;;  %v1207_v26 = vpop.f32.mrb[53].mxu1  ;;  %1865 = vmatprep.mubr.f32.mxu0 %v3685_v9  ;;  %2497 = vmatprep.mubr.f32.mxu1 %v3685_v9  ;;  %v3691_v55 = vld [vmem:[#allocation2 + $0x238] sm:$0xff] }
 0x1f5   : > { %v3367_v59 = vpop.eup %3366  ;;  %v1528_v27 = vmul.f32 %v1480_v5, %v1336_v39  ;;  %v756_v51 = vmul.f32 0.70710677, %v4850_v20  ;;  %v708_v26 = vmul.f32 0.5, %v4850_v20 }
 0x1f6   : > { %v3369_v4 = vpop.eup %3368  ;;  %944 = vst [vmem:[%s4545_s17 + $0x2c0] sm:$0xff] %v896_v49  ;;  %v849_v41 = vadd.f32 1.0, %v3367_v59  ;;  %v1388_v0 = vmul.f32 0.70710677, %v4853_v43  ;;  %v578_v1 = vpop.f32.mrb[54].mxu0 }
 0x1f7   : > { %1576 = vst [vmem:[%s4545_s17 + $0x2c8] sm:$0xff] %v1528_v27  ;;  %v1481_v48 = vadd.f32 1.0, %v3369_v4  ;;  %3378 = verf.f32 %v756_v51  ;;  %v4862_v63 = vadd.f32 %v4808_v34, %v578_v1  ;;  %v1210_v29 = vpop.f32.mrb[54].mxu1  ;;  %v580_v33 = vpop.f32.mrb[55].mxu0  ;;  %1866 = vmatmul.mubr.f32.gmra.mrb[160].mxu0 %v3686_v30  ;;  %2498 = vmatmul.mubr.f32.gmra.mrb[160].mxu1 %v3686_v30  ;;  %v1340_v51 = vmul.f32 0.5, %v4853_v43  ;;  %v3692_v1 = vld [vmem:[#allocation2 + $0x230] sm:$0xff] }
 0x1f8   : > { %v897_v46 = vmul.f32 %v849_v41, %v705_v14  ;;  %3380 = verf.f32 %v1388_v0  ;;  %v4865_v24 = vadd.f32 %v4814_v28, %v1210_v29  ;;  %v1212_v12 = vpop.f32.mrb[55].mxu1  ;;  %1870 = vmatprep.mubr.f32.mxu0 %v3687_v7  ;;  %2502 = vmatprep.mubr.f32.mxu1 %v3687_v7  ;;  %v3693_v29 = vld [vmem:[#allocation2 + $0x248] sm:$0xff] }
 0x1f9   : > { %v3371_v6 = vpop.eup %3370  ;;  %v1529_v23 = vmul.f32 %v1481_v48, %v1337_v53  ;;  %v757_v32 = vmul.f32 0.70710677, %v4862_v63  ;;  %v709_v12 = vmul.f32 0.5, %v4862_v63 }
 0x1fa   : > { %v3373_v36 = vpop.eup %3372  ;;  %945 = vst [vmem:[%s4545_s17 + $0x2e0] sm:$0xff] %v897_v46  ;;  %v850_v19 = vadd.f32 1.0, %v3371_v6  ;;  %v1389_v31 = vmul.f32 0.70710677, %v4865_v24  ;;  %v583_v16 = vpop.f32.mrb[56].mxu0 }
 0x1fb   : > { %1577 = vst [vmem:[%s4545_s17 + $0x2e8] sm:$0xff] %v1529_v23  ;;  %v1482_v38 = vadd.f32 1.0, %v3373_v36  ;;  %3382 = verf.f32 %v757_v32  ;;  %v4874_v40 = vadd.f32 %v4808_v34, %v583_v16  ;;  %v1215_v50 = vpop.f32.mrb[56].mxu1  ;;  %v585_v47 = vpop.f32.mrb[57].mxu0  ;;  %1871 = vmatmul.mubr.f32.gmra.mrb[162].mxu0 %v3688_v21  ;;  %2503 = vmatmul.mubr.f32.gmra.mrb[162].mxu1 %v3688_v21  ;;  %v1341_v32 = vmul.f32 0.5, %v4865_v24  ;;  %v3694_v16 = vld [vmem:[#allocation2 + $0x240] sm:$0xff] }
 0x1fc   : > { %v898_v60 = vmul.f32 %v850_v19, %v706_v10  ;;  %3384 = verf.f32 %v1389_v31  ;;  %v4877_v44 = vadd.f32 %v4814_v28, %v1215_v50  ;;  %v1217_v37 = vpop.f32.mrb[57].mxu1  ;;  %1875 = vmatprep.mubr.f32.mxu0 %v3689_v58  ;;  %2507 = vmatprep.mubr.f32.mxu1 %v3689_v58  ;;  %v3695_v50 = vld [vmem:[#allocation2 + $0x258] sm:$0xff] }
 0x1fd   : > { %v3375_v56 = vpop.eup %3374  ;;  %v1530_v11 = vmul.f32 %v1482_v38, %v1338_v17  ;;  %v758_v25 = vmul.f32 0.70710677, %v4874_v40  ;;  %v710_v37 = vmul.f32 0.5, %v4874_v40 }
 0x1fe   : > { %v3377_v22 = vpop.eup %3376  ;;  %946 = vst [vmem:[%s4545_s17 + $0x300] sm:$0xff] %v898_v60  ;;  %v851_v57 = vadd.f32 1.0, %v3375_v56  ;;  %v1390_v45 = vmul.f32 0.70710677, %v4877_v44  ;;  %v588_v8 = vpop.f32.mrb[58].mxu0 }
 0x1ff   : > { %1578 = vst [vmem:[%s4545_s17 + $0x308] sm:$0xff] %v1530_v11  ;;  %v1483_v3 = vadd.f32 1.0, %v3377_v22  ;;  %3386 = verf.f32 %v758_v25  ;;  %v4886_v15 = vadd.f32 %v4808_v34, %v588_v8  ;;  %v1220_v18 = vpop.f32.mrb[58].mxu1  ;;  %v590_v35 = vpop.f32.mrb[59].mxu0  ;;  %1876 = vmatmul.mubr.f32.gmra.mrb[164].mxu0 %v3690_v62  ;;  %2508 = vmatmul.mubr.f32.gmra.mrb[164].mxu1 %v3690_v62  ;;  %v1342_v25 = vmul.f32 0.5, %v4877_v44  ;;  %v3696_v8 = vld [vmem:[#allocation2 + $0x250] sm:$0xff] }
 0x200   : > { %v899_v39 = vmul.f32 %v851_v57, %v707_v54  ;;  %3388 = verf.f32 %v1390_v45  ;;  %v4889_v13 = vadd.f32 %v4814_v28, %v1220_v18  ;;  %v1222_v5 = vpop.f32.mrb[59].mxu1  ;;  %1880 = vmatprep.mubr.f32.mxu0 %v3691_v55  ;;  %2512 = vmatprep.mubr.f32.mxu1 %v3691_v55  ;;  %v3697_v18 = vld [vmem:[#allocation2 + $0x268] sm:$0xff] }
 0x201   : > { %v3379_v52 = vpop.eup %3378  ;;  %v1531_v2 = vmul.f32 %v1483_v3, %v1339_v61  ;;  %v759_v42 = vmul.f32 0.70710677, %v4886_v15  ;;  %v711_v5 = vmul.f32 0.5, %v4886_v15 }
 0x202   : > { %v3381_v49 = vpop.eup %3380  ;;  %947 = vst [vmem:[%s4545_s17 + $0x320] sm:$0xff] %v899_v39  ;;  %v852_v9 = vadd.f32 1.0, %v3379_v52  ;;  %v1391_v59 = vmul.f32 0.70710677, %v4889_v13  ;;  %v593_v27 = vpop.f32.mrb[60].mxu0 }
 0x203   : > { %1579 = vst [vmem:[%s4545_s17 + $0x328] sm:$0xff] %v1531_v2  ;;  %v1484_v4 = vadd.f32 1.0, %v3381_v49  ;;  %3390 = verf.f32 %v759_v42  ;;  %v4898_v14 = vadd.f32 %v4808_v34, %v593_v27  ;;  %v1225_v41 = vpop.f32.mrb[60].mxu1  ;;  %v595_v0 = vpop.f32.mrb[61].mxu0  ;;  %1881 = vmatmul.mubr.f32.gmra.mrb[166].mxu0 %v3692_v1  ;;  %2513 = vmatmul.mubr.f32.gmra.mrb[166].mxu1 %v3692_v1  ;;  %v1343_v42 = vmul.f32 0.5, %v4889_v13  ;;  %v3698_v27 = vld [vmem:[#allocation2 + $0x260] sm:$0xff] }
 0x204   : > { %v900_v53 = vmul.f32 %v852_v9, %v708_v26  ;;  %3392 = verf.f32 %v1391_v59  ;;  %v4901_v20 = vadd.f32 %v4814_v28, %v1225_v41  ;;  %v1227_v48 = vpop.f32.mrb[61].mxu1  ;;  %1885 = vmatprep.mubr.f32.mxu0 %v3693_v29  ;;  %2517 = vmatprep.mubr.f32.mxu1 %v3693_v29  ;;  %v3699_v41 = vld [vmem:[#allocation2 + $0x278] sm:$0xff] }
 0x205   : > { %v3383_v43 = vpop.eup %3382  ;;  %v1532_v33 = vmul.f32 %v1484_v4, %v1340_v51  ;;  %v760_v30 = vmul.f32 0.70710677, %v4898_v14  ;;  %v712_v48 = vmul.f32 0.5, %v4898_v14 }
 0x206   : > { %v3385_v46 = vpop.eup %3384  ;;  %948 = vst [vmem:[%s4545_s17 + $0x340] sm:$0xff] %v900_v53  ;;  %v853_v7 = vadd.f32 1.0, %v3383_v43  ;;  %v1392_v6 = vmul.f32 0.70710677, %v4901_v20  ;;  %v598_v23 = vpop.f32.mrb[62].mxu0 }
 0x207   : > { %1580 = vst [vmem:[%s4545_s17 + $0x348] sm:$0xff] %v1532_v33  ;;  %v1485_v36 = vadd.f32 1.0, %v3385_v46  ;;  %3394 = verf.f32 %v760_v30  ;;  %v4910_v10 = vadd.f32 %v4808_v34, %v598_v23  ;;  %v1230_v19 = vpop.f32.mrb[62].mxu1  ;;  %v600_v31 = vpop.f32.mrb[63].mxu0  ;;  %1886 = vmatmul.mubr.f32.gmra.mrb[168].mxu0 %v3694_v16  ;;  %2518 = vmatmul.mubr.f32.gmra.mrb[168].mxu1 %v3694_v16  ;;  %v1344_v30 = vmul.f32 0.5, %v4901_v20  ;;  %v3700_v23 = vld [vmem:[#allocation2 + $0x270] sm:$0xff] }
 0x208   : > { %v901_v17 = vmul.f32 %v853_v7, %v709_v12  ;;  %3396 = verf.f32 %v1392_v6  ;;  %v4913_v63 = vadd.f32 %v4814_v28, %v1230_v19  ;;  %v1232_v38 = vpop.f32.mrb[63].mxu1  ;;  %1890 = vmatprep.mubr.f32.mxu0 %v3695_v50  ;;  %2522 = vmatprep.mubr.f32.mxu1 %v3695_v50  ;;  %v3701_v19 = vld [vmem:[#allocation2 + $0x288] sm:$0xff] }
 0x209   : > { %v3387_v24 = vpop.eup %3386  ;;  %v1533_v47 = vmul.f32 %v1485_v36, %v1341_v32  ;;  %v761_v21 = vmul.f32 0.70710677, %v4910_v10  ;;  %v713_v38 = vmul.f32 0.5, %v4910_v10 }
 0x20a   : > { %v3389_v60 = vpop.eup %3388  ;;  %949 = vst [vmem:[%s4545_s17 + $0x360] sm:$0xff] %v901_v17  ;;  %v854_v58 = vadd.f32 1.0, %v3387_v24  ;;  %v1393_v56 = vmul.f32 0.70710677, %v4913_v63  ;;  %v603_v11 = vpop.f32.mrb[64].mxu0 }
 0x20b   : > { %1581 = vst [vmem:[%s4545_s17 + $0x368] sm:$0xff] %v1533_v47  ;;  %v1486_v22 = vadd.f32 1.0, %v3389_v60  ;;  %3398 = verf.f32 %v761_v21  ;;  %v4922_v54 = vadd.f32 %v4808_v34, %v603_v11  ;;  %v1235_v57 = vpop.f32.mrb[64].mxu1  ;;  %v605_v45 = vpop.f32.mrb[65].mxu0  ;;  %1891 = vmatmul.mubr.f32.gmra.mrb[170].mxu0 %v3696_v8  ;;  %2523 = vmatmul.mubr.f32.gmra.mrb[170].mxu1 %v3696_v8  ;;  %v1345_v21 = vmul.f32 0.5, %v4913_v63  ;;  %v3702_v11 = vld [vmem:[#allocation2 + $0x280] sm:$0xff] }
 0x20c   : > { %v902_v61 = vmul.f32 %v854_v58, %v710_v37  ;;  %3400 = verf.f32 %v1393_v56  ;;  %v4925_v40 = vadd.f32 %v4814_v28, %v1235_v57  ;;  %v1237_v3 = vpop.f32.mrb[65].mxu1  ;;  %1895 = vmatprep.mubr.f32.mxu0 %v3697_v18  ;;  %2527 = vmatprep.mubr.f32.mxu1 %v3697_v18  ;;  %v3703_v57 = vld [vmem:[#allocation2 + $0x298] sm:$0xff] }
 0x20d   : > { %v3391_v44 = vpop.eup %3390  ;;  %v1534_v35 = vmul.f32 %v1486_v22, %v1342_v25  ;;  %v762_v62 = vmul.f32 0.70710677, %v4922_v54  ;;  %v714_v3 = vmul.f32 0.5, %v4922_v54 }
 0x20e   : > { %v3393_v39 = vpop.eup %3392  ;;  %950 = vst [vmem:[%s4545_s17 + $0x380] sm:$0xff] %v902_v61  ;;  %v855_v55 = vadd.f32 1.0, %v3391_v44  ;;  %v1394_v52 = vmul.f32 0.70710677, %v4925_v40  ;;  %v608_v2 = vpop.f32.mrb[66].mxu0 }
 0x20f   : > { %1582 = vst [vmem:[%s4545_s17 + $0x388] sm:$0xff] %v1534_v35  ;;  %v1487_v49 = vadd.f32 1.0, %v3393_v39  ;;  %3402 = verf.f32 %v762_v62  ;;  %v4934_v26 = vadd.f32 %v4808_v34, %v608_v2  ;;  %v1240_v9 = vpop.f32.mrb[66].mxu1  ;;  %v610_v59 = vpop.f32.mrb[67].mxu0  ;;  %1896 = vmatmul.mubr.f32.gmra.mrb[172].mxu0 %v3698_v27  ;;  %2528 = vmatmul.mubr.f32.gmra.mrb[172].mxu1 %v3698_v27  ;;  %v1346_v62 = vmul.f32 0.5, %v4925_v40  ;;  %v3704_v2 = vld [vmem:[#allocation2 + $0x290] sm:$0xff] }
 0x210   : > { %v903_v51 = vmul.f32 %v855_v55, %v711_v5  ;;  %3404 = verf.f32 %v1394_v52  ;;  %v4937_v15 = vadd.f32 %v4814_v28, %v1240_v9  ;;  %v1242_v4 = vpop.f32.mrb[67].mxu1  ;;  %1900 = vmatprep.mubr.f32.mxu0 %v3699_v41  ;;  %2532 = vmatprep.mubr.f32.mxu1 %v3699_v41  ;;  %v3705_v9 = vld [vmem:[#allocation2 + $0x2a8] sm:$0xff] }
 0x211   : > { %v3395_v13 = vpop.eup %3394  ;;  %v1535_v0 = vmul.f32 %v1487_v49, %v1343_v42  ;;  %v763_v1 = vmul.f32 0.70710677, %v4934_v26  ;;  %v715_v4 = vmul.f32 0.5, %v4934_v26 }
 0x212   : > { %v3397_v53 = vpop.eup %3396  ;;  %951 = vst [vmem:[%s4545_s17 + $0x3a0] sm:$0xff] %v903_v51  ;;  %v856_v29 = vadd.f32 1.0, %v3395_v13  ;;  %v1395_v43 = vmul.f32 0.70710677, %v4937_v15  ;;  %v613_v33 = vpop.f32.mrb[68].mxu0 }
 0x213   : > { %1583 = vst [vmem:[%s4545_s17 + $0x3a8] sm:$0xff] %v1535_v0  ;;  %v1488_v46 = vadd.f32 1.0, %v3397_v53  ;;  %3406 = verf.f32 %v763_v1  ;;  %v4946_v12 = vadd.f32 %v4808_v34, %v613_v33  ;;  %v1245_v7 = vpop.f32.mrb[68].mxu1  ;;  %v615_v6 = vpop.f32.mrb[69].mxu0  ;;  %1901 = vmatmul.mubr.f32.gmra.mrb[174].mxu0 %v3700_v23  ;;  %2533 = vmatmul.mubr.f32.gmra.mrb[174].mxu1 %v3700_v23  ;;  %v1347_v1 = vmul.f32 0.5, %v4937_v15  ;;  %v3706_v33 = vld [vmem:[#allocation2 + $0x2a0] sm:$0xff] }
 0x214   : > { %v904_v32 = vmul.f32 %v856_v29, %v712_v48  ;;  %3408 = verf.f32 %v1395_v43  ;;  %v4949_v14 = vadd.f32 %v4814_v28, %v1245_v7  ;;  %v1247_v36 = vpop.f32.mrb[69].mxu1  ;;  %1905 = vmatprep.mubr.f32.mxu0 %v3701_v19  ;;  %2537 = vmatprep.mubr.f32.mxu1 %v3701_v19  ;;  %v3707_v7 = vld [vmem:[#allocation2 + $0x2b8] sm:$0xff] }
 0x215   : > { %v3399_v20 = vpop.eup %3398  ;;  %v1536_v31 = vmul.f32 %v1488_v46, %v1344_v30  ;;  %v764_v16 = vmul.f32 0.70710677, %v4946_v12  ;;  %v716_v36 = vmul.f32 0.5, %v4946_v12 }
 0x216   : > { %v3401_v17 = vpop.eup %3400  ;;  %952 = vst [vmem:[%s4545_s17 + $0x3c0] sm:$0xff] %v904_v32  ;;  %v857_v50 = vadd.f32 1.0, %v3399_v20  ;;  %v1396_v24 = vmul.f32 0.70710677, %v4949_v14  ;;  %v618_v47 = vpop.f32.mrb[70].mxu0 }
 0x217   : > { %1584 = vst [vmem:[%s4545_s17 + $0x3c8] sm:$0xff] %v1536_v31  ;;  %v1489_v60 = vadd.f32 1.0, %v3401_v17  ;;  %3410 = verf.f32 %v764_v16  ;;  %v4958_v37 = vadd.f32 %v4808_v34, %v618_v47  ;;  %v1250_v58 = vpop.f32.mrb[70].mxu1  ;;  %v620_v56 = vpop.f32.mrb[71].mxu0  ;;  %1906 = vmatmul.mubr.f32.gmra.mrb[176].mxu0 %v3702_v11  ;;  %2538 = vmatmul.mubr.f32.gmra.mrb[176].mxu1 %v3702_v11  ;;  %v1348_v16 = vmul.f32 0.5, %v4949_v14  ;;  %v3708_v47 = vld [vmem:[#allocation2 + $0x2b0] sm:$0xff] }
 0x218   : > { %v905_v25 = vmul.f32 %v857_v50, %v713_v38  ;;  %3412 = verf.f32 %v1396_v24  ;;  %v4961_v10 = vadd.f32 %v4814_v28, %v1250_v58  ;;  %v1252_v22 = vpop.f32.mrb[71].mxu1  ;;  %1910 = vmatprep.mubr.f32.mxu0 %v3703_v57  ;;  %2542 = vmatprep.mubr.f32.mxu1 %v3703_v57  ;;  %v3709_v58 = vld [vmem:[#allocation2 + $0x2c8] sm:$0xff] }
 0x219   : > { %v3403_v63 = vpop.eup %3402  ;;  %v1537_v45 = vmul.f32 %v1489_v60, %v1345_v21  ;;  %v765_v8 = vmul.f32 0.70710677, %v4958_v37  ;;  %v717_v22 = vmul.f32 0.5, %v4958_v37 }
 0x21a   : > { %v3405_v61 = vpop.eup %3404  ;;  %953 = vst [vmem:[%s4545_s17 + $0x3e0] sm:$0xff] %v905_v25  ;;  %v858_v18 = vadd.f32 1.0, %v3403_v63  ;;  %v1397_v44 = vmul.f32 0.70710677, %v4961_v10  ;;  %v623_v35 = vpop.f32.mrb[72].mxu0 }
 0x21b   : > { %1585 = vst [vmem:[%s4545_s17 + $0x3e8] sm:$0xff] %v1537_v45  ;;  %v1490_v39 = vadd.f32 1.0, %v3405_v61  ;;  %3414 = verf.f32 %v765_v8  ;;  %v4970_v5 = vadd.f32 %v4808_v34, %v623_v35  ;;  %v1255_v55 = vpop.f32.mrb[72].mxu1  ;;  %v625_v52 = vpop.f32.mrb[73].mxu0  ;;  %1911 = vmatmul.mubr.f32.gmra.mrb[178].mxu0 %v3704_v2  ;;  %2543 = vmatmul.mubr.f32.gmra.mrb[178].mxu1 %v3704_v2  ;;  %v1349_v8 = vmul.f32 0.5, %v4961_v10  ;;  %v3710_v35 = vld [vmem:[#allocation2 + $0x2c0] sm:$0xff] }
 0x21c   : > { %v906_v42 = vmul.f32 %v858_v18, %v714_v3  ;;  %3416 = verf.f32 %v1397_v44  ;;  %v4973_v54 = vadd.f32 %v4814_v28, %v1255_v55  ;;  %v1257_v49 = vpop.f32.mrb[73].mxu1  ;;  %1915 = vmatprep.mubr.f32.mxu0 %v3705_v9  ;;  %2547 = vmatprep.mubr.f32.mxu1 %v3705_v9  ;;  %v3711_v55 = vld [vmem:[#allocation2 + $0x2d8] sm:$0xff] }
 0x21d   : > { %v3407_v40 = vpop.eup %3406  ;;  %v1538_v59 = vmul.f32 %v1490_v39, %v1346_v62  ;;  %v766_v27 = vmul.f32 0.70710677, %v4970_v5  ;;  %v718_v49 = vmul.f32 0.5, %v4970_v5 }
 0x21e   : > { %v3409_v51 = vpop.eup %3408  ;;  %954 = vst [vmem:[%s4545_s17 + $0x400] sm:$0xff] %v906_v42  ;;  %v859_v41 = vadd.f32 1.0, %v3407_v40  ;;  %v1398_v13 = vmul.f32 0.70710677, %v4973_v54  ;;  %v628_v0 = vpop.f32.mrb[74].mxu0 }
 0x21f   : > { %1586 = vst [vmem:[%s4545_s17 + $0x408] sm:$0xff] %v1538_v59  ;;  %v1491_v53 = vadd.f32 1.0, %v3409_v51  ;;  %3418 = verf.f32 %v766_v27  ;;  %v4982_v48 = vadd.f32 %v4808_v34, %v628_v0  ;;  %v1260_v29 = vpop.f32.mrb[74].mxu1  ;;  %v630_v43 = vpop.f32.mrb[75].mxu0  ;;  %1916 = vmatmul.mubr.f32.gmra.mrb[180].mxu0 %v3706_v33  ;;  %2548 = vmatmul.mubr.f32.gmra.mrb[180].mxu1 %v3706_v33  ;;  %v1350_v27 = vmul.f32 0.5, %v4973_v54  ;;  %v3712_v0 = vld [vmem:[#allocation2 + $0x2d0] sm:$0xff] }
 0x220   : > { %v907_v30 = vmul.f32 %v859_v41, %v715_v4  ;;  %3420 = verf.f32 %v1398_v13  ;;  %v4985_v26 = vadd.f32 %v4814_v28, %v1260_v29  ;;  %v1262_v46 = vpop.f32.mrb[75].mxu1  ;;  %1920 = vmatprep.mubr.f32.mxu0 %v3707_v7  ;;  %2552 = vmatprep.mubr.f32.mxu1 %v3707_v7  ;;  %v3713_v29 = vld [vmem:[#allocation2 + $0x2e8] sm:$0xff] }
 0x221   : > { %v3411_v15 = vpop.eup %3410  ;;  %v1539_v6 = vmul.f32 %v1491_v53, %v1347_v1  ;;  %v767_v23 = vmul.f32 0.70710677, %v4982_v48  ;;  %v719_v46 = vmul.f32 0.5, %v4982_v48 }
 0x222   : > { %v3413_v32 = vpop.eup %3412  ;;  %955 = vst [vmem:[%s4545_s17 + $0x420] sm:$0xff] %v907_v30  ;;  %v860_v19 = vadd.f32 1.0, %v3411_v15  ;;  %v1399_v20 = vmul.f32 0.70710677, %v4985_v26  ;;  %v633_v31 = vpop.f32.mrb[76].mxu0 }
 0x223   : > { %1587 = vst [vmem:[%s4545_s17 + $0x428] sm:$0xff] %v1539_v6  ;;  %v1492_v17 = vadd.f32 1.0, %v3413_v32  ;;  %3422 = verf.f32 %v767_v23  ;;  %v4994_v38 = vadd.f32 %v4808_v34, %v633_v31  ;;  %v1265_v50 = vpop.f32.mrb[76].mxu1  ;;  %v635_v24 = vpop.f32.mrb[77].mxu0  ;;  %1921 = vmatmul.mubr.f32.gmra.mrb[182].mxu0 %v3708_v47  ;;  %2553 = vmatmul.mubr.f32.gmra.mrb[182].mxu1 %v3708_v47  ;;  %v1351_v23 = vmul.f32 0.5, %v4985_v26  ;;  %v3714_v31 = vld [vmem:[#allocation2 + $0x2e0] sm:$0xff] }
 0x224   : > { %v908_v21 = vmul.f32 %v860_v19, %v716_v36  ;;  %3424 = verf.f32 %v1399_v20  ;;  %v4997_v12 = vadd.f32 %v4814_v28, %v1265_v50  ;;  %v1267_v60 = vpop.f32.mrb[77].mxu1  ;;  %1925 = vmatprep.mubr.f32.mxu0 %v3709_v58  ;;  %2557 = vmatprep.mubr.f32.mxu1 %v3709_v58  ;;  %v3715_v50 = vld [vmem:[#allocation2 + $0x2f8] sm:$0xff] }
 0x225   : > { %v3415_v14 = vpop.eup %3414  ;;  %v1540_v56 = vmul.f32 %v1492_v17, %v1348_v16  ;;  %v768_v11 = vmul.f32 0.70710677, %v4994_v38  ;;  %v720_v60 = vmul.f32 0.5, %v4994_v38 }
 0x226   : > { %v3417_v25 = vpop.eup %3416  ;;  %956 = vst [vmem:[%s4545_s17 + $0x440] sm:$0xff] %v908_v21  ;;  %v861_v57 = vadd.f32 1.0, %v3415_v14  ;;  %v1400_v63 = vmul.f32 0.70710677, %v4997_v12  ;;  %v638_v45 = vpop.f32.mrb[78].mxu0 }
 0x227   : > { %1588 = vst [vmem:[%s4545_s17 + $0x448] sm:$0xff] %v1540_v56  ;;  %v1493_v61 = vadd.f32 1.0, %v3417_v25  ;;  %3426 = verf.f32 %v768_v11  ;;  %v5006_v3 = vadd.f32 %v4808_v34, %v638_v45  ;;  %v1270_v18 = vpop.f32.mrb[78].mxu1  ;;  %v640_v44 = vpop.f32.mrb[79].mxu0  ;;  %1926 = vmatmul.mubr.f32.gmra.mrb[184].mxu0 %v3710_v35  ;;  %2558 = vmatmul.mubr.f32.gmra.mrb[184].mxu1 %v3710_v35  ;;  %v1352_v11 = vmul.f32 0.5, %v4997_v12  ;;  %v3716_v45 = vld [vmem:[#allocation2 + $0x2f0] sm:$0xff] }
 0x228   : > { %v909_v62 = vmul.f32 %v861_v57, %v717_v22  ;;  %3428 = verf.f32 %v1400_v63  ;;  %v5009_v37 = vadd.f32 %v4814_v28, %v1270_v18  ;;  %v1272_v39 = vpop.f32.mrb[79].mxu1  ;;  %1930 = vmatprep.mubr.f32.mxu0 %v3711_v55  ;;  %2562 = vmatprep.mubr.f32.mxu1 %v3711_v55 }
 0x229   : > { %v3419_v10 = vpop.eup %3418  ;;  %v1541_v52 = vmul.f32 %v1493_v61, %v1349_v8  ;;  %v769_v2 = vmul.f32 0.70710677, %v5006_v3 }
 0x22a   : > { %v3421_v42 = vpop.eup %3420  ;;  %957 = vst [vmem:[%s4545_s17 + $0x460] sm:$0xff] %v909_v62  ;;  %v862_v9 = vadd.f32 1.0, %v3419_v10  ;;  %v1401_v40 = vmul.f32 0.70710677, %v5009_v37  ;;  %v643_v59 = vpop.f32.mrb[80].mxu0  ;;  %v721_v62 = vmul.f32 0.5, %v5006_v3 }
 0x22b   : > { %1589 = vst [vmem:[%s4545_s17 + $0x468] sm:$0xff] %v1541_v52  ;;  %v1494_v51 = vadd.f32 1.0, %v3421_v42  ;;  %3430 = verf.f32 %v769_v2  ;;  %v5018_v4 = vadd.f32 %v4808_v34, %v643_v59  ;;  %v1275_v41 = vpop.f32.mrb[80].mxu1  ;;  %v645_v13 = vpop.f32.mrb[81].mxu0  ;;  %1931 = vmatmul.mubr.f32.gmra.mrb[186].mxu0 %v3712_v0  ;;  %2563 = vmatmul.mubr.f32.gmra.mrb[186].mxu1 %v3712_v0  ;;  %v1353_v52 = vmul.f32 0.5, %v5009_v37 }
 0x22c   : > { %v910_v1 = vmul.f32 %v862_v9, %v718_v49  ;;  %3432 = verf.f32 %v1401_v40  ;;  %v5021_v5 = vadd.f32 %v4814_v28, %v1275_v41  ;;  %v1277_v53 = vpop.f32.mrb[81].mxu1  ;;  %1935 = vmatprep.mubr.f32.mxu0 %v3713_v29  ;;  %2567 = vmatprep.mubr.f32.mxu1 %v3713_v29 }
 0x22d   : > { %v3423_v54 = vpop.eup %3422  ;;  %v1542_v43 = vmul.f32 %v1494_v51, %v1350_v27  ;;  %v770_v33 = vmul.f32 0.70710677, %v5018_v4  ;;  %v722_v37 = vmul.f32 0.5, %v5018_v4 }
 0x22e   : > { %v3425_v30 = vpop.eup %3424  ;;  %958 = vst [vmem:[%s4545_s17 + $0x480] sm:$0xff] %v910_v1  ;;  %v863_v7 = vadd.f32 1.0, %v3423_v54  ;;  %v1402_v15 = vmul.f32 0.70710677, %v5021_v5  ;;  %v648_v6 = vpop.f32.mrb[82].mxu0  ;;  %v1354_v29 = vmul.f32 0.5, %v5021_v5 }
 0x22f   : > { %1590 = vst [vmem:[%s4545_s17 + $0x488] sm:$0xff] %v1542_v43  ;;  %v1495_v32 = vadd.f32 1.0, %v3425_v30  ;;  %3434 = verf.f32 %v770_v33  ;;  %v5030_v36 = vadd.f32 %v4808_v34, %v648_v6  ;;  %v1280_v19 = vpop.f32.mrb[82].mxu1  ;;  %v650_v20 = vpop.f32.mrb[83].mxu0  ;;  %1936 = vmatmul.mubr.f32.gmra.mrb[188].mxu0 %v3714_v31  ;;  %2568 = vmatmul.mubr.f32.gmra.mrb[188].mxu1 %v3714_v31 }
 0x230   : > { %v911_v16 = vmul.f32 %v863_v7, %v719_v46  ;;  %3436 = verf.f32 %v1402_v15  ;;  %v5033_v48 = vadd.f32 %v4814_v28, %v1280_v19  ;;  %v1282_v17 = vpop.f32.mrb[83].mxu1  ;;  %1940 = vmatprep.mubr.f32.mxu0 %v3715_v50  ;;  %2572 = vmatprep.mubr.f32.mxu1 %v3715_v50 }
 0x231   : > { %v3427_v26 = vpop.eup %3426  ;;  %v1543_v24 = vmul.f32 %v1495_v32, %v1351_v23  ;;  %v771_v47 = vmul.f32 0.70710677, %v5030_v36 }
 0x232   : > { %v3429_v21 = vpop.eup %3428  ;;  %959 = vst [vmem:[%s4545_s17 + $0x4a0] sm:$0xff] %v911_v16  ;;  %v864_v58 = vadd.f32 1.0, %v3427_v26  ;;  %v1403_v14 = vmul.f32 0.70710677, %v5033_v48  ;;  %v653_v56 = vpop.f32.mrb[84].mxu0  ;;  %v1355_v31 = vmul.f32 0.5, %v5033_v48 }
 0x233   : > { %1591 = vst [vmem:[%s4545_s17 + $0x4a8] sm:$0xff] %v1543_v24  ;;  %v1496_v25 = vadd.f32 1.0, %v3429_v21  ;;  %3438 = verf.f32 %v771_v47  ;;  %v5042_v22 = vadd.f32 %v4808_v34, %v653_v56  ;;  %v1285_v57 = vpop.f32.mrb[84].mxu1  ;;  %v655_v63 = vpop.f32.mrb[85].mxu0  ;;  %1941 = vmatmul.mubr.f32.gmra.mrb[190].mxu0 %v3716_v45  ;;  %2573 = vmatmul.mubr.f32.gmra.mrb[190].mxu1 %v3716_v45  ;;  %v3717_v16 = vld [vmem:[%s4479_s27] ss:$0 sm:$0xff] }
 0x234   : > { %v912_v8 = vmul.f32 %v864_v58, %v720_v60  ;;  %3440 = verf.f32 %v1403_v14  ;;  %v5045_v38 = vadd.f32 %v4814_v28, %v1285_v57  ;;  %v1287_v61 = vpop.f32.mrb[85].mxu1  ;;  %v3718_v47 = vld [vmem:[%s4479_s27 + $0x1] ss:$0 sm:$0xff] }
 0x235   : > { %v3431_v18 = vpop.eup %3430  ;;  %v1544_v12 = vmul.f32 %v1496_v25, %v1352_v11  ;;  %v772_v44 = vmul.f32 0.70710677, %v5042_v22  ;;  %v724_v56 = vmul.f32 0.5, %v5042_v22 }
 0x236   : > { %v3433_v35 = vpop.eup %3432  ;;  %960 = vst [vmem:[%s4545_s17 + $0x4c0] sm:$0xff] %v912_v8  ;;  %v865_v39 = vadd.f32 1.0, %v3431_v18  ;;  %v1404_v55 = vmul.f32 0.70710677, %v5045_v38  ;;  %v658_v10 = vpop.f32.mrb[86].mxu0  ;;  %v1356_v63 = vmul.f32 0.5, %v5045_v38 }
 0x237   : > { %1592 = vst [vmem:[%s4545_s17 + $0x4c8] sm:$0xff] %v1544_v12  ;;  %v1497_v2 = vadd.f32 1.0, %v3433_v35  ;;  %3442 = verf.f32 %v772_v44  ;;  %v5054_v42 = vadd.f32 %v4808_v34, %v658_v10  ;;  %v1290_v49 = vpop.f32.mrb[86].mxu1  ;;  %v660_v9 = vpop.f32.mrb[87].mxu0 }
 0x238   : > { %v913_v40 = vmul.f32 %v865_v39, %v721_v62  ;;  %3444 = verf.f32 %v1404_v55  ;;  %v5057_v3 = vadd.f32 %v4814_v28, %v1290_v49  ;;  %v1292_v59 = vpop.f32.mrb[87].mxu1 }
 0x239   : > { %v3435_v27 = vpop.eup %3434  ;;  %v1545_v51 = vmul.f32 %v1497_v2, %v1353_v52  ;;  %v773_v41 = vmul.f32 0.70710677, %v5054_v42  ;;  %v725_v38 = vmul.f32 0.5, %v5054_v42 }
 0x23a   : > { %v3437_v13 = vpop.eup %3436  ;;  %961 = vst [vmem:[%s4545_s17 + $0x4e0] sm:$0xff] %v913_v40  ;;  %v866_v0 = vadd.f32 1.0, %v3435_v27  ;;  %v1405_v1 = vmul.f32 0.70710677, %v5057_v3  ;;  %v663_v53 = vpop.f32.mrb[88].mxu0  ;;  %v1357_v49 = vmul.f32 0.5, %v5057_v3 }
 0x23b   : > { %1593 = vst [vmem:[%s4545_s17 + $0x4e8] sm:$0xff] %v1545_v51  ;;  %v1498_v54 = vadd.f32 1.0, %v3437_v13  ;;  %3446 = verf.f32 %v773_v41  ;;  %v5066_v43 = vadd.f32 %v4808_v34, %v663_v53  ;;  %v1295_v33 = vpop.f32.mrb[88].mxu1  ;;  %v665_v30 = vpop.f32.mrb[89].mxu0  ;;  %v723_v34 = vmul.f32 0.5, %v5030_v36 }
 0x23c   : > { %v914_v46 = vmul.f32 %v866_v0, %v722_v37  ;;  %3448 = verf.f32 %v1405_v1  ;;  %v5069_v4 = vadd.f32 %v4814_v28, %v1295_v33  ;;  %v1297_v7 = vpop.f32.mrb[89].mxu1  ;;  %v5104_v13 = vld [vmem:[%s4479_s27 + $0x2] ss:$0 sm:$0xff]  ;;  %v5108_v3 = vld [vmem:[%s4479_s27 + $0x3] ss:$0 sm:$0xff] }
 0x23d   : > { %v3439_v15 = vpop.eup %3438  ;;  %v1546_v6 = vmul.f32 %v1498_v54, %v1354_v29  ;;  %v774_v23 = vmul.f32 0.70710677, %v5066_v43  ;;  %v726_v29 = vmul.f32 0.5, %v5066_v43 }
 0x23e   : > { %v3441_v5 = vpop.eup %3440  ;;  %962 = vst [vmem:[%s4545_s17 + $0x500] sm:$0xff] %v914_v46  ;;  %v867_v32 = vadd.f32 1.0, %v3439_v15  ;;  %v1406_v19 = vmul.f32 0.70710677, %v5069_v4  ;;  %v668_v20 = vpop.f32.mrb[90].mxu0  ;;  %v1358_v46 = vmul.f32 0.5, %v5069_v4 }
 0x23f   : > { %1594 = vst [vmem:[%s4545_s17 + $0x508] sm:$0xff] %v1546_v6  ;;  %v1499_v28 = vadd.f32 1.0, %v3441_v5  ;;  %3450 = verf.f32 %v774_v23  ;;  %v5078_v17 = vadd.f32 %v3717_v16, %v668_v20  ;;  %v1300_v50 = vpop.f32.mrb[90].mxu1  ;;  %v670_v26 = vpop.f32.mrb[91].mxu0 }
 0x240   : > { %v915_v24 = vmul.f32 %v867_v32, %v723_v34  ;;  %3452 = verf.f32 %v1406_v19  ;;  %v5081_v36 = vadd.f32 %v3718_v47, %v1300_v50  ;;  %v1302_v21 = vpop.f32.mrb[91].mxu1 }
 0x241   : > { %v3443_v60 = vpop.eup %3442  ;;  %v1547_v58 = vmul.f32 %v1499_v28, %v1355_v31  ;;  %v775_v14 = vmul.f32 0.70710677, %v5078_v17  ;;  %v727_v4 = vmul.f32 0.5, %v5078_v17 }
 0x242   : > { %v3445_v48 = vpop.eup %3444  ;;  %963 = vst [vmem:[%s4545_s17 + $0x520] sm:$0xff] %v915_v24  ;;  %v868_v11 = vadd.f32 1.0, %v3443_v60  ;;  %v1407_v25 = vmul.f32 0.70710677, %v5081_v36  ;;  %v673_v57 = vpop.f32.mrb[92].mxu0  ;;  %v1359_v26 = vmul.f32 0.5, %v5081_v36 }
 0x243   : > { %1595 = vst [vmem:[%s4545_s17 + $0x528] sm:$0xff] %v1547_v58  ;;  %v1500_v45 = vadd.f32 1.0, %v3445_v48  ;;  %3454 = verf.f32 %v775_v14  ;;  %v5089_v8 = vadd.f32 %v3717_v16, %v673_v57  ;;  %v1305_v61 = vpop.f32.mrb[92].mxu1  ;;  %v675_v18 = vpop.f32.mrb[93].mxu0 }
 0x244   : > { %v916_v12 = vmul.f32 %v868_v11, %v724_v56  ;;  %3456 = verf.f32 %v1407_v25  ;;  %v5091_v44 = vadd.f32 %v3718_v47, %v1305_v61  ;;  %v1307_v22 = vpop.f32.mrb[93].mxu1 }
 0x245   : > { %v3447_v35 = vpop.eup %3446  ;;  %v1548_v62 = vmul.f32 %v1500_v45, %v1356_v63  ;;  %v776_v39 = vmul.f32 0.70710677, %v5089_v8  ;;  %v728_v36 = vmul.f32 0.5, %v5089_v8 }
 0x246   : > { %v3449_v55 = vpop.eup %3448  ;;  %964 = vst [vmem:[%s4545_s17 + $0x540] sm:$0xff] %v916_v12  ;;  %v869_v10 = vadd.f32 1.0, %v3447_v35  ;;  %v1408_v52 = vmul.f32 0.70710677, %v5091_v44  ;;  %v678_v2 = vpop.f32.mrb[94].mxu0  ;;  %v1360_v61 = vmul.f32 0.5, %v5091_v44 }
 0x247   : > { %1596 = vst [vmem:[%s4545_s17 + $0x548] sm:$0xff] %v1548_v62  ;;  %v1501_v9 = vadd.f32 1.0, %v3449_v55  ;;  %3458 = verf.f32 %v776_v39  ;;  %v5099_v40 = vadd.f32 %v3717_v16, %v678_v2  ;;  %v1310_v59 = vpop.f32.mrb[94].mxu1  ;;  %v680_v27 = vpop.f32.mrb[95].mxu0 }
 0x248   : > { %v917_v51 = vmul.f32 %v869_v10, %v725_v38  ;;  %3460 = verf.f32 %v1408_v52  ;;  %v5101_v41 = vadd.f32 %v3718_v47, %v1310_v59  ;;  %v1312_v42 = vpop.f32.mrb[95].mxu1 }
 0x249   : > { %v3451_v37 = vpop.eup %3450  ;;  %v1549_v0 = vmul.f32 %v1501_v9, %v1357_v49  ;;  %v777_v1 = vmul.f32 0.70710677, %v5099_v40  ;;  %v729_v44 = vmul.f32 0.5, %v5099_v40 }
 0x24a   : > { %v3453_v53 = vpop.eup %3452  ;;  %965 = vst [vmem:[%s4545_s17 + $0x560] sm:$0xff] %v917_v51  ;;  %v870_v54 = vadd.f32 1.0, %v3451_v37  ;;  %v1409_v33 = vmul.f32 0.70710677, %v5101_v41  ;;  %v1707_v30 = vpop.f32.mrb[96].mxu0  ;;  %v1361_v59 = vmul.f32 0.5, %v5101_v41 }
 0x24b   : > { %1597 = vst [vmem:[%s4545_s17 + $0x568] sm:$0xff] %v1549_v0  ;;  %v1502_v7 = vadd.f32 1.0, %v3453_v53  ;;  %3462 = verf.f32 %v777_v1  ;;  %v5116_v15 = vadd.f32 %v5104_v13, %v1707_v30  ;;  %v2339_v6 = vpop.f32.mrb[96].mxu1  ;;  %v1709_v23 = vpop.f32.mrb[97].mxu0 }
 0x24c   : > { %v918_v5 = vmul.f32 %v870_v54, %v726_v29  ;;  %3464 = verf.f32 %v1409_v33  ;;  %v5119_v43 = vadd.f32 %v5108_v3, %v2339_v6  ;;  %v2341_v34 = vpop.f32.mrb[97].mxu1 }
 0x24d   : > { %v3455_v32 = vpop.eup %3454  ;;  %v1550_v19 = vmul.f32 %v1502_v7, %v1358_v46  ;;  %v1994_v20 = vmul.f32 0.70710677, %v5116_v15  ;;  %v1946_v41 = vmul.f32 0.5, %v5116_v15 }
 0x24e   : > { %v3457_v31 = vpop.eup %3456  ;;  %966 = vst [vmem:[%s4545_s17 + $0x580] sm:$0xff] %v918_v5  ;;  %v871_v28 = vadd.f32 1.0, %v3455_v32  ;;  %v2626_v16 = vmul.f32 0.70710677, %v5119_v43  ;;  %v1712_v50 = vpop.f32.mrb[98].mxu0  ;;  %v2578_v6 = vmul.f32 0.5, %v5119_v43 }
 0x24f   : > { %1598 = vst [vmem:[%s4545_s17 + $0x588] sm:$0xff] %v1550_v19  ;;  %v1503_v24 = vadd.f32 1.0, %v3457_v31  ;;  %3466 = verf.f32 %v1994_v20  ;;  %v5128_v47 = vadd.f32 %v5104_v13, %v1712_v50  ;;  %v2344_v21 = vpop.f32.mrb[98].mxu1  ;;  %v1714_v60 = vpop.f32.mrb[99].mxu0 }
 0x250   : > { %v919_v58 = vmul.f32 %v871_v28, %v727_v4  ;;  %3468 = verf.f32 %v2626_v16  ;;  %v5131_v17 = vadd.f32 %v5108_v3, %v2344_v21  ;;  %v2346_v14 = vpop.f32.mrb[99].mxu1 }
 0x251   : > { %v3459_v48 = vpop.eup %3458  ;;  %v1551_v56 = vmul.f32 %v1503_v24, %v1359_v26  ;;  %v1995_v11 = vmul.f32 0.70710677, %v5128_v47  ;;  %v1947_v43 = vmul.f32 0.5, %v5128_v47 }
 0x252   : > { %v3461_v25 = vpop.eup %3460  ;;  %967 = vst [vmem:[%s4545_s17 + $0x5a0] sm:$0xff] %v919_v58  ;;  %v872_v57 = vadd.f32 1.0, %v3459_v48  ;;  %v2627_v63 = vmul.f32 0.70710677, %v5131_v17  ;;  %v1717_v45 = vpop.f32.mrb[100].mxu0  ;;  %v2579_v21 = vmul.f32 0.5, %v5131_v17 }
 0x253   : > { %1599 = vst [vmem:[%s4545_s17 + $0x5a8] sm:$0xff] %v1551_v56  ;;  %v1504_v18 = vadd.f32 1.0, %v3461_v25  ;;  %3470 = verf.f32 %v1995_v11  ;;  %v5140_v12 = vadd.f32 %v5104_v13, %v1717_v45  ;;  %v2349_v22 = vpop.f32.mrb[100].mxu1  ;;  %v1719_v35 = vpop.f32.mrb[101].mxu0 }
 0x254   : > { %v920_v62 = vmul.f32 %v872_v57, %v728_v36  ;;  %3472 = verf.f32 %v2627_v63  ;;  %v5143_v8 = vadd.f32 %v5108_v3, %v2349_v22  ;;  %v2351_v39 = vpop.f32.mrb[101].mxu1 }
 0x255   : > { %v3463_v55 = vpop.eup %3462  ;;  %v1552_v38 = vmul.f32 %v1504_v18, %v1360_v61  ;;  %v1996_v10 = vmul.f32 0.70710677, %v5140_v12  ;;  %v1948_v17 = vmul.f32 0.5, %v5140_v12 }
 0x256   : > { %v3465_v52 = vpop.eup %3464  ;;  %968 = vst [vmem:[%s4545_s17 + $0x5c0] sm:$0xff] %v920_v62  ;;  %v873_v2 = vadd.f32 1.0, %v3463_v55  ;;  %v2628_v49 = vmul.f32 0.70710677, %v5143_v8  ;;  %v1722_v9 = vpop.f32.mrb[102].mxu0  ;;  %v2580_v22 = vmul.f32 0.5, %v5143_v8 }
 0x257   : > { %1600 = vst [vmem:[%s4545_s17 + $0x5c8] sm:$0xff] %v1552_v38  ;;  %v1505_v27 = vadd.f32 1.0, %v3465_v52  ;;  %3474 = verf.f32 %v1996_v10  ;;  %v5152_v51 = vadd.f32 %v5104_v13, %v1722_v9  ;;  %v2354_v42 = vpop.f32.mrb[102].mxu1  ;;  %v1724_v37 = vpop.f32.mrb[103].mxu0 }
 0x258   : > { %v921_v0 = vmul.f32 %v873_v2, %v729_v44  ;;  %3476 = verf.f32 %v2628_v49  ;;  %v5155_v40 = vadd.f32 %v5108_v3, %v2354_v42  ;;  %v2356_v1 = vpop.f32.mrb[103].mxu1 }
 0x259   : > { %v3467_v53 = vpop.eup %3466  ;;  %v1553_v29 = vmul.f32 %v1505_v27, %v1361_v59  ;;  %v1997_v54 = vmul.f32 0.70710677, %v5152_v51  ;;  %v1949_v8 = vmul.f32 0.5, %v5152_v51 }
 0x25a   : > { %v3469_v33 = vpop.eup %3468  ;;  %969 = vst [vmem:[%s4545_s17 + $0x5e0] sm:$0xff] %v921_v0  ;;  %v2090_v30 = vadd.f32 1.0, %v3467_v53  ;;  %v2629_v46 = vmul.f32 0.70710677, %v5155_v40  ;;  %v1727_v7 = vpop.f32.mrb[104].mxu0  ;;  %v2581_v42 = vmul.f32 0.5, %v5155_v40 }
 0x25b   : > { %1601 = vst [vmem:[%s4545_s17 + $0x5e8] sm:$0xff] %v1553_v29  ;;  %v2722_v23 = vadd.f32 1.0, %v3469_v33  ;;  %3478 = verf.f32 %v1997_v54  ;;  %v5164_v5 = vadd.f32 %v5104_v13, %v1727_v7  ;;  %v2359_v34 = vpop.f32.mrb[104].mxu1  ;;  %v1729_v32 = vpop.f32.mrb[105].mxu0 }
 0x25c   : > { %v2138_v19 = vmul.f32 %v2090_v30, %v1946_v41  ;;  %3480 = verf.f32 %v2629_v46  ;;  %v5167_v15 = vadd.f32 %v5108_v3, %v2359_v34  ;;  %v2361_v20 = vpop.f32.mrb[105].mxu1 }
 0x25d   : > { %v3471_v31 = vpop.eup %3470  ;;  %v2770_v4 = vmul.f32 %v2722_v23, %v2578_v6  ;;  %v1998_v28 = vmul.f32 0.70710677, %v5164_v5  ;;  %v1950_v40 = vmul.f32 0.5, %v5164_v5 }
 0x25e   : > { %v3473_v16 = vpop.eup %3472  ;;  %2186 = vst [vmem:[%s4545_s17 + $0x10] sm:$0xff] %v2138_v19  ;;  %v2091_v50 = vadd.f32 1.0, %v3471_v31  ;;  %v2630_v26 = vmul.f32 0.70710677, %v5167_v15  ;;  %v1732_v24 = vpop.f32.mrb[106].mxu0  ;;  %v2582_v34 = vmul.f32 0.5, %v5167_v15 }
 0x25f   : > { %2818 = vst [vmem:[%s4545_s17 + $0x18] sm:$0xff] %v2770_v4  ;;  %v2723_v60 = vadd.f32 1.0, %v3473_v16  ;;  %3482 = verf.f32 %v1998_v28  ;;  %v5176_v58 = vadd.f32 %v5104_v13, %v1732_v24  ;;  %v2364_v14 = vpop.f32.mrb[106].mxu1  ;;  %v1734_v48 = vpop.f32.mrb[107].mxu0 }
 0x260   : > { %v2139_v56 = vmul.f32 %v2091_v50, %v1947_v43  ;;  %3484 = verf.f32 %v2630_v26  ;;  %v5179_v47 = vadd.f32 %v5108_v3, %v2364_v14  ;;  %v2366_v11 = vpop.f32.mrb[107].mxu1 }
 0x261   : > { %v3475_v25 = vpop.eup %3474  ;;  %v2771_v36 = vmul.f32 %v2723_v60, %v2579_v21  ;;  %v1999_v57 = vmul.f32 0.70710677, %v5176_v58  ;;  %v1951_v15 = vmul.f32 0.5, %v5176_v58 }
 0x262   : > { %v3477_v63 = vpop.eup %3476  ;;  %2187 = vst [vmem:[%s4545_s17 + $0x30] sm:$0xff] %v2139_v56  ;;  %v2092_v45 = vadd.f32 1.0, %v3475_v25  ;;  %v2631_v61 = vmul.f32 0.70710677, %v5179_v47  ;;  %v1737_v18 = vpop.f32.mrb[108].mxu0  ;;  %v2583_v14 = vmul.f32 0.5, %v5179_v47 }
 0x263   : > { %2819 = vst [vmem:[%s4545_s17 + $0x38] sm:$0xff] %v2771_v36  ;;  %v2724_v35 = vadd.f32 1.0, %v3477_v63  ;;  %3486 = verf.f32 %v1999_v57  ;;  %v5188_v62 = vadd.f32 %v5104_v13, %v1737_v18  ;;  %v2369_v39 = vpop.f32.mrb[108].mxu1  ;;  %v1739_v55 = vpop.f32.mrb[109].mxu0 }
 0x264   : > { %v2140_v38 = vmul.f32 %v2092_v45, %v1948_v17  ;;  %3488 = verf.f32 %v2631_v61  ;;  %v5191_v12 = vadd.f32 %v5108_v3, %v2369_v39  ;;  %v2371_v10 = vpop.f32.mrb[109].mxu1 }
 0x265   : > { %v3479_v52 = vpop.eup %3478  ;;  %v2772_v44 = vmul.f32 %v2724_v35, %v2580_v22  ;;  %v2000_v2 = vmul.f32 0.70710677, %v5188_v62  ;;  %v1952_v47 = vmul.f32 0.5, %v5188_v62 }
 0x266   : > { %v3481_v49 = vpop.eup %3480  ;;  %2188 = vst [vmem:[%s4545_s17 + $0x50] sm:$0xff] %v2140_v38  ;;  %v2093_v9 = vadd.f32 1.0, %v3479_v52  ;;  %v2632_v59 = vmul.f32 0.70710677, %v5191_v12  ;;  %v1742_v27 = vpop.f32.mrb[110].mxu0  ;;  %v2584_v39 = vmul.f32 0.5, %v5191_v12 }
 0x267   : > { %2820 = vst [vmem:[%s4545_s17 + $0x58] sm:$0xff] %v2772_v44  ;;  %v2725_v37 = vadd.f32 1.0, %v3481_v49  ;;  %3490 = verf.f32 %v2000_v2  ;;  %v5200_v0 = vadd.f32 %v5104_v13, %v1742_v27  ;;  %v2374_v1 = vpop.f32.mrb[110].mxu1  ;;  %v1744_v53 = vpop.f32.mrb[111].mxu0 }
 0x268   : > { %v2141_v29 = vmul.f32 %v2093_v9, %v1949_v8  ;;  %3492 = verf.f32 %v2632_v59  ;;  %v5203_v51 = vadd.f32 %v5108_v3, %v2374_v1  ;;  %v2376_v54 = vpop.f32.mrb[111].mxu1 }
 0x269   : > { %v3483_v33 = vpop.eup %3482  ;;  %v2773_v41 = vmul.f32 %v2725_v37, %v2581_v42  ;;  %v2001_v30 = vmul.f32 0.70710677, %v5200_v0  ;;  %v1953_v12 = vmul.f32 0.5, %v5200_v0 }
 0x26a   : > { %v3485_v46 = vpop.eup %3484  ;;  %2189 = vst [vmem:[%s4545_s17 + $0x70] sm:$0xff] %v2141_v29  ;;  %v2094_v7 = vadd.f32 1.0, %v3483_v33  ;;  %v2633_v6 = vmul.f32 0.70710677, %v5203_v51  ;;  %v1747_v23 = vpop.f32.mrb[112].mxu0  ;;  %v2585_v1 = vmul.f32 0.5, %v5203_v51 }
 0x26b   : > { %2821 = vst [vmem:[%s4545_s17 + $0x78] sm:$0xff] %v2773_v41  ;;  %v2726_v32 = vadd.f32 1.0, %v3485_v46  ;;  %3494 = verf.f32 %v2001_v30  ;;  %v5212_v19 = vadd.f32 %v5104_v13, %v1747_v23  ;;  %v2379_v20 = vpop.f32.mrb[112].mxu1  ;;  %v1749_v31 = vpop.f32.mrb[113].mxu0 }
 0x26c   : > { %v2142_v4 = vmul.f32 %v2094_v7, %v1950_v40  ;;  %3496 = verf.f32 %v2633_v6  ;;  %v5215_v5 = vadd.f32 %v5108_v3, %v2379_v20  ;;  %v2381_v28 = vpop.f32.mrb[113].mxu1 }
 0x26d   : > { %v3487_v16 = vpop.eup %3486  ;;  %v2774_v43 = vmul.f32 %v2726_v32, %v2582_v34  ;;  %v2002_v50 = vmul.f32 0.70710677, %v5212_v19  ;;  %v1954_v51 = vmul.f32 0.5, %v5212_v19 }
 0x26e   : > { %v3489_v26 = vpop.eup %3488  ;;  %2190 = vst [vmem:[%s4545_s17 + $0x90] sm:$0xff] %v2142_v4  ;;  %v2095_v24 = vadd.f32 1.0, %v3487_v16  ;;  %v2634_v21 = vmul.f32 0.70710677, %v5215_v5  ;;  %v1752_v60 = vpop.f32.mrb[114].mxu0  ;;  %v2586_v20 = vmul.f32 0.5, %v5215_v5 }
 0x26f   : > { %2822 = vst [vmem:[%s4545_s17 + $0x98] sm:$0xff] %v2774_v43  ;;  %v2727_v48 = vadd.f32 1.0, %v3489_v26  ;;  %3498 = verf.f32 %v2002_v50  ;;  %v5224_v56 = vadd.f32 %v5104_v13, %v1752_v60  ;;  %v2384_v11 = vpop.f32.mrb[114].mxu1  ;;  %v1754_v25 = vpop.f32.mrb[115].mxu0 }
 0x270   : > { %v2143_v36 = vmul.f32 %v2095_v24, %v1951_v15  ;;  %3500 = verf.f32 %v2634_v21  ;;  %v5227_v58 = vadd.f32 %v5108_v3, %v2384_v11  ;;  %v2386_v57 = vpop.f32.mrb[115].mxu1 }
 0x271   : > { %v3491_v63 = vpop.eup %3490  ;;  %v2775_v17 = vmul.f32 %v2727_v48, %v2583_v14  ;;  %v2003_v45 = vmul.f32 0.70710677, %v5224_v56  ;;  %v1955_v5 = vmul.f32 0.5, %v5224_v56 }
 0x272   : > { %v3493_v61 = vpop.eup %3492  ;;  %2191 = vst [vmem:[%s4545_s17 + $0xb0] sm:$0xff] %v2143_v36  ;;  %v2096_v18 = vadd.f32 1.0, %v3491_v63  ;;  %v2635_v22 = vmul.f32 0.70710677, %v5227_v58  ;;  %v1757_v35 = vpop.f32.mrb[116].mxu0  ;;  %v2587_v11 = vmul.f32 0.5, %v5227_v58 }
 0x273   : > { %2823 = vst [vmem:[%s4545_s17 + $0xb8] sm:$0xff] %v2775_v17  ;;  %v2728_v55 = vadd.f32 1.0, %v3493_v61  ;;  %3502 = verf.f32 %v2003_v45  ;;  %v5236_v38 = vadd.f32 %v5104_v13, %v1757_v35  ;;  %v2389_v10 = vpop.f32.mrb[116].mxu1  ;;  %v1759_v52 = vpop.f32.mrb[117].mxu0 }
 0x274   : > { %v2144_v44 = vmul.f32 %v2096_v18, %v1952_v47  ;;  %3504 = verf.f32 %v2635_v22  ;;  %v5239_v62 = vadd.f32 %v5108_v3, %v2389_v10  ;;  %v2391_v2 = vpop.f32.mrb[117].mxu1 }
 0x275   : > { %v3495_v49 = vpop.eup %3494  ;;  %v2776_v8 = vmul.f32 %v2728_v55, %v2584_v39  ;;  %v2004_v9 = vmul.f32 0.70710677, %v5236_v38  ;;  %v1956_v58 = vmul.f32 0.5, %v5236_v38 }
 0x276   : > { %v3497_v59 = vpop.eup %3496  ;;  %2192 = vst [vmem:[%s4545_s17 + $0xd0] sm:$0xff] %v2144_v44  ;;  %v2097_v27 = vadd.f32 1.0, %v3495_v49  ;;  %v2636_v42 = vmul.f32 0.70710677, %v5239_v62  ;;  %v1762_v37 = vpop.f32.mrb[118].mxu0  ;;  %v2588_v10 = vmul.f32 0.5, %v5239_v62 }
 0x277   : > { %2824 = vst [vmem:[%s4545_s17 + $0xd8] sm:$0xff] %v2776_v8  ;;  %v2729_v53 = vadd.f32 1.0, %v3497_v59  ;;  %3506 = verf.f32 %v2004_v9  ;;  %v5248_v29 = vadd.f32 %v5104_v13, %v1762_v37  ;;  %v2394_v54 = vpop.f32.mrb[118].mxu1  ;;  %v1764_v33 = vpop.f32.mrb[119].mxu0 }
 0x278   : > { %v2145_v41 = vmul.f32 %v2097_v27, %v1953_v12  ;;  %3508 = verf.f32 %v2636_v42  ;;  %v5251_v0 = vadd.f32 %v5108_v3, %v2394_v54  ;;  %v2396_v30 = vpop.f32.mrb[119].mxu1 }
 0x279   : > { %v3499_v46 = vpop.eup %3498  ;;  %v2777_v40 = vmul.f32 %v2729_v53, %v2585_v1  ;;  %v2005_v7 = vmul.f32 0.70710677, %v5248_v29  ;;  %v1957_v62 = vmul.f32 0.5, %v5248_v29 }
 0x27a   : > { %v3501_v6 = vpop.eup %3500  ;;  %2193 = vst [vmem:[%s4545_s17 + $0xf0] sm:$0xff] %v2145_v41  ;;  %v2098_v23 = vadd.f32 1.0, %v3499_v46  ;;  %v2637_v34 = vmul.f32 0.70710677, %v5251_v0  ;;  %v1767_v32 = vpop.f32.mrb[120].mxu0  ;;  %v2589_v54 = vmul.f32 0.5, %v5251_v0 }
 0x27b   : > { %2825 = vst [vmem:[%s4545_s17 + $0xf8] sm:$0xff] %v2777_v40  ;;  %v2730_v31 = vadd.f32 1.0, %v3501_v6  ;;  %3510 = verf.f32 %v2005_v7  ;;  %v5260_v4 = vadd.f32 %v5104_v13, %v1767_v32  ;;  %v2399_v28 = vpop.f32.mrb[120].mxu1  ;;  %v1769_v16 = vpop.f32.mrb[121].mxu0 }
 0x27c   : > { %v2146_v43 = vmul.f32 %v2098_v23, %v1954_v51  ;;  %3512 = verf.f32 %v2637_v34  ;;  %v5263_v19 = vadd.f32 %v5108_v3, %v2399_v28  ;;  %v2401_v50 = vpop.f32.mrb[121].mxu1 }
 0x27d   : > { %v3503_v26 = vpop.eup %3502  ;;  %v2778_v15 = vmul.f32 %v2730_v31, %v2586_v20  ;;  %v2006_v24 = vmul.f32 0.70710677, %v5260_v4  ;;  %v1958_v0 = vmul.f32 0.5, %v5260_v4 }
 0x27e   : > { %v3505_v21 = vpop.eup %3504  ;;  %2194 = vst [vmem:[%s4545_s17 + $0x110] sm:$0xff] %v2146_v43  ;;  %v2099_v60 = vadd.f32 1.0, %v3503_v26  ;;  %v2638_v14 = vmul.f32 0.70710677, %v5263_v19  ;;  %v1772_v48 = vpop.f32.mrb[122].mxu0  ;;  %v2590_v28 = vmul.f32 0.5, %v5263_v19 }
 0x27f   : > { %2826 = vst [vmem:[%s4545_s17 + $0x118] sm:$0xff] %v2778_v15  ;;  %v2731_v25 = vadd.f32 1.0, %v3505_v21  ;;  %3514 = verf.f32 %v2006_v24  ;;  %v5272_v36 = vadd.f32 %v5104_v13, %v1772_v48  ;;  %v2404_v57 = vpop.f32.mrb[122].mxu1  ;;  %v1774_v63 = vpop.f32.mrb[123].mxu0 }
 0x280   : > { %v2147_v17 = vmul.f32 %v2099_v60, %v1955_v5  ;;  %3516 = verf.f32 %v2638_v14  ;;  %v5275_v56 = vadd.f32 %v5108_v3, %v2404_v57  ;;  %v2406_v45 = vpop.f32.mrb[123].mxu1 }
 0x281   : > { %v3507_v61 = vpop.eup %3506  ;;  %v2779_v47 = vmul.f32 %v2731_v25, %v2587_v11  ;;  %v2007_v18 = vmul.f32 0.70710677, %v5272_v36  ;;  %v1959_v19 = vmul.f32 0.5, %v5272_v36 }
 0x282   : > { %v3509_v22 = vpop.eup %3508  ;;  %2195 = vst [vmem:[%s4545_s17 + $0x130] sm:$0xff] %v2147_v17  ;;  %v2100_v35 = vadd.f32 1.0, %v3507_v61  ;;  %v2639_v39 = vmul.f32 0.70710677, %v5275_v56  ;;  %v1777_v55 = vpop.f32.mrb[124].mxu0  ;;  %v2591_v57 = vmul.f32 0.5, %v5275_v56 }
 0x283   : > { %2827 = vst [vmem:[%s4545_s17 + $0x138] sm:$0xff] %v2779_v47  ;;  %v2732_v52 = vadd.f32 1.0, %v3509_v22  ;;  %3518 = verf.f32 %v2007_v18  ;;  %v5284_v44 = vadd.f32 %v5104_v13, %v1777_v55  ;;  %v2409_v2 = vpop.f32.mrb[124].mxu1  ;;  %v1779_v49 = vpop.f32.mrb[125].mxu0 }
 0x284   : > { %v2148_v8 = vmul.f32 %v2100_v35, %v1956_v58  ;;  %3520 = verf.f32 %v2639_v39  ;;  %v5287_v38 = vadd.f32 %v5108_v3, %v2409_v2  ;;  %v2411_v9 = vpop.f32.mrb[125].mxu1 }
 0x285   : > { %v3511_v59 = vpop.eup %3510  ;;  %v2780_v12 = vmul.f32 %v2732_v52, %v2588_v10  ;;  %v2008_v27 = vmul.f32 0.70710677, %v5284_v44  ;;  %v1960_v56 = vmul.f32 0.5, %v5284_v44 }
 0x286   : > { %v3513_v42 = vpop.eup %3512  ;;  %2196 = vst [vmem:[%s4545_s17 + $0x150] sm:$0xff] %v2148_v8  ;;  %v2101_v37 = vadd.f32 1.0, %v3511_v59  ;;  %v2640_v1 = vmul.f32 0.70710677, %v5287_v38  ;;  %v1782_v53 = vpop.f32.mrb[126].mxu0  ;;  %v2592_v2 = vmul.f32 0.5, %v5287_v38 }
 0x287   : > { %2828 = vst [vmem:[%s4545_s17 + $0x158] sm:$0xff] %v2780_v12  ;;  %v2733_v33 = vadd.f32 1.0, %v3513_v42  ;;  %3522 = verf.f32 %v2008_v27  ;;  %v5296_v41 = vadd.f32 %v5104_v13, %v1782_v53  ;;  %v2414_v30 = vpop.f32.mrb[126].mxu1  ;;  %v1784_v46 = vpop.f32.mrb[127].mxu0 }
 0x288   : > { %v2149_v40 = vmul.f32 %v2101_v37, %v1957_v62  ;;  %3524 = verf.f32 %v2640_v1  ;;  %v5299_v29 = vadd.f32 %v5108_v3, %v2414_v30  ;;  %v2416_v7 = vpop.f32.mrb[127].mxu1 }
 0x289   : > { %v3515_v6 = vpop.eup %3514  ;;  %v2781_v51 = vmul.f32 %v2733_v33, %v2589_v54  ;;  %v2009_v23 = vmul.f32 0.70710677, %v5296_v41  ;;  %v1961_v38 = vmul.f32 0.5, %v5296_v41 }
 0x28a   : > { %v3517_v34 = vpop.eup %3516  ;;  %2197 = vst [vmem:[%s4545_s17 + $0x170] sm:$0xff] %v2149_v40  ;;  %v2102_v32 = vadd.f32 1.0, %v3515_v6  ;;  %v2641_v20 = vmul.f32 0.70710677, %v5299_v29  ;;  %v1787_v31 = vpop.f32.mrb[128].mxu0  ;;  %v2593_v30 = vmul.f32 0.5, %v5299_v29 }
 0x28b   : > { %2829 = vst [vmem:[%s4545_s17 + $0x178] sm:$0xff] %v2781_v51  ;;  %v2734_v16 = vadd.f32 1.0, %v3517_v34  ;;  %3526 = verf.f32 %v2009_v23  ;;  %v5308_v43 = vadd.f32 %v5104_v13, %v1787_v31  ;;  %v2419_v50 = vpop.f32.mrb[128].mxu1  ;;  %v1789_v26 = vpop.f32.mrb[129].mxu0 }
 0x28c   : > { %v2150_v15 = vmul.f32 %v2102_v32, %v1958_v0  ;;  %3528 = verf.f32 %v2641_v20  ;;  %v5311_v4 = vadd.f32 %v5108_v3, %v2419_v50  ;;  %v2421_v24 = vpop.f32.mrb[129].mxu1 }
 0x28d   : > { %v3519_v21 = vpop.eup %3518  ;;  %v2782_v5 = vmul.f32 %v2734_v16, %v2590_v28  ;;  %v2010_v60 = vmul.f32 0.70710677, %v5308_v43  ;;  %v1962_v29 = vmul.f32 0.5, %v5308_v43 }
 0x28e   : > { %v3521_v14 = vpop.eup %3520  ;;  %2198 = vst [vmem:[%s4545_s17 + $0x190] sm:$0xff] %v2150_v15  ;;  %v2103_v48 = vadd.f32 1.0, %v3519_v21  ;;  %v2642_v11 = vmul.f32 0.70710677, %v5311_v4  ;;  %v1792_v25 = vpop.f32.mrb[130].mxu0  ;;  %v2594_v50 = vmul.f32 0.5, %v5311_v4 }
 0x28f   : > { %2830 = vst [vmem:[%s4545_s17 + $0x198] sm:$0xff] %v2782_v5  ;;  %v2735_v63 = vadd.f32 1.0, %v3521_v14  ;;  %3530 = verf.f32 %v2010_v60  ;;  %v5320_v17 = vadd.f32 %v5104_v13, %v1792_v25  ;;  %v2424_v45 = vpop.f32.mrb[130].mxu1  ;;  %v1794_v61 = vpop.f32.mrb[131].mxu0 }
 0x290   : > { %v2151_v47 = vmul.f32 %v2103_v48, %v1959_v19  ;;  %3532 = verf.f32 %v2642_v11  ;;  %v5323_v36 = vadd.f32 %v5108_v3, %v2424_v45  ;;  %v2426_v18 = vpop.f32.mrb[131].mxu1 }
 0x291   : > { %v3523_v22 = vpop.eup %3522  ;;  %v2783_v58 = vmul.f32 %v2735_v63, %v2591_v57  ;;  %v2011_v35 = vmul.f32 0.70710677, %v5320_v17  ;;  %v1963_v4 = vmul.f32 0.5, %v5320_v17 }
 0x292   : > { %v3525_v39 = vpop.eup %3524  ;;  %2199 = vst [vmem:[%s4545_s17 + $0x1b0] sm:$0xff] %v2151_v47  ;;  %v2104_v55 = vadd.f32 1.0, %v3523_v22  ;;  %v2643_v10 = vmul.f32 0.70710677, %v5323_v36  ;;  %v1797_v52 = vpop.f32.mrb[132].mxu0  ;;  %v2595_v45 = vmul.f32 0.5, %v5323_v36 }
 0x293   : > { %2831 = vst [vmem:[%s4545_s17 + $0x1b8] sm:$0xff] %v2783_v58  ;;  %v2736_v49 = vadd.f32 1.0, %v3525_v39  ;;  %3534 = verf.f32 %v2011_v35  ;;  %v5332_v8 = vadd.f32 %v5104_v13, %v1797_v52  ;;  %v2429_v9 = vpop.f32.mrb[132].mxu1  ;;  %v1799_v59 = vpop.f32.mrb[133].mxu0 }
 0x294   : > { %v2152_v12 = vmul.f32 %v2104_v55, %v1960_v56  ;;  %3536 = verf.f32 %v2643_v10  ;;  %v5335_v44 = vadd.f32 %v5108_v3, %v2429_v9  ;;  %v2431_v27 = vpop.f32.mrb[133].mxu1 }
 0x295   : > { %v3527_v42 = vpop.eup %3526  ;;  %v2784_v62 = vmul.f32 %v2736_v49, %v2592_v2  ;;  %v2012_v37 = vmul.f32 0.70710677, %v5332_v8  ;;  %v1964_v36 = vmul.f32 0.5, %v5332_v8 }
 0x296   : > { %v3529_v1 = vpop.eup %3528  ;;  %2200 = vst [vmem:[%s4545_s17 + $0x1d0] sm:$0xff] %v2152_v12  ;;  %v2105_v53 = vadd.f32 1.0, %v3527_v42  ;;  %v2644_v54 = vmul.f32 0.70710677, %v5335_v44  ;;  %v1802_v33 = vpop.f32.mrb[134].mxu0  ;;  %v2596_v9 = vmul.f32 0.5, %v5335_v44 }
 0x297   : > { %2832 = vst [vmem:[%s4545_s17 + $0x1d8] sm:$0xff] %v2784_v62  ;;  %v2737_v46 = vadd.f32 1.0, %v3529_v1  ;;  %3538 = verf.f32 %v2012_v37  ;;  %v5344_v40 = vadd.f32 %v5104_v13, %v1802_v33  ;;  %v2434_v7 = vpop.f32.mrb[134].mxu1  ;;  %v1804_v6 = vpop.f32.mrb[135].mxu0 }
 0x298   : > { %v2153_v51 = vmul.f32 %v2105_v53, %v1961_v38  ;;  %3540 = verf.f32 %v2644_v54  ;;  %v5347_v41 = vadd.f32 %v5108_v3, %v2434_v7  ;;  %v2436_v23 = vpop.f32.mrb[135].mxu1 }
 0x299   : > { %v3531_v34 = vpop.eup %3530  ;;  %v2785_v0 = vmul.f32 %v2737_v46, %v2593_v30  ;;  %v2013_v32 = vmul.f32 0.70710677, %v5344_v40  ;;  %v1965_v44 = vmul.f32 0.5, %v5344_v40 }
 0x29a   : > { %v3533_v20 = vpop.eup %3532  ;;  %2201 = vst [vmem:[%s4545_s17 + $0x1f0] sm:$0xff] %v2153_v51  ;;  %v2106_v31 = vadd.f32 1.0, %v3531_v34  ;;  %v2645_v28 = vmul.f32 0.70710677, %v5347_v41  ;;  %v1807_v16 = vpop.f32.mrb[136].mxu0  ;;  %v2597_v7 = vmul.f32 0.5, %v5347_v41 }
 0x29b   : > { %2833 = vst [vmem:[%s4545_s17 + $0x1f8] sm:$0xff] %v2785_v0  ;;  %v2738_v26 = vadd.f32 1.0, %v3533_v20  ;;  %3542 = verf.f32 %v2013_v32  ;;  %v5356_v15 = vadd.f32 %v5104_v13, %v1807_v16  ;;  %v2439_v24 = vpop.f32.mrb[136].mxu1  ;;  %v1809_v21 = vpop.f32.mrb[137].mxu0 }
 0x29c   : > { %v2154_v5 = vmul.f32 %v2106_v31, %v1962_v29  ;;  %3544 = verf.f32 %v2645_v28  ;;  %v5359_v43 = vadd.f32 %v5108_v3, %v2439_v24  ;;  %v2441_v60 = vpop.f32.mrb[137].mxu1 }
 0x29d   : > { %v3535_v14 = vpop.eup %3534  ;;  %v2786_v19 = vmul.f32 %v2738_v26, %v2594_v50  ;;  %v2014_v48 = vmul.f32 0.70710677, %v5356_v15  ;;  %v1966_v41 = vmul.f32 0.5, %v5356_v15 }
 0x29e   : > { %v3537_v11 = vpop.eup %3536  ;;  %2202 = vst [vmem:[%s4545_s17 + $0x210] sm:$0xff] %v2154_v5  ;;  %v2107_v25 = vadd.f32 1.0, %v3535_v14  ;;  %v2646_v57 = vmul.f32 0.70710677, %v5359_v43  ;;  %v1812_v63 = vpop.f32.mrb[138].mxu0  ;;  %v2598_v24 = vmul.f32 0.5, %v5359_v43 }
 0x29f   : > { %2834 = vst [vmem:[%s4545_s17 + $0x218] sm:$0xff] %v2786_v19  ;;  %v2739_v61 = vadd.f32 1.0, %v3537_v11  ;;  %3546 = verf.f32 %v2014_v48  ;;  %v5368_v47 = vadd.f32 %v5104_v13, %v1812_v63  ;;  %v2444_v18 = vpop.f32.mrb[138].mxu1  ;;  %v1814_v22 = vpop.f32.mrb[139].mxu0 }
 0x2a0   : > { %v2155_v58 = vmul.f32 %v2107_v25, %v1963_v4  ;;  %3548 = verf.f32 %v2646_v57  ;;  %v5371_v17 = vadd.f32 %v5108_v3, %v2444_v18  ;;  %v2446_v35 = vpop.f32.mrb[139].mxu1  ;;  %v5416_v18 = vld [vmem:[%s4479_s27 + $0x2] ss:$0 sm:$0xff] }
 0x2a1   : > { %v3539_v39 = vpop.eup %3538  ;;  %v2787_v56 = vmul.f32 %v2739_v61, %v2595_v45  ;;  %v2015_v55 = vmul.f32 0.70710677, %v5368_v47 }
 0x2a2   : > { %v3541_v10 = vpop.eup %3540  ;;  %2203 = vst [vmem:[%s4545_s17 + $0x230] sm:$0xff] %v2155_v58  ;;  %v2108_v52 = vadd.f32 1.0, %v3539_v39  ;;  %v2647_v2 = vmul.f32 0.70710677, %v5371_v17  ;;  %v1817_v49 = vpop.f32.mrb[140].mxu0  ;;  %v2599_v61 = vmul.f32 0.5, %v5371_v17 }
 0x2a3   : > { %2835 = vst [vmem:[%s4545_s17 + $0x238] sm:$0xff] %v2787_v56  ;;  %v2740_v59 = vadd.f32 1.0, %v3541_v10  ;;  %3550 = verf.f32 %v2015_v55  ;;  %v5380_v12 = vadd.f32 %v5104_v13, %v1817_v49  ;;  %v2449_v27 = vpop.f32.mrb[140].mxu1  ;;  %v1819_v42 = vpop.f32.mrb[141].mxu0 }
 0x2a4   : > { %v2156_v62 = vmul.f32 %v2108_v52, %v1964_v36  ;;  %3552 = verf.f32 %v2647_v2  ;;  %v5383_v8 = vadd.f32 %v5108_v3, %v2449_v27  ;;  %v2451_v37 = vpop.f32.mrb[141].mxu1 }
 0x2a5   : > { %v3543_v1 = vpop.eup %3542  ;;  %v2788_v38 = vmul.f32 %v2740_v59, %v2596_v9  ;;  %v2016_v53 = vmul.f32 0.70710677, %v5380_v12  ;;  %v1968_v2 = vmul.f32 0.5, %v5380_v12 }
 0x2a6   : > { %v3545_v54 = vpop.eup %3544  ;;  %2204 = vst [vmem:[%s4545_s17 + $0x250] sm:$0xff] %v2156_v62  ;;  %v2109_v33 = vadd.f32 1.0, %v3543_v1  ;;  %v2648_v30 = vmul.f32 0.70710677, %v5383_v8  ;;  %v1822_v46 = vpop.f32.mrb[142].mxu0  ;;  %v2600_v27 = vmul.f32 0.5, %v5383_v8 }
 0x2a7   : > { %2836 = vst [vmem:[%s4545_s17 + $0x258] sm:$0xff] %v2788_v38  ;;  %v2741_v6 = vadd.f32 1.0, %v3545_v54  ;;  %3554 = verf.f32 %v2016_v53  ;;  %v5392_v51 = vadd.f32 %v5104_v13, %v1822_v46  ;;  %v2454_v23 = vpop.f32.mrb[142].mxu1  ;;  %v1824_v34 = vpop.f32.mrb[143].mxu0 }
 0x2a8   : > { %v2157_v0 = vmul.f32 %v2109_v33, %v1965_v44  ;;  %3556 = verf.f32 %v2648_v30  ;;  %v5395_v40 = vadd.f32 %v5108_v3, %v2454_v23  ;;  %v2456_v32 = vpop.f32.mrb[143].mxu1 }
 0x2a9   : > { %v3547_v20 = vpop.eup %3546  ;;  %v2789_v29 = vmul.f32 %v2741_v6, %v2597_v7  ;;  %v2017_v31 = vmul.f32 0.70710677, %v5392_v51  ;;  %v1969_v8 = vmul.f32 0.5, %v5392_v51 }
 0x2aa   : > { %v3549_v28 = vpop.eup %3548  ;;  %2205 = vst [vmem:[%s4545_s17 + $0x270] sm:$0xff] %v2157_v0  ;;  %v2110_v16 = vadd.f32 1.0, %v3547_v20  ;;  %v2649_v50 = vmul.f32 0.70710677, %v5395_v40  ;;  %v1827_v26 = vpop.f32.mrb[144].mxu0  ;;  %v2601_v23 = vmul.f32 0.5, %v5395_v40 }
 0x2ab   : > { %2837 = vst [vmem:[%s4545_s17 + $0x278] sm:$0xff] %v2789_v29  ;;  %v2742_v21 = vadd.f32 1.0, %v3549_v28  ;;  %3558 = verf.f32 %v2017_v31  ;;  %v5404_v5 = vadd.f32 %v5104_v13, %v1827_v26  ;;  %v2459_v60 = vpop.f32.mrb[144].mxu1  ;;  %v1829_v14 = vpop.f32.mrb[145].mxu0  ;;  %v1967_v13 = vmul.f32 0.5, %v5368_v47 }
 0x2ac   : > { %v2158_v19 = vmul.f32 %v2110_v16, %v1966_v41  ;;  %3560 = verf.f32 %v2649_v50  ;;  %v5407_v15 = vadd.f32 %v5108_v3, %v2459_v60  ;;  %v2461_v48 = vpop.f32.mrb[145].mxu1  ;;  %v5422_v47 = vld [vmem:[%s4479_s27 + $0x3] ss:$0 sm:$0xff] }
 0x2ad   : > { %v3551_v11 = vpop.eup %3550  ;;  %v2790_v4 = vmul.f32 %v2742_v21, %v2598_v24  ;;  %v2018_v25 = vmul.f32 0.70710677, %v5404_v5  ;;  %v1970_v40 = vmul.f32 0.5, %v5404_v5 }
 0x2ae   : > { %v3553_v43 = vpop.eup %3552  ;;  %2206 = vst [vmem:[%s4545_s17 + $0x290] sm:$0xff] %v2158_v19  ;;  %v2111_v57 = vadd.f32 1.0, %v3551_v11  ;;  %v2650_v63 = vmul.f32 0.70710677, %v5407_v15  ;;  %v1832_v45 = vpop.f32.mrb[146].mxu0  ;;  %v2602_v60 = vmul.f32 0.5, %v5407_v15 }
 0x2af   : > { %2838 = vst [vmem:[%s4545_s17 + $0x298] sm:$0xff] %v2790_v4  ;;  %v2743_v3 = vadd.f32 1.0, %v3553_v43  ;;  %3562 = verf.f32 %v2018_v25  ;;  %v5419_v22 = vadd.f32 %v5416_v18, %v1832_v45  ;;  %v2464_v58 = vpop.f32.mrb[146].mxu1  ;;  %v1834_v35 = vpop.f32.mrb[147].mxu0 }
 0x2b0   : > { %v2159_v39 = vmul.f32 %v2111_v57, %v1967_v13  ;;  %3564 = verf.f32 %v2650_v63  ;;  %v5425_v56 = vadd.f32 %v5422_v47, %v2464_v58  ;;  %v2466_v55 = vpop.f32.mrb[147].mxu1 }
 0x2b1   : > { %v3555_v17 = vpop.eup %3554  ;;  %v2791_v10 = vmul.f32 %v2743_v3, %v2599_v61  ;;  %v2019_v36 = vmul.f32 0.70710677, %v5419_v22  ;;  %v1971_v15 = vmul.f32 0.5, %v5419_v22 }
 0x2b2   : > { %v3557_v52 = vpop.eup %3556  ;;  %2207 = vst [vmem:[%s4545_s17 + $0x2b0] sm:$0xff] %v2159_v39  ;;  %v2112_v49 = vadd.f32 1.0, %v3555_v17  ;;  %v2651_v9 = vmul.f32 0.70710677, %v5425_v56  ;;  %v1837_v59 = vpop.f32.mrb[148].mxu0  ;;  %v2603_v58 = vmul.f32 0.5, %v5425_v56 }
 0x2b3   : > { %2839 = vst [vmem:[%s4545_s17 + $0x2b8] sm:$0xff] %v2791_v10  ;;  %v2744_v42 = vadd.f32 1.0, %v3557_v52  ;;  %3566 = verf.f32 %v2019_v36  ;;  %v5434_v62 = vadd.f32 %v5416_v18, %v1837_v59  ;;  %v2469_v37 = vpop.f32.mrb[148].mxu1  ;;  %v1839_v1 = vpop.f32.mrb[149].mxu0 }
 0x2b4   : > { %v2160_v38 = vmul.f32 %v2112_v49, %v1968_v2  ;;  %3568 = verf.f32 %v2651_v9  ;;  %v5437_v12 = vadd.f32 %v5422_v47, %v2469_v37  ;;  %v2471_v53 = vpop.f32.mrb[149].mxu1 }
 0x2b5   : > { %v3559_v54 = vpop.eup %3558  ;;  %v2792_v44 = vmul.f32 %v2744_v42, %v2600_v27  ;;  %v2020_v33 = vmul.f32 0.70710677, %v5434_v62  ;;  %v1972_v56 = vmul.f32 0.5, %v5434_v62 }
 0x2b6   : > { %v3561_v30 = vpop.eup %3560  ;;  %2208 = vst [vmem:[%s4545_s17 + $0x2d0] sm:$0xff] %v2160_v38  ;;  %v2113_v46 = vadd.f32 1.0, %v3559_v54  ;;  %v2652_v7 = vmul.f32 0.70710677, %v5437_v12  ;;  %v1842_v6 = vpop.f32.mrb[150].mxu0  ;;  %v2604_v37 = vmul.f32 0.5, %v5437_v12 }
 0x2b7   : > { %2840 = vst [vmem:[%s4545_s17 + $0x2d8] sm:$0xff] %v2792_v44  ;;  %v2745_v34 = vadd.f32 1.0, %v3561_v30  ;;  %3570 = verf.f32 %v2020_v33  ;;  %v5446_v0 = vadd.f32 %v5416_v18, %v1842_v6  ;;  %v2474_v32 = vpop.f32.mrb[150].mxu1  ;;  %v1844_v20 = vpop.f32.mrb[151].mxu0 }
 0x2b8   : > { %v2161_v29 = vmul.f32 %v2113_v46, %v1969_v8  ;;  %3572 = verf.f32 %v2652_v7  ;;  %v5449_v51 = vadd.f32 %v5422_v47, %v2474_v32  ;;  %v2476_v31 = vpop.f32.mrb[151].mxu1 }
 0x2b9   : > { %v3563_v28 = vpop.eup %3562  ;;  %v2793_v41 = vmul.f32 %v2745_v34, %v2601_v23  ;;  %v2021_v16 = vmul.f32 0.70710677, %v5446_v0  ;;  %v1973_v12 = vmul.f32 0.5, %v5446_v0 }
 0x2ba   : > { %v3565_v50 = vpop.eup %3564  ;;  %2209 = vst [vmem:[%s4545_s17 + $0x2f0] sm:$0xff] %v2161_v29  ;;  %v2114_v26 = vadd.f32 1.0, %v3563_v28  ;;  %v2653_v24 = vmul.f32 0.70710677, %v5449_v51  ;;  %v1847_v21 = vpop.f32.mrb[152].mxu0  ;;  %v2605_v32 = vmul.f32 0.5, %v5449_v51 }
 0x2bb   : > { %2841 = vst [vmem:[%s4545_s17 + $0x2f8] sm:$0xff] %v2793_v41  ;;  %v2746_v14 = vadd.f32 1.0, %v3565_v50  ;;  %3574 = verf.f32 %v2021_v16  ;;  %v5458_v19 = vadd.f32 %v5416_v18, %v1847_v21  ;;  %v2479_v48 = vpop.f32.mrb[152].mxu1  ;;  %v1849_v11 = vpop.f32.mrb[153].mxu0 }
 0x2bc   : > { %v2162_v4 = vmul.f32 %v2114_v26, %v1970_v40  ;;  %3576 = verf.f32 %v2653_v24  ;;  %v5461_v5 = vadd.f32 %v5422_v47, %v2479_v48  ;;  %v2481_v25 = vpop.f32.mrb[153].mxu1 }
 0x2bd   : > { %v3567_v43 = vpop.eup %3566  ;;  %v2794_v13 = vmul.f32 %v2746_v14, %v2602_v60  ;;  %v2022_v57 = vmul.f32 0.70710677, %v5458_v19  ;;  %v1974_v51 = vmul.f32 0.5, %v5458_v19 }
 0x2be   : > { %v3569_v63 = vpop.eup %3568  ;;  %2210 = vst [vmem:[%s4545_s17 + $0x310] sm:$0xff] %v2162_v4  ;;  %v2115_v45 = vadd.f32 1.0, %v3567_v43  ;;  %v2654_v61 = vmul.f32 0.70710677, %v5461_v5  ;;  %v1852_v3 = vpop.f32.mrb[154].mxu0  ;;  %v2606_v48 = vmul.f32 0.5, %v5461_v5 }
 0x2bf   : > { %2842 = vst [vmem:[%s4545_s17 + $0x318] sm:$0xff] %v2794_v13  ;;  %v2747_v35 = vadd.f32 1.0, %v3569_v63  ;;  %3578 = verf.f32 %v2022_v57  ;;  %v5470_v39 = vadd.f32 %v5416_v18, %v1852_v3  ;;  %v2484_v55 = vpop.f32.mrb[154].mxu1  ;;  %v1854_v17 = vpop.f32.mrb[155].mxu0 }
 0x2c0   : > { %v2163_v10 = vmul.f32 %v2115_v45, %v1971_v15  ;;  %3580 = verf.f32 %v2654_v61  ;;  %v5473_v22 = vadd.f32 %v5422_v47, %v2484_v55  ;;  %v2486_v36 = vpop.f32.mrb[155].mxu1 }
 0x2c1   : > { %v3571_v52 = vpop.eup %3570  ;;  %v2795_v2 = vmul.f32 %v2747_v35, %v2603_v58  ;;  %v2023_v49 = vmul.f32 0.70710677, %v5470_v39  ;;  %v1975_v5 = vmul.f32 0.5, %v5470_v39 }
 0x2c2   : > { %v3573_v9 = vpop.eup %3572  ;;  %2211 = vst [vmem:[%s4545_s17 + $0x330] sm:$0xff] %v2163_v10  ;;  %v2116_v59 = vadd.f32 1.0, %v3571_v52  ;;  %v2655_v27 = vmul.f32 0.70710677, %v5473_v22  ;;  %v1857_v42 = vpop.f32.mrb[156].mxu0  ;;  %v2607_v55 = vmul.f32 0.5, %v5473_v22 }
 0x2c3   : > { %2843 = vst [vmem:[%s4545_s17 + $0x338] sm:$0xff] %v2795_v2  ;;  %v2748_v1 = vadd.f32 1.0, %v3573_v9  ;;  %3582 = verf.f32 %v2023_v49  ;;  %v5482_v38 = vadd.f32 %v5416_v18, %v1857_v42  ;;  %v2489_v53 = vpop.f32.mrb[156].mxu1  ;;  %v1859_v54 = vpop.f32.mrb[157].mxu0 }
 0x2c4   : > { %v2164_v44 = vmul.f32 %v2116_v59, %v1972_v56  ;;  %3584 = verf.f32 %v2655_v27  ;;  %v5485_v62 = vadd.f32 %v5422_v47, %v2489_v53  ;;  %v2491_v33 = vpop.f32.mrb[157].mxu1 }
 0x2c5   : > { %v3575_v30 = vpop.eup %3574  ;;  %v2796_v8 = vmul.f32 %v2748_v1, %v2604_v37  ;;  %v2024_v46 = vmul.f32 0.70710677, %v5482_v38  ;;  %v1976_v22 = vmul.f32 0.5, %v5482_v38 }
 0x2c6   : > { %v3577_v7 = vpop.eup %3576  ;;  %2212 = vst [vmem:[%s4545_s17 + $0x350] sm:$0xff] %v2164_v44  ;;  %v2117_v6 = vadd.f32 1.0, %v3575_v30  ;;  %v2656_v23 = vmul.f32 0.70710677, %v5485_v62  ;;  %v1862_v34 = vpop.f32.mrb[158].mxu0  ;;  %v2608_v53 = vmul.f32 0.5, %v5485_v62 }
 0x2c7   : > { %2844 = vst [vmem:[%s4545_s17 + $0x358] sm:$0xff] %v2796_v8  ;;  %v2749_v20 = vadd.f32 1.0, %v3577_v7  ;;  %3586 = verf.f32 %v2024_v46  ;;  %v5494_v29 = vadd.f32 %v5416_v18, %v1862_v34  ;;  %v2494_v31 = vpop.f32.mrb[158].mxu1  ;;  %v1864_v28 = vpop.f32.mrb[159].mxu0 }
 0x2c8   : > { %v2165_v41 = vmul.f32 %v2117_v6, %v1973_v12  ;;  %3588 = verf.f32 %v2656_v23  ;;  %v5497_v0 = vadd.f32 %v5422_v47, %v2494_v31  ;;  %v2496_v16 = vpop.f32.mrb[159].mxu1 }
 0x2c9   : > { %v3579_v50 = vpop.eup %3578  ;;  %v2797_v40 = vmul.f32 %v2749_v20, %v2605_v32  ;;  %v2025_v26 = vmul.f32 0.70710677, %v5494_v29  ;;  %v1977_v62 = vmul.f32 0.5, %v5494_v29 }
 0x2ca   : > { %v3581_v24 = vpop.eup %3580  ;;  %2213 = vst [vmem:[%s4545_s17 + $0x370] sm:$0xff] %v2165_v41  ;;  %v2118_v21 = vadd.f32 1.0, %v3579_v50  ;;  %v2657_v60 = vmul.f32 0.70710677, %v5497_v0  ;;  %v1867_v14 = vpop.f32.mrb[160].mxu0  ;;  %v2609_v31 = vmul.f32 0.5, %v5497_v0 }
 0x2cb   : > { %2845 = vst [vmem:[%s4545_s17 + $0x378] sm:$0xff] %v2797_v40  ;;  %v2750_v11 = vadd.f32 1.0, %v3581_v24  ;;  %3590 = verf.f32 %v2025_v26  ;;  %v5506_v4 = vadd.f32 %v5416_v18, %v1867_v14  ;;  %v2499_v25 = vpop.f32.mrb[160].mxu1  ;;  %v1869_v43 = vpop.f32.mrb[161].mxu0 }
 0x2cc   : > { %v2166_v13 = vmul.f32 %v2118_v21, %v1974_v51  ;;  %3592 = verf.f32 %v2657_v60  ;;  %v5509_v19 = vadd.f32 %v5422_v47, %v2499_v25  ;;  %v2501_v57 = vpop.f32.mrb[161].mxu1 }
 0x2cd   : > { %v3583_v63 = vpop.eup %3582  ;;  %v2798_v15 = vmul.f32 %v2750_v11, %v2606_v48  ;;  %v2026_v45 = vmul.f32 0.70710677, %v5506_v4  ;;  %v1978_v0 = vmul.f32 0.5, %v5506_v4 }
 0x2ce   : > { %v3585_v61 = vpop.eup %3584  ;;  %2214 = vst [vmem:[%s4545_s17 + $0x390] sm:$0xff] %v2166_v13  ;;  %v2119_v3 = vadd.f32 1.0, %v3583_v63  ;;  %v2658_v58 = vmul.f32 0.70710677, %v5509_v19  ;;  %v1872_v35 = vpop.f32.mrb[162].mxu0  ;;  %v2610_v25 = vmul.f32 0.5, %v5509_v19 }
 0x2cf   : > { %2846 = vst [vmem:[%s4545_s17 + $0x398] sm:$0xff] %v2798_v15  ;;  %v2751_v17 = vadd.f32 1.0, %v3585_v61  ;;  %3594 = verf.f32 %v2026_v45  ;;  %v5518_v10 = vadd.f32 %v5416_v18, %v1872_v35  ;;  %v2504_v36 = vpop.f32.mrb[162].mxu1  ;;  %v1874_v52 = vpop.f32.mrb[163].mxu0 }
 0x2d0   : > { %v2167_v2 = vmul.f32 %v2119_v3, %v1975_v5  ;;  %3596 = verf.f32 %v2658_v58  ;;  %v5521_v39 = vadd.f32 %v5422_v47, %v2504_v36  ;;  %v2506_v49 = vpop.f32.mrb[163].mxu1 }
 0x2d1   : > { %v3587_v9 = vpop.eup %3586  ;;  %v2799_v56 = vmul.f32 %v2751_v17, %v2607_v55  ;;  %v2027_v59 = vmul.f32 0.70710677, %v5518_v10  ;;  %v1979_v19 = vmul.f32 0.5, %v5518_v10 }
 0x2d2   : > { %v3589_v27 = vpop.eup %3588  ;;  %2215 = vst [vmem:[%s4545_s17 + $0x3b0] sm:$0xff] %v2167_v2  ;;  %v2120_v42 = vadd.f32 1.0, %v3587_v9  ;;  %v2659_v37 = vmul.f32 0.70710677, %v5521_v39  ;;  %v1877_v1 = vpop.f32.mrb[164].mxu0  ;;  %v2611_v36 = vmul.f32 0.5, %v5521_v39 }
 0x2d3   : > { %2847 = vst [vmem:[%s4545_s17 + $0x3b8] sm:$0xff] %v2799_v56  ;;  %v2752_v54 = vadd.f32 1.0, %v3589_v27  ;;  %3598 = verf.f32 %v2027_v59  ;;  %v5530_v44 = vadd.f32 %v5416_v18, %v1877_v1  ;;  %v2509_v33 = vpop.f32.mrb[164].mxu1  ;;  %v1879_v30 = vpop.f32.mrb[165].mxu0 }
 0x2d4   : > { %v2168_v8 = vmul.f32 %v2120_v42, %v1976_v22  ;;  %3600 = verf.f32 %v2659_v37  ;;  %v5533_v38 = vadd.f32 %v5422_v47, %v2509_v33  ;;  %v2511_v46 = vpop.f32.mrb[165].mxu1 }
 0x2d5   : > { %v3591_v7 = vpop.eup %3590  ;;  %v2800_v12 = vmul.f32 %v2752_v54, %v2608_v53  ;;  %v2028_v6 = vmul.f32 0.70710677, %v5530_v44  ;;  %v1980_v39 = vmul.f32 0.5, %v5530_v44 }
 0x2d6   : > { %v3593_v23 = vpop.eup %3592  ;;  %2216 = vst [vmem:[%s4545_s17 + $0x3d0] sm:$0xff] %v2168_v8  ;;  %v2121_v34 = vadd.f32 1.0, %v3591_v7  ;;  %v2660_v32 = vmul.f32 0.70710677, %v5533_v38  ;;  %v1882_v20 = vpop.f32.mrb[166].mxu0  ;;  %v2612_v33 = vmul.f32 0.5, %v5533_v38 }
 0x2d7   : > { %2848 = vst [vmem:[%s4545_s17 + $0x3d8] sm:$0xff] %v2800_v12  ;;  %v2753_v28 = vadd.f32 1.0, %v3593_v23  ;;  %3602 = verf.f32 %v2028_v6  ;;  %v5542_v41 = vadd.f32 %v5416_v18, %v1882_v20  ;;  %v2514_v16 = vpop.f32.mrb[166].mxu1  ;;  %v1884_v50 = vpop.f32.mrb[167].mxu0 }
 0x2d8   : > { %v2169_v40 = vmul.f32 %v2121_v34, %v1977_v62  ;;  %3604 = verf.f32 %v2660_v32  ;;  %v5545_v29 = vadd.f32 %v5422_v47, %v2514_v16  ;;  %v2516_v26 = vpop.f32.mrb[167].mxu1 }
 0x2d9   : > { %v3595_v24 = vpop.eup %3594  ;;  %v2801_v51 = vmul.f32 %v2753_v28, %v2609_v31  ;;  %v2029_v21 = vmul.f32 0.70710677, %v5542_v41  ;;  %v1981_v38 = vmul.f32 0.5, %v5542_v41 }
 0x2da   : > { %v3597_v60 = vpop.eup %3596  ;;  %2217 = vst [vmem:[%s4545_s17 + $0x3f0] sm:$0xff] %v2169_v40  ;;  %v2122_v14 = vadd.f32 1.0, %v3595_v24  ;;  %v2661_v48 = vmul.f32 0.70710677, %v5545_v29  ;;  %v1887_v11 = vpop.f32.mrb[168].mxu0  ;;  %v2613_v16 = vmul.f32 0.5, %v5545_v29 }
 0x2db   : > { %2849 = vst [vmem:[%s4545_s17 + $0x3f8] sm:$0xff] %v2801_v51  ;;  %v2754_v43 = vadd.f32 1.0, %v3597_v60  ;;  %3606 = verf.f32 %v2029_v21  ;;  %v5554_v13 = vadd.f32 %v5416_v18, %v1887_v11  ;;  %v2519_v57 = vpop.f32.mrb[168].mxu1  ;;  %v1889_v63 = vpop.f32.mrb[169].mxu0 }
 0x2dc   : > { %v2170_v15 = vmul.f32 %v2122_v14, %v1978_v0  ;;  %3608 = verf.f32 %v2661_v48  ;;  %v5557_v4 = vadd.f32 %v5422_v47, %v2519_v57  ;;  %v2521_v45 = vpop.f32.mrb[169].mxu1 }
 0x2dd   : > { %v3599_v61 = vpop.eup %3598  ;;  %v2802_v5 = vmul.f32 %v2754_v43, %v2610_v25  ;;  %v2030_v3 = vmul.f32 0.70710677, %v5554_v13  ;;  %v1982_v29 = vmul.f32 0.5, %v5554_v13 }
 0x2de   : > { %v3601_v58 = vpop.eup %3600  ;;  %2218 = vst [vmem:[%s4545_s17 + $0x410] sm:$0xff] %v2170_v15  ;;  %v2123_v35 = vadd.f32 1.0, %v3599_v61  ;;  %v2662_v55 = vmul.f32 0.70710677, %v5557_v4  ;;  %v1892_v17 = vpop.f32.mrb[170].mxu0  ;;  %v2614_v57 = vmul.f32 0.5, %v5557_v4 }
 0x2df   : > { %2850 = vst [vmem:[%s4545_s17 + $0x418] sm:$0xff] %v2802_v5  ;;  %v2755_v52 = vadd.f32 1.0, %v3601_v58  ;;  %3610 = verf.f32 %v2030_v3  ;;  %v5566_v2 = vadd.f32 %v5416_v18, %v1892_v17  ;;  %v2524_v49 = vpop.f32.mrb[170].mxu1  ;;  %v1894_v9 = vpop.f32.mrb[171].mxu0 }
 0x2e0   : > { %v2171_v56 = vmul.f32 %v2123_v35, %v1979_v19  ;;  %3612 = verf.f32 %v2662_v55  ;;  %v5569_v10 = vadd.f32 %v5422_v47, %v2524_v49  ;;  %v2526_v59 = vpop.f32.mrb[171].mxu1 }
 0x2e1   : > { %v3603_v27 = vpop.eup %3602  ;;  %v2803_v22 = vmul.f32 %v2755_v52, %v2611_v36  ;;  %v2031_v42 = vmul.f32 0.70710677, %v5566_v2  ;;  %v1983_v4 = vmul.f32 0.5, %v5566_v2 }
 0x2e2   : > { %v3605_v37 = vpop.eup %3604  ;;  %2219 = vst [vmem:[%s4545_s17 + $0x430] sm:$0xff] %v2171_v56  ;;  %v2124_v1 = vadd.f32 1.0, %v3603_v27  ;;  %v2663_v53 = vmul.f32 0.70710677, %v5569_v10  ;;  %v1897_v54 = vpop.f32.mrb[172].mxu0  ;;  %v2615_v49 = vmul.f32 0.5, %v5569_v10 }
 0x2e3   : > { %2851 = vst [vmem:[%s4545_s17 + $0x438] sm:$0xff] %v2803_v22  ;;  %v2756_v30 = vadd.f32 1.0, %v3605_v37  ;;  %3614 = verf.f32 %v2031_v42  ;;  %v5578_v8 = vadd.f32 %v5416_v18, %v1897_v54  ;;  %v2529_v46 = vpop.f32.mrb[172].mxu1  ;;  %v1899_v7 = vpop.f32.mrb[173].mxu0 }
 0x2e4   : > { %v2172_v12 = vmul.f32 %v2124_v1, %v1980_v39  ;;  %3616 = verf.f32 %v2663_v53  ;;  %v5581_v44 = vadd.f32 %v5422_v47, %v2529_v46  ;;  %v2531_v6 = vpop.f32.mrb[173].mxu1 }
 0x2e5   : > { %v3607_v23 = vpop.eup %3606  ;;  %v2804_v62 = vmul.f32 %v2756_v30, %v2612_v33  ;;  %v2032_v34 = vmul.f32 0.70710677, %v5578_v8  ;;  %v1984_v10 = vmul.f32 0.5, %v5578_v8 }
 0x2e6   : > { %v3609_v32 = vpop.eup %3608  ;;  %2220 = vst [vmem:[%s4545_s17 + $0x450] sm:$0xff] %v2172_v12  ;;  %v2125_v20 = vadd.f32 1.0, %v3607_v23  ;;  %v2664_v31 = vmul.f32 0.70710677, %v5581_v44  ;;  %v1902_v28 = vpop.f32.mrb[174].mxu0  ;;  %v2616_v46 = vmul.f32 0.5, %v5581_v44 }
 0x2e7   : > { %2852 = vst [vmem:[%s4545_s17 + $0x458] sm:$0xff] %v2804_v62  ;;  %v2757_v50 = vadd.f32 1.0, %v3609_v32  ;;  %3618 = verf.f32 %v2032_v34  ;;  %v5590_v40 = vadd.f32 %v5416_v18, %v1902_v28  ;;  %v2534_v26 = vpop.f32.mrb[174].mxu1  ;;  %v1904_v24 = vpop.f32.mrb[175].mxu0 }
 0x2e8   : > { %v2173_v51 = vmul.f32 %v2125_v20, %v1981_v38  ;;  %3620 = verf.f32 %v2664_v31  ;;  %v5593_v41 = vadd.f32 %v5422_v47, %v2534_v26  ;;  %v2536_v21 = vpop.f32.mrb[175].mxu1 }
 0x2e9   : > { %v3611_v60 = vpop.eup %3610  ;;  %v2805_v0 = vmul.f32 %v2757_v50, %v2613_v16  ;;  %v2033_v14 = vmul.f32 0.70710677, %v5590_v40  ;;  %v1985_v44 = vmul.f32 0.5, %v5590_v40 }
 0x2ea   : > { %v3613_v48 = vpop.eup %3612  ;;  %2221 = vst [vmem:[%s4545_s17 + $0x470] sm:$0xff] %v2173_v51  ;;  %v2126_v11 = vadd.f32 1.0, %v3611_v60  ;;  %v2665_v25 = vmul.f32 0.70710677, %v5593_v41  ;;  %v1907_v43 = vpop.f32.mrb[176].mxu0  ;;  %v2617_v26 = vmul.f32 0.5, %v5593_v41 }
 0x2eb   : > { %2853 = vst [vmem:[%s4545_s17 + $0x478] sm:$0xff] %v2805_v0  ;;  %v2758_v63 = vadd.f32 1.0, %v3613_v48  ;;  %3622 = verf.f32 %v2033_v14  ;;  %v5602_v15 = vadd.f32 %v5416_v18, %v1907_v43  ;;  %v2539_v45 = vpop.f32.mrb[176].mxu1  ;;  %v1909_v61 = vpop.f32.mrb[177].mxu0 }
 0x2ec   : > { %v2174_v5 = vmul.f32 %v2126_v11, %v1982_v29  ;;  %3624 = verf.f32 %v2665_v25  ;;  %v5605_v13 = vadd.f32 %v5422_v47, %v2539_v45  ;;  %v2541_v3 = vpop.f32.mrb[177].mxu1 }
 0x2ed   : > { %v3615_v58 = vpop.eup %3614  ;;  %v2806_v19 = vmul.f32 %v2758_v63, %v2614_v57  ;;  %v2034_v35 = vmul.f32 0.70710677, %v5602_v15  ;;  %v1986_v41 = vmul.f32 0.5, %v5602_v15 }
 0x2ee   : > { %v3617_v55 = vpop.eup %3616  ;;  %2222 = vst [vmem:[%s4545_s17 + $0x490] sm:$0xff] %v2174_v5  ;;  %v2127_v17 = vadd.f32 1.0, %v3615_v58  ;;  %v2666_v36 = vmul.f32 0.70710677, %v5605_v13  ;;  %v1912_v52 = vpop.f32.mrb[178].mxu0  ;;  %v2618_v45 = vmul.f32 0.5, %v5605_v13 }
 0x2ef   : > { %2854 = vst [vmem:[%s4545_s17 + $0x498] sm:$0xff] %v2806_v19  ;;  %v2759_v9 = vadd.f32 1.0, %v3617_v55  ;;  %3626 = verf.f32 %v2034_v35  ;;  %v5614_v56 = vadd.f32 %v5416_v18, %v1912_v52  ;;  %v2544_v59 = vpop.f32.mrb[178].mxu1  ;;  %v1914_v27 = vpop.f32.mrb[179].mxu0 }
 0x2f0   : > { %v2175_v22 = vmul.f32 %v2127_v17, %v1983_v4  ;;  %3628 = verf.f32 %v2666_v36  ;;  %v5617_v2 = vadd.f32 %v5422_v47, %v2544_v59  ;;  %v2546_v42 = vpop.f32.mrb[179].mxu1 }
 0x2f1   : > { %v3619_v37 = vpop.eup %3618  ;;  %v2807_v39 = vmul.f32 %v2759_v9, %v2615_v49  ;;  %v2035_v1 = vmul.f32 0.70710677, %v5614_v56  ;;  %v1987_v13 = vmul.f32 0.5, %v5614_v56 }
 0x2f2   : > { %v3621_v53 = vpop.eup %3620  ;;  %2223 = vst [vmem:[%s4545_s17 + $0x4b0] sm:$0xff] %v2175_v22  ;;  %v2128_v54 = vadd.f32 1.0, %v3619_v37  ;;  %v2667_v33 = vmul.f32 0.70710677, %v5617_v2  ;;  %v1917_v30 = vpop.f32.mrb[180].mxu0  ;;  %v2619_v59 = vmul.f32 0.5, %v5617_v2 }
 0x2f3   : > { %2855 = vst [vmem:[%s4545_s17 + $0x4b8] sm:$0xff] %v2807_v39  ;;  %v2760_v7 = vadd.f32 1.0, %v3621_v53  ;;  %3630 = verf.f32 %v2035_v1  ;;  %v5626_v12 = vadd.f32 %v5416_v18, %v1917_v30  ;;  %v2549_v6 = vpop.f32.mrb[180].mxu1  ;;  %v1919_v23 = vpop.f32.mrb[181].mxu0 }
 0x2f4   : > { %v2176_v62 = vmul.f32 %v2128_v54, %v1984_v10  ;;  %3632 = verf.f32 %v2667_v33  ;;  %v5629_v8 = vadd.f32 %v5422_v47, %v2549_v6  ;;  %v2551_v34 = vpop.f32.mrb[181].mxu1 }
 0x2f5   : > { %v3623_v32 = vpop.eup %3622  ;;  %v2808_v38 = vmul.f32 %v2760_v7, %v2616_v46  ;;  %v2036_v20 = vmul.f32 0.70710677, %v5626_v12  ;;  %v1988_v2 = vmul.f32 0.5, %v5626_v12 }
 0x2f6   : > { %v3625_v31 = vpop.eup %3624  ;;  %2224 = vst [vmem:[%s4545_s17 + $0x4d0] sm:$0xff] %v2176_v62  ;;  %v2129_v28 = vadd.f32 1.0, %v3623_v32  ;;  %v2668_v16 = vmul.f32 0.70710677, %v5629_v8  ;;  %v1922_v50 = vpop.f32.mrb[182].mxu0  ;;  %v2620_v6 = vmul.f32 0.5, %v5629_v8 }
 0x2f7   : > { %2856 = vst [vmem:[%s4545_s17 + $0x4d8] sm:$0xff] %v2808_v38  ;;  %v2761_v24 = vadd.f32 1.0, %v3625_v31  ;;  %3634 = verf.f32 %v2036_v20  ;;  %v5638_v51 = vadd.f32 %v5416_v18, %v1922_v50  ;;  %v2554_v21 = vpop.f32.mrb[182].mxu1  ;;  %v1924_v60 = vpop.f32.mrb[183].mxu0 }
 0x2f8   : > { %v2177_v0 = vmul.f32 %v2129_v28, %v1985_v44  ;;  %3636 = verf.f32 %v2668_v16  ;;  %v5641_v40 = vadd.f32 %v5422_v47, %v2554_v21  ;;  %v2556_v14 = vpop.f32.mrb[183].mxu1 }
 0x2f9   : > { %v3627_v48 = vpop.eup %3626  ;;  %v2809_v29 = vmul.f32 %v2761_v24, %v2617_v26  ;;  %v2037_v11 = vmul.f32 0.70710677, %v5638_v51  ;;  %v1989_v50 = vmul.f32 0.5, %v5638_v51 }
 0x2fa   : > { %v3629_v25 = vpop.eup %3628  ;;  %2225 = vst [vmem:[%s4545_s17 + $0x4f0] sm:$0xff] %v2177_v0  ;;  %v2130_v43 = vadd.f32 1.0, %v3627_v48  ;;  %v2669_v57 = vmul.f32 0.70710677, %v5641_v40  ;;  %v1927_v63 = vpop.f32.mrb[184].mxu0  ;;  %v2621_v21 = vmul.f32 0.5, %v5641_v40 }
 0x2fb   : > { %2857 = vst [vmem:[%s4545_s17 + $0x4f8] sm:$0xff] %v2809_v29  ;;  %v2762_v61 = vadd.f32 1.0, %v3629_v25  ;;  %3638 = verf.f32 %v2037_v11  ;;  %v5650_v5 = vadd.f32 %v5416_v18, %v1927_v63  ;;  %v2559_v3 = vpop.f32.mrb[184].mxu1  ;;  %v1929_v58 = vpop.f32.mrb[185].mxu0 }
 0x2fc   : > { %v2178_v19 = vmul.f32 %v2130_v43, %v1986_v41  ;;  %3640 = verf.f32 %v2669_v57  ;;  %v5653_v15 = vadd.f32 %v5422_v47, %v2559_v3  ;;  %v2561_v35 = vpop.f32.mrb[185].mxu1 }
 0x2fd   : > { %v3631_v55 = vpop.eup %3630  ;;  %v2810_v4 = vmul.f32 %v2762_v61, %v2618_v45  ;;  %v2038_v17 = vmul.f32 0.70710677, %v5650_v5  ;;  %v1990_v40 = vmul.f32 0.5, %v5650_v5 }
 0x2fe   : > { %v3633_v36 = vpop.eup %3632  ;;  %2226 = vst [vmem:[%s4545_s17 + $0x510] sm:$0xff] %v2178_v19  ;;  %v2131_v52 = vadd.f32 1.0, %v3631_v55  ;;  %v2670_v49 = vmul.f32 0.70710677, %v5653_v15  ;;  %v1932_v9 = vpop.f32.mrb[186].mxu0 }
 0x2ff   : > { %2858 = vst [vmem:[%s4545_s17 + $0x518] sm:$0xff] %v2810_v4  ;;  %v2763_v27 = vadd.f32 1.0, %v3633_v36  ;;  %3642 = verf.f32 %v2038_v17  ;;  %v5662_v22 = vadd.f32 %v5416_v18, %v1932_v9  ;;  %v2564_v42 = vpop.f32.mrb[186].mxu1  ;;  %v1934_v37 = vpop.f32.mrb[187].mxu0 }
 0x300   : > { %v2179_v39 = vmul.f32 %v2131_v52, %v1987_v13  ;;  %3644 = verf.f32 %v2670_v49  ;;  %v2565_v56 = vadd.f32 %v5422_v47, %v2564_v42  ;;  %v2566_v1 = vpop.f32.mrb[187].mxu1 }
 0x301   : > { %v3635_v53 = vpop.eup %3634  ;;  %v2811_v10 = vmul.f32 %v2763_v27, %v2619_v59  ;;  %v2039_v54 = vmul.f32 0.70710677, %v5662_v22  ;;  %v1991_v35 = vmul.f32 0.5, %v5662_v22 }
 0x302   : > { %v3637_v33 = vpop.eup %3636  ;;  %2227 = vst [vmem:[%s4545_s17 + $0x530] sm:$0xff] %v2179_v39  ;;  %v2132_v30 = vadd.f32 1.0, %v3635_v53  ;;  %v2671_v46 = vmul.f32 0.70710677, %v2565_v56  ;;  %v1937_v7 = vpop.f32.mrb[188].mxu0  ;;  %v2623_v5 = vmul.f32 0.5, %v2565_v56 }
 0x303   : > { %2859 = vst [vmem:[%s4545_s17 + $0x538] sm:$0xff] %v2811_v10  ;;  %v2764_v23 = vadd.f32 1.0, %v3637_v33  ;;  %3646 = verf.f32 %v2039_v54  ;;  %v1938_v62 = vadd.f32 %v5416_v18, %v1937_v7  ;;  %v2569_v34 = vpop.f32.mrb[188].mxu1  ;;  %v1939_v32 = vpop.f32.mrb[189].mxu0 }
 0x304   : > { %v2180_v38 = vmul.f32 %v2132_v30, %v1988_v2  ;;  %3648 = verf.f32 %v2671_v46  ;;  %v2570_v20 = vadd.f32 %v5422_v47, %v2569_v34  ;;  %v2571_v31 = vpop.f32.mrb[189].mxu1 }
 0x305   : > { %v3639_v12 = vpop.eup %3638  ;;  %v2812_v44 = vmul.f32 %v2764_v23, %v2620_v6  ;;  %v2040_v28 = vmul.f32 0.70710677, %v1938_v62  ;;  %v1992_v52 = vmul.f32 0.5, %v1938_v62 }
 0x306   : > { %v3641_v16 = vpop.eup %3640  ;;  %2228 = vst [vmem:[%s4545_s17 + $0x550] sm:$0xff] %v2180_v38  ;;  %v2133_v8 = vadd.f32 1.0, %v3639_v12  ;;  %v2672_v26 = vmul.f32 0.70710677, %v2570_v20  ;;  %v1942_v24 = vpop.f32.mrb[190].mxu0  ;;  %v2624_v9 = vmul.f32 0.5, %v2570_v20 }
 0x307   : > { %2860 = vst [vmem:[%s4545_s17 + $0x558] sm:$0xff] %v2812_v44  ;;  %v2765_v60 = vadd.f32 1.0, %v3641_v16  ;;  %3650 = verf.f32 %v2040_v28  ;;  %v1943_v0 = vadd.f32 %v5416_v18, %v1942_v24  ;;  %v2574_v14 = vpop.f32.mrb[190].mxu1  ;;  %v1944_v48 = vpop.f32.mrb[191].mxu0  ;;  %v2622_v18 = vmul.f32 0.5, %v5653_v15 }
 0x308   : > { %v2181_v29 = vmul.f32 %v2133_v8, %v1989_v50  ;;  %3652 = verf.f32 %v2672_v26  ;;  %v2575_v11 = vadd.f32 %v5422_v47, %v2574_v14  ;;  %v2576_v25 = vpop.f32.mrb[191].mxu1 }
 0x309   : > { %v3643_v51 = vpop.eup %3642  ;;  %v2813_v41 = vmul.f32 %v2765_v60, %v2621_v21  ;;  %v2041_v43 = vmul.f32 0.70710677, %v1943_v0  ;;  %v1993_v39 = vmul.f32 0.5, %v1943_v0 }
 0x30a   : > { %v3645_v57 = vpop.eup %3644  ;;  %2229 = vst [vmem:[%s4545_s17 + $0x570] sm:$0xff] %v2181_v29  ;;  %v2134_v63 = vadd.f32 1.0, %v3643_v51  ;;  %v2673_v45 = vmul.f32 0.70710677, %v2575_v11  ;;  %v2625_v1 = vmul.f32 0.5, %v2575_v11 }
 0x30b   : > { %2861 = vst [vmem:[%s4545_s17 + $0x578] sm:$0xff] %v2813_v41  ;;  %v2766_v61 = vadd.f32 1.0, %v3645_v57  ;;  %3654 = verf.f32 %v2041_v43 }
 0x30c   : > { %v2182_v3 = vmul.f32 %v2134_v63, %v1990_v40  ;;  %3656 = verf.f32 %v2673_v45 }
 0x30d   : > { %v3647_v47 = vpop.eup %3646  ;;  %v2814_v58 = vmul.f32 %v2766_v61, %v2622_v18 }
 0x30e   : > { %v3649_v19 = vpop.eup %3648  ;;  %2230 = vst [vmem:[%s4545_s17 + $0x590] sm:$0xff] %v2182_v3  ;;  %v2135_v55 = vadd.f32 1.0, %v3647_v47 }
 0x30f   : > { %2862 = vst [vmem:[%s4545_s17 + $0x598] sm:$0xff] %v2814_v58  ;;  %v2767_v4 = vadd.f32 1.0, %v3649_v19 }
 0x310   : > { %v2183_v17 = vmul.f32 %v2135_v55, %v1991_v35 }
 0x311   : > { %v3651_v15 = vpop.eup %3650  ;;  %v2815_v36 = vmul.f32 %v2767_v4, %v2623_v5 }
 0x312   : > { %v3653_v13 = vpop.eup %3652  ;;  %2231 = vst [vmem:[%s4545_s17 + $0x5b0] sm:$0xff] %v2183_v17  ;;  %v2136_v49 = vadd.f32 1.0, %v3651_v15 }
 0x313   : > { %2863 = vst [vmem:[%s4545_s17 + $0x5b8] sm:$0xff] %v2815_v36  ;;  %v2768_v59 = vadd.f32 1.0, %v3653_v13 }
 0x314   : > { %v2184_v27 = vmul.f32 %v2136_v49, %v1992_v52 }
 0x315   : > { %v3655_v22 = vpop.eup %3654  ;;  %v2816_v42 = vmul.f32 %v2768_v59, %v2624_v9 }
 0x316   : > { %v3657_v37 = vpop.eup %3656  ;;  %2232 = vst [vmem:[%s4545_s17 + $0x5d0] sm:$0xff] %v2184_v27  ;;  %v2137_v56 = vadd.f32 1.0, %v3655_v22 }
 0x317   : > { %2864 = vst [vmem:[%s4545_s17 + $0x5d8] sm:$0xff] %v2816_v42  ;;  %v2769_v53 = vadd.f32 1.0, %v3657_v37 }
 0x318   : > { %v2185_v10 = vmul.f32 %v2137_v56, %v1993_v39 }
 0x319   : > { %v2817_v54 = vmul.f32 %v2769_v53, %v2625_v1 }
 0x31a   : > { %2233 = vst [vmem:[%s4545_s17 + $0x5f0] sm:$0xff] %v2185_v10 }
 0x31b   : > { %2865 = vst [vmem:[%s4545_s17 + $0x5f8] sm:$0xff] %v2817_v54 }
 0x31c   : > { %3822 = shalt.err (!%p3819_p7)
}
 0x31d   : > { %s3823_s22 = scalar_lea.hbm %s5694_s7, 24576  ;;  %s3827_s25 = scalar_lea.hbm %s5745_s3, 49152 }
 0x31e   : > { %p3824_p9 = scmp.ne.s32.totalorder %s5694_s7, %s3823_s22  ;;  %p3828_p3 = scmp.lt.u32.totalorder %s5694_s7, %s5745_s3 }
 0x31f   : > { %p3829_p1 = scmp.lt.u32.totalorder %s3827_s25, %s3823_s22  ;;  %p3831_p2 = scmp.lt.u32.totalorder %s3823_s22, %s5694_s7 }
 0x320   : > { %p3825_p12 = pnand %p3824_p9, %p5766_p4 }
 0x321   : > { %p3830_p10 = por %p3829_p1, %p3828_p3 }
 0x322   : > { %p3826_p6 = pneg %p3825_p12 }
 0x323   : > { %p3832_p0 = por %p3831_p2, %p3830_p10 }
 0x325   : > { %p3833_p11 = pnand %p3832_p0, %p3826_p6 }
 0x327   : > { %3836 = shalt.err (!%p3833_p11)
}
 0x328   : > { %s3891_s4 = smov 512   ;;  %s3892_s17 = smov 1024  }
 0x329   : > { %s3893_s20 = smov 32  }
 0x32a   : > { %3211 = dma.vmem_to_hbm [thread:$0]  (%p5766_p4), %s5696_s5, 24576, %s5694_s7, %s2867_s24, %s3891_s4, %s3892_s17, %s3893_s20  }
 0x32b PF: > { %s2895_s10 = sand.u32 1, %s3867_s12   ;;  %p5767_p13 = scmp.ne.s32.totalorder %s5756_s28, 0 }
 0x32c   : > { %p5768_p8 = scmp.ge.s32.totalorder %s3879_s15, 2  ;;  %s2896_s11 = scalar_lea.sflag [#allocation4], %s2895_s10 }
 0x32e   : > { %p3225_p5 = pnand %p5768_p8, %p5767_p13 }
 0x330   : > { %3862 = dma.done.wait (!%p3225_p5), %s2896_s11, 24576  }
 0x331   : > { %3864 = vsyncadd (!%p3225_p5), %s2896_s11, 4294942720  ;;  %p17_p7 = scmp.ge.s32.totalorder %s3935_s16, 4   ;;  %s5769_s12 = smov %s3871_s13 }
 0x332   : > { %s5770_s13 = smov %s3875_s14  ;;  %s5771_s14 = smov %s3946_s19 }
 0x333   : > { %s5772_s15 = smov %s3935_s16  ;;  %19 = sbr.rel (!%p17_p7) target bundleno = 6 (0x6), region = 93 }
 0x33a   :  { %2901 = vsyncpa [#allocation3], 1 }
 0x33b   :  { %2903 = vsyncpa [#allocation3 + $0x1], 1 }
 0x33c   :  { %2904 = vsyncpa [#allocation6], 1 }
 0x33d   :  { %2906 = vsyncpa [#allocation6 + $0x1], 1 }
 0x33e   :  { %2907 = vsyncpa [#allocation4], 1 }
 0x33f   :  { %2909 = vsyncpa [#allocation4 + $0x1], 1 }

// kernel: tpu_custom_call.1
= control target key start
LH: loop header
LB: loop body
LE: loop exit
PB: predicated region body
PF: predicated region fallthrough
CT: control target
= control target key end

     0   :  { %8 = vsyncpa [#allocation3], 0  ;;  %s5742_s0 = inlined_call_operand.hbm [shape: f32[384,256], index: 0, kind: input, shape index: {}]   ;;  %s5743_s1 = inlined_call_operand.hbm [shape: f32[256,1024], index: 1, kind: input, shape index: {}]   ;;  %s5744_s2 = inlined_call_operand.hbm [shape: f32[1,1024], index: 2, kind: input, shape index: {}]   ;;  %s5745_s3 = inlined_call_operand.hbm [shape: f32[384,1024], index: 3, kind: output, shape index: {}]  }
   0x1   :  { %9 = vsyncpa [#allocation6], 0 }
   0x2   :  { %11 = vsyncpa [#allocation6 + $0x1], 0 }
   0x3   :  { %12 = vsyncpa [#allocation4], 0 }
   0x4   :  { %14 = vsyncpa [#allocation4 + $0x1], 0  ;;  %s3914_s12 = smov 0   ;;  %s3916_s13 = smov 0  }
   0x5   :  { %s3918_s14 = smov 0   ;;  %s3920_s15 = smov 0  }
   0x6 LB: > { %s3935_s16 = sadd.s32 1, %s3879_s15   ;;  %s48_s17 = sadd.s32 1, %s3875_s14  ;;  %s3879_s15 = sphi %s3920_s15, %s5772_s15   ;;  %s3875_s14 = sphi %s3918_s14, %s5771_s14   ;;  %s3871_s13 = sphi %s3916_s13, %s5770_s13   ;;  %s3867_s12 = sphi %s3914_s12, %s5769_s12  }
   0x7   : > { %s45_s18 = ssub.s32 %s3879_s15, %s3935_s16  ;;  %p55_p0 = scmp.ne.s32.totalorder %s3875_s14, %s3871_s13 }
   0x8   : > { %p46_p1 = scmp.eq.s32.totalorder %s45_s18, 0  ;;  %p56_p2 = scmp.eq.s32.totalorder %s3879_s15, 0 }
   0x9   : > { %p3229_p4 = scmp.lt.s32.totalorder %s3879_s15, 2  ;;  %s150_s20 = sand.u32 1, %s3879_s15  }
   0xa   : > { %s3946_s19 = scalar_select %p46_p1, %s3875_s14, %s48_s17  }
   0xb   : > { %p57_p5 = por %p56_p2, %p55_p0  ;;  %s152_s21 = sand.u32 1, %s3875_s14  }
   0xc   : > { %s2989_s22 = sshll.u32 %s152_s21, 10  ;;  %s3007_s23 = sshll.u32 %s3879_s15, 9 }
   0xd   : > { %s3959_s26 = scalar_lea.hbm %s5743_s1, %s3007_s23  ;;  %s154_s27 = scalar_lea.vmem [#allocation5], %s2989_s22 }
   0xe   : > { %s161_s28 = sshll.u32 %s154_s27, 4  ;;  %p3961_p6 = pnand %p3229_p4, %p57_p5  ;;  %s3965_s28 = int_to_ptr.vmem [resolvable:$true] %s161_s28 }
   0xf   : > { %s3967_s30 = scalar_lea.sflag [#allocation6], %s150_s20  ;;  %s3721_s4 = scalar_lea.hbm %s3959_s26, 16384 }
  0x10   : > { %s5753_s29 = scalar_select %p3961_p6, 1, 0 }
  0x11   : > { %p3722_p7 = scmp.ne.s32.totalorder %s3959_s26, %s3721_s4  ;;  %p5747_p8 = pneg %p3961_p6 }
  0x12   : > { %s3726_s7 = scalar_lea.hbm %s5743_s1, 32768  ;;  %p3727_p11 = scmp.lt.u32.totalorder %s3959_s26, %s5743_s1 }
  0x13   : > { %p3724_p9 = pnand %p5747_p8, %p3722_p7  ;;  %p3728_p12 = scmp.lt.u32.totalorder %s3726_s7, %s3721_s4 }
  0x14   : > { %p3730_p1 = scmp.lt.u32.totalorder %s3721_s4, %s3959_s26 }
  0x15   : > { %p3725_p10 = pneg %p3724_p9  ;;  %p3729_p13 = por %p3728_p12, %p3727_p11 }
  0x17   : > { %p3731_p2 = por %p3730_p1, %p3729_p13 }
  0x19   : > { %p3732_p4 = pnand %p3731_p2, %p3725_p10 }
  0x1b   : > { %3735 = shalt.err (!%p3732_p4)
}
  0x1c   : > { %s3736_s10 = scalar_lea.vmem %s3965_s28, 16384  ;;  %s3881_s11 = smov [#allocation5]  }
  0x1d   : > { %p3737_p5 = scmp.ne.s32.totalorder %s3965_s28, %s3736_s10  ;;  %s3741_s17 = sshll.u32 %s3881_s11, 4  ;;  %s3742_s17 = int_to_ptr.vmem [resolvable:$false] %s3741_s17 }
  0x1e   : > { %s3743_s18 = scalar_lea.vmem %s3742_s17, 32768  ;;  %p3744_p3 = scmp.lt.s32.totalorder %s3965_s28, %s3742_s17 }
  0x1f   : > { %p3739_p7 = pnand %p3737_p5, %p5747_p8  ;;  %p3745_p11 = scmp.lt.s32.totalorder %s3743_s18, %s3736_s10 }
  0x21   : > { %p3740_p9 = pneg %p3739_p7  ;;  %p3746_p12 = por %p3745_p11, %p3744_p3 }
  0x23   : > { %p3747_p13 = pnand %p3746_p12, %p3740_p9 }
  0x25   : > { %3750 = shalt.err (!%p3747_p13)
}
  0x26   : > { %s3882_s20 = smov 1024   ;;  %s3883_s22 = smov 512  }
  0x27   : > { %s3884_s23 = smov 32   ;;  %s3996_s24 = sadd.s32 4294967295, %s3879_s15  }
  0x28   : > { %3220 = dma.hbm_to_vmem [thread:$0]  (!%p3961_p6), %s3959_s26, 16384, %s3965_s28, %s3967_s30, %s3882_s20, %s3883_s22, %s3884_s23  }
  0x29   : > { %s2985_s25 = sadd.s32 4294967294, %s3879_s15   ;;  %p61_p3 = scmp.ne.s32.totalorder %s3871_s13, %s3867_s12 }
  0x2a   : > { %p5746_p10 = scmp.eq.s32.totalorder %s3996_s24, 0  ;;  %p111_p1 = scmp.eq.s32.totalorder %s3996_s24, 1 }
  0x2b   : > { %p117_p2 = scmp.eq.s32.totalorder %s2985_s25, 1  ;;  %p2986_p4 = scmp.ge.s32.totalorder %s3879_s15, 1 }
  0x2c   : > { %p4006_p5 = por %p5746_p10, %p61_p3  ;;  %p4013_p7 = por %p111_p1, %p55_p0 }
  0x2d   : > { %p4017_p9 = por %p117_p2, %p61_p3  ;;  %p124_p11 = scmp.lt.s32.totalorder %s3879_s15, 3 }
  0x2e   : > { %s5754_s27 = scalar_select %p4006_p5, 1, 0 }
  0x2f   : > { %s5755_s26 = scalar_select %p4013_p7, 1, 0 }
  0x30   : > { %s5756_s28 = scalar_select %p4017_p9, 1, 0 }
  0x31   : > { %p4022_p12 = pnand %p2986_p4, %p124_p11  ;;  %s3885_s5 = smov [#allocation2]  }
  0x32   : > { %s136_s6 = sshll.u32 %s3885_s5, 4  ;;  %s2992_s7 = sshll.u32 %s152_s21, 2  ;;  %s4026_s6 = int_to_ptr.vmem [resolvable:$true] %s136_s6 }
  0x33   : > { %s5757_s4 = scalar_select %p4022_p12, 1, 0 }
  0x34   : > { %p3213_p13 = pneg %p4022_p12  ;;  %s3008_s8 = sshll.u32 %s3879_s15, 6 }
  0x35   : > { %s4042_s17 = scalar_lea.hbm %s5744_s2, %s3008_s8  ;;  %s175_s18 = scalar_lea.vmem [#allocation7], %s2992_s7 }
  0x36   : > { %p4035_p0 = pnand %p3213_p13, %p5746_p10  ;;  %s183_s20 = sshll.u32 %s175_s18, 4  ;;  %s4044_s20 = int_to_ptr.vmem [resolvable:$true] %s183_s20 }
  0x37   : > { %s3751_s21 = scalar_lea.hbm %s5742_s0, 12288 }
  0x38   : > { %p3752_p3 = scmp.ne.s32.totalorder %s5742_s0, %s3751_s21  ;;  %p3753_p1 = pneg %p4035_p0 }
  0x39   : > { %p3758_p11 = scmp.lt.u32.totalorder %s3751_s21, %s5742_s0 }
  0x3a   : > { %p3754_p2 = pnand %p3753_p1, %p3752_p3 }
  0x3c   : > { %p3755_p4 = pneg %p3754_p2 }
  0x3e   : > { %p3760_p13 = pnand %p3758_p11, %p3755_p4 }
  0x40   : > { %3763 = shalt.err (!%p3760_p13)
}
  0x41   : > { %s3764_s7 = scalar_lea.vmem %s4026_s6, 12288  ;;  %p3772_p7 = scmp.lt.s32.totalorder %s4026_s6, %s4026_s6 }
  0x42   : > { %p3765_p10 = scmp.ne.s32.totalorder %s4026_s6, %s3764_s7  ;;  %p3773_p5 = scmp.lt.s32.totalorder %s3764_s7, %s3764_s7 }
  0x44   : > { %p3767_p8 = pnand %p3765_p10, %p3753_p1  ;;  %p3774_p12 = por %p3773_p5, %p3772_p7 }
  0x46   : > { %p3768_p9 = pneg %p3767_p8 }
  0x48   : > { %p3775_p6 = pnand %p3774_p12, %p3768_p9 }
  0x4a   : > { %3778 = shalt.err (!%p3775_p6)
}
  0x4b   : > { %s3886_s8 = smov 256   ;;  %s3887_s18 = smov 16  }
  0x4c   : > { %3216 = dma.hbm_to_vmem [thread:$0]  (!%p4035_p0), %s5742_s0, 12288, %s4026_s6, [#allocation3], %s3886_s8, %s3886_s8, %s3887_s18  }
  0x4d   : > { %s3779_s21 = scalar_lea.hbm %s4042_s17, 64  ;;  %p5759_p10 = scmp.ne.s32.totalorder %s5753_s29, 0 }
  0x4e   : > { %p3780_p8 = scmp.ne.s32.totalorder %s4042_s17, %s3779_s21  ;;  %s3784_s10 = scalar_lea.hbm %s5744_s2, 128 }
  0x4f   : > { %p5760_p5 = pneg %p5759_p10  ;;  %p3785_p9 = scmp.lt.u32.totalorder %s4042_s17, %s5744_s2 }
  0x50   : > { %p3786_p12 = scmp.lt.u32.totalorder %s3784_s10, %s3779_s21  ;;  %p3788_p1 = scmp.lt.u32.totalorder %s3779_s21, %s4042_s17 }
  0x51   : > { %p3782_p7 = pnand %p3780_p8, %p5760_p5 }
  0x52   : > { %p3787_p3 = por %p3786_p12, %p3785_p9 }
  0x53   : > { %p3783_p6 = pneg %p3782_p7 }
  0x54   : > { %p3789_p2 = por %p3788_p1, %p3787_p3 }
  0x56   : > { %p3790_p4 = pnand %p3789_p2, %p3783_p6 }
  0x58   : > { %3793 = shalt.err (!%p3790_p4)
}
  0x59   : > { %s3794_s6 = scalar_lea.vmem %s4044_s20, 64  ;;  %p5761_p11 = pmov %p5760_p5 }
  0x5a   : > { %p3795_p0 = scmp.ne.s32.totalorder %s4044_s20, %s3794_s6  ;;  %s3888_s9 = smov [#allocation7]  }
  0x5b   : > { %s3799_s8 = sshll.u32 %s3888_s9, 4  ;;  %s3800_s8 = int_to_ptr.vmem [resolvable:$false] %s3799_s8 }
  0x5c   : > { %p3797_p13 = pnand %p3795_p0, %p5761_p11  ;;  %s3801_s18 = scalar_lea.vmem %s3800_s8, 128 }
  0x5d   : > { %p3802_p5 = scmp.lt.s32.totalorder %s4044_s20, %s3800_s8  ;;  %p3803_p7 = scmp.lt.s32.totalorder %s3801_s18, %s3794_s6 }
  0x5e   : > { %p3798_p8 = pneg %p3797_p13 }
  0x5f   : > { %p3804_p9 = por %p3803_p7, %p3802_p5 }
  0x61   : > { %p3805_p12 = pnand %p3804_p9, %p3798_p8 }
  0x63   : > { %3808 = shalt.err (!%p3805_p12)
}
  0x64   : > { %3223 = dma.hbm_to_vmem [thread:$0]  (!%p5759_p10), %s4042_s17, 64, %s4044_s20, %s3967_s30  }
  0x65   : > { %p5762_p6 = scmp.ne.s32.totalorder %s5757_s4, 0 }
  0x66   : > { %p5763_p3 = scmp.eq.s32.totalorder (!%p5762_p6), %s3996_s24, 0 }
  0x67   : > { %192 = sbr.rel (%p5762_p6) target bundleno = 811 (0x32b), region = 32 }
  0x6e   : > { %3854 = dma.done.wait (%p5763_p3), [#allocation3], 12288   ;;  %p5764_p1 = pmov %p5763_p3 }
  0x6f   : > { %s198_s22 = sand.u32 1, %s3996_s24   ;;  %s4099_s23 = sand.u32 1, %s3871_s13  }
  0x70   : > { %3856 = vsyncadd (%p5764_p1), [#allocation3], 4294955008  ;;  %s2997_s29 = sshll.u32 %s4099_s23, 10  ;;  %s199_s21 = scalar_lea.sflag [#allocation6], %s198_s22 }
  0x71   : > { %s4102_s25 = scalar_lea.vmem [#allocation5], %s2997_s29  ;;  %p5765_p10 = scmp.ne.s32.totalorder %s5754_s27, 0 }
  0x73   : > { %3858 = dma.done.wait (%p5765_p10), %s199_s21, 16448  }
  0x74   : > { %3860 = vsyncadd (%p5765_p10), %s199_s21, 4294950848  ;;  %v3889_v0 = vmov 0.0|0.0   ;;  %v338_v1 = vld [vmem:[%s4102_s25] sm:$0xff]  ;;  %v970_v3 = vld [vmem:[%s4102_s25 + $0x8] sm:$0xff]  ;;  %s2998_s30 = sshll.u32 %s4099_s23, 2  ;;  %s3202_s4 = smul.u32 1536, %s4099_s23 }
  0x75   : > { %3010 = vmatprep.subr.bf16.mxu0 %v3889_v0  ;;  %3058 = vmatprep.subr.bf16.mxu1 %v3889_v0  ;;  %v339_v2 = vld [vmem:[%s4102_s25 + $0x20] sm:$0xff]  ;;  %v971_v5 = vld [vmem:[%s4102_s25 + $0x28] sm:$0xff]  ;;  %s4479_s27 = scalar_lea.vmem [#allocation7], %s2998_s30  ;;  %s3009_s20 = sshll.u32 %s3996_s24, 9 }
  0x76   : > { %v3011_v4 = vpack.c.bf16 %v339_v2, %v338_v1  ;;  %v340_v6 = vld [vmem:[%s4102_s25 + $0x40] sm:$0xff]  ;;  %v3059_v8 = vpack.c.bf16 %v971_v5, %v970_v3  ;;  %v972_v9 = vld [vmem:[%s4102_s25 + $0x48] sm:$0xff]  ;;  %s4545_s17 = scalar_lea.vmem [#allocation8], %s3202_s4  ;;  %s5694_s7 = scalar_lea.hbm %s5745_s3, %s3009_s20 }
  0x77   : > { %v341_v7 = vld [vmem:[%s4102_s25 + $0x60] sm:$0xff]  ;;  %v973_v10 = vld [vmem:[%s4102_s25 + $0x68] sm:$0xff]  ;;  %s2880_s5 = sshll.u32 %s4545_s17, 4  ;;  %s2867_s24 = scalar_lea.sflag [#allocation4], %s4099_s23  ;;  %s5696_s5 = int_to_ptr.vmem [resolvable:$true] %s2880_s5 }
  0x78   : > { %3012 = vmatpush1.bf16.msra.mxu0 %v3011_v4  ;;  %v3014_v11 = vpack.c.bf16 %v341_v7, %v340_v6  ;;  %3060 = vmatpush1.bf16.msra.mxu1 %v3059_v8  ;;  %v3062_v12 = vpack.c.bf16 %v973_v10, %v972_v9  ;;  %v342_v13 = vld [vmem:[%s4102_s25 + $0x80] sm:$0xff]  ;;  %v974_v15 = vld [vmem:[%s4102_s25 + $0x88] sm:$0xff]  ;;  %s3809_s6 = scalar_lea.vmem %s5696_s5, 24576  ;;  %p5766_p4 = scmp.ne.s32.totalorder %s5755_s26, 0 }
  0x79   : > { %3013 = vmatprep.subr.bf16.mxu0 %v3889_v0  ;;  %v343_v14 = vld [vmem:[%s4102_s25 + $0xa0] sm:$0xff]  ;;  %3061 = vmatprep.subr.bf16.mxu1 %v3889_v0  ;;  %v975_v16 = vld [vmem:[%s4102_s25 + $0xa8] sm:$0xff]  ;;  %p3810_p2 = scmp.ne.s32.totalorder %s5696_s5, %s3809_s6  ;;  %s3890_s9 = smov [#allocation8]  }
  0x7a   : > { %v3017_v17 = vpack.c.bf16 %v343_v14, %v342_v13  ;;  %v3065_v18 = vpack.c.bf16 %v975_v16, %v974_v15  ;;  %v344_v19 = vld [vmem:[%s4102_s25 + $0xc0] sm:$0xff]  ;;  %v976_v21 = vld [vmem:[%s4102_s25 + $0xc8] sm:$0xff]  ;;  %s3813_s8 = sshll.u32 %s3890_s9, 4  ;;  %s3814_s8 = int_to_ptr.vmem [resolvable:$false] %s3813_s8 }
  0x7b   : > { %v345_v20 = vld [vmem:[%s4102_s25 + $0xe0] sm:$0xff]  ;;  %v977_v22 = vld [vmem:[%s4102_s25 + $0xe8] sm:$0xff]  ;;  %p3811_p0 = pnand %p3810_p2, %p5766_p4  ;;  %s3815_s18 = scalar_lea.vmem %s3814_s8, 49152 }
  0x7c   : > { %3015 = vmatpush1.bf16.msra.mxu0 %v3014_v11  ;;  %3063 = vmatpush1.bf16.msra.mxu1 %v3062_v12  ;;  %v3020_v23 = vpack.c.bf16 %v345_v20, %v344_v19  ;;  %v3068_v24 = vpack.c.bf16 %v977_v22, %v976_v21  ;;  %v346_v25 = vld [vmem:[%s4102_s25 + $0x100] sm:$0xff]  ;;  %v978_v27 = vld [vmem:[%s4102_s25 + $0x108] sm:$0xff]  ;;  %p3816_p13 = scmp.lt.s32.totalorder %s5696_s5, %s3814_s8  ;;  %p3817_p8 = scmp.lt.s32.totalorder %s3815_s18, %s3809_s6 }
  0x7d   : > { %3016 = vmatprep.subr.bf16.mxu0 %v3889_v0  ;;  %3064 = vmatprep.subr.bf16.mxu1 %v3889_v0  ;;  %v347_v26 = vld [vmem:[%s4102_s25 + $0x120] sm:$0xff]  ;;  %v979_v28 = vld [vmem:[%s4102_s25 + $0x128] sm:$0xff]  ;;  %p3812_p11 = pneg %p3811_p0 }
  0x7e   : > { %v3023_v29 = vpack.c.bf16 %v347_v26, %v346_v25  ;;  %v3071_v30 = vpack.c.bf16 %v979_v28, %v978_v27  ;;  %v348_v31 = vld [vmem:[%s4102_s25 + $0x140] sm:$0xff]  ;;  %v980_v33 = vld [vmem:[%s4102_s25 + $0x148] sm:$0xff]  ;;  %p3818_p5 = por %p3817_p8, %p3816_p13 }
  0x7f   : > { %v349_v32 = vld [vmem:[%s4102_s25 + $0x160] sm:$0xff]  ;;  %v981_v34 = vld [vmem:[%s4102_s25 + $0x168] sm:$0xff] }
  0x80   : > { %3018 = vmatpush1.bf16.msra.mxu0 %v3017_v17  ;;  %3066 = vmatpush1.bf16.msra.mxu1 %v3065_v18  ;;  %v3026_v35 = vpack.c.bf16 %v349_v32, %v348_v31  ;;  %v3074_v36 = vpack.c.bf16 %v981_v34, %v980_v33  ;;  %v350_v37 = vld [vmem:[%s4102_s25 + $0x180] sm:$0xff]  ;;  %v982_v39 = vld [vmem:[%s4102_s25 + $0x188] sm:$0xff]  ;;  %p3819_p7 = pnand %p3818_p5, %p3812_p11 }
  0x81   : > { %3019 = vmatprep.subr.bf16.mxu0 %v3889_v0  ;;  %3067 = vmatprep.subr.bf16.mxu1 %v3889_v0  ;;  %v351_v38 = vld [vmem:[%s4102_s25 + $0x1a0] sm:$0xff]  ;;  %v983_v40 = vld [vmem:[%s4102_s25 + $0x1a8] sm:$0xff] }
  0x82   : > { %v243_v41 = vld [vmem:[#allocation2 + $0x8] sm:$0xff]  ;;  %v3029_v42 = vpack.c.bf16 %v351_v38, %v350_v37  ;;  %v3077_v43 = vpack.c.bf16 %v983_v40, %v982_v39  ;;  %v352_v44 = vld [vmem:[%s4102_s25 + $0x1c0] sm:$0xff]  ;;  %v2234_v37 = vld [vmem:[%s4102_s25 + $0x18] sm:$0xff] }
  0x83   : > { %441 = vmatprep.mubr.f32.mxu0 %v243_v41  ;;  %1073 = vmatprep.mubr.f32.mxu1 %v243_v41  ;;  %v353_v45 = vld [vmem:[%s4102_s25 + $0x1e0] sm:$0xff]  ;;  %v984_v46 = vld [vmem:[%s4102_s25 + $0x1c8] sm:$0xff]  ;;  %v2235_v38 = vld [vmem:[%s4102_s25 + $0x38] sm:$0xff] }
  0x84   : > { %3021 = vmatpush1.bf16.msra.mxu0 %v3020_v23  ;;  %3069 = vmatpush1.bf16.msra.mxu1 %v3068_v24  ;;  %v985_v47 = vld [vmem:[%s4102_s25 + $0x1e8] sm:$0xff]  ;;  %v3032_v48 = vpack.c.bf16 %v353_v45, %v352_v44  ;;  %v354_v50 = vld [vmem:[%s4102_s25 + $0x200] sm:$0xff]  ;;  %v3155_v41 = vpack.c.bf16 %v2235_v38, %v2234_v37  ;;  %v1605_v44 = vld [vmem:[%s4102_s25 + $0x70] sm:$0xff] }
  0x85   : > { %3022 = vmatprep.subr.bf16.mxu0 %v3889_v0  ;;  %3070 = vmatprep.subr.bf16.mxu1 %v3889_v0  ;;  %v3080_v49 = vpack.c.bf16 %v985_v47, %v984_v46  ;;  %v355_v51 = vld [vmem:[%s4102_s25 + $0x220] sm:$0xff]  ;;  %v986_v52 = vld [vmem:[%s4102_s25 + $0x208] sm:$0xff]  ;;  %v2236_v45 = vld [vmem:[%s4102_s25 + $0x58] sm:$0xff] }
  0x86   : > { %v987_v53 = vld [vmem:[%s4102_s25 + $0x228] sm:$0xff]  ;;  %v3035_v54 = vpack.c.bf16 %v355_v51, %v354_v50  ;;  %v356_v56 = vld [vmem:[%s4102_s25 + $0x240] sm:$0xff]  ;;  %v2237_v46 = vld [vmem:[%s4102_s25 + $0x78] sm:$0xff] }
  0x87   : > { %v3083_v55 = vpack.c.bf16 %v987_v53, %v986_v52  ;;  %v357_v57 = vld [vmem:[%s4102_s25 + $0x260] sm:$0xff]  ;;  %v988_v58 = vld [vmem:[%s4102_s25 + $0x248] sm:$0xff]  ;;  %v4220_v47 = vld [vmem:[#allocation2 + $0x10] sm:$0xff]  ;;  %v3158_v50 = vpack.c.bf16 %v2237_v46, %v2236_v45 }
  0x88   : > { %3024 = vmatpush1.bf16.msra.mxu0 %v3023_v29  ;;  %3072 = vmatpush1.bf16.msra.mxu1 %v3071_v30  ;;  %v989_v59 = vld [vmem:[%s4102_s25 + $0x268] sm:$0xff]  ;;  %v3038_v60 = vpack.c.bf16 %v357_v57, %v356_v56  ;;  %v358_v62 = vld [vmem:[%s4102_s25 + $0x280] sm:$0xff]  ;;  %v1606_v51 = vld [vmem:[%s4102_s25 + $0x90] sm:$0xff] }
  0x89   : > { %3025 = vmatprep.subr.bf16.mxu0 %v3889_v0  ;;  %3073 = vmatprep.subr.bf16.mxu1 %v3889_v0  ;;  %v3086_v61 = vpack.c.bf16 %v989_v59, %v988_v58  ;;  %v359_v63 = vld [vmem:[%s4102_s25 + $0x2a0] sm:$0xff]  ;;  %v990_v1 = vld [vmem:[%s4102_s25 + $0x288] sm:$0xff]  ;;  %v1607_v52 = vld [vmem:[%s4102_s25 + $0xb0] sm:$0xff] }
  0x8a   : > { %v991_v2 = vld [vmem:[%s4102_s25 + $0x2a8] sm:$0xff]  ;;  %v3041_v3 = vpack.c.bf16 %v359_v63, %v358_v62  ;;  %v360_v5 = vld [vmem:[%s4102_s25 + $0x2c0] sm:$0xff]  ;;  %v2238_v53 = vld [vmem:[%s4102_s25 + $0x98] sm:$0xff]  ;;  %v3113_v57 = vpack.c.bf16 %v1607_v52, %v1606_v51 }
  0x8b   : > { %v3089_v4 = vpack.c.bf16 %v991_v2, %v990_v1  ;;  %v361_v6 = vld [vmem:[%s4102_s25 + $0x2e0] sm:$0xff]  ;;  %v992_v7 = vld [vmem:[%s4102_s25 + $0x2c8] sm:$0xff]  ;;  %v4238_v56 = vld [vmem:[#allocation2 + $0x38] sm:$0xff] }
  0x8c   : > { %3027 = vmatpush1.bf16.msra.mxu0 %v3026_v35  ;;  %3075 = vmatpush1.bf16.msra.mxu1 %v3074_v36  ;;  %v993_v8 = vld [vmem:[%s4102_s25 + $0x2e8] sm:$0xff]  ;;  %v3044_v9 = vpack.c.bf16 %v361_v6, %v360_v5  ;;  %v362_v11 = vld [vmem:[%s4102_s25 + $0x300] sm:$0xff]  ;;  %v1602_v35 = vld [vmem:[%s4102_s25 + $0x10] sm:$0xff] }
  0x8d   : > { %3028 = vmatprep.subr.bf16.mxu0 %v3889_v0  ;;  %3076 = vmatprep.subr.bf16.mxu1 %v3889_v0  ;;  %v3092_v10 = vpack.c.bf16 %v993_v8, %v992_v7  ;;  %v363_v12 = vld [vmem:[%s4102_s25 + $0x320] sm:$0xff]  ;;  %v994_v13 = vld [vmem:[%s4102_s25 + $0x308] sm:$0xff]  ;;  %v1603_v36 = vld [vmem:[%s4102_s25 + $0x30] sm:$0xff] }
  0x8e   : > { %v995_v14 = vld [vmem:[%s4102_s25 + $0x328] sm:$0xff]  ;;  %v3047_v15 = vpack.c.bf16 %v363_v12, %v362_v11  ;;  %v364_v17 = vld [vmem:[%s4102_s25 + $0x340] sm:$0xff]  ;;  %v3107_v40 = vpack.c.bf16 %v1603_v36, %v1602_v35  ;;  %v1608_v59 = vld [vmem:[%s4102_s25 + $0xd0] sm:$0xff] }
  0x8f   : > { %v3095_v16 = vpack.c.bf16 %v995_v14, %v994_v13  ;;  %v365_v18 = vld [vmem:[%s4102_s25 + $0x360] sm:$0xff]  ;;  %v996_v19 = vld [vmem:[%s4102_s25 + $0x348] sm:$0xff]  ;;  %v2241_v62 = vld [vmem:[%s4102_s25 + $0xf8] sm:$0xff] }
  0x90   : > { %3030 = vmatpush1.bf16.msra.mxu0 %v3029_v42  ;;  %3078 = vmatpush1.bf16.msra.mxu1 %v3077_v43  ;;  %v997_v20 = vld [vmem:[%s4102_s25 + $0x368] sm:$0xff]  ;;  %v3050_v21 = vpack.c.bf16 %v365_v18, %v364_v17  ;;  %v366_v23 = vld [vmem:[%s4102_s25 + $0x380] sm:$0xff]  ;;  %v4212_v42 = vld [vmem:[#allocation2 + $0x18] sm:$0xff] }
  0x91   : > { %3031 = vmatprep.subr.bf16.mxu0 %v3889_v0  ;;  %3079 = vmatprep.subr.bf16.mxu1 %v3889_v0  ;;  %v3098_v22 = vpack.c.bf16 %v997_v20, %v996_v19  ;;  %v367_v24 = vld [vmem:[%s4102_s25 + $0x3a0] sm:$0xff]  ;;  %v998_v25 = vld [vmem:[%s4102_s25 + $0x388] sm:$0xff]  ;;  %v1604_v43 = vld [vmem:[%s4102_s25 + $0x50] sm:$0xff] }
  0x92   : > { %v999_v26 = vld [vmem:[%s4102_s25 + $0x3a8] sm:$0xff]  ;;  %v3053_v27 = vpack.c.bf16 %v367_v24, %v366_v23  ;;  %v368_v29 = vld [vmem:[%s4102_s25 + $0x3c0] sm:$0xff]  ;;  %v4249_v63 = vld [vmem:[#allocation2 + $0x30] sm:$0xff] }
  0x93   : > { %v3101_v28 = vpack.c.bf16 %v999_v26, %v998_v25  ;;  %v369_v30 = vld [vmem:[%s4102_s25 + $0x3e0] sm:$0xff]  ;;  %v1000_v31 = vld [vmem:[%s4102_s25 + $0x3c8] sm:$0xff]  ;;  %v1611_v5 = vld [vmem:[%s4102_s25 + $0x130] sm:$0xff] }
  0x94   : > { %3033 = vmatpush1.bf16.msra.mxu0 %v3032_v48  ;;  %3081 = vmatpush1.bf16.msra.mxu1 %v3080_v49  ;;  %v1001_v32 = vld [vmem:[%s4102_s25 + $0x3e8] sm:$0xff]  ;;  %v3056_v33 = vpack.c.bf16 %v369_v30, %v368_v29  ;;  %v4208_v39 = vld [vmem:[#allocation2] sm:$0xff]  ;;  %v3110_v49 = vpack.c.bf16 %v1605_v44, %v1604_v43  ;;  %v2242_v6 = vld [vmem:[%s4102_s25 + $0x118] sm:$0xff] }
  0x95   : > { %3034 = vmatprep.subr.bf16.mxu0 %v3889_v0  ;;  %3082 = vmatprep.subr.bf16.mxu1 %v3889_v0  ;;  %v3104_v34 = vpack.c.bf16 %v1001_v32, %v1000_v31  ;;  %v4223_v48 = vld [vmem:[#allocation2 + $0x28] sm:$0xff]  ;;  %v2243_v7 = vld [vmem:[%s4102_s25 + $0x138] sm:$0xff]  ;;  %v4263_v8 = vld [vmem:[#allocation2 + $0x40] sm:$0xff] }
  0x96   : > { %v4252_v1 = vld [vmem:[#allocation2 + $0x48] sm:$0xff]  ;;  %v3167_v11 = vpack.c.bf16 %v2243_v7, %v2242_v6  ;;  %v1612_v12 = vld [vmem:[%s4102_s25 + $0x150] sm:$0xff]  ;;  %v2244_v14 = vld [vmem:[%s4102_s25 + $0x158] sm:$0xff] }
  0x97   : > { %v1613_v13 = vld [vmem:[%s4102_s25 + $0x170] sm:$0xff]  ;;  %v4280_v17 = vld [vmem:[#allocation2 + $0x68] sm:$0xff]  ;;  %v2247_v23 = vld [vmem:[%s4102_s25 + $0x1b8] sm:$0xff] }
  0x98   : > { %3036 = vmatpush1.bf16.msra.mxu0 %v3035_v54  ;;  %3084 = vmatpush1.bf16.msra.mxu1 %v3083_v55  ;;  %v2239_v54 = vld [vmem:[%s4102_s25 + $0xb8] sm:$0xff]  ;;  %v4235_v55 = vld [vmem:[#allocation2 + $0x20] sm:$0xff]  ;;  %v3122_v18 = vpack.c.bf16 %v1613_v13, %v1612_v12  ;;  %v1614_v20 = vld [vmem:[%s4102_s25 + $0x190] sm:$0xff] }
  0x99   : > { %3037 = vmatprep.subr.bf16.mxu0 %v3889_v0  ;;  %3085 = vmatprep.subr.bf16.mxu1 %v3889_v0  ;;  %v3161_v58 = vpack.c.bf16 %v2239_v54, %v2238_v53  ;;  %v4291_v24 = vld [vmem:[#allocation2 + $0x60] sm:$0xff]  ;;  %v4294_v25 = vld [vmem:[#allocation2 + $0x78] sm:$0xff]  ;;  %v1617_v29 = vld [vmem:[%s4102_s25 + $0x1f0] sm:$0xff] }
  0x9a   : > { %v2248_v30 = vld [vmem:[%s4102_s25 + $0x1d8] sm:$0xff]  ;;  %v4305_v32 = vld [vmem:[#allocation2 + $0x70] sm:$0xff]  ;;  %v4336_v53 = vld [vmem:[#allocation2 + $0xa8] sm:$0xff] }
  0x9b   : > { %v2249_v31 = vld [vmem:[%s4102_s25 + $0x1f8] sm:$0xff]  ;;  %v1618_v36 = vld [vmem:[%s4102_s25 + $0x210] sm:$0xff]  ;;  %v4364_v12 = vld [vmem:[#allocation2 + $0xc8] sm:$0xff] }
  0x9c   : > { %3039 = vmatpush1.bf16.msra.mxu0 %v3038_v60  ;;  %3087 = vmatpush1.bf16.msra.mxu1 %v3086_v61  ;;  %v1609_v60 = vld [vmem:[%s4102_s25 + $0xf0] sm:$0xff]  ;;  %v2240_v61 = vld [vmem:[%s4102_s25 + $0xd8] sm:$0xff]  ;;  %v3176_v35 = vpack.c.bf16 %v2249_v31, %v2248_v30 }
  0x9d   : > { %3040 = vmatprep.subr.bf16.mxu0 %v3889_v0  ;;  %3088 = vmatprep.subr.bf16.mxu1 %v3889_v0  ;;  %v3116_v2 = vpack.c.bf16 %v1609_v60, %v1608_v59  ;;  %v1619_v37 = vld [vmem:[%s4102_s25 + $0x230] sm:$0xff]  ;;  %v2250_v38 = vld [vmem:[%s4102_s25 + $0x218] sm:$0xff] }
  0x9e   : > { %v4322_v43 = vld [vmem:[#allocation2 + $0x98] sm:$0xff]  ;;  %v3131_v44 = vpack.c.bf16 %v1619_v37, %v1618_v36  ;;  %v1620_v46 = vld [vmem:[%s4102_s25 + $0x250] sm:$0xff] }
  0x9f   : > { %v2253_v51 = vld [vmem:[%s4102_s25 + $0x278] sm:$0xff]  ;;  %v4333_v52 = vld [vmem:[#allocation2 + $0x90] sm:$0xff] }
  0xa0   : > { %3042 = vmatpush1.bf16.msra.mxu0 %v3041_v3  ;;  %3090 = vmatpush1.bf16.msra.mxu1 %v3089_v4  ;;  %v3164_v3 = vpack.c.bf16 %v2241_v62, %v2240_v61  ;;  %v1610_v4 = vld [vmem:[%s4102_s25 + $0x110] sm:$0xff]  ;;  %v2254_v60 = vld [vmem:[%s4102_s25 + $0x298] sm:$0xff]  ;;  %v4347_v62 = vld [vmem:[#allocation2 + $0xa0] sm:$0xff] }
  0xa1   : > { %3043 = vmatprep.subr.bf16.mxu0 %v3889_v0  ;;  %3091 = vmatprep.subr.bf16.mxu1 %v3889_v0  ;;  %v1623_v59 = vld [vmem:[%s4102_s25 + $0x2b0] sm:$0xff]  ;;  %v2255_v61 = vld [vmem:[%s4102_s25 + $0x2b8] sm:$0xff] }
  0xa2   : > { %v1625_v6 = vld [vmem:[%s4102_s25 + $0x2f0] sm:$0xff]  ;;  %v2256_v7 = vld [vmem:[%s4102_s25 + $0x2d8] sm:$0xff] }
  0xa3   : > { %v2261_v30 = vld [vmem:[%s4102_s25 + $0x378] sm:$0xff]  ;;  %v4389_v31 = vld [vmem:[#allocation2 + $0xd0] sm:$0xff] }
  0xa4   : > { %3045 = vmatpush1.bf16.msra.mxu0 %v3044_v9  ;;  %3093 = vmatpush1.bf16.msra.mxu1 %v3092_v10  ;;  %v4266_v9 = vld [vmem:[#allocation2 + $0x58] sm:$0xff]  ;;  %v3119_v10 = vpack.c.bf16 %v1611_v5, %v1610_v4  ;;  %v3185_v4 = vpack.c.bf16 %v2255_v61, %v2254_v60  ;;  %v1624_v5 = vld [vmem:[%s4102_s25 + $0x2d0] sm:$0xff]  ;;  %v4420_v60 = vld [vmem:[#allocation2 + $0x108] sm:$0xff] }
  0xa5   : > { %3046 = vmatprep.subr.bf16.mxu0 %v3889_v0  ;;  %3094 = vmatprep.subr.bf16.mxu1 %v3889_v0  ;;  %v3140_v13 = vpack.c.bf16 %v1625_v6, %v1624_v5  ;;  %v1630_v37 = vld [vmem:[%s4102_s25 + $0x390] sm:$0xff]  ;;  %v4430_v5 = vld [vmem:[#allocation2 + $0x118] sm:$0xff] }
  0xa6   : > { %v4435_v6 = vld [vmem:[#allocation2 + $0x110] sm:$0xff] }
  0xa8   : > { %3048 = vmatpush1.bf16.msra.mxu0 %v3047_v15  ;;  %3096 = vmatpush1.bf16.msra.mxu1 %v3095_v16  ;;  %v2245_v15 = vld [vmem:[%s4102_s25 + $0x178] sm:$0xff]  ;;  %v4277_v16 = vld [vmem:[#allocation2 + $0x50] sm:$0xff] }
  0xa9   : > { %3049 = vmatprep.subr.bf16.mxu0 %v3889_v0  ;;  %3097 = vmatprep.subr.bf16.mxu1 %v3889_v0  ;;  %v3170_v19 = vpack.c.bf16 %v2245_v15, %v2244_v14  ;;  %v1626_v15 = vld [vmem:[%s4102_s25 + $0x310] sm:$0xff] }
  0xac   : > { %3051 = vmatpush1.bf16.msra.mxu0 %v3050_v21  ;;  %3099 = vmatpush1.bf16.msra.mxu1 %v3098_v22  ;;  %v1615_v21 = vld [vmem:[%s4102_s25 + $0x1b0] sm:$0xff]  ;;  %v2246_v22 = vld [vmem:[%s4102_s25 + $0x198] sm:$0xff] }
  0xad   : > { %3052 = vmatprep.subr.bf16.mxu0 %v3889_v0  ;;  %3100 = vmatprep.subr.bf16.mxu1 %v3889_v0  ;;  %v3125_v26 = vpack.c.bf16 %v1615_v21, %v1614_v20  ;;  %v2259_v20 = vld [vmem:[%s4102_s25 + $0x338] sm:$0xff]  ;;  %v4375_v21 = vld [vmem:[#allocation2 + $0xc0] sm:$0xff] }
  0xb0   : > { %3054 = vmatpush1.bf16.msra.mxu0 %v3053_v27  ;;  %3102 = vmatpush1.bf16.msra.mxu1 %v3101_v28  ;;  %v3173_v27 = vpack.c.bf16 %v2247_v23, %v2246_v22  ;;  %v1616_v28 = vld [vmem:[%s4102_s25 + $0x1d0] sm:$0xff]  ;;  %v4378_v22 = vld [vmem:[#allocation2 + $0xd8] sm:$0xff] }
  0xb1   : > { %3055 = vmatprep.subr.bf16.mxu0 %v3889_v0  ;;  %3103 = vmatprep.subr.bf16.mxu1 %v3889_v0 }
  0xb4   : > { %3057 = vmatpush1.bf16.msra.mxu0 %v3056_v33  ;;  %3105 = vmatpush1.bf16.msra.mxu1 %v3104_v34  ;;  %v4308_v33 = vld [vmem:[#allocation2 + $0x88] sm:$0xff]  ;;  %v3128_v34 = vpack.c.bf16 %v1617_v29, %v1616_v28  ;;  %v1629_v28 = vld [vmem:[%s4102_s25 + $0x370] sm:$0xff]  ;;  %v2260_v29 = vld [vmem:[%s4102_s25 + $0x358] sm:$0xff] }
  0xb5   : > { %3106 = vmatprep.subr.bf16.mxu0 %v3889_v0  ;;  %3154 = vmatprep.subr.bf16.mxu1 %v3889_v0  ;;  %v3194_v36 = vpack.c.bf16 %v2261_v30, %v2260_v29  ;;  %v290_v29 = vld [vmem:[#allocation2 + $0x180] sm:$0xff]  ;;  %v293_v30 = vld [vmem:[#allocation2 + $0x198] sm:$0xff] }
  0xb7   : > { %442 = vmatmul.mubr.f32.vlgmr.msra.gmra.mrb[0].mxu0 %v4208_v39  ;;  %1074 = vmatmul.mubr.f32.vlgmr.msra.gmra.mrb[0].mxu1 %v4208_v39 }
  0xb8   : > { %3108 = vmatpush1.bf16.msra.mxu0 %v3107_v40  ;;  %3156 = vmatpush1.bf16.msra.mxu1 %v3155_v41  ;;  %v2251_v40 = vld [vmem:[%s4102_s25 + $0x238] sm:$0xff]  ;;  %v4319_v41 = vld [vmem:[#allocation2 + $0x80] sm:$0xff] }
  0xb9   : > { %446 = vmatprep.mubr.f32.mxu0 %v4212_v42  ;;  %1078 = vmatprep.mubr.f32.mxu1 %v4212_v42  ;;  %v3179_v45 = vpack.c.bf16 %v2251_v40, %v2250_v38  ;;  %v1631_v38 = vld [vmem:[%s4102_s25 + $0x3b0] sm:$0xff]  ;;  %v2262_v40 = vld [vmem:[%s4102_s25 + $0x398] sm:$0xff] }
  0xba   : > { %3109 = vmatprep.subr.bf16.mxu0 %v3889_v0  ;;  %3157 = vmatprep.subr.bf16.mxu1 %v3889_v0 }
  0xbb   : > { %447 = vmatmul.mubr.f32.gmra.mrb[2].mxu0 %v4220_v47  ;;  %1079 = vmatmul.mubr.f32.gmra.mrb[2].mxu1 %v4220_v47 }
  0xbc   : > { %451 = vmatprep.mubr.f32.mxu0 %v4223_v48  ;;  %1083 = vmatprep.mubr.f32.mxu1 %v4223_v48 }
  0xbd   : > { %3111 = vmatpush1.bf16.msra.mxu0 %v3110_v49  ;;  %3159 = vmatpush1.bf16.msra.mxu1 %v3158_v50  ;;  %v1621_v49 = vld [vmem:[%s4102_s25 + $0x270] sm:$0xff]  ;;  %v2252_v50 = vld [vmem:[%s4102_s25 + $0x258] sm:$0xff] }
  0xbe   : > { %3112 = vmatprep.subr.bf16.mxu0 %v3889_v0  ;;  %3160 = vmatprep.subr.bf16.mxu1 %v3889_v0  ;;  %v3134_v54 = vpack.c.bf16 %v1621_v49, %v1620_v46  ;;  %v4406_v46 = vld [vmem:[#allocation2 + $0xf8] sm:$0xff]  ;;  %v3149_v49 = vpack.c.bf16 %v1631_v38, %v1630_v37  ;;  %v294_v37 = vld [vmem:[#allocation2 + $0x1a0] sm:$0xff] }
  0xbf   : > { %452 = vmatmul.mubr.f32.gmra.mrb[4].mxu0 %v4235_v55  ;;  %1084 = vmatmul.mubr.f32.gmra.mrb[4].mxu1 %v4235_v55  ;;  %v297_v38 = vld [vmem:[#allocation2 + $0x1b8] sm:$0xff] }
  0xc0   : > { %456 = vmatprep.mubr.f32.mxu0 %v4238_v56  ;;  %1088 = vmatprep.mubr.f32.mxu1 %v4238_v56 }
  0xc1   : > { %3114 = vmatpush1.bf16.msra.mxu0 %v3113_v57  ;;  %3162 = vmatpush1.bf16.msra.mxu1 %v3161_v58  ;;  %v3182_v57 = vpack.c.bf16 %v2253_v51, %v2252_v50  ;;  %v1622_v58 = vld [vmem:[%s4102_s25 + $0x290] sm:$0xff] }
  0xc2   : > { %3115 = vmatprep.subr.bf16.mxu0 %v3889_v0  ;;  %3163 = vmatprep.subr.bf16.mxu1 %v3889_v0  ;;  %v1632_v51 = vld [vmem:[%s4102_s25 + $0x3d0] sm:$0xff] }
  0xc3   : > { %457 = vmatmul.mubr.f32.gmra.mrb[6].mxu0 %v4249_v63  ;;  %1089 = vmatmul.mubr.f32.gmra.mrb[6].mxu1 %v4249_v63 }
  0xc4   : > { %461 = vmatprep.mubr.f32.mxu0 %v4252_v1  ;;  %1093 = vmatprep.mubr.f32.mxu1 %v4252_v1 }
  0xc5   : > { %3117 = vmatpush1.bf16.msra.mxu0 %v3116_v2  ;;  %3165 = vmatpush1.bf16.msra.mxu1 %v3164_v3  ;;  %v4350_v2 = vld [vmem:[#allocation2 + $0xb8] sm:$0xff]  ;;  %v3137_v3 = vpack.c.bf16 %v1623_v59, %v1622_v58  ;;  %v4417_v59 = vld [vmem:[#allocation2 + $0xf0] sm:$0xff] }
  0xc6   : > { %3118 = vmatprep.subr.bf16.mxu0 %v3889_v0  ;;  %3166 = vmatprep.subr.bf16.mxu1 %v3889_v0  ;;  %v2265_v58 = vld [vmem:[%s4102_s25 + $0x3f8] sm:$0xff] }
  0xc7   : > { %462 = vmatmul.mubr.f32.gmra.mrb[8].mxu0 %v4263_v8  ;;  %1094 = vmatmul.mubr.f32.gmra.mrb[8].mxu1 %v4263_v8 }
  0xc8   : > { %466 = vmatprep.mubr.f32.mxu0 %v4266_v9  ;;  %1098 = vmatprep.mubr.f32.mxu1 %v4266_v9 }
  0xc9   : > { %3120 = vmatpush1.bf16.msra.mxu0 %v3119_v10  ;;  %3168 = vmatpush1.bf16.msra.mxu1 %v3167_v11  ;;  %v2257_v10 = vld [vmem:[%s4102_s25 + $0x2f8] sm:$0xff]  ;;  %v4361_v11 = vld [vmem:[#allocation2 + $0xb0] sm:$0xff] }
  0xca   : > { %3121 = vmatprep.subr.bf16.mxu0 %v3889_v0  ;;  %3169 = vmatprep.subr.bf16.mxu1 %v3889_v0  ;;  %v3188_v14 = vpack.c.bf16 %v2257_v10, %v2256_v7  ;;  %v4443_v7 = vld [vmem:[#allocation2 + $0x120] sm:$0xff]  ;;  %v4446_v10 = vld [vmem:[#allocation2 + $0x138] sm:$0xff] }
  0xcb   : > { %467 = vmatmul.mubr.f32.gmra.mrb[10].mxu0 %v4277_v16  ;;  %1099 = vmatmul.mubr.f32.gmra.mrb[10].mxu1 %v4277_v16 }
  0xcc   : > { %471 = vmatprep.mubr.f32.mxu0 %v4280_v17  ;;  %1103 = vmatprep.mubr.f32.mxu1 %v4280_v17 }
  0xcd   : > { %3123 = vmatpush1.bf16.msra.mxu0 %v3122_v18  ;;  %3171 = vmatpush1.bf16.msra.mxu1 %v3170_v19  ;;  %v1627_v18 = vld [vmem:[%s4102_s25 + $0x330] sm:$0xff]  ;;  %v2258_v19 = vld [vmem:[%s4102_s25 + $0x318] sm:$0xff] }
  0xce   : > { %3124 = vmatprep.subr.bf16.mxu0 %v3889_v0  ;;  %3172 = vmatprep.subr.bf16.mxu1 %v3889_v0  ;;  %v3143_v23 = vpack.c.bf16 %v1627_v18, %v1626_v15  ;;  %v282_v15 = vld [vmem:[#allocation2 + $0x140] sm:$0xff]  ;;  %v285_v18 = vld [vmem:[#allocation2 + $0x158] sm:$0xff] }
  0xcf   : > { %472 = vmatmul.mubr.f32.gmra.mrb[12].mxu0 %v4291_v24  ;;  %1104 = vmatmul.mubr.f32.gmra.mrb[12].mxu1 %v4291_v24 }
  0xd0   : > { %476 = vmatprep.mubr.f32.mxu0 %v4294_v25  ;;  %1108 = vmatprep.mubr.f32.mxu1 %v4294_v25 }
  0xd1   : > { %3126 = vmatpush1.bf16.msra.mxu0 %v3125_v26  ;;  %3174 = vmatpush1.bf16.msra.mxu1 %v3173_v27  ;;  %v3191_v26 = vpack.c.bf16 %v2259_v20, %v2258_v19  ;;  %v1628_v27 = vld [vmem:[%s4102_s25 + $0x350] sm:$0xff]  ;;  %v287_v20 = vld [vmem:[#allocation2 + $0x168] sm:$0xff] }
  0xd2   : > { %3127 = vmatprep.subr.bf16.mxu0 %v3889_v0  ;;  %3175 = vmatprep.subr.bf16.mxu1 %v3889_v0  ;;  %v284_v19 = vld [vmem:[#allocation2 + $0x150] sm:$0xff] }
  0xd3   : > { %477 = vmatmul.mubr.f32.gmra.mrb[14].mxu0 %v4305_v32  ;;  %1109 = vmatmul.mubr.f32.gmra.mrb[14].mxu1 %v4305_v32 }
  0xd4   : > { %481 = vmatprep.mubr.f32.mxu0 %v4308_v33  ;;  %1113 = vmatprep.mubr.f32.mxu1 %v4308_v33 }
  0xd5   : > { %3129 = vmatpush1.bf16.msra.mxu0 %v3128_v34  ;;  %3177 = vmatpush1.bf16.msra.mxu1 %v3176_v35  ;;  %v4392_v34 = vld [vmem:[#allocation2 + $0xe8] sm:$0xff]  ;;  %v3146_v35 = vpack.c.bf16 %v1629_v28, %v1628_v27  ;;  %v288_v27 = vld [vmem:[#allocation2 + $0x170] sm:$0xff] }
  0xd6   : > { %3130 = vmatprep.subr.bf16.mxu0 %v3889_v0  ;;  %3178 = vmatprep.subr.bf16.mxu1 %v3889_v0  ;;  %v291_v28 = vld [vmem:[#allocation2 + $0x188] sm:$0xff] }
  0xd7   : > { %482 = vmatmul.mubr.f32.gmra.mrb[16].mxu0 %v4319_v41  ;;  %1114 = vmatmul.mubr.f32.gmra.mrb[16].mxu1 %v4319_v41 }
  0xd8   : > { %486 = vmatprep.mubr.f32.mxu0 %v4322_v43  ;;  %1118 = vmatprep.mubr.f32.mxu1 %v4322_v43 }
  0xd9   : > { %3132 = vmatpush1.bf16.msra.mxu0 %v3131_v44  ;;  %3180 = vmatpush1.bf16.msra.mxu1 %v3179_v45  ;;  %v2263_v44 = vld [vmem:[%s4102_s25 + $0x3b8] sm:$0xff]  ;;  %v4403_v45 = vld [vmem:[#allocation2 + $0xe0] sm:$0xff] }
  0xda   : > { %3133 = vmatprep.subr.bf16.mxu0 %v3889_v0  ;;  %3181 = vmatprep.subr.bf16.mxu1 %v3889_v0  ;;  %v3197_v50 = vpack.c.bf16 %v2263_v44, %v2262_v40  ;;  %v296_v40 = vld [vmem:[#allocation2 + $0x1b0] sm:$0xff]  ;;  %v299_v44 = vld [vmem:[#allocation2 + $0x1c8] sm:$0xff] }
  0xdb   : > { %487 = vmatmul.mubr.f32.gmra.mrb[18].mxu0 %v4333_v52  ;;  %1119 = vmatmul.mubr.f32.gmra.mrb[18].mxu1 %v4333_v52 }
  0xdc   : > { %491 = vmatprep.mubr.f32.mxu0 %v4336_v53  ;;  %1123 = vmatprep.mubr.f32.mxu1 %v4336_v53 }
  0xdd   : > { %3135 = vmatpush1.bf16.msra.mxu0 %v3134_v54  ;;  %3183 = vmatpush1.bf16.msra.mxu1 %v3182_v57  ;;  %v1633_v54 = vld [vmem:[%s4102_s25 + $0x3f0] sm:$0xff]  ;;  %v2264_v57 = vld [vmem:[%s4102_s25 + $0x3d8] sm:$0xff] }
  0xde   : > { %3136 = vmatprep.subr.bf16.mxu0 %v3889_v0  ;;  %3184 = vmatprep.subr.bf16.mxu1 %v3889_v0  ;;  %v3152_v61 = vpack.c.bf16 %v1633_v54, %v1632_v51  ;;  %v300_v51 = vld [vmem:[#allocation2 + $0x1d0] sm:$0xff]  ;;  %v303_v54 = vld [vmem:[#allocation2 + $0x1e8] sm:$0xff] }
  0xdf   : > { %492 = vmatmul.mubr.f32.gmra.mrb[20].mxu0 %v4347_v62  ;;  %1124 = vmatmul.mubr.f32.gmra.mrb[20].mxu1 %v4347_v62 }
  0xe0   : > { %496 = vmatprep.mubr.f32.mxu0 %v4350_v2  ;;  %1128 = vmatprep.mubr.f32.mxu1 %v4350_v2 }
  0xe1   : > { %3138 = vmatpush1.bf16.msra.mxu0 %v3137_v3  ;;  %3186 = vmatpush1.bf16.msra.mxu1 %v3185_v4  ;;  %v3200_v3 = vpack.c.bf16 %v2265_v58, %v2264_v57  ;;  %v4427_v4 = vld [vmem:[#allocation2 + $0x100] sm:$0xff]  ;;  %v305_v58 = vld [vmem:[#allocation2 + $0x1f8] sm:$0xff] }
  0xe2   : > { %3139 = vmatprep.subr.bf16.mxu0 %v3889_v0  ;;  %3187 = vmatprep.subr.bf16.mxu1 %v3889_v0  ;;  %v302_v57 = vld [vmem:[#allocation2 + $0x1e0] sm:$0xff] }
  0xe3   : > { %497 = vmatmul.mubr.f32.gmra.mrb[22].mxu0 %v4361_v11  ;;  %1129 = vmatmul.mubr.f32.gmra.mrb[22].mxu1 %v4361_v11 }
  0xe4   : > { %501 = vmatprep.mubr.f32.mxu0 %v4364_v12  ;;  %1133 = vmatprep.mubr.f32.mxu1 %v4364_v12 }
  0xe5   : > { %3141 = vmatpush1.bf16.msra.mxu0 %v3140_v13  ;;  %3189 = vmatpush1.bf16.msra.mxu1 %v3188_v14  ;;  %v4451_v13 = vld [vmem:[#allocation2 + $0x130] sm:$0xff]  ;;  %v4454_v14 = vld [vmem:[#allocation2 + $0x148] sm:$0xff] }
  0xe6   : > { %3142 = vmatprep.subr.bf16.mxu0 %v3889_v0  ;;  %3190 = vmatprep.subr.bf16.mxu1 %v3889_v0 }
  0xe7   : > { %502 = vmatmul.mubr.f32.gmra.mrb[24].mxu0 %v4375_v21  ;;  %1134 = vmatmul.mubr.f32.gmra.mrb[24].mxu1 %v4375_v21 }
  0xe8   : > { %506 = vmatprep.mubr.f32.mxu0 %v4378_v22  ;;  %1138 = vmatprep.mubr.f32.mxu1 %v4378_v22 }
  0xe9   : > { %3144 = vmatpush1.bf16.msra.mxu0 %v3143_v23  ;;  %3192 = vmatpush1.bf16.msra.mxu1 %v3191_v26  ;;  %v286_v23 = vld [vmem:[#allocation2 + $0x160] sm:$0xff]  ;;  %v289_v26 = vld [vmem:[#allocation2 + $0x178] sm:$0xff] }
  0xea   : > { %3145 = vmatprep.subr.bf16.mxu0 %v3889_v0  ;;  %3193 = vmatprep.subr.bf16.mxu1 %v3889_v0 }
  0xeb   : > { %507 = vmatmul.mubr.f32.gmra.mrb[26].mxu0 %v4389_v31  ;;  %1139 = vmatmul.mubr.f32.gmra.mrb[26].mxu1 %v4389_v31 }
  0xec   : > { %511 = vmatprep.mubr.f32.mxu0 %v4392_v34  ;;  %1143 = vmatprep.mubr.f32.mxu1 %v4392_v34 }
  0xed   : > { %3147 = vmatpush1.bf16.msra.mxu0 %v3146_v35  ;;  %3195 = vmatpush1.bf16.msra.mxu1 %v3194_v36  ;;  %v292_v35 = vld [vmem:[#allocation2 + $0x190] sm:$0xff]  ;;  %v295_v36 = vld [vmem:[#allocation2 + $0x1a8] sm:$0xff] }
  0xee   : > { %3148 = vmatprep.subr.bf16.mxu0 %v3889_v0  ;;  %3196 = vmatprep.subr.bf16.mxu1 %v3889_v0 }
  0xef   : > { %512 = vmatmul.mubr.f32.gmra.mrb[28].mxu0 %v4403_v45  ;;  %1144 = vmatmul.mubr.f32.gmra.mrb[28].mxu1 %v4403_v45 }
  0xf0   : > { %516 = vmatprep.mubr.f32.mxu0 %v4406_v46  ;;  %1148 = vmatprep.mubr.f32.mxu1 %v4406_v46 }
  0xf1   : > { %3150 = vmatpush1.bf16.msra.mxu0 %v3149_v49  ;;  %3198 = vmatpush1.bf16.msra.mxu1 %v3197_v50  ;;  %v298_v49 = vld [vmem:[#allocation2 + $0x1c0] sm:$0xff]  ;;  %v301_v50 = vld [vmem:[#allocation2 + $0x1d8] sm:$0xff] }
  0xf2   : > { %3151 = vmatprep.subr.bf16.mxu0 %v3889_v0  ;;  %3199 = vmatprep.subr.bf16.mxu1 %v3889_v0  ;;  %v4438_v0 = vld [vmem:[#allocation2 + $0x128] sm:$0xff] }
  0xf3   : > { %517 = vmatmul.mubr.f32.gmra.mrb[30].mxu0 %v4417_v59  ;;  %1149 = vmatmul.mubr.f32.gmra.mrb[30].mxu1 %v4417_v59 }
  0xf4   : > { %521 = vmatprep.mubr.f32.mxu0 %v4420_v60  ;;  %1153 = vmatprep.mubr.f32.mxu1 %v4420_v60 }
  0xf5   : > { %3153 = vmatpush1.bf16.msra.mxu0 %v3152_v61  ;;  %3201 = vmatpush1.bf16.msra.mxu1 %v3200_v3  ;;  %v304_v61 = vld [vmem:[#allocation2 + $0x1f0] sm:$0xff]  ;;  %v307_v3 = vld [vmem:[#allocation2 + $0x208] sm:$0xff] }
  0xf7   : > { %522 = vmatmul.mubr.f32.gmra.mrb[32].mxu0 %v4427_v4  ;;  %1154 = vmatmul.mubr.f32.gmra.mrb[32].mxu1 %v4427_v4 }
  0xf8   : > { %526 = vmatprep.mubr.f32.mxu0 %v4430_v5  ;;  %1158 = vmatprep.mubr.f32.mxu1 %v4430_v5 }
  0xfb   : > { %527 = vmatmul.mubr.f32.gmra.mrb[34].mxu0 %v4435_v6  ;;  %1159 = vmatmul.mubr.f32.gmra.mrb[34].mxu1 %v4435_v6 }
  0xfc   : > { %531 = vmatprep.mubr.f32.mxu0 %v4438_v0  ;;  %1163 = vmatprep.mubr.f32.mxu1 %v4438_v0 }
  0xff   : > { %532 = vmatmul.mubr.f32.gmra.mrb[36].mxu0 %v4443_v7  ;;  %1164 = vmatmul.mubr.f32.gmra.mrb[36].mxu1 %v4443_v7 }
 0x100   : > { %536 = vmatprep.mubr.f32.mxu0 %v4446_v10  ;;  %1168 = vmatprep.mubr.f32.mxu1 %v4446_v10 }
 0x103   : > { %537 = vmatmul.mubr.f32.gmra.mrb[38].mxu0 %v4451_v13  ;;  %1169 = vmatmul.mubr.f32.gmra.mrb[38].mxu1 %v4451_v13 }
 0x104   : > { %541 = vmatprep.mubr.f32.mxu0 %v4454_v14  ;;  %1173 = vmatprep.mubr.f32.mxu1 %v4454_v14 }
 0x107   : > { %542 = vmatmul.mubr.f32.gmra.mrb[40].mxu0 %v282_v15  ;;  %1174 = vmatmul.mubr.f32.gmra.mrb[40].mxu1 %v282_v15  ;;  %v306_v15 = vld [vmem:[#allocation2 + $0x200] sm:$0xff] }
 0x108   : > { %546 = vmatprep.mubr.f32.mxu0 %v285_v18  ;;  %1178 = vmatprep.mubr.f32.mxu1 %v285_v18  ;;  %v309_v18 = vld [vmem:[#allocation2 + $0x218] sm:$0xff] }
 0x10b   : > { %547 = vmatmul.mubr.f32.gmra.mrb[42].mxu0 %v284_v19  ;;  %1179 = vmatmul.mubr.f32.gmra.mrb[42].mxu1 %v284_v19  ;;  %v308_v19 = vld [vmem:[#allocation2 + $0x210] sm:$0xff] }
 0x10c   : > { %551 = vmatprep.mubr.f32.mxu0 %v287_v20  ;;  %1183 = vmatprep.mubr.f32.mxu1 %v287_v20  ;;  %v311_v20 = vld [vmem:[#allocation2 + $0x228] sm:$0xff] }
 0x10f   : > { %552 = vmatmul.mubr.f32.gmra.mrb[44].mxu0 %v286_v23  ;;  %1184 = vmatmul.mubr.f32.gmra.mrb[44].mxu1 %v286_v23  ;;  %v310_v23 = vld [vmem:[#allocation2 + $0x220] sm:$0xff] }
 0x110   : > { %556 = vmatprep.mubr.f32.mxu0 %v289_v26  ;;  %1188 = vmatprep.mubr.f32.mxu1 %v289_v26  ;;  %v313_v26 = vld [vmem:[#allocation2 + $0x238] sm:$0xff] }
 0x113   : > { %557 = vmatmul.mubr.f32.gmra.mrb[46].mxu0 %v288_v27  ;;  %1189 = vmatmul.mubr.f32.gmra.mrb[46].mxu1 %v288_v27  ;;  %v312_v27 = vld [vmem:[#allocation2 + $0x230] sm:$0xff] }
 0x114   : > { %561 = vmatprep.mubr.f32.mxu0 %v291_v28  ;;  %1193 = vmatprep.mubr.f32.mxu1 %v291_v28  ;;  %v315_v28 = vld [vmem:[#allocation2 + $0x248] sm:$0xff] }
 0x117   : > { %562 = vmatmul.mubr.f32.gmra.mrb[48].mxu0 %v290_v29  ;;  %1194 = vmatmul.mubr.f32.gmra.mrb[48].mxu1 %v290_v29  ;;  %v314_v29 = vld [vmem:[#allocation2 + $0x240] sm:$0xff] }
 0x118   : > { %566 = vmatprep.mubr.f32.mxu0 %v293_v30  ;;  %1198 = vmatprep.mubr.f32.mxu1 %v293_v30  ;;  %v317_v30 = vld [vmem:[#allocation2 + $0x258] sm:$0xff] }
 0x11b   : > { %567 = vmatmul.mubr.f32.gmra.mrb[50].mxu0 %v292_v35  ;;  %1199 = vmatmul.mubr.f32.gmra.mrb[50].mxu1 %v292_v35  ;;  %v316_v35 = vld [vmem:[#allocation2 + $0x250] sm:$0xff] }
 0x11c   : > { %571 = vmatprep.mubr.f32.mxu0 %v295_v36  ;;  %1203 = vmatprep.mubr.f32.mxu1 %v295_v36  ;;  %v319_v36 = vld [vmem:[#allocation2 + $0x268] sm:$0xff] }
 0x11f   : > { %572 = vmatmul.mubr.f32.gmra.mrb[52].mxu0 %v294_v37  ;;  %1204 = vmatmul.mubr.f32.gmra.mrb[52].mxu1 %v294_v37  ;;  %v318_v37 = vld [vmem:[#allocation2 + $0x260] sm:$0xff] }
 0x120   : > { %576 = vmatprep.mubr.f32.mxu0 %v297_v38  ;;  %1208 = vmatprep.mubr.f32.mxu1 %v297_v38  ;;  %v321_v38 = vld [vmem:[#allocation2 + $0x278] sm:$0xff] }
 0x123   : > { %577 = vmatmul.mubr.f32.gmra.mrb[54].mxu0 %v296_v40  ;;  %1209 = vmatmul.mubr.f32.gmra.mrb[54].mxu1 %v296_v40  ;;  %v320_v40 = vld [vmem:[#allocation2 + $0x270] sm:$0xff] }
 0x124   : > { %581 = vmatprep.mubr.f32.mxu0 %v299_v44  ;;  %1213 = vmatprep.mubr.f32.mxu1 %v299_v44  ;;  %v323_v44 = vld [vmem:[#allocation2 + $0x288] sm:$0xff] }
 0x127   : > { %582 = vmatmul.mubr.f32.gmra.mrb[56].mxu0 %v298_v49  ;;  %1214 = vmatmul.mubr.f32.gmra.mrb[56].mxu1 %v298_v49  ;;  %v322_v49 = vld [vmem:[#allocation2 + $0x280] sm:$0xff] }
 0x128   : > { %586 = vmatprep.mubr.f32.mxu0 %v301_v50  ;;  %1218 = vmatprep.mubr.f32.mxu1 %v301_v50  ;;  %v325_v50 = vld [vmem:[#allocation2 + $0x298] sm:$0xff] }
 0x12b   : > { %587 = vmatmul.mubr.f32.gmra.mrb[58].mxu0 %v300_v51  ;;  %1219 = vmatmul.mubr.f32.gmra.mrb[58].mxu1 %v300_v51  ;;  %v324_v51 = vld [vmem:[#allocation2 + $0x290] sm:$0xff] }
 0x12c   : > { %591 = vmatprep.mubr.f32.mxu0 %v303_v54  ;;  %1223 = vmatprep.mubr.f32.mxu1 %v303_v54  ;;  %v327_v54 = vld [vmem:[#allocation2 + $0x2a8] sm:$0xff] }
 0x12f   : > { %592 = vmatmul.mubr.f32.gmra.mrb[60].mxu0 %v302_v57  ;;  %1224 = vmatmul.mubr.f32.gmra.mrb[60].mxu1 %v302_v57  ;;  %v326_v57 = vld [vmem:[#allocation2 + $0x2a0] sm:$0xff] }
 0x130   : > { %596 = vmatprep.mubr.f32.mxu0 %v305_v58  ;;  %1228 = vmatprep.mubr.f32.mxu1 %v305_v58  ;;  %v329_v58 = vld [vmem:[#allocation2 + $0x2b8] sm:$0xff] }
 0x133   : > { %597 = vmatmul.mubr.f32.gmra.mrb[62].mxu0 %v304_v61  ;;  %1229 = vmatmul.mubr.f32.gmra.mrb[62].mxu1 %v304_v61  ;;  %v328_v61 = vld [vmem:[#allocation2 + $0x2b0] sm:$0xff] }
 0x134   : > { %601 = vmatprep.mubr.f32.mxu0 %v307_v3  ;;  %1233 = vmatprep.mubr.f32.mxu1 %v307_v3  ;;  %v331_v3 = vld [vmem:[#allocation2 + $0x2c8] sm:$0xff] }
 0x137   : > { %602 = vmatmul.mubr.f32.gmra.mrb[64].mxu0 %v306_v15  ;;  %1234 = vmatmul.mubr.f32.gmra.mrb[64].mxu1 %v306_v15  ;;  %v330_v15 = vld [vmem:[#allocation2 + $0x2c0] sm:$0xff] }
 0x138   : > { %606 = vmatprep.mubr.f32.mxu0 %v309_v18  ;;  %1238 = vmatprep.mubr.f32.mxu1 %v309_v18  ;;  %v333_v18 = vld [vmem:[#allocation2 + $0x2d8] sm:$0xff] }
 0x13b   : > { %607 = vmatmul.mubr.f32.gmra.mrb[66].mxu0 %v308_v19  ;;  %1239 = vmatmul.mubr.f32.gmra.mrb[66].mxu1 %v308_v19  ;;  %v332_v19 = vld [vmem:[#allocation2 + $0x2d0] sm:$0xff] }
 0x13c   : > { %611 = vmatprep.mubr.f32.mxu0 %v311_v20  ;;  %1243 = vmatprep.mubr.f32.mxu1 %v311_v20  ;;  %v335_v20 = vld [vmem:[#allocation2 + $0x2e8] sm:$0xff] }
 0x13f   : > { %612 = vmatmul.mubr.f32.gmra.mrb[68].mxu0 %v310_v23  ;;  %1244 = vmatmul.mubr.f32.gmra.mrb[68].mxu1 %v310_v23  ;;  %v334_v23 = vld [vmem:[#allocation2 + $0x2e0] sm:$0xff] }
 0x140   : > { %616 = vmatprep.mubr.f32.mxu0 %v313_v26  ;;  %1248 = vmatprep.mubr.f32.mxu1 %v313_v26  ;;  %v337_v26 = vld [vmem:[#allocation2 + $0x2f8] sm:$0xff] }
 0x143   : > { %617 = vmatmul.mubr.f32.gmra.mrb[70].mxu0 %v312_v27  ;;  %1249 = vmatmul.mubr.f32.gmra.mrb[70].mxu1 %v312_v27  ;;  %v336_v27 = vld [vmem:[#allocation2 + $0x2f0] sm:$0xff] }
 0x144   : > { %621 = vmatprep.mubr.f32.mxu0 %v315_v28  ;;  %1253 = vmatprep.mubr.f32.mxu1 %v315_v28  ;;  %v3658_v28 = vld [vmem:[#allocation2 + $0x8] sm:$0xff] }
 0x147   : > { %622 = vmatmul.mubr.f32.gmra.mrb[72].mxu0 %v314_v29  ;;  %1254 = vmatmul.mubr.f32.gmra.mrb[72].mxu1 %v314_v29 }
 0x148   : > { %626 = vmatprep.mubr.f32.mxu0 %v317_v30  ;;  %1258 = vmatprep.mubr.f32.mxu1 %v317_v30 }
 0x14b   : > { %627 = vmatmul.mubr.f32.gmra.mrb[74].mxu0 %v316_v35  ;;  %1259 = vmatmul.mubr.f32.gmra.mrb[74].mxu1 %v316_v35 }
 0x14c   : > { %631 = vmatprep.mubr.f32.mxu0 %v319_v36  ;;  %1263 = vmatprep.mubr.f32.mxu1 %v319_v36 }
 0x14f   : > { %632 = vmatmul.mubr.f32.gmra.mrb[76].mxu0 %v318_v37  ;;  %1264 = vmatmul.mubr.f32.gmra.mrb[76].mxu1 %v318_v37 }
 0x150   : > { %636 = vmatprep.mubr.f32.mxu0 %v321_v38  ;;  %1268 = vmatprep.mubr.f32.mxu1 %v321_v38 }
 0x153   : > { %637 = vmatmul.mubr.f32.gmra.mrb[78].mxu0 %v320_v40  ;;  %1269 = vmatmul.mubr.f32.gmra.mrb[78].mxu1 %v320_v40 }
 0x154   : > { %641 = vmatprep.mubr.f32.mxu0 %v323_v44  ;;  %1273 = vmatprep.mubr.f32.mxu1 %v323_v44 }
 0x157   : > { %642 = vmatmul.mubr.f32.gmra.mrb[80].mxu0 %v322_v49  ;;  %1274 = vmatmul.mubr.f32.gmra.mrb[80].mxu1 %v322_v49 }
 0x158   : > { %646 = vmatprep.mubr.f32.mxu0 %v325_v50  ;;  %1278 = vmatprep.mubr.f32.mxu1 %v325_v50 }
 0x15b   : > { %647 = vmatmul.mubr.f32.gmra.mrb[82].mxu0 %v324_v51  ;;  %1279 = vmatmul.mubr.f32.gmra.mrb[82].mxu1 %v324_v51 }
 0x15c   : > { %651 = vmatprep.mubr.f32.mxu0 %v327_v54  ;;  %1283 = vmatprep.mubr.f32.mxu1 %v327_v54 }
 0x15f   : > { %652 = vmatmul.mubr.f32.gmra.mrb[84].mxu0 %v326_v57  ;;  %1284 = vmatmul.mubr.f32.gmra.mrb[84].mxu1 %v326_v57 }
 0x160   : > { %656 = vmatprep.mubr.f32.mxu0 %v329_v58  ;;  %1288 = vmatprep.mubr.f32.mxu1 %v329_v58 }
 0x163   : > { %657 = vmatmul.mubr.f32.gmra.mrb[86].mxu0 %v328_v61  ;;  %1289 = vmatmul.mubr.f32.gmra.mrb[86].mxu1 %v328_v61 }
 0x164   : > { %661 = vmatprep.mubr.f32.mxu0 %v331_v3  ;;  %1293 = vmatprep.mubr.f32.mxu1 %v331_v3 }
 0x167   : > { %662 = vmatmul.mubr.f32.gmra.mrb[88].mxu0 %v330_v15  ;;  %1294 = vmatmul.mubr.f32.gmra.mrb[88].mxu1 %v330_v15 }
 0x168   : > { %666 = vmatprep.mubr.f32.mxu0 %v333_v18  ;;  %1298 = vmatprep.mubr.f32.mxu1 %v333_v18 }
 0x16b   : > { %667 = vmatmul.mubr.f32.gmra.mrb[90].mxu0 %v332_v19  ;;  %1299 = vmatmul.mubr.f32.gmra.mrb[90].mxu1 %v332_v19 }
 0x16c   : > { %671 = vmatprep.mubr.f32.mxu0 %v335_v20  ;;  %1303 = vmatprep.mubr.f32.mxu1 %v335_v20 }
 0x16f   : > { %672 = vmatmul.mubr.f32.gmra.mrb[92].mxu0 %v334_v23  ;;  %1304 = vmatmul.mubr.f32.gmra.mrb[92].mxu1 %v334_v23 }
 0x170   : > { %676 = vmatprep.mubr.f32.mxu0 %v337_v26  ;;  %1308 = vmatprep.mubr.f32.mxu1 %v337_v26 }
 0x173   : > { %677 = vmatmul.mubr.f32.gmra.mrb[94].mxu0 %v336_v27  ;;  %1309 = vmatmul.mubr.f32.gmra.mrb[94].mxu1 %v336_v27 }
 0x174   : > { %1705 = vmatprep.mubr.f32.mxu0 %v3658_v28  ;;  %2337 = vmatprep.mubr.f32.mxu1 %v3658_v28 }
 0x177   : > { %1706 = vmatmul.mubr.f32.vlgmr.msra.gmra.mrb[96].mxu0 %v4208_v39  ;;  %2338 = vmatmul.mubr.f32.vlgmr.msra.gmra.mrb[96].mxu1 %v4208_v39  ;;  %v4482_v39 = vld [vmem:[%s4479_s27] ss:$0 sm:$0xff] }
 0x178   : > { %1710 = vmatprep.mubr.f32.mxu0 %v4212_v42  ;;  %2342 = vmatprep.mubr.f32.mxu1 %v4212_v42  ;;  %v4486_v42 = vld [vmem:[%s4479_s27 + $0x1] ss:$0 sm:$0xff] }
 0x17b   : > { %1711 = vmatmul.mubr.f32.gmra.mrb[98].mxu0 %v4220_v47  ;;  %2343 = vmatmul.mubr.f32.gmra.mrb[98].mxu1 %v4220_v47 }
 0x17c   : > { %1715 = vmatprep.mubr.f32.mxu0 %v4223_v48  ;;  %2347 = vmatprep.mubr.f32.mxu1 %v4223_v48 }
 0x17f   : > { %1716 = vmatmul.mubr.f32.gmra.mrb[100].mxu0 %v4235_v55  ;;  %2348 = vmatmul.mubr.f32.gmra.mrb[100].mxu1 %v4235_v55 }
 0x180   : > { %1720 = vmatprep.mubr.f32.mxu0 %v4238_v56  ;;  %2352 = vmatprep.mubr.f32.mxu1 %v4238_v56 }
 0x183   : > { %1721 = vmatmul.mubr.f32.gmra.mrb[102].mxu0 %v4249_v63  ;;  %2353 = vmatmul.mubr.f32.gmra.mrb[102].mxu1 %v4249_v63 }
 0x184   : > { %1725 = vmatprep.mubr.f32.mxu0 %v4252_v1  ;;  %2357 = vmatprep.mubr.f32.mxu1 %v4252_v1 }
 0x187   : > { %1726 = vmatmul.mubr.f32.gmra.mrb[104].mxu0 %v4263_v8  ;;  %2358 = vmatmul.mubr.f32.gmra.mrb[104].mxu1 %v4263_v8 }
 0x188   : > { %1730 = vmatprep.mubr.f32.mxu0 %v4266_v9  ;;  %2362 = vmatprep.mubr.f32.mxu1 %v4266_v9 }
 0x18a   : > { %v443_v47 = vpop.f32.mrb[0].mxu0  ;;  %v1075_v55 = vpop.f32.mrb[0].mxu1 }
 0x18b   : > { %v444_v48 = vadd.f32 %v4482_v39, %v443_v47  ;;  %v445_v56 = vpop.f32.mrb[1].mxu0  ;;  %1731 = vmatmul.mubr.f32.gmra.mrb[106].mxu0 %v4277_v16  ;;  %v1076_v63 = vadd.f32 %v4486_v42, %v1075_v55  ;;  %v1077_v1 = vpop.f32.mrb[1].mxu1  ;;  %2363 = vmatmul.mubr.f32.gmra.mrb[106].mxu1 %v4277_v16 }
 0x18c   : > { %1735 = vmatprep.mubr.f32.mxu0 %v4280_v17  ;;  %2367 = vmatprep.mubr.f32.mxu1 %v4280_v17 }
 0x18d   : > { %v730_v8 = vmul.f32 0.70710677, %v444_v48  ;;  %v1362_v29 = vmul.f32 0.70710677, %v1076_v63  ;;  %v682_v20 = vmul.f32 0.5, %v444_v48  ;;  %v1314_v28 = vmul.f32 0.5, %v1076_v63 }
 0x18e   : > { %v448_v30 = vpop.f32.mrb[2].mxu0  ;;  %v1080_v35 = vpop.f32.mrb[2].mxu1 }
 0x18f   : > { %3274 = verf.f32 %v730_v8  ;;  %v4496_v9 = vadd.f32 %v4482_v39, %v448_v30  ;;  %v450_v36 = vpop.f32.mrb[3].mxu0  ;;  %1736 = vmatmul.mubr.f32.gmra.mrb[108].mxu0 %v4291_v24  ;;  %v4500_v37 = vadd.f32 %v4486_v42, %v1080_v35  ;;  %v1082_v16 = vpop.f32.mrb[3].mxu1  ;;  %2368 = vmatmul.mubr.f32.gmra.mrb[108].mxu1 %v4291_v24 }
 0x190   : > { %3276 = verf.f32 %v1362_v29  ;;  %1740 = vmatprep.mubr.f32.mxu0 %v4294_v25  ;;  %2372 = vmatprep.mubr.f32.mxu1 %v4294_v25 }
 0x191   : > { %v731_v17 = vmul.f32 0.70710677, %v4496_v9  ;;  %v1363_v38 = vmul.f32 0.70710677, %v4500_v37  ;;  %v683_v35 = vmul.f32 0.5, %v4496_v9 }
 0x192   : > { %v453_v40 = vpop.f32.mrb[4].mxu0  ;;  %v1085_v49 = vpop.f32.mrb[4].mxu1 }
 0x193   : > { %3278 = verf.f32 %v731_v17  ;;  %v4508_v44 = vadd.f32 %v4482_v39, %v453_v40  ;;  %v455_v50 = vpop.f32.mrb[5].mxu0  ;;  %1741 = vmatmul.mubr.f32.gmra.mrb[110].mxu0 %v4305_v32  ;;  %v4512_v24 = vadd.f32 %v4486_v42, %v1085_v49  ;;  %v1087_v51 = vpop.f32.mrb[5].mxu1  ;;  %2373 = vmatmul.mubr.f32.gmra.mrb[110].mxu1 %v4305_v32  ;;  %v1315_v17 = vmul.f32 0.5, %v4500_v37 }
 0x194   : > { %3280 = verf.f32 %v1363_v38  ;;  %1745 = vmatprep.mubr.f32.mxu0 %v4308_v33  ;;  %2377 = vmatprep.mubr.f32.mxu1 %v4308_v33 }
 0x195   : > { %v732_v25 = vmul.f32 0.70710677, %v4508_v44  ;;  %v1364_v54 = vmul.f32 0.70710677, %v4512_v24 }
 0x196   : > { %v458_v57 = vpop.f32.mrb[6].mxu0  ;;  %v1090_v61 = vpop.f32.mrb[6].mxu1 }
 0x197   : > { %3282 = verf.f32 %v732_v25  ;;  %v4521_v58 = vadd.f32 %v4482_v39, %v458_v57  ;;  %v460_v3 = vpop.f32.mrb[7].mxu0  ;;  %1746 = vmatmul.mubr.f32.gmra.mrb[112].mxu0 %v4319_v41  ;;  %v4525_v32 = vadd.f32 %v4486_v42, %v1090_v61  ;;  %v1092_v15 = vpop.f32.mrb[7].mxu1  ;;  %2378 = vmatmul.mubr.f32.gmra.mrb[112].mxu1 %v4319_v41  ;;  %v684_v61 = vmul.f32 0.5, %v4508_v44 }
 0x198   : > { %3284 = verf.f32 %v1364_v54  ;;  %1750 = vmatprep.mubr.f32.mxu0 %v4322_v43  ;;  %2382 = vmatprep.mubr.f32.mxu1 %v4322_v43 }
 0x199   : > { %v3275_v33 = vpop.eup %3274  ;;  %v733_v18 = vmul.f32 0.70710677, %v4521_v58  ;;  %v1365_v26 = vmul.f32 0.70710677, %v4525_v32 }
 0x19a   : > { %v3277_v19 = vpop.eup %3276  ;;  %v826_v23 = vadd.f32 1.0, %v3275_v33  ;;  %v463_v27 = vpop.f32.mrb[8].mxu0 }
 0x19b   : > { %v1458_v47 = vadd.f32 1.0, %v3277_v19  ;;  %3286 = verf.f32 %v733_v18  ;;  %v4533_v55 = vadd.f32 %v4482_v39, %v463_v27  ;;  %v1095_v41 = vpop.f32.mrb[8].mxu1  ;;  %v465_v56 = vpop.f32.mrb[9].mxu0  ;;  %1751 = vmatmul.mubr.f32.gmra.mrb[114].mxu0 %v4333_v52  ;;  %2383 = vmatmul.mubr.f32.gmra.mrb[114].mxu1 %v4333_v52  ;;  %v1316_v18 = vmul.f32 0.5, %v4512_v24 }
 0x19c   : > { %v874_v1 = vmul.f32 %v826_v23, %v682_v20  ;;  %3288 = verf.f32 %v1365_v26  ;;  %v4537_v43 = vadd.f32 %v4486_v42, %v1095_v41  ;;  %v1097_v48 = vpop.f32.mrb[9].mxu1  ;;  %1755 = vmatprep.mubr.f32.mxu0 %v4336_v53  ;;  %2387 = vmatprep.mubr.f32.mxu1 %v4336_v53  ;;  %v685_v41 = vmul.f32 0.5, %v4521_v58 }
 0x19d   : > { %v3279_v63 = vpop.eup %3278  ;;  %v1506_v8 = vmul.f32 %v1458_v47, %v1314_v28  ;;  %v734_v29 = vmul.f32 0.70710677, %v4533_v55 }
 0x19e   : > { %v3281_v30 = vpop.eup %3280  ;;  %922 = vst [vmem:[%s4545_s17] sm:$0xff] %v874_v1  ;;  %v827_v36 = vadd.f32 1.0, %v3279_v63  ;;  %v1366_v52 = vmul.f32 0.70710677, %v4537_v43  ;;  %v468_v16 = vpop.f32.mrb[10].mxu0  ;;  %v1317_v63 = vmul.f32 0.5, %v4525_v32 }
 0x19f   : > { %1554 = vst [vmem:[%s4545_s17 + $0x8] sm:$0xff] %v1506_v8  ;;  %v1459_v38 = vadd.f32 1.0, %v3281_v30  ;;  %3290 = verf.f32 %v734_v29  ;;  %v4553_v53 = vadd.f32 %v4482_v39, %v468_v16  ;;  %v1100_v40 = vpop.f32.mrb[10].mxu1  ;;  %v470_v49 = vpop.f32.mrb[11].mxu0  ;;  %1756 = vmatmul.mubr.f32.gmra.mrb[116].mxu0 %v4347_v62  ;;  %2388 = vmatmul.mubr.f32.gmra.mrb[116].mxu1 %v4347_v62 }
 0x1a0   : > { %v875_v50 = vmul.f32 %v827_v36, %v683_v35  ;;  %3292 = verf.f32 %v1366_v52  ;;  %v4557_v9 = vadd.f32 %v4486_v42, %v1100_v40  ;;  %v1102_v51 = vpop.f32.mrb[11].mxu1  ;;  %1760 = vmatprep.mubr.f32.mxu0 %v4350_v2  ;;  %2392 = vmatprep.mubr.f32.mxu1 %v4350_v2 }
 0x1a1   : > { %v3283_v37 = vpop.eup %3282  ;;  %v1507_v25 = vmul.f32 %v1459_v38, %v1315_v17  ;;  %v735_v54 = vmul.f32 0.70710677, %v4553_v53  ;;  %v686_v17 = vmul.f32 0.5, %v4533_v55 }
 0x1a2   : > { %v3285_v57 = vpop.eup %3284  ;;  %923 = vst [vmem:[%s4545_s17 + $0x20] sm:$0xff] %v875_v50  ;;  %v828_v3 = vadd.f32 1.0, %v3283_v37  ;;  %v1367_v15 = vmul.f32 0.70710677, %v4557_v9  ;;  %v473_v33 = vpop.f32.mrb[12].mxu0  ;;  %v1318_v50 = vmul.f32 0.5, %v4537_v43 }
 0x1a3   : > { %1555 = vst [vmem:[%s4545_s17 + $0x28] sm:$0xff] %v1507_v25  ;;  %v1460_v62 = vadd.f32 1.0, %v3285_v57  ;;  %3294 = verf.f32 %v735_v54  ;;  %v4569_v19 = vadd.f32 %v4482_v39, %v473_v33  ;;  %v1105_v20 = vpop.f32.mrb[12].mxu1  ;;  %v475_v23 = vpop.f32.mrb[13].mxu0  ;;  %1761 = vmatmul.mubr.f32.gmra.mrb[118].mxu0 %v4361_v11  ;;  %2393 = vmatmul.mubr.f32.gmra.mrb[118].mxu1 %v4361_v11 }
 0x1a4   : > { %v876_v2 = vmul.f32 %v828_v3, %v684_v61  ;;  %3296 = verf.f32 %v1367_v15  ;;  %v4573_v44 = vadd.f32 %v4486_v42, %v1105_v20  ;;  %v1107_v26 = vpop.f32.mrb[13].mxu1  ;;  %1765 = vmatprep.mubr.f32.mxu0 %v4364_v12  ;;  %2397 = vmatprep.mubr.f32.mxu1 %v4364_v12  ;;  %v687_v15 = vmul.f32 0.5, %v4553_v53 }
 0x1a5   : > { %v3287_v24 = vpop.eup %3286  ;;  %v1508_v27 = vmul.f32 %v1460_v62, %v1316_v18  ;;  %v736_v28 = vmul.f32 0.70710677, %v4569_v19  ;;  %v1319_v20 = vmul.f32 0.5, %v4557_v9 }
 0x1a6   : > { %v3289_v47 = vpop.eup %3288  ;;  %924 = vst [vmem:[%s4545_s17 + $0x40] sm:$0xff] %v876_v2  ;;  %v829_v56 = vadd.f32 1.0, %v3287_v24  ;;  %v1368_v1 = vmul.f32 0.70710677, %v4573_v44  ;;  %v478_v48 = vpop.f32.mrb[14].mxu0 }
 0x1a7   : > { %1556 = vst [vmem:[%s4545_s17 + $0x48] sm:$0xff] %v1508_v27  ;;  %v1461_v11 = vadd.f32 1.0, %v3289_v47  ;;  %3298 = verf.f32 %v736_v28  ;;  %v4585_v8 = vadd.f32 %v4482_v39, %v478_v48  ;;  %v1110_v29 = vpop.f32.mrb[14].mxu1  ;;  %v480_v30 = vpop.f32.mrb[15].mxu0  ;;  %1766 = vmatmul.mubr.f32.gmra.mrb[120].mxu0 %v4375_v21  ;;  %2398 = vmatmul.mubr.f32.gmra.mrb[120].mxu1 %v4375_v21 }
 0x1a8   : > { %v877_v12 = vmul.f32 %v829_v56, %v685_v41  ;;  %3300 = verf.f32 %v1368_v1  ;;  %v4589_v58 = vadd.f32 %v4486_v42, %v1110_v29  ;;  %v1112_v35 = vpop.f32.mrb[15].mxu1  ;;  %1770 = vmatprep.mubr.f32.mxu0 %v4378_v22  ;;  %2402 = vmatprep.mubr.f32.mxu1 %v4378_v22  ;;  %v688_v41 = vmul.f32 0.5, %v4569_v19 }
 0x1a9   : > { %v3291_v32 = vpop.eup %3290  ;;  %v1509_v36 = vmul.f32 %v1461_v11, %v1317_v63  ;;  %v737_v52 = vmul.f32 0.70710677, %v4585_v8  ;;  %v1320_v63 = vmul.f32 0.5, %v4573_v44 }
 0x1aa   : > { %v3293_v16 = vpop.eup %3292  ;;  %925 = vst [vmem:[%s4545_s17 + $0x60] sm:$0xff] %v877_v12  ;;  %v830_v38 = vadd.f32 1.0, %v3291_v32  ;;  %v1369_v40 = vmul.f32 0.70710677, %v4589_v58  ;;  %v483_v49 = vpop.f32.mrb[16].mxu0 }
 0x1ab   : > { %1557 = vst [vmem:[%s4545_s17 + $0x68] sm:$0xff] %v1509_v36  ;;  %v1462_v21 = vadd.f32 1.0, %v3293_v16  ;;  %3302 = verf.f32 %v737_v52  ;;  %v4601_v51 = vadd.f32 %v4482_v39, %v483_v49  ;;  %v1115_v37 = vpop.f32.mrb[16].mxu1  ;;  %v485_v25 = vpop.f32.mrb[17].mxu0  ;;  %1771 = vmatmul.mubr.f32.gmra.mrb[122].mxu0 %v4389_v31  ;;  %2403 = vmatmul.mubr.f32.gmra.mrb[122].mxu1 %v4389_v31  ;;  %v689_v52 = vmul.f32 0.5, %v4585_v8 }
 0x1ac   : > { %v878_v22 = vmul.f32 %v830_v38, %v686_v17  ;;  %3304 = verf.f32 %v1369_v40  ;;  %v4605_v55 = vadd.f32 %v4486_v42, %v1115_v37  ;;  %v1117_v54 = vpop.f32.mrb[17].mxu1  ;;  %1775 = vmatprep.mubr.f32.mxu0 %v4392_v34  ;;  %2407 = vmatprep.mubr.f32.mxu1 %v4392_v34  ;;  %v1321_v40 = vmul.f32 0.5, %v4589_v58 }
 0x1ad   : > { %v3295_v43 = vpop.eup %3294  ;;  %v1510_v57 = vmul.f32 %v1462_v21, %v1318_v50  ;;  %v738_v61 = vmul.f32 0.70710677, %v4601_v51 }
 0x1ae   : > { %v3297_v3 = vpop.eup %3296  ;;  %926 = vst [vmem:[%s4545_s17 + $0x80] sm:$0xff] %v878_v22  ;;  %v831_v33 = vadd.f32 1.0, %v3295_v43  ;;  %v1370_v18 = vmul.f32 0.70710677, %v4605_v55  ;;  %v488_v62 = vpop.f32.mrb[18].mxu0  ;;  %v690_v43 = vmul.f32 0.5, %v4601_v51 }
 0x1af   : > { %1558 = vst [vmem:[%s4545_s17 + $0x88] sm:$0xff] %v1510_v57  ;;  %v1463_v31 = vadd.f32 1.0, %v3297_v3  ;;  %3306 = verf.f32 %v738_v61  ;;  %v4617_v23 = vadd.f32 %v4482_v39, %v488_v62  ;;  %v1120_v2 = vpop.f32.mrb[18].mxu1  ;;  %v490_v26 = vpop.f32.mrb[19].mxu0  ;;  %1776 = vmatmul.mubr.f32.gmra.mrb[124].mxu0 %v4403_v45  ;;  %2408 = vmatmul.mubr.f32.gmra.mrb[124].mxu1 %v4403_v45 }
 0x1b0   : > { %v879_v34 = vmul.f32 %v831_v33, %v687_v15  ;;  %3308 = verf.f32 %v1370_v18  ;;  %v4621_v53 = vadd.f32 %v4486_v42, %v1120_v2  ;;  %v1122_v24 = vpop.f32.mrb[19].mxu1  ;;  %1780 = vmatprep.mubr.f32.mxu0 %v4406_v46  ;;  %2412 = vmatprep.mubr.f32.mxu1 %v4406_v46  ;;  %v1322_v15 = vmul.f32 0.5, %v4605_v55 }
 0x1b1   : > { %v3299_v9 = vpop.eup %3298  ;;  %v1511_v27 = vmul.f32 %v1463_v31, %v1319_v20  ;;  %v739_v28 = vmul.f32 0.70710677, %v4617_v23 }
 0x1b2   : > { %v3301_v47 = vpop.eup %3300  ;;  %927 = vst [vmem:[%s4545_s17 + $0xa0] sm:$0xff] %v879_v34  ;;  %v832_v56 = vadd.f32 1.0, %v3299_v9  ;;  %v1371_v1 = vmul.f32 0.70710677, %v4621_v53  ;;  %v493_v48 = vpop.f32.mrb[20].mxu0  ;;  %v691_v34 = vmul.f32 0.5, %v4617_v23 }
 0x1b3   : > { %1559 = vst [vmem:[%s4545_s17 + $0xa8] sm:$0xff] %v1511_v27  ;;  %v1464_v45 = vadd.f32 1.0, %v3301_v47  ;;  %3310 = verf.f32 %v739_v28  ;;  %v4633_v11 = vadd.f32 %v4482_v39, %v493_v48  ;;  %v1125_v29 = vpop.f32.mrb[20].mxu1  ;;  %v495_v30 = vpop.f32.mrb[21].mxu0  ;;  %1781 = vmatmul.mubr.f32.gmra.mrb[126].mxu0 %v4417_v59  ;;  %2413 = vmatmul.mubr.f32.gmra.mrb[126].mxu1 %v4417_v59  ;;  %v1323_v28 = vmul.f32 0.5, %v4621_v53 }
 0x1b4   : > { %v880_v46 = vmul.f32 %v832_v56, %v688_v41  ;;  %3312 = verf.f32 %v1371_v1  ;;  %v4637_v19 = vadd.f32 %v4486_v42, %v1125_v29  ;;  %v1127_v12 = vpop.f32.mrb[21].mxu1  ;;  %1785 = vmatprep.mubr.f32.mxu0 %v4420_v60  ;;  %2417 = vmatprep.mubr.f32.mxu1 %v4420_v60 }
 0x1b5   : > { %v3303_v44 = vpop.eup %3302  ;;  %v1512_v35 = vmul.f32 %v1464_v45, %v1320_v63  ;;  %v740_v32 = vmul.f32 0.70710677, %v4633_v11  ;;  %v692_v29 = vmul.f32 0.5, %v4633_v11 }
 0x1b6   : > { %v3305_v36 = vpop.eup %3304  ;;  %928 = vst [vmem:[%s4545_s17 + $0xc0] sm:$0xff] %v880_v46  ;;  %v833_v16 = vadd.f32 1.0, %v3303_v44  ;;  %v1372_v17 = vmul.f32 0.70710677, %v4637_v19  ;;  %v498_v38 = vpop.f32.mrb[22].mxu0  ;;  %v1324_v44 = vmul.f32 0.5, %v4637_v19 }
 0x1b7   : > { %1560 = vst [vmem:[%s4545_s17 + $0xc8] sm:$0xff] %v1512_v35  ;;  %v1465_v59 = vadd.f32 1.0, %v3305_v36  ;;  %3314 = verf.f32 %v740_v32  ;;  %v4649_v49 = vadd.f32 %v4482_v39, %v498_v38  ;;  %v1130_v50 = vpop.f32.mrb[22].mxu1  ;;  %v500_v21 = vpop.f32.mrb[23].mxu0  ;;  %1786 = vmatmul.mubr.f32.gmra.mrb[128].mxu0 %v4427_v4  ;;  %2418 = vmatmul.mubr.f32.gmra.mrb[128].mxu1 %v4427_v4  ;;  %v3659_v38 = vld [vmem:[#allocation2 + $0x148] sm:$0xff] }
 0x1b8   : > { %v881_v60 = vmul.f32 %v833_v16, %v689_v52  ;;  %3316 = verf.f32 %v1372_v17  ;;  %v4653_v8 = vadd.f32 %v4486_v42, %v1130_v50  ;;  %v1132_v37 = vpop.f32.mrb[23].mxu1  ;;  %1790 = vmatprep.mubr.f32.mxu0 %v4430_v5  ;;  %2422 = vmatprep.mubr.f32.mxu1 %v4430_v5 }
 0x1b9   : > { %v3307_v58 = vpop.eup %3306  ;;  %v1513_v25 = vmul.f32 %v1465_v59, %v1321_v40  ;;  %v741_v22 = vmul.f32 0.70710677, %v4649_v49  ;;  %v693_v59 = vmul.f32 0.5, %v4649_v49 }
 0x1ba   : > { %v3309_v54 = vpop.eup %3308  ;;  %929 = vst [vmem:[%s4545_s17 + $0xe0] sm:$0xff] %v881_v60  ;;  %v834_v57 = vadd.f32 1.0, %v3307_v58  ;;  %v1373_v61 = vmul.f32 0.70710677, %v4653_v8  ;;  %v503_v3 = vpop.f32.mrb[24].mxu0  ;;  %v1325_v37 = vmul.f32 0.5, %v4653_v8 }
 0x1bb   : > { %1561 = vst [vmem:[%s4545_s17 + $0xe8] sm:$0xff] %v1513_v25  ;;  %v1466_v4 = vadd.f32 1.0, %v3309_v54  ;;  %3318 = verf.f32 %v741_v22  ;;  %v4665_v33 = vadd.f32 %v4482_v39, %v503_v3  ;;  %v1135_v18 = vpop.f32.mrb[24].mxu1  ;;  %v505_v62 = vpop.f32.mrb[25].mxu0  ;;  %1791 = vmatmul.mubr.f32.gmra.mrb[130].mxu0 %v4435_v6  ;;  %2423 = vmatmul.mubr.f32.gmra.mrb[130].mxu1 %v4435_v6  ;;  %v3660_v22 = vld [vmem:[#allocation2 + $0x140] sm:$0xff] }
 0x1bc   : > { %v882_v5 = vmul.f32 %v834_v57, %v690_v43  ;;  %3320 = verf.f32 %v1373_v61  ;;  %v4669_v51 = vadd.f32 %v4486_v42, %v1135_v18  ;;  %v1137_v20 = vpop.f32.mrb[25].mxu1  ;;  %1795 = vmatprep.mubr.f32.mxu0 %v4438_v0  ;;  %2427 = vmatprep.mubr.f32.mxu1 %v4438_v0  ;;  %v3661_v57 = vld [vmem:[#allocation2 + $0x158] sm:$0xff] }
 0x1bd   : > { %v3311_v55 = vpop.eup %3310  ;;  %v1514_v31 = vmul.f32 %v1466_v4, %v1322_v15  ;;  %v742_v2 = vmul.f32 0.70710677, %v4665_v33  ;;  %v694_v4 = vmul.f32 0.5, %v4665_v33 }
 0x1be   : > { %v3313_v26 = vpop.eup %3312  ;;  %930 = vst [vmem:[%s4545_s17 + $0x100] sm:$0xff] %v882_v5  ;;  %v835_v24 = vadd.f32 1.0, %v3311_v55  ;;  %v1374_v9 = vmul.f32 0.70710677, %v4669_v51  ;;  %v508_v27 = vpop.f32.mrb[26].mxu0  ;;  %v1326_v20 = vmul.f32 0.5, %v4669_v51 }
 0x1bf   : > { %1562 = vst [vmem:[%s4545_s17 + $0x108] sm:$0xff] %v1514_v31  ;;  %v1467_v6 = vadd.f32 1.0, %v3313_v26  ;;  %3322 = verf.f32 %v742_v2  ;;  %v4681_v47 = vadd.f32 %v4482_v39, %v508_v27  ;;  %v1140_v41 = vpop.f32.mrb[26].mxu1  ;;  %v510_v56 = vpop.f32.mrb[27].mxu0  ;;  %1796 = vmatmul.mubr.f32.gmra.mrb[132].mxu0 %v4443_v7  ;;  %2428 = vmatmul.mubr.f32.gmra.mrb[132].mxu1 %v4443_v7  ;;  %v3663_v27 = vld [vmem:[#allocation2 + $0x168] sm:$0xff] }
 0x1c0   : > { %v883_v0 = vmul.f32 %v835_v24, %v691_v34  ;;  %3324 = verf.f32 %v1374_v9  ;;  %v4685_v23 = vadd.f32 %v4486_v42, %v1140_v41  ;;  %v1142_v1 = vpop.f32.mrb[27].mxu1  ;;  %1800 = vmatprep.mubr.f32.mxu0 %v4446_v10  ;;  %2432 = vmatprep.mubr.f32.mxu1 %v4446_v10  ;;  %v3662_v34 = vld [vmem:[#allocation2 + $0x150] sm:$0xff] }
 0x1c1   : > { %v3315_v53 = vpop.eup %3314  ;;  %v1515_v48 = vmul.f32 %v1467_v6, %v1323_v28  ;;  %v743_v63 = vmul.f32 0.70710677, %v4681_v47  ;;  %v695_v56 = vmul.f32 0.5, %v4681_v47 }
 0x1c2   : > { %v3317_v45 = vpop.eup %3316  ;;  %931 = vst [vmem:[%s4545_s17 + $0x120] sm:$0xff] %v883_v0  ;;  %v836_v30 = vadd.f32 1.0, %v3315_v53  ;;  %v1375_v46 = vmul.f32 0.70710677, %v4685_v23  ;;  %v513_v12 = vpop.f32.mrb[28].mxu0 }
 0x1c3   : > { %1563 = vst [vmem:[%s4545_s17 + $0x128] sm:$0xff] %v1515_v48  ;;  %v1468_v7 = vadd.f32 1.0, %v3317_v45  ;;  %3326 = verf.f32 %v743_v63  ;;  %v4697_v35 = vadd.f32 %v4482_v39, %v513_v12  ;;  %v1145_v32 = vpop.f32.mrb[28].mxu1  ;;  %v515_v36 = vpop.f32.mrb[29].mxu0  ;;  %1801 = vmatmul.mubr.f32.gmra.mrb[134].mxu0 %v4451_v13  ;;  %2433 = vmatmul.mubr.f32.gmra.mrb[134].mxu1 %v4451_v13  ;;  %v1327_v48 = vmul.f32 0.5, %v4685_v23 }
 0x1c4   : > { %v884_v10 = vmul.f32 %v836_v30, %v692_v29  ;;  %3328 = verf.f32 %v1375_v46  ;;  %v4701_v11 = vadd.f32 %v4486_v42, %v1145_v32  ;;  %v1147_v52 = vpop.f32.mrb[29].mxu1  ;;  %1805 = vmatprep.mubr.f32.mxu0 %v4454_v14  ;;  %2437 = vmatprep.mubr.f32.mxu1 %v3659_v38  ;;  %v3664_v46 = vld [vmem:[#allocation2 + $0x160] sm:$0xff] }
 0x1c5   : > { %v3319_v19 = vpop.eup %3318  ;;  %v1516_v16 = vmul.f32 %v1468_v7, %v1324_v44  ;;  %v744_v17 = vmul.f32 0.70710677, %v4697_v35  ;;  %v3665_v7 = vld [vmem:[#allocation2 + $0x178] sm:$0xff]  ;;  %v696_v52 = vmul.f32 0.5, %v4697_v35 }
 0x1c6   : > { %v3321_v40 = vpop.eup %3320  ;;  %932 = vst [vmem:[%s4545_s17 + $0x140] sm:$0xff] %v884_v10  ;;  %v837_v50 = vadd.f32 1.0, %v3319_v19  ;;  %v1376_v21 = vmul.f32 0.70710677, %v4701_v11  ;;  %v518_v60 = vpop.f32.mrb[30].mxu0  ;;  %v1328_v38 = vmul.f32 0.5, %v4701_v11 }
 0x1c7   : > { %1564 = vst [vmem:[%s4545_s17 + $0x148] sm:$0xff] %v1516_v16  ;;  %v1469_v13 = vadd.f32 1.0, %v3321_v40  ;;  %3330 = verf.f32 %v744_v17  ;;  %v4712_v14 = vadd.f32 %v4482_v39, %v518_v60  ;;  %v1150_v58 = vpop.f32.mrb[30].mxu1  ;;  %v520_v25 = vpop.f32.mrb[31].mxu0  ;;  %1806 = vmatmul.mubr.f32.gmra.mrb[136].mxu0 %v3660_v22  ;;  %2438 = vmatmul.mubr.f32.gmra.mrb[136].mxu1 %v3660_v22  ;;  %v3666_v60 = vld [vmem:[#allocation2 + $0x170] sm:$0xff] }
 0x1c8   : > { %v885_v54 = vmul.f32 %v837_v50, %v693_v59  ;;  %3332 = verf.f32 %v1376_v21  ;;  %v4715_v49 = vadd.f32 %v4486_v42, %v1150_v58  ;;  %v1152_v43 = vpop.f32.mrb[31].mxu1  ;;  %1810 = vmatprep.mubr.f32.mxu0 %v3661_v57  ;;  %2442 = vmatprep.mubr.f32.mxu1 %v3661_v57  ;;  %v3667_v58 = vld [vmem:[#allocation2 + $0x188] sm:$0xff] }
 0x1c9   : > { %v3323_v8 = vpop.eup %3322  ;;  %v1517_v61 = vmul.f32 %v1469_v13, %v1325_v37  ;;  %v745_v3 = vmul.f32 0.70710677, %v4712_v14  ;;  %v697_v43 = vmul.f32 0.5, %v4712_v14 }
 0x1ca   : > { %v3325_v15 = vpop.eup %3324  ;;  %933 = vst [vmem:[%s4545_s17 + $0x160] sm:$0xff] %v885_v54  ;;  %v838_v18 = vadd.f32 1.0, %v3323_v8  ;;  %v1377_v62 = vmul.f32 0.70710677, %v4715_v49  ;;  %v523_v5 = vpop.f32.mrb[32].mxu0 }
 0x1cb   : > { %1565 = vst [vmem:[%s4545_s17 + $0x168] sm:$0xff] %v1517_v61  ;;  %v1470_v55 = vadd.f32 1.0, %v3325_v15  ;;  %3334 = verf.f32 %v745_v3  ;;  %v4724_v31 = vadd.f32 %v4482_v39, %v523_v5  ;;  %v1155_v2 = vpop.f32.mrb[32].mxu1  ;;  %v525_v26 = vpop.f32.mrb[33].mxu0  ;;  %1811 = vmatmul.mubr.f32.gmra.mrb[138].mxu0 %v3662_v34  ;;  %2443 = vmatmul.mubr.f32.gmra.mrb[138].mxu1 %v3662_v34  ;;  %v1329_v3 = vmul.f32 0.5, %v4715_v49  ;;  %v3668_v5 = vld [vmem:[#allocation2 + $0x180] sm:$0xff] }
 0x1cc   : > { %v886_v24 = vmul.f32 %v838_v18, %v694_v4  ;;  %3336 = verf.f32 %v1377_v62  ;;  %v4727_v33 = vadd.f32 %v4486_v42, %v1155_v2  ;;  %v1157_v9 = vpop.f32.mrb[33].mxu1  ;;  %1815 = vmatprep.mubr.f32.mxu0 %v3663_v27  ;;  %2447 = vmatprep.mubr.f32.mxu1 %v3663_v27  ;;  %v3669_v2 = vld [vmem:[#allocation2 + $0x198] sm:$0xff] }
 0x1cd   : > { %v3327_v51 = vpop.eup %3326  ;;  %v1518_v28 = vmul.f32 %v1470_v55, %v1326_v20  ;;  %v746_v6 = vmul.f32 0.70710677, %v4724_v31  ;;  %v698_v9 = vmul.f32 0.5, %v4724_v31 }
 0x1ce   : > { %v3329_v41 = vpop.eup %3328  ;;  %934 = vst [vmem:[%s4545_s17 + $0x180] sm:$0xff] %v886_v24  ;;  %v839_v0 = vadd.f32 1.0, %v3327_v51  ;;  %v1378_v1 = vmul.f32 0.70710677, %v4727_v33  ;;  %v528_v53 = vpop.f32.mrb[34].mxu0 }
 0x1cf   : > { %1566 = vst [vmem:[%s4545_s17 + $0x188] sm:$0xff] %v1518_v28  ;;  %v1471_v63 = vadd.f32 1.0, %v3329_v41  ;;  %3338 = verf.f32 %v746_v6  ;;  %v4736_v45 = vadd.f32 %v4482_v39, %v528_v53  ;;  %v1160_v29 = vpop.f32.mrb[34].mxu1  ;;  %v530_v30 = vpop.f32.mrb[35].mxu0  ;;  %1816 = vmatmul.mubr.f32.gmra.mrb[140].mxu0 %v3664_v46  ;;  %2448 = vmatmul.mubr.f32.gmra.mrb[140].mxu1 %v3664_v46  ;;  %v1330_v6 = vmul.f32 0.5, %v4727_v33  ;;  %v3670_v53 = vld [vmem:[#allocation2 + $0x190] sm:$0xff] }
 0x1d0   : > { %v887_v12 = vmul.f32 %v839_v0, %v695_v56  ;;  %3340 = verf.f32 %v1378_v1  ;;  %v4739_v47 = vadd.f32 %v4486_v42, %v1160_v29  ;;  %v1162_v44 = vpop.f32.mrb[35].mxu1  ;;  %1820 = vmatprep.mubr.f32.mxu0 %v3665_v7  ;;  %2452 = vmatprep.mubr.f32.mxu1 %v3665_v7  ;;  %v3671_v29 = vld [vmem:[#allocation2 + $0x1a8] sm:$0xff] }
 0x1d1   : > { %v3331_v23 = vpop.eup %3330  ;;  %v1519_v32 = vmul.f32 %v1471_v63, %v1327_v48  ;;  %v747_v36 = vmul.f32 0.70710677, %v4736_v45  ;;  %v699_v44 = vmul.f32 0.5, %v4736_v45 }
 0x1d2   : > { %v3333_v10 = vpop.eup %3332  ;;  %935 = vst [vmem:[%s4545_s17 + $0x1a0] sm:$0xff] %v887_v12  ;;  %v840_v19 = vadd.f32 1.0, %v3331_v23  ;;  %v1379_v16 = vmul.f32 0.70710677, %v4739_v47  ;;  %v533_v17 = vpop.f32.mrb[36].mxu0 }
 0x1d3   : > { %1567 = vst [vmem:[%s4545_s17 + $0x1a8] sm:$0xff] %v1519_v32  ;;  %v1472_v40 = vadd.f32 1.0, %v3333_v10  ;;  %3342 = verf.f32 %v747_v36  ;;  %v4748_v59 = vadd.f32 %v4482_v39, %v533_v17  ;;  %v1165_v50 = vpop.f32.mrb[36].mxu1  ;;  %v535_v21 = vpop.f32.mrb[37].mxu0  ;;  %1821 = vmatmul.mubr.f32.gmra.mrb[142].mxu0 %v3666_v60  ;;  %2453 = vmatmul.mubr.f32.gmra.mrb[142].mxu1 %v3666_v60  ;;  %v1331_v36 = vmul.f32 0.5, %v4739_v47  ;;  %v3672_v17 = vld [vmem:[#allocation2 + $0x1a0] sm:$0xff] }
 0x1d4   : > { %v888_v37 = vmul.f32 %v840_v19, %v696_v52  ;;  %3344 = verf.f32 %v1379_v16  ;;  %v4751_v35 = vadd.f32 %v4486_v42, %v1165_v50  ;;  %v1167_v13 = vpop.f32.mrb[37].mxu1  ;;  %1825 = vmatprep.mubr.f32.mxu0 %v3667_v58  ;;  %2457 = vmatprep.mubr.f32.mxu1 %v3667_v58  ;;  %v3673_v50 = vld [vmem:[#allocation2 + $0x1b8] sm:$0xff] }
 0x1d5   : > { %v3335_v11 = vpop.eup %3334  ;;  %v1520_v25 = vmul.f32 %v1472_v40, %v1328_v38  ;;  %v748_v22 = vmul.f32 0.70710677, %v4748_v59  ;;  %v700_v13 = vmul.f32 0.5, %v4748_v59 }
 0x1d6   : > { %v3337_v54 = vpop.eup %3336  ;;  %936 = vst [vmem:[%s4545_s17 + $0x1c0] sm:$0xff] %v888_v37  ;;  %v841_v57 = vadd.f32 1.0, %v3335_v11  ;;  %v1380_v8 = vmul.f32 0.70710677, %v4751_v35  ;;  %v538_v61 = vpop.f32.mrb[38].mxu0 }
 0x1d7   : > { %1568 = vst [vmem:[%s4545_s17 + $0x1c8] sm:$0xff] %v1520_v25  ;;  %v1473_v15 = vadd.f32 1.0, %v3337_v54  ;;  %3346 = verf.f32 %v748_v22  ;;  %v4760_v4 = vadd.f32 %v4482_v39, %v538_v61  ;;  %v1170_v18 = vpop.f32.mrb[38].mxu1  ;;  %v540_v62 = vpop.f32.mrb[39].mxu0  ;;  %1826 = vmatmul.mubr.f32.gmra.mrb[144].mxu0 %v3668_v5  ;;  %2458 = vmatmul.mubr.f32.gmra.mrb[144].mxu1 %v3668_v5  ;;  %v1332_v22 = vmul.f32 0.5, %v4751_v35  ;;  %v3674_v61 = vld [vmem:[#allocation2 + $0x1b0] sm:$0xff] }
 0x1d8   : > { %v889_v20 = vmul.f32 %v841_v57, %v697_v43  ;;  %3348 = verf.f32 %v1380_v8  ;;  %v4763_v14 = vadd.f32 %v4486_v42, %v1170_v18  ;;  %v1172_v55 = vpop.f32.mrb[39].mxu1  ;;  %1830 = vmatprep.mubr.f32.mxu0 %v3669_v2  ;;  %2462 = vmatprep.mubr.f32.mxu1 %v3669_v2  ;;  %v3675_v18 = vld [vmem:[#allocation2 + $0x1c8] sm:$0xff] }
 0x1d9   : > { %v3339_v49 = vpop.eup %3338  ;;  %v1521_v26 = vmul.f32 %v1473_v15, %v1329_v3  ;;  %v749_v34 = vmul.f32 0.70710677, %v4760_v4 }
 0x1da   : > { %v3341_v24 = vpop.eup %3340  ;;  %937 = vst [vmem:[%s4545_s17 + $0x1e0] sm:$0xff] %v889_v20  ;;  %v842_v27 = vadd.f32 1.0, %v3339_v49  ;;  %v1381_v51 = vmul.f32 0.70710677, %v4763_v14  ;;  %v543_v28 = vpop.f32.mrb[40].mxu0  ;;  %v701_v20 = vmul.f32 0.5, %v4760_v4 }
 0x1db   : > { %1569 = vst [vmem:[%s4545_s17 + $0x1e8] sm:$0xff] %v1521_v26  ;;  %v1474_v41 = vadd.f32 1.0, %v3341_v24  ;;  %3350 = verf.f32 %v749_v34  ;;  %v4772_v56 = vadd.f32 %v4482_v39, %v543_v28  ;;  %v1175_v0 = vpop.f32.mrb[40].mxu1  ;;  %v545_v1 = vpop.f32.mrb[41].mxu0  ;;  %1831 = vmatmul.mubr.f32.gmra.mrb[146].mxu0 %v3670_v53  ;;  %2463 = vmatmul.mubr.f32.gmra.mrb[146].mxu1 %v3670_v53  ;;  %v1333_v49 = vmul.f32 0.5, %v4763_v14 }
 0x1dc   : > { %v890_v48 = vmul.f32 %v842_v27, %v698_v9  ;;  %3352 = verf.f32 %v1381_v51  ;;  %v4775_v31 = vadd.f32 %v4486_v42, %v1175_v0  ;;  %v1177_v63 = vpop.f32.mrb[41].mxu1  ;;  %1835 = vmatprep.mubr.f32.mxu0 %v3671_v29  ;;  %2467 = vmatprep.mubr.f32.mxu1 %v3671_v29  ;;  %v4808_v34 = vld [vmem:[%s4479_s27] ss:$0 sm:$0xff]  ;;  %v4814_v28 = vld [vmem:[%s4479_s27 + $0x1] ss:$0 sm:$0xff] }
 0x1dd   : > { %v3343_v33 = vpop.eup %3342  ;;  %v1522_v30 = vmul.f32 %v1474_v41, %v1330_v6  ;;  %v750_v46 = vmul.f32 0.70710677, %v4772_v56  ;;  %v3677_v51 = vld [vmem:[#allocation2 + $0x1c0] sm:$0xff]  ;;  %v3679_v41 = vld [vmem:[#allocation2 + $0x1d8] sm:$0xff]  ;;  %v702_v63 = vmul.f32 0.5, %v4772_v56 }
 0x1de   : > { %v3345_v12 = vpop.eup %3344  ;;  %938 = vst [vmem:[%s4545_s17 + $0x200] sm:$0xff] %v890_v48  ;;  %v843_v7 = vadd.f32 1.0, %v3343_v33  ;;  %v1382_v23 = vmul.f32 0.70710677, %v4775_v31  ;;  %v548_v32 = vpop.f32.mrb[42].mxu0 }
 0x1df   : > { %1570 = vst [vmem:[%s4545_s17 + $0x208] sm:$0xff] %v1522_v30  ;;  %v1475_v10 = vadd.f32 1.0, %v3345_v12  ;;  %3354 = verf.f32 %v750_v46  ;;  %v4784_v52 = vadd.f32 %v4482_v39, %v548_v32  ;;  %v1180_v19 = vpop.f32.mrb[42].mxu1  ;;  %v550_v16 = vpop.f32.mrb[43].mxu0  ;;  %1836 = vmatmul.mubr.f32.gmra.mrb[148].mxu0 %v3672_v17  ;;  %2468 = vmatmul.mubr.f32.gmra.mrb[148].mxu1 %v3672_v17  ;;  %v1334_v46 = vmul.f32 0.5, %v4775_v31  ;;  %v3680_v32 = vld [vmem:[#allocation2 + $0x1d0] sm:$0xff] }
 0x1e0   : > { %v891_v38 = vmul.f32 %v843_v7, %v699_v44  ;;  %3356 = verf.f32 %v1382_v23  ;;  %v4787_v45 = vadd.f32 %v4486_v42, %v1180_v19  ;;  %v1182_v40 = vpop.f32.mrb[43].mxu1  ;;  %1840 = vmatprep.mubr.f32.mxu0 %v3673_v50  ;;  %2472 = vmatprep.mubr.f32.mxu1 %v3673_v50  ;;  %v3681_v19 = vld [vmem:[#allocation2 + $0x1e8] sm:$0xff] }
 0x1e1   : > { %v3347_v47 = vpop.eup %3346  ;;  %v1523_v21 = vmul.f32 %v1475_v10, %v1331_v36  ;;  %v751_v60 = vmul.f32 0.70710677, %v4784_v52  ;;  %v703_v40 = vmul.f32 0.5, %v4784_v52 }
 0x1e2   : > { %v3349_v37 = vpop.eup %3348  ;;  %939 = vst [vmem:[%s4545_s17 + $0x220] sm:$0xff] %v891_v38  ;;  %v844_v58 = vadd.f32 1.0, %v3347_v47  ;;  %v1383_v11 = vmul.f32 0.70710677, %v4787_v45  ;;  %v553_v25 = vpop.f32.mrb[44].mxu0 }
 0x1e3   : > { %1571 = vst [vmem:[%s4545_s17 + $0x228] sm:$0xff] %v1523_v21  ;;  %v1476_v54 = vadd.f32 1.0, %v3349_v37  ;;  %3358 = verf.f32 %v751_v60  ;;  %v4796_v43 = vadd.f32 %v4482_v39, %v553_v25  ;;  %v1185_v57 = vpop.f32.mrb[44].mxu1  ;;  %v555_v8 = vpop.f32.mrb[45].mxu0  ;;  %1841 = vmatmul.mubr.f32.gmra.mrb[150].mxu0 %v3674_v61  ;;  %2473 = vmatmul.mubr.f32.gmra.mrb[150].mxu1 %v3674_v61  ;;  %v1335_v60 = vmul.f32 0.5, %v4787_v45  ;;  %v3682_v25 = vld [vmem:[#allocation2 + $0x1e0] sm:$0xff] }
 0x1e4   : > { %v892_v3 = vmul.f32 %v844_v58, %v700_v13  ;;  %3360 = verf.f32 %v1383_v11  ;;  %v4799_v59 = vadd.f32 %v4486_v42, %v1185_v57  ;;  %v1187_v15 = vpop.f32.mrb[45].mxu1  ;;  %1845 = vmatprep.mubr.f32.mxu0 %v3675_v18  ;;  %2477 = vmatprep.mubr.f32.mxu1 %v3675_v18  ;;  %v3683_v57 = vld [vmem:[#allocation2 + $0x1f8] sm:$0xff] }
 0x1e5   : > { %v3351_v35 = vpop.eup %3350  ;;  %v1524_v62 = vmul.f32 %v1476_v54, %v1332_v22  ;;  %v752_v39 = vmul.f32 0.70710677, %v4796_v43  ;;  %v704_v15 = vmul.f32 0.5, %v4796_v43 }
 0x1e6   : > { %v3353_v5 = vpop.eup %3352  ;;  %940 = vst [vmem:[%s4545_s17 + $0x240] sm:$0xff] %v892_v3  ;;  %v845_v55 = vadd.f32 1.0, %v3351_v35  ;;  %v1384_v2 = vmul.f32 0.70710677, %v4799_v59  ;;  %v558_v42 = vpop.f32.mrb[46].mxu0 }
 0x1e7   : > { %1572 = vst [vmem:[%s4545_s17 + $0x248] sm:$0xff] %v1524_v62  ;;  %v1477_v26 = vadd.f32 1.0, %v3353_v5  ;;  %3362 = verf.f32 %v752_v39  ;;  %v4811_v24 = vadd.f32 %v4808_v34, %v558_v42  ;;  %v1190_v9 = vpop.f32.mrb[46].mxu1  ;;  %v560_v27 = vpop.f32.mrb[47].mxu0  ;;  %1846 = vmatmul.mubr.f32.gmra.mrb[152].mxu0 %v3677_v51  ;;  %2478 = vmatmul.mubr.f32.gmra.mrb[152].mxu1 %v3677_v51  ;;  %v1336_v39 = vmul.f32 0.5, %v4799_v59  ;;  %v3684_v42 = vld [vmem:[#allocation2 + $0x1f0] sm:$0xff] }
 0x1e8   : > { %v893_v4 = vmul.f32 %v845_v55, %v701_v20  ;;  %3364 = verf.f32 %v1384_v2  ;;  %v4817_v6 = vadd.f32 %v4814_v28, %v1190_v9  ;;  %v1192_v14 = vpop.f32.mrb[47].mxu1  ;;  %1850 = vmatprep.mubr.f32.mxu0 %v3679_v41  ;;  %2482 = vmatprep.mubr.f32.mxu1 %v3679_v41  ;;  %v3685_v9 = vld [vmem:[#allocation2 + $0x208] sm:$0xff] }
 0x1e9   : > { %v3355_v0 = vpop.eup %3354  ;;  %v1525_v1 = vmul.f32 %v1477_v26, %v1333_v49  ;;  %v753_v53 = vmul.f32 0.70710677, %v4811_v24  ;;  %v705_v14 = vmul.f32 0.5, %v4811_v24 }
 0x1ea   : > { %v3357_v48 = vpop.eup %3356  ;;  %941 = vst [vmem:[%s4545_s17 + $0x260] sm:$0xff] %v893_v4  ;;  %v846_v29 = vadd.f32 1.0, %v3355_v0  ;;  %v1385_v33 = vmul.f32 0.70710677, %v4817_v6  ;;  %v563_v30 = vpop.f32.mrb[48].mxu0 }
 0x1eb   : > { %1573 = vst [vmem:[%s4545_s17 + $0x268] sm:$0xff] %v1525_v1  ;;  %v1478_v12 = vadd.f32 1.0, %v3357_v48  ;;  %3366 = verf.f32 %v753_v53  ;;  %v4826_v44 = vadd.f32 %v4808_v34, %v563_v30  ;;  %v1195_v7 = vpop.f32.mrb[48].mxu1  ;;  %v565_v23 = vpop.f32.mrb[49].mxu0  ;;  %1851 = vmatmul.mubr.f32.gmra.mrb[154].mxu0 %v3680_v32  ;;  %2483 = vmatmul.mubr.f32.gmra.mrb[154].mxu1 %v3680_v32  ;;  %v1337_v53 = vmul.f32 0.5, %v4817_v6  ;;  %v3686_v30 = vld [vmem:[#allocation2 + $0x200] sm:$0xff] }
 0x1ec   : > { %v894_v36 = vmul.f32 %v846_v29, %v702_v63  ;;  %3368 = verf.f32 %v1385_v33  ;;  %v4829_v56 = vadd.f32 %v4814_v28, %v1195_v7  ;;  %v1197_v10 = vpop.f32.mrb[49].mxu1  ;;  %1855 = vmatprep.mubr.f32.mxu0 %v3681_v19  ;;  %2487 = vmatprep.mubr.f32.mxu1 %v3681_v19  ;;  %v3687_v7 = vld [vmem:[#allocation2 + $0x218] sm:$0xff] }
 0x1ed   : > { %v3359_v31 = vpop.eup %3358  ;;  %v1526_v16 = vmul.f32 %v1478_v12, %v1334_v46  ;;  %v754_v17 = vmul.f32 0.70710677, %v4826_v44  ;;  %v706_v10 = vmul.f32 0.5, %v4826_v44 }
 0x1ee   : > { %v3361_v38 = vpop.eup %3360  ;;  %942 = vst [vmem:[%s4545_s17 + $0x280] sm:$0xff] %v894_v36  ;;  %v847_v50 = vadd.f32 1.0, %v3359_v31  ;;  %v1386_v47 = vmul.f32 0.70710677, %v4829_v56  ;;  %v568_v21 = vpop.f32.mrb[50].mxu0 }
 0x1ef   : > { %1574 = vst [vmem:[%s4545_s17 + $0x288] sm:$0xff] %v1526_v16  ;;  %v1479_v37 = vadd.f32 1.0, %v3361_v38  ;;  %3370 = verf.f32 %v754_v17  ;;  %v4838_v13 = vadd.f32 %v4808_v34, %v568_v21  ;;  %v1200_v58 = vpop.f32.mrb[50].mxu1  ;;  %v570_v11 = vpop.f32.mrb[51].mxu0  ;;  %1856 = vmatmul.mubr.f32.gmra.mrb[156].mxu0 %v3682_v25  ;;  %2488 = vmatmul.mubr.f32.gmra.mrb[156].mxu1 %v3682_v25  ;;  %v1338_v17 = vmul.f32 0.5, %v4829_v56  ;;  %v3688_v21 = vld [vmem:[#allocation2 + $0x210] sm:$0xff] }
 0x1f0   : > { %v895_v22 = vmul.f32 %v847_v50, %v703_v40  ;;  %3372 = verf.f32 %v1386_v47  ;;  %v4841_v52 = vadd.f32 %v4814_v28, %v1200_v58  ;;  %v1202_v54 = vpop.f32.mrb[51].mxu1  ;;  %1860 = vmatprep.mubr.f32.mxu0 %v3683_v57  ;;  %2492 = vmatprep.mubr.f32.mxu1 %v3683_v57  ;;  %v3689_v58 = vld [vmem:[#allocation2 + $0x228] sm:$0xff] }
 0x1f1   : > { %v3363_v45 = vpop.eup %3362  ;;  %v1527_v8 = vmul.f32 %v1479_v37, %v1335_v60  ;;  %v755_v61 = vmul.f32 0.70710677, %v4838_v13  ;;  %v707_v54 = vmul.f32 0.5, %v4838_v13 }
 0x1f2   : > { %v3365_v3 = vpop.eup %3364  ;;  %943 = vst [vmem:[%s4545_s17 + $0x2a0] sm:$0xff] %v895_v22  ;;  %v848_v18 = vadd.f32 1.0, %v3363_v45  ;;  %v1387_v35 = vmul.f32 0.70710677, %v4841_v52  ;;  %v573_v62 = vpop.f32.mrb[52].mxu0 }
 0x1f3   : > { %1575 = vst [vmem:[%s4545_s17 + $0x2a8] sm:$0xff] %v1527_v8  ;;  %v1480_v5 = vadd.f32 1.0, %v3365_v3  ;;  %3374 = verf.f32 %v755_v61  ;;  %v4850_v20 = vadd.f32 %v4808_v34, %v573_v62  ;;  %v1205_v55 = vpop.f32.mrb[52].mxu1  ;;  %v575_v2 = vpop.f32.mrb[53].mxu0  ;;  %1861 = vmatmul.mubr.f32.gmra.mrb[158].mxu0 %v3684_v42  ;;  %2493 = vmatmul.mubr.f32.gmra.mrb[158].mxu1 %v3684_v42  ;;  %v1339_v61 = vmul.f32 0.5, %v4841_v52  ;;  %v3690_v62 = vld [vmem:[#allocation2 + $0x220] sm:$0xff] }
 0x1f4   : > { %v896_v49 = vmul.f32 %v848_v18, %v704_v15  ;;  %3376 = verf.f32 %v1387_v35  ;;  %v4853_v43 = vadd.f32 %v4814_v28, %v1205_v55  ;;  %v1207_v26 = vpop.f32.mrb[53].mxu1  ;;  %1865 = vmatprep.mubr.f32.mxu0 %v3685_v9  ;;  %2497 = vmatprep.mubr.f32.mxu1 %v3685_v9  ;;  %v3691_v55 = vld [vmem:[#allocation2 + $0x238] sm:$0xff] }
 0x1f5   : > { %v3367_v59 = vpop.eup %3366  ;;  %v1528_v27 = vmul.f32 %v1480_v5, %v1336_v39  ;;  %v756_v51 = vmul.f32 0.70710677, %v4850_v20  ;;  %v708_v26 = vmul.f32 0.5, %v4850_v20 }
 0x1f6   : > { %v3369_v4 = vpop.eup %3368  ;;  %944 = vst [vmem:[%s4545_s17 + $0x2c0] sm:$0xff] %v896_v49  ;;  %v849_v41 = vadd.f32 1.0, %v3367_v59  ;;  %v1388_v0 = vmul.f32 0.70710677, %v4853_v43  ;;  %v578_v1 = vpop.f32.mrb[54].mxu0 }
 0x1f7   : > { %1576 = vst [vmem:[%s4545_s17 + $0x2c8] sm:$0xff] %v1528_v27  ;;  %v1481_v48 = vadd.f32 1.0, %v3369_v4  ;;  %3378 = verf.f32 %v756_v51  ;;  %v4862_v63 = vadd.f32 %v4808_v34, %v578_v1  ;;  %v1210_v29 = vpop.f32.mrb[54].mxu1  ;;  %v580_v33 = vpop.f32.mrb[55].mxu0  ;;  %1866 = vmatmul.mubr.f32.gmra.mrb[160].mxu0 %v3686_v30  ;;  %2498 = vmatmul.mubr.f32.gmra.mrb[160].mxu1 %v3686_v30  ;;  %v1340_v51 = vmul.f32 0.5, %v4853_v43  ;;  %v3692_v1 = vld [vmem:[#allocation2 + $0x230] sm:$0xff] }
 0x1f8   : > { %v897_v46 = vmul.f32 %v849_v41, %v705_v14  ;;  %3380 = verf.f32 %v1388_v0  ;;  %v4865_v24 = vadd.f32 %v4814_v28, %v1210_v29  ;;  %v1212_v12 = vpop.f32.mrb[55].mxu1  ;;  %1870 = vmatprep.mubr.f32.mxu0 %v3687_v7  ;;  %2502 = vmatprep.mubr.f32.mxu1 %v3687_v7  ;;  %v3693_v29 = vld [vmem:[#allocation2 + $0x248] sm:$0xff] }
 0x1f9   : > { %v3371_v6 = vpop.eup %3370  ;;  %v1529_v23 = vmul.f32 %v1481_v48, %v1337_v53  ;;  %v757_v32 = vmul.f32 0.70710677, %v4862_v63  ;;  %v709_v12 = vmul.f32 0.5, %v4862_v63 }
 0x1fa   : > { %v3373_v36 = vpop.eup %3372  ;;  %945 = vst [vmem:[%s4545_s17 + $0x2e0] sm:$0xff] %v897_v46  ;;  %v850_v19 = vadd.f32 1.0, %v3371_v6  ;;  %v1389_v31 = vmul.f32 0.70710677, %v4865_v24  ;;  %v583_v16 = vpop.f32.mrb[56].mxu0 }
 0x1fb   : > { %1577 = vst [vmem:[%s4545_s17 + $0x2e8] sm:$0xff] %v1529_v23  ;;  %v1482_v38 = vadd.f32 1.0, %v3373_v36  ;;  %3382 = verf.f32 %v757_v32  ;;  %v4874_v40 = vadd.f32 %v4808_v34, %v583_v16  ;;  %v1215_v50 = vpop.f32.mrb[56].mxu1  ;;  %v585_v47 = vpop.f32.mrb[57].mxu0  ;;  %1871 = vmatmul.mubr.f32.gmra.mrb[162].mxu0 %v3688_v21  ;;  %2503 = vmatmul.mubr.f32.gmra.mrb[162].mxu1 %v3688_v21  ;;  %v1341_v32 = vmul.f32 0.5, %v4865_v24  ;;  %v3694_v16 = vld [vmem:[#allocation2 + $0x240] sm:$0xff] }
 0x1fc   : > { %v898_v60 = vmul.f32 %v850_v19, %v706_v10  ;;  %3384 = verf.f32 %v1389_v31  ;;  %v4877_v44 = vadd.f32 %v4814_v28, %v1215_v50  ;;  %v1217_v37 = vpop.f32.mrb[57].mxu1  ;;  %1875 = vmatprep.mubr.f32.mxu0 %v3689_v58  ;;  %2507 = vmatprep.mubr.f32.mxu1 %v3689_v58  ;;  %v3695_v50 = vld [vmem:[#allocation2 + $0x258] sm:$0xff] }
 0x1fd   : > { %v3375_v56 = vpop.eup %3374  ;;  %v1530_v11 = vmul.f32 %v1482_v38, %v1338_v17  ;;  %v758_v25 = vmul.f32 0.70710677, %v4874_v40  ;;  %v710_v37 = vmul.f32 0.5, %v4874_v40 }
 0x1fe   : > { %v3377_v22 = vpop.eup %3376  ;;  %946 = vst [vmem:[%s4545_s17 + $0x300] sm:$0xff] %v898_v60  ;;  %v851_v57 = vadd.f32 1.0, %v3375_v56  ;;  %v1390_v45 = vmul.f32 0.70710677, %v4877_v44  ;;  %v588_v8 = vpop.f32.mrb[58].mxu0 }
 0x1ff   : > { %1578 = vst [vmem:[%s4545_s17 + $0x308] sm:$0xff] %v1530_v11  ;;  %v1483_v3 = vadd.f32 1.0, %v3377_v22  ;;  %3386 = verf.f32 %v758_v25  ;;  %v4886_v15 = vadd.f32 %v4808_v34, %v588_v8  ;;  %v1220_v18 = vpop.f32.mrb[58].mxu1  ;;  %v590_v35 = vpop.f32.mrb[59].mxu0  ;;  %1876 = vmatmul.mubr.f32.gmra.mrb[164].mxu0 %v3690_v62  ;;  %2508 = vmatmul.mubr.f32.gmra.mrb[164].mxu1 %v3690_v62  ;;  %v1342_v25 = vmul.f32 0.5, %v4877_v44  ;;  %v3696_v8 = vld [vmem:[#allocation2 + $0x250] sm:$0xff] }
 0x200   : > { %v899_v39 = vmul.f32 %v851_v57, %v707_v54  ;;  %3388 = verf.f32 %v1390_v45  ;;  %v4889_v13 = vadd.f32 %v4814_v28, %v1220_v18  ;;  %v1222_v5 = vpop.f32.mrb[59].mxu1  ;;  %1880 = vmatprep.mubr.f32.mxu0 %v3691_v55  ;;  %2512 = vmatprep.mubr.f32.mxu1 %v3691_v55  ;;  %v3697_v18 = vld [vmem:[#allocation2 + $0x268] sm:$0xff] }
 0x201   : > { %v3379_v52 = vpop.eup %3378  ;;  %v1531_v2 = vmul.f32 %v1483_v3, %v1339_v61  ;;  %v759_v42 = vmul.f32 0.70710677, %v4886_v15  ;;  %v711_v5 = vmul.f32 0.5, %v4886_v15 }
 0x202   : > { %v3381_v49 = vpop.eup %3380  ;;  %947 = vst [vmem:[%s4545_s17 + $0x320] sm:$0xff] %v899_v39  ;;  %v852_v9 = vadd.f32 1.0, %v3379_v52  ;;  %v1391_v59 = vmul.f32 0.70710677, %v4889_v13  ;;  %v593_v27 = vpop.f32.mrb[60].mxu0 }
 0x203   : > { %1579 = vst [vmem:[%s4545_s17 + $0x328] sm:$0xff] %v1531_v2  ;;  %v1484_v4 = vadd.f32 1.0, %v3381_v49  ;;  %3390 = verf.f32 %v759_v42  ;;  %v4898_v14 = vadd.f32 %v4808_v34, %v593_v27  ;;  %v1225_v41 = vpop.f32.mrb[60].mxu1  ;;  %v595_v0 = vpop.f32.mrb[61].mxu0  ;;  %1881 = vmatmul.mubr.f32.gmra.mrb[166].mxu0 %v3692_v1  ;;  %2513 = vmatmul.mubr.f32.gmra.mrb[166].mxu1 %v3692_v1  ;;  %v1343_v42 = vmul.f32 0.5, %v4889_v13  ;;  %v3698_v27 = vld [vmem:[#allocation2 + $0x260] sm:$0xff] }
 0x204   : > { %v900_v53 = vmul.f32 %v852_v9, %v708_v26  ;;  %3392 = verf.f32 %v1391_v59  ;;  %v4901_v20 = vadd.f32 %v4814_v28, %v1225_v41  ;;  %v1227_v48 = vpop.f32.mrb[61].mxu1  ;;  %1885 = vmatprep.mubr.f32.mxu0 %v3693_v29  ;;  %2517 = vmatprep.mubr.f32.mxu1 %v3693_v29  ;;  %v3699_v41 = vld [vmem:[#allocation2 + $0x278] sm:$0xff] }
 0x205   : > { %v3383_v43 = vpop.eup %3382  ;;  %v1532_v33 = vmul.f32 %v1484_v4, %v1340_v51  ;;  %v760_v30 = vmul.f32 0.70710677, %v4898_v14  ;;  %v712_v48 = vmul.f32 0.5, %v4898_v14 }
 0x206   : > { %v3385_v46 = vpop.eup %3384  ;;  %948 = vst [vmem:[%s4545_s17 + $0x340] sm:$0xff] %v900_v53  ;;  %v853_v7 = vadd.f32 1.0, %v3383_v43  ;;  %v1392_v6 = vmul.f32 0.70710677, %v4901_v20  ;;  %v598_v23 = vpop.f32.mrb[62].mxu0 }
 0x207   : > { %1580 = vst [vmem:[%s4545_s17 + $0x348] sm:$0xff] %v1532_v33  ;;  %v1485_v36 = vadd.f32 1.0, %v3385_v46  ;;  %3394 = verf.f32 %v760_v30  ;;  %v4910_v10 = vadd.f32 %v4808_v34, %v598_v23  ;;  %v1230_v19 = vpop.f32.mrb[62].mxu1  ;;  %v600_v31 = vpop.f32.mrb[63].mxu0  ;;  %1886 = vmatmul.mubr.f32.gmra.mrb[168].mxu0 %v3694_v16  ;;  %2518 = vmatmul.mubr.f32.gmra.mrb[168].mxu1 %v3694_v16  ;;  %v1344_v30 = vmul.f32 0.5, %v4901_v20  ;;  %v3700_v23 = vld [vmem:[#allocation2 + $0x270] sm:$0xff] }
 0x208   : > { %v901_v17 = vmul.f32 %v853_v7, %v709_v12  ;;  %3396 = verf.f32 %v1392_v6  ;;  %v4913_v63 = vadd.f32 %v4814_v28, %v1230_v19  ;;  %v1232_v38 = vpop.f32.mrb[63].mxu1  ;;  %1890 = vmatprep.mubr.f32.mxu0 %v3695_v50  ;;  %2522 = vmatprep.mubr.f32.mxu1 %v3695_v50  ;;  %v3701_v19 = vld [vmem:[#allocation2 + $0x288] sm:$0xff] }
 0x209   : > { %v3387_v24 = vpop.eup %3386  ;;  %v1533_v47 = vmul.f32 %v1485_v36, %v1341_v32  ;;  %v761_v21 = vmul.f32 0.70710677, %v4910_v10  ;;  %v713_v38 = vmul.f32 0.5, %v4910_v10 }
 0x20a   : > { %v3389_v60 = vpop.eup %3388  ;;  %949 = vst [vmem:[%s4545_s17 + $0x360] sm:$0xff] %v901_v17  ;;  %v854_v58 = vadd.f32 1.0, %v3387_v24  ;;  %v1393_v56 = vmul.f32 0.70710677, %v4913_v63  ;;  %v603_v11 = vpop.f32.mrb[64].mxu0 }
 0x20b   : > { %1581 = vst [vmem:[%s4545_s17 + $0x368] sm:$0xff] %v1533_v47  ;;  %v1486_v22 = vadd.f32 1.0, %v3389_v60  ;;  %3398 = verf.f32 %v761_v21  ;;  %v4922_v54 = vadd.f32 %v4808_v34, %v603_v11  ;;  %v1235_v57 = vpop.f32.mrb[64].mxu1  ;;  %v605_v45 = vpop.f32.mrb[65].mxu0  ;;  %1891 = vmatmul.mubr.f32.gmra.mrb[170].mxu0 %v3696_v8  ;;  %2523 = vmatmul.mubr.f32.gmra.mrb[170].mxu1 %v3696_v8  ;;  %v1345_v21 = vmul.f32 0.5, %v4913_v63  ;;  %v3702_v11 = vld [vmem:[#allocation2 + $0x280] sm:$0xff] }
 0x20c   : > { %v902_v61 = vmul.f32 %v854_v58, %v710_v37  ;;  %3400 = verf.f32 %v1393_v56  ;;  %v4925_v40 = vadd.f32 %v4814_v28, %v1235_v57  ;;  %v1237_v3 = vpop.f32.mrb[65].mxu1  ;;  %1895 = vmatprep.mubr.f32.mxu0 %v3697_v18  ;;  %2527 = vmatprep.mubr.f32.mxu1 %v3697_v18  ;;  %v3703_v57 = vld [vmem:[#allocation2 + $0x298] sm:$0xff] }
 0x20d   : > { %v3391_v44 = vpop.eup %3390  ;;  %v1534_v35 = vmul.f32 %v1486_v22, %v1342_v25  ;;  %v762_v62 = vmul.f32 0.70710677, %v4922_v54  ;;  %v714_v3 = vmul.f32 0.5, %v4922_v54 }
 0x20e   : > { %v3393_v39 = vpop.eup %3392  ;;  %950 = vst [vmem:[%s4545_s17 + $0x380] sm:$0xff] %v902_v61  ;;  %v855_v55 = vadd.f32 1.0, %v3391_v44  ;;  %v1394_v52 = vmul.f32 0.70710677, %v4925_v40  ;;  %v608_v2 = vpop.f32.mrb[66].mxu0 }
 0x20f   : > { %1582 = vst [vmem:[%s4545_s17 + $0x388] sm:$0xff] %v1534_v35  ;;  %v1487_v49 = vadd.f32 1.0, %v3393_v39  ;;  %3402 = verf.f32 %v762_v62  ;;  %v4934_v26 = vadd.f32 %v4808_v34, %v608_v2  ;;  %v1240_v9 = vpop.f32.mrb[66].mxu1  ;;  %v610_v59 = vpop.f32.mrb[67].mxu0  ;;  %1896 = vmatmul.mubr.f32.gmra.mrb[172].mxu0 %v3698_v27  ;;  %2528 = vmatmul.mubr.f32.gmra.mrb[172].mxu1 %v3698_v27  ;;  %v1346_v62 = vmul.f32 0.5, %v4925_v40  ;;  %v3704_v2 = vld [vmem:[#allocation2 + $0x290] sm:$0xff] }
 0x210   : > { %v903_v51 = vmul.f32 %v855_v55, %v711_v5  ;;  %3404 = verf.f32 %v1394_v52  ;;  %v4937_v15 = vadd.f32 %v4814_v28, %v1240_v9  ;;  %v1242_v4 = vpop.f32.mrb[67].mxu1  ;;  %1900 = vmatprep.mubr.f32.mxu0 %v3699_v41  ;;  %2532 = vmatprep.mubr.f32.mxu1 %v3699_v41  ;;  %v3705_v9 = vld [vmem:[#allocation2 + $0x2a8] sm:$0xff] }
 0x211   : > { %v3395_v13 = vpop.eup %3394  ;;  %v1535_v0 = vmul.f32 %v1487_v49, %v1343_v42  ;;  %v763_v1 = vmul.f32 0.70710677, %v4934_v26  ;;  %v715_v4 = vmul.f32 0.5, %v4934_v26 }
 0x212   : > { %v3397_v53 = vpop.eup %3396  ;;  %951 = vst [vmem:[%s4545_s17 + $0x3a0] sm:$0xff] %v903_v51  ;;  %v856_v29 = vadd.f32 1.0, %v3395_v13  ;;  %v1395_v43 = vmul.f32 0.70710677, %v4937_v15  ;;  %v613_v33 = vpop.f32.mrb[68].mxu0 }
 0x213   : > { %1583 = vst [vmem:[%s4545_s17 + $0x3a8] sm:$0xff] %v1535_v0  ;;  %v1488_v46 = vadd.f32 1.0, %v3397_v53  ;;  %3406 = verf.f32 %v763_v1  ;;  %v4946_v12 = vadd.f32 %v4808_v34, %v613_v33  ;;  %v1245_v7 = vpop.f32.mrb[68].mxu1  ;;  %v615_v6 = vpop.f32.mrb[69].mxu0  ;;  %1901 = vmatmul.mubr.f32.gmra.mrb[174].mxu0 %v3700_v23  ;;  %2533 = vmatmul.mubr.f32.gmra.mrb[174].mxu1 %v3700_v23  ;;  %v1347_v1 = vmul.f32 0.5, %v4937_v15  ;;  %v3706_v33 = vld [vmem:[#allocation2 + $0x2a0] sm:$0xff] }
 0x214   : > { %v904_v32 = vmul.f32 %v856_v29, %v712_v48  ;;  %3408 = verf.f32 %v1395_v43  ;;  %v4949_v14 = vadd.f32 %v4814_v28, %v1245_v7  ;;  %v1247_v36 = vpop.f32.mrb[69].mxu1  ;;  %1905 = vmatprep.mubr.f32.mxu0 %v3701_v19  ;;  %2537 = vmatprep.mubr.f32.mxu1 %v3701_v19  ;;  %v3707_v7 = vld [vmem:[#allocation2 + $0x2b8] sm:$0xff] }
 0x215   : > { %v3399_v20 = vpop.eup %3398  ;;  %v1536_v31 = vmul.f32 %v1488_v46, %v1344_v30  ;;  %v764_v16 = vmul.f32 0.70710677, %v4946_v12  ;;  %v716_v36 = vmul.f32 0.5, %v4946_v12 }
 0x216   : > { %v3401_v17 = vpop.eup %3400  ;;  %952 = vst [vmem:[%s4545_s17 + $0x3c0] sm:$0xff] %v904_v32  ;;  %v857_v50 = vadd.f32 1.0, %v3399_v20  ;;  %v1396_v24 = vmul.f32 0.70710677, %v4949_v14  ;;  %v618_v47 = vpop.f32.mrb[70].mxu0 }
 0x217   : > { %1584 = vst [vmem:[%s4545_s17 + $0x3c8] sm:$0xff] %v1536_v31  ;;  %v1489_v60 = vadd.f32 1.0, %v3401_v17  ;;  %3410 = verf.f32 %v764_v16  ;;  %v4958_v37 = vadd.f32 %v4808_v34, %v618_v47  ;;  %v1250_v58 = vpop.f32.mrb[70].mxu1  ;;  %v620_v56 = vpop.f32.mrb[71].mxu0  ;;  %1906 = vmatmul.mubr.f32.gmra.mrb[176].mxu0 %v3702_v11  ;;  %2538 = vmatmul.mubr.f32.gmra.mrb[176].mxu1 %v3702_v11  ;;  %v1348_v16 = vmul.f32 0.5, %v4949_v14  ;;  %v3708_v47 = vld [vmem:[#allocation2 + $0x2b0] sm:$0xff] }
 0x218   : > { %v905_v25 = vmul.f32 %v857_v50, %v713_v38  ;;  %3412 = verf.f32 %v1396_v24  ;;  %v4961_v10 = vadd.f32 %v4814_v28, %v1250_v58  ;;  %v1252_v22 = vpop.f32.mrb[71].mxu1  ;;  %1910 = vmatprep.mubr.f32.mxu0 %v3703_v57  ;;  %2542 = vmatprep.mubr.f32.mxu1 %v3703_v57  ;;  %v3709_v58 = vld [vmem:[#allocation2 + $0x2c8] sm:$0xff] }
 0x219   : > { %v3403_v63 = vpop.eup %3402  ;;  %v1537_v45 = vmul.f32 %v1489_v60, %v1345_v21  ;;  %v765_v8 = vmul.f32 0.70710677, %v4958_v37  ;;  %v717_v22 = vmul.f32 0.5, %v4958_v37 }
 0x21a   : > { %v3405_v61 = vpop.eup %3404  ;;  %953 = vst [vmem:[%s4545_s17 + $0x3e0] sm:$0xff] %v905_v25  ;;  %v858_v18 = vadd.f32 1.0, %v3403_v63  ;;  %v1397_v44 = vmul.f32 0.70710677, %v4961_v10  ;;  %v623_v35 = vpop.f32.mrb[72].mxu0 }
 0x21b   : > { %1585 = vst [vmem:[%s4545_s17 + $0x3e8] sm:$0xff] %v1537_v45  ;;  %v1490_v39 = vadd.f32 1.0, %v3405_v61  ;;  %3414 = verf.f32 %v765_v8  ;;  %v4970_v5 = vadd.f32 %v4808_v34, %v623_v35  ;;  %v1255_v55 = vpop.f32.mrb[72].mxu1  ;;  %v625_v52 = vpop.f32.mrb[73].mxu0  ;;  %1911 = vmatmul.mubr.f32.gmra.mrb[178].mxu0 %v3704_v2  ;;  %2543 = vmatmul.mubr.f32.gmra.mrb[178].mxu1 %v3704_v2  ;;  %v1349_v8 = vmul.f32 0.5, %v4961_v10  ;;  %v3710_v35 = vld [vmem:[#allocation2 + $0x2c0] sm:$0xff] }
 0x21c   : > { %v906_v42 = vmul.f32 %v858_v18, %v714_v3  ;;  %3416 = verf.f32 %v1397_v44  ;;  %v4973_v54 = vadd.f32 %v4814_v28, %v1255_v55  ;;  %v1257_v49 = vpop.f32.mrb[73].mxu1  ;;  %1915 = vmatprep.mubr.f32.mxu0 %v3705_v9  ;;  %2547 = vmatprep.mubr.f32.mxu1 %v3705_v9  ;;  %v3711_v55 = vld [vmem:[#allocation2 + $0x2d8] sm:$0xff] }
 0x21d   : > { %v3407_v40 = vpop.eup %3406  ;;  %v1538_v59 = vmul.f32 %v1490_v39, %v1346_v62  ;;  %v766_v27 = vmul.f32 0.70710677, %v4970_v5  ;;  %v718_v49 = vmul.f32 0.5, %v4970_v5 }
 0x21e   : > { %v3409_v51 = vpop.eup %3408  ;;  %954 = vst [vmem:[%s4545_s17 + $0x400] sm:$0xff] %v906_v42  ;;  %v859_v41 = vadd.f32 1.0, %v3407_v40  ;;  %v1398_v13 = vmul.f32 0.70710677, %v4973_v54  ;;  %v628_v0 = vpop.f32.mrb[74].mxu0 }
 0x21f   : > { %1586 = vst [vmem:[%s4545_s17 + $0x408] sm:$0xff] %v1538_v59  ;;  %v1491_v53 = vadd.f32 1.0, %v3409_v51  ;;  %3418 = verf.f32 %v766_v27  ;;  %v4982_v48 = vadd.f32 %v4808_v34, %v628_v0  ;;  %v1260_v29 = vpop.f32.mrb[74].mxu1  ;;  %v630_v43 = vpop.f32.mrb[75].mxu0  ;;  %1916 = vmatmul.mubr.f32.gmra.mrb[180].mxu0 %v3706_v33  ;;  %2548 = vmatmul.mubr.f32.gmra.mrb[180].mxu1 %v3706_v33  ;;  %v1350_v27 = vmul.f32 0.5, %v4973_v54  ;;  %v3712_v0 = vld [vmem:[#allocation2 + $0x2d0] sm:$0xff] }
 0x220   : > { %v907_v30 = vmul.f32 %v859_v41, %v715_v4  ;;  %3420 = verf.f32 %v1398_v13  ;;  %v4985_v26 = vadd.f32 %v4814_v28, %v1260_v29  ;;  %v1262_v46 = vpop.f32.mrb[75].mxu1  ;;  %1920 = vmatprep.mubr.f32.mxu0 %v3707_v7  ;;  %2552 = vmatprep.mubr.f32.mxu1 %v3707_v7  ;;  %v3713_v29 = vld [vmem:[#allocation2 + $0x2e8] sm:$0xff] }
 0x221   : > { %v3411_v15 = vpop.eup %3410  ;;  %v1539_v6 = vmul.f32 %v1491_v53, %v1347_v1  ;;  %v767_v23 = vmul.f32 0.70710677, %v4982_v48  ;;  %v719_v46 = vmul.f32 0.5, %v4982_v48 }
 0x222   : > { %v3413_v32 = vpop.eup %3412  ;;  %955 = vst [vmem:[%s4545_s17 + $0x420] sm:$0xff] %v907_v30  ;;  %v860_v19 = vadd.f32 1.0, %v3411_v15  ;;  %v1399_v20 = vmul.f32 0.70710677, %v4985_v26  ;;  %v633_v31 = vpop.f32.mrb[76].mxu0 }
 0x223   : > { %1587 = vst [vmem:[%s4545_s17 + $0x428] sm:$0xff] %v1539_v6  ;;  %v1492_v17 = vadd.f32 1.0, %v3413_v32  ;;  %3422 = verf.f32 %v767_v23  ;;  %v4994_v38 = vadd.f32 %v4808_v34, %v633_v31  ;;  %v1265_v50 = vpop.f32.mrb[76].mxu1  ;;  %v635_v24 = vpop.f32.mrb[77].mxu0  ;;  %1921 = vmatmul.mubr.f32.gmra.mrb[182].mxu0 %v3708_v47  ;;  %2553 = vmatmul.mubr.f32.gmra.mrb[182].mxu1 %v3708_v47  ;;  %v1351_v23 = vmul.f32 0.5, %v4985_v26  ;;  %v3714_v31 = vld [vmem:[#allocation2 + $0x2e0] sm:$0xff] }
 0x224   : > { %v908_v21 = vmul.f32 %v860_v19, %v716_v36  ;;  %3424 = verf.f32 %v1399_v20  ;;  %v4997_v12 = vadd.f32 %v4814_v28, %v1265_v50  ;;  %v1267_v60 = vpop.f32.mrb[77].mxu1  ;;  %1925 = vmatprep.mubr.f32.mxu0 %v3709_v58  ;;  %2557 = vmatprep.mubr.f32.mxu1 %v3709_v58  ;;  %v3715_v50 = vld [vmem:[#allocation2 + $0x2f8] sm:$0xff] }
 0x225   : > { %v3415_v14 = vpop.eup %3414  ;;  %v1540_v56 = vmul.f32 %v1492_v17, %v1348_v16  ;;  %v768_v11 = vmul.f32 0.70710677, %v4994_v38  ;;  %v720_v60 = vmul.f32 0.5, %v4994_v38 }
 0x226   : > { %v3417_v25 = vpop.eup %3416  ;;  %956 = vst [vmem:[%s4545_s17 + $0x440] sm:$0xff] %v908_v21  ;;  %v861_v57 = vadd.f32 1.0, %v3415_v14  ;;  %v1400_v63 = vmul.f32 0.70710677, %v4997_v12  ;;  %v638_v45 = vpop.f32.mrb[78].mxu0 }
 0x227   : > { %1588 = vst [vmem:[%s4545_s17 + $0x448] sm:$0xff] %v1540_v56  ;;  %v1493_v61 = vadd.f32 1.0, %v3417_v25  ;;  %3426 = verf.f32 %v768_v11  ;;  %v5006_v3 = vadd.f32 %v4808_v34, %v638_v45  ;;  %v1270_v18 = vpop.f32.mrb[78].mxu1  ;;  %v640_v44 = vpop.f32.mrb[79].mxu0  ;;  %1926 = vmatmul.mubr.f32.gmra.mrb[184].mxu0 %v3710_v35  ;;  %2558 = vmatmul.mubr.f32.gmra.mrb[184].mxu1 %v3710_v35  ;;  %v1352_v11 = vmul.f32 0.5, %v4997_v12  ;;  %v3716_v45 = vld [vmem:[#allocation2 + $0x2f0] sm:$0xff] }
 0x228   : > { %v909_v62 = vmul.f32 %v861_v57, %v717_v22  ;;  %3428 = verf.f32 %v1400_v63  ;;  %v5009_v37 = vadd.f32 %v4814_v28, %v1270_v18  ;;  %v1272_v39 = vpop.f32.mrb[79].mxu1  ;;  %1930 = vmatprep.mubr.f32.mxu0 %v3711_v55  ;;  %2562 = vmatprep.mubr.f32.mxu1 %v3711_v55 }
 0x229   : > { %v3419_v10 = vpop.eup %3418  ;;  %v1541_v52 = vmul.f32 %v1493_v61, %v1349_v8  ;;  %v769_v2 = vmul.f32 0.70710677, %v5006_v3 }
 0x22a   : > { %v3421_v42 = vpop.eup %3420  ;;  %957 = vst [vmem:[%s4545_s17 + $0x460] sm:$0xff] %v909_v62  ;;  %v862_v9 = vadd.f32 1.0, %v3419_v10  ;;  %v1401_v40 = vmul.f32 0.70710677, %v5009_v37  ;;  %v643_v59 = vpop.f32.mrb[80].mxu0  ;;  %v721_v62 = vmul.f32 0.5, %v5006_v3 }
 0x22b   : > { %1589 = vst [vmem:[%s4545_s17 + $0x468] sm:$0xff] %v1541_v52  ;;  %v1494_v51 = vadd.f32 1.0, %v3421_v42  ;;  %3430 = verf.f32 %v769_v2  ;;  %v5018_v4 = vadd.f32 %v4808_v34, %v643_v59  ;;  %v1275_v41 = vpop.f32.mrb[80].mxu1  ;;  %v645_v13 = vpop.f32.mrb[81].mxu0  ;;  %1931 = vmatmul.mubr.f32.gmra.mrb[186].mxu0 %v3712_v0  ;;  %2563 = vmatmul.mubr.f32.gmra.mrb[186].mxu1 %v3712_v0  ;;  %v1353_v52 = vmul.f32 0.5, %v5009_v37 }
 0x22c   : > { %v910_v1 = vmul.f32 %v862_v9, %v718_v49  ;;  %3432 = verf.f32 %v1401_v40  ;;  %v5021_v5 = vadd.f32 %v4814_v28, %v1275_v41  ;;  %v1277_v53 = vpop.f32.mrb[81].mxu1  ;;  %1935 = vmatprep.mubr.f32.mxu0 %v3713_v29  ;;  %2567 = vmatprep.mubr.f32.mxu1 %v3713_v29 }
 0x22d   : > { %v3423_v54 = vpop.eup %3422  ;;  %v1542_v43 = vmul.f32 %v1494_v51, %v1350_v27  ;;  %v770_v33 = vmul.f32 0.70710677, %v5018_v4  ;;  %v722_v37 = vmul.f32 0.5, %v5018_v4 }
 0x22e   : > { %v3425_v30 = vpop.eup %3424  ;;  %958 = vst [vmem:[%s4545_s17 + $0x480] sm:$0xff] %v910_v1  ;;  %v863_v7 = vadd.f32 1.0, %v3423_v54  ;;  %v1402_v15 = vmul.f32 0.70710677, %v5021_v5  ;;  %v648_v6 = vpop.f32.mrb[82].mxu0  ;;  %v1354_v29 = vmul.f32 0.5, %v5021_v5 }
 0x22f   : > { %1590 = vst [vmem:[%s4545_s17 + $0x488] sm:$0xff] %v1542_v43  ;;  %v1495_v32 = vadd.f32 1.0, %v3425_v30  ;;  %3434 = verf.f32 %v770_v33  ;;  %v5030_v36 = vadd.f32 %v4808_v34, %v648_v6  ;;  %v1280_v19 = vpop.f32.mrb[82].mxu1  ;;  %v650_v20 = vpop.f32.mrb[83].mxu0  ;;  %1936 = vmatmul.mubr.f32.gmra.mrb[188].mxu0 %v3714_v31  ;;  %2568 = vmatmul.mubr.f32.gmra.mrb[188].mxu1 %v3714_v31 }
 0x230   : > { %v911_v16 = vmul.f32 %v863_v7, %v719_v46  ;;  %3436 = verf.f32 %v1402_v15  ;;  %v5033_v48 = vadd.f32 %v4814_v28, %v1280_v19  ;;  %v1282_v17 = vpop.f32.mrb[83].mxu1  ;;  %1940 = vmatprep.mubr.f32.mxu0 %v3715_v50  ;;  %2572 = vmatprep.mubr.f32.mxu1 %v3715_v50 }
 0x231   : > { %v3427_v26 = vpop.eup %3426  ;;  %v1543_v24 = vmul.f32 %v1495_v32, %v1351_v23  ;;  %v771_v47 = vmul.f32 0.70710677, %v5030_v36 }
 0x232   : > { %v3429_v21 = vpop.eup %3428  ;;  %959 = vst [vmem:[%s4545_s17 + $0x4a0] sm:$0xff] %v911_v16  ;;  %v864_v58 = vadd.f32 1.0, %v3427_v26  ;;  %v1403_v14 = vmul.f32 0.70710677, %v5033_v48  ;;  %v653_v56 = vpop.f32.mrb[84].mxu0  ;;  %v1355_v31 = vmul.f32 0.5, %v5033_v48 }
 0x233   : > { %1591 = vst [vmem:[%s4545_s17 + $0x4a8] sm:$0xff] %v1543_v24  ;;  %v1496_v25 = vadd.f32 1.0, %v3429_v21  ;;  %3438 = verf.f32 %v771_v47  ;;  %v5042_v22 = vadd.f32 %v4808_v34, %v653_v56  ;;  %v1285_v57 = vpop.f32.mrb[84].mxu1  ;;  %v655_v63 = vpop.f32.mrb[85].mxu0  ;;  %1941 = vmatmul.mubr.f32.gmra.mrb[190].mxu0 %v3716_v45  ;;  %2573 = vmatmul.mubr.f32.gmra.mrb[190].mxu1 %v3716_v45  ;;  %v3717_v16 = vld [vmem:[%s4479_s27] ss:$0 sm:$0xff] }
 0x234   : > { %v912_v8 = vmul.f32 %v864_v58, %v720_v60  ;;  %3440 = verf.f32 %v1403_v14  ;;  %v5045_v38 = vadd.f32 %v4814_v28, %v1285_v57  ;;  %v1287_v61 = vpop.f32.mrb[85].mxu1  ;;  %v3718_v47 = vld [vmem:[%s4479_s27 + $0x1] ss:$0 sm:$0xff] }
 0x235   : > { %v3431_v18 = vpop.eup %3430  ;;  %v1544_v12 = vmul.f32 %v1496_v25, %v1352_v11  ;;  %v772_v44 = vmul.f32 0.70710677, %v5042_v22  ;;  %v724_v56 = vmul.f32 0.5, %v5042_v22 }
 0x236   : > { %v3433_v35 = vpop.eup %3432  ;;  %960 = vst [vmem:[%s4545_s17 + $0x4c0] sm:$0xff] %v912_v8  ;;  %v865_v39 = vadd.f32 1.0, %v3431_v18  ;;  %v1404_v55 = vmul.f32 0.70710677, %v5045_v38  ;;  %v658_v10 = vpop.f32.mrb[86].mxu0  ;;  %v1356_v63 = vmul.f32 0.5, %v5045_v38 }
 0x237   : > { %1592 = vst [vmem:[%s4545_s17 + $0x4c8] sm:$0xff] %v1544_v12  ;;  %v1497_v2 = vadd.f32 1.0, %v3433_v35  ;;  %3442 = verf.f32 %v772_v44  ;;  %v5054_v42 = vadd.f32 %v4808_v34, %v658_v10  ;;  %v1290_v49 = vpop.f32.mrb[86].mxu1  ;;  %v660_v9 = vpop.f32.mrb[87].mxu0 }
 0x238   : > { %v913_v40 = vmul.f32 %v865_v39, %v721_v62  ;;  %3444 = verf.f32 %v1404_v55  ;;  %v5057_v3 = vadd.f32 %v4814_v28, %v1290_v49  ;;  %v1292_v59 = vpop.f32.mrb[87].mxu1 }
 0x239   : > { %v3435_v27 = vpop.eup %3434  ;;  %v1545_v51 = vmul.f32 %v1497_v2, %v1353_v52  ;;  %v773_v41 = vmul.f32 0.70710677, %v5054_v42  ;;  %v725_v38 = vmul.f32 0.5, %v5054_v42 }
 0x23a   : > { %v3437_v13 = vpop.eup %3436  ;;  %961 = vst [vmem:[%s4545_s17 + $0x4e0] sm:$0xff] %v913_v40  ;;  %v866_v0 = vadd.f32 1.0, %v3435_v27  ;;  %v1405_v1 = vmul.f32 0.70710677, %v5057_v3  ;;  %v663_v53 = vpop.f32.mrb[88].mxu0  ;;  %v1357_v49 = vmul.f32 0.5, %v5057_v3 }
 0x23b   : > { %1593 = vst [vmem:[%s4545_s17 + $0x4e8] sm:$0xff] %v1545_v51  ;;  %v1498_v54 = vadd.f32 1.0, %v3437_v13  ;;  %3446 = verf.f32 %v773_v41  ;;  %v5066_v43 = vadd.f32 %v4808_v34, %v663_v53  ;;  %v1295_v33 = vpop.f32.mrb[88].mxu1  ;;  %v665_v30 = vpop.f32.mrb[89].mxu0  ;;  %v723_v34 = vmul.f32 0.5, %v5030_v36 }
 0x23c   : > { %v914_v46 = vmul.f32 %v866_v0, %v722_v37  ;;  %3448 = verf.f32 %v1405_v1  ;;  %v5069_v4 = vadd.f32 %v4814_v28, %v1295_v33  ;;  %v1297_v7 = vpop.f32.mrb[89].mxu1  ;;  %v5104_v13 = vld [vmem:[%s4479_s27 + $0x2] ss:$0 sm:$0xff]  ;;  %v5108_v3 = vld [vmem:[%s4479_s27 + $0x3] ss:$0 sm:$0xff] }
 0x23d   : > { %v3439_v15 = vpop.eup %3438  ;;  %v1546_v6 = vmul.f32 %v1498_v54, %v1354_v29  ;;  %v774_v23 = vmul.f32 0.70710677, %v5066_v43  ;;  %v726_v29 = vmul.f32 0.5, %v5066_v43 }
 0x23e   : > { %v3441_v5 = vpop.eup %3440  ;;  %962 = vst [vmem:[%s4545_s17 + $0x500] sm:$0xff] %v914_v46  ;;  %v867_v32 = vadd.f32 1.0, %v3439_v15  ;;  %v1406_v19 = vmul.f32 0.70710677, %v5069_v4  ;;  %v668_v20 = vpop.f32.mrb[90].mxu0  ;;  %v1358_v46 = vmul.f32 0.5, %v5069_v4 }
 0x23f   : > { %1594 = vst [vmem:[%s4545_s17 + $0x508] sm:$0xff] %v1546_v6  ;;  %v1499_v28 = vadd.f32 1.0, %v3441_v5  ;;  %3450 = verf.f32 %v774_v23  ;;  %v5078_v17 = vadd.f32 %v3717_v16, %v668_v20  ;;  %v1300_v50 = vpop.f32.mrb[90].mxu1  ;;  %v670_v26 = vpop.f32.mrb[91].mxu0 }
 0x240   : > { %v915_v24 = vmul.f32 %v867_v32, %v723_v34  ;;  %3452 = verf.f32 %v1406_v19  ;;  %v5081_v36 = vadd.f32 %v3718_v47, %v1300_v50  ;;  %v1302_v21 = vpop.f32.mrb[91].mxu1 }
 0x241   : > { %v3443_v60 = vpop.eup %3442  ;;  %v1547_v58 = vmul.f32 %v1499_v28, %v1355_v31  ;;  %v775_v14 = vmul.f32 0.70710677, %v5078_v17  ;;  %v727_v4 = vmul.f32 0.5, %v5078_v17 }
 0x242   : > { %v3445_v48 = vpop.eup %3444  ;;  %963 = vst [vmem:[%s4545_s17 + $0x520] sm:$0xff] %v915_v24  ;;  %v868_v11 = vadd.f32 1.0, %v3443_v60  ;;  %v1407_v25 = vmul.f32 0.70710677, %v5081_v36  ;;  %v673_v57 = vpop.f32.mrb[92].mxu0  ;;  %v1359_v26 = vmul.f32 0.5, %v5081_v36 }
 0x243   : > { %1595 = vst [vmem:[%s4545_s17 + $0x528] sm:$0xff] %v1547_v58  ;;  %v1500_v45 = vadd.f32 1.0, %v3445_v48  ;;  %3454 = verf.f32 %v775_v14  ;;  %v5089_v8 = vadd.f32 %v3717_v16, %v673_v57  ;;  %v1305_v61 = vpop.f32.mrb[92].mxu1  ;;  %v675_v18 = vpop.f32.mrb[93].mxu0 }
 0x244   : > { %v916_v12 = vmul.f32 %v868_v11, %v724_v56  ;;  %3456 = verf.f32 %v1407_v25  ;;  %v5091_v44 = vadd.f32 %v3718_v47, %v1305_v61  ;;  %v1307_v22 = vpop.f32.mrb[93].mxu1 }
 0x245   : > { %v3447_v35 = vpop.eup %3446  ;;  %v1548_v62 = vmul.f32 %v1500_v45, %v1356_v63  ;;  %v776_v39 = vmul.f32 0.70710677, %v5089_v8  ;;  %v728_v36 = vmul.f32 0.5, %v5089_v8 }
 0x246   : > { %v3449_v55 = vpop.eup %3448  ;;  %964 = vst [vmem:[%s4545_s17 + $0x540] sm:$0xff] %v916_v12  ;;  %v869_v10 = vadd.f32 1.0, %v3447_v35  ;;  %v1408_v52 = vmul.f32 0.70710677, %v5091_v44  ;;  %v678_v2 = vpop.f32.mrb[94].mxu0  ;;  %v1360_v61 = vmul.f32 0.5, %v5091_v44 }
 0x247   : > { %1596 = vst [vmem:[%s4545_s17 + $0x548] sm:$0xff] %v1548_v62  ;;  %v1501_v9 = vadd.f32 1.0, %v3449_v55  ;;  %3458 = verf.f32 %v776_v39  ;;  %v5099_v40 = vadd.f32 %v3717_v16, %v678_v2  ;;  %v1310_v59 = vpop.f32.mrb[94].mxu1  ;;  %v680_v27 = vpop.f32.mrb[95].mxu0 }
 0x248   : > { %v917_v51 = vmul.f32 %v869_v10, %v725_v38  ;;  %3460 = verf.f32 %v1408_v52  ;;  %v5101_v41 = vadd.f32 %v3718_v47, %v1310_v59  ;;  %v1312_v42 = vpop.f32.mrb[95].mxu1 }
 0x249   : > { %v3451_v37 = vpop.eup %3450  ;;  %v1549_v0 = vmul.f32 %v1501_v9, %v1357_v49  ;;  %v777_v1 = vmul.f32 0.70710677, %v5099_v40  ;;  %v729_v44 = vmul.f32 0.5, %v5099_v40 }
 0x24a   : > { %v3453_v53 = vpop.eup %3452  ;;  %965 = vst [vmem:[%s4545_s17 + $0x560] sm:$0xff] %v917_v51  ;;  %v870_v54 = vadd.f32 1.0, %v3451_v37  ;;  %v1409_v33 = vmul.f32 0.70710677, %v5101_v41  ;;  %v1707_v30 = vpop.f32.mrb[96].mxu0  ;;  %v1361_v59 = vmul.f32 0.5, %v5101_v41 }
 0x24b   : > { %1597 = vst [vmem:[%s4545_s17 + $0x568] sm:$0xff] %v1549_v0  ;;  %v1502_v7 = vadd.f32 1.0, %v3453_v53  ;;  %3462 = verf.f32 %v777_v1  ;;  %v5116_v15 = vadd.f32 %v5104_v13, %v1707_v30  ;;  %v2339_v6 = vpop.f32.mrb[96].mxu1  ;;  %v1709_v23 = vpop.f32.mrb[97].mxu0 }
 0x24c   : > { %v918_v5 = vmul.f32 %v870_v54, %v726_v29  ;;  %3464 = verf.f32 %v1409_v33  ;;  %v5119_v43 = vadd.f32 %v5108_v3, %v2339_v6  ;;  %v2341_v34 = vpop.f32.mrb[97].mxu1 }
 0x24d   : > { %v3455_v32 = vpop.eup %3454  ;;  %v1550_v19 = vmul.f32 %v1502_v7, %v1358_v46  ;;  %v1994_v20 = vmul.f32 0.70710677, %v5116_v15  ;;  %v1946_v41 = vmul.f32 0.5, %v5116_v15 }
 0x24e   : > { %v3457_v31 = vpop.eup %3456  ;;  %966 = vst [vmem:[%s4545_s17 + $0x580] sm:$0xff] %v918_v5  ;;  %v871_v28 = vadd.f32 1.0, %v3455_v32  ;;  %v2626_v16 = vmul.f32 0.70710677, %v5119_v43  ;;  %v1712_v50 = vpop.f32.mrb[98].mxu0  ;;  %v2578_v6 = vmul.f32 0.5, %v5119_v43 }
 0x24f   : > { %1598 = vst [vmem:[%s4545_s17 + $0x588] sm:$0xff] %v1550_v19  ;;  %v1503_v24 = vadd.f32 1.0, %v3457_v31  ;;  %3466 = verf.f32 %v1994_v20  ;;  %v5128_v47 = vadd.f32 %v5104_v13, %v1712_v50  ;;  %v2344_v21 = vpop.f32.mrb[98].mxu1  ;;  %v1714_v60 = vpop.f32.mrb[99].mxu0 }
 0x250   : > { %v919_v58 = vmul.f32 %v871_v28, %v727_v4  ;;  %3468 = verf.f32 %v2626_v16  ;;  %v5131_v17 = vadd.f32 %v5108_v3, %v2344_v21  ;;  %v2346_v14 = vpop.f32.mrb[99].mxu1 }
 0x251   : > { %v3459_v48 = vpop.eup %3458  ;;  %v1551_v56 = vmul.f32 %v1503_v24, %v1359_v26  ;;  %v1995_v11 = vmul.f32 0.70710677, %v5128_v47  ;;  %v1947_v43 = vmul.f32 0.5, %v5128_v47 }
 0x252   : > { %v3461_v25 = vpop.eup %3460  ;;  %967 = vst [vmem:[%s4545_s17 + $0x5a0] sm:$0xff] %v919_v58  ;;  %v872_v57 = vadd.f32 1.0, %v3459_v48  ;;  %v2627_v63 = vmul.f32 0.70710677, %v5131_v17  ;;  %v1717_v45 = vpop.f32.mrb[100].mxu0  ;;  %v2579_v21 = vmul.f32 0.5, %v5131_v17 }
 0x253   : > { %1599 = vst [vmem:[%s4545_s17 + $0x5a8] sm:$0xff] %v1551_v56  ;;  %v1504_v18 = vadd.f32 1.0, %v3461_v25  ;;  %3470 = verf.f32 %v1995_v11  ;;  %v5140_v12 = vadd.f32 %v5104_v13, %v1717_v45  ;;  %v2349_v22 = vpop.f32.mrb[100].mxu1  ;;  %v1719_v35 = vpop.f32.mrb[101].mxu0 }
 0x254   : > { %v920_v62 = vmul.f32 %v872_v57, %v728_v36  ;;  %3472 = verf.f32 %v2627_v63  ;;  %v5143_v8 = vadd.f32 %v5108_v3, %v2349_v22  ;;  %v2351_v39 = vpop.f32.mrb[101].mxu1 }
 0x255   : > { %v3463_v55 = vpop.eup %3462  ;;  %v1552_v38 = vmul.f32 %v1504_v18, %v1360_v61  ;;  %v1996_v10 = vmul.f32 0.70710677, %v5140_v12  ;;  %v1948_v17 = vmul.f32 0.5, %v5140_v12 }
 0x256   : > { %v3465_v52 = vpop.eup %3464  ;;  %968 = vst [vmem:[%s4545_s17 + $0x5c0] sm:$0xff] %v920_v62  ;;  %v873_v2 = vadd.f32 1.0, %v3463_v55  ;;  %v2628_v49 = vmul.f32 0.70710677, %v5143_v8  ;;  %v1722_v9 = vpop.f32.mrb[102].mxu0  ;;  %v2580_v22 = vmul.f32 0.5, %v5143_v8 }
 0x257   : > { %1600 = vst [vmem:[%s4545_s17 + $0x5c8] sm:$0xff] %v1552_v38  ;;  %v1505_v27 = vadd.f32 1.0, %v3465_v52  ;;  %3474 = verf.f32 %v1996_v10  ;;  %v5152_v51 = vadd.f32 %v5104_v13, %v1722_v9  ;;  %v2354_v42 = vpop.f32.mrb[102].mxu1  ;;  %v1724_v37 = vpop.f32.mrb[103].mxu0 }
 0x258   : > { %v921_v0 = vmul.f32 %v873_v2, %v729_v44  ;;  %3476 = verf.f32 %v2628_v49  ;;  %v5155_v40 = vadd.f32 %v5108_v3, %v2354_v42  ;;  %v2356_v1 = vpop.f32.mrb[103].mxu1 }
 0x259   : > { %v3467_v53 = vpop.eup %3466  ;;  %v1553_v29 = vmul.f32 %v1505_v27, %v1361_v59  ;;  %v1997_v54 = vmul.f32 0.70710677, %v5152_v51  ;;  %v1949_v8 = vmul.f32 0.5, %v5152_v51 }
 0x25a   : > { %v3469_v33 = vpop.eup %3468  ;;  %969 = vst [vmem:[%s4545_s17 + $0x5e0] sm:$0xff] %v921_v0  ;;  %v2090_v30 = vadd.f32 1.0, %v3467_v53  ;;  %v2629_v46 = vmul.f32 0.70710677, %v5155_v40  ;;  %v1727_v7 = vpop.f32.mrb[104].mxu0  ;;  %v2581_v42 = vmul.f32 0.5, %v5155_v40 }
 0x25b   : > { %1601 = vst [vmem:[%s4545_s17 + $0x5e8] sm:$0xff] %v1553_v29  ;;  %v2722_v23 = vadd.f32 1.0, %v3469_v33  ;;  %3478 = verf.f32 %v1997_v54  ;;  %v5164_v5 = vadd.f32 %v5104_v13, %v1727_v7  ;;  %v2359_v34 = vpop.f32.mrb[104].mxu1  ;;  %v1729_v32 = vpop.f32.mrb[105].mxu0 }
 0x25c   : > { %v2138_v19 = vmul.f32 %v2090_v30, %v1946_v41  ;;  %3480 = verf.f32 %v2629_v46  ;;  %v5167_v15 = vadd.f32 %v5108_v3, %v2359_v34  ;;  %v2361_v20 = vpop.f32.mrb[105].mxu1 }
 0x25d   : > { %v3471_v31 = vpop.eup %3470  ;;  %v2770_v4 = vmul.f32 %v2722_v23, %v2578_v6  ;;  %v1998_v28 = vmul.f32 0.70710677, %v5164_v5  ;;  %v1950_v40 = vmul.f32 0.5, %v5164_v5 }
 0x25e   : > { %v3473_v16 = vpop.eup %3472  ;;  %2186 = vst [vmem:[%s4545_s17 + $0x10] sm:$0xff] %v2138_v19  ;;  %v2091_v50 = vadd.f32 1.0, %v3471_v31  ;;  %v2630_v26 = vmul.f32 0.70710677, %v5167_v15  ;;  %v1732_v24 = vpop.f32.mrb[106].mxu0  ;;  %v2582_v34 = vmul.f32 0.5, %v5167_v15 }
 0x25f   : > { %2818 = vst [vmem:[%s4545_s17 + $0x18] sm:$0xff] %v2770_v4  ;;  %v2723_v60 = vadd.f32 1.0, %v3473_v16  ;;  %3482 = verf.f32 %v1998_v28  ;;  %v5176_v58 = vadd.f32 %v5104_v13, %v1732_v24  ;;  %v2364_v14 = vpop.f32.mrb[106].mxu1  ;;  %v1734_v48 = vpop.f32.mrb[107].mxu0 }
 0x260   : > { %v2139_v56 = vmul.f32 %v2091_v50, %v1947_v43  ;;  %3484 = verf.f32 %v2630_v26  ;;  %v5179_v47 = vadd.f32 %v5108_v3, %v2364_v14  ;;  %v2366_v11 = vpop.f32.mrb[107].mxu1 }
 0x261   : > { %v3475_v25 = vpop.eup %3474  ;;  %v2771_v36 = vmul.f32 %v2723_v60, %v2579_v21  ;;  %v1999_v57 = vmul.f32 0.70710677, %v5176_v58  ;;  %v1951_v15 = vmul.f32 0.5, %v5176_v58 }
 0x262   : > { %v3477_v63 = vpop.eup %3476  ;;  %2187 = vst [vmem:[%s4545_s17 + $0x30] sm:$0xff] %v2139_v56  ;;  %v2092_v45 = vadd.f32 1.0, %v3475_v25  ;;  %v2631_v61 = vmul.f32 0.70710677, %v5179_v47  ;;  %v1737_v18 = vpop.f32.mrb[108].mxu0  ;;  %v2583_v14 = vmul.f32 0.5, %v5179_v47 }
 0x263   : > { %2819 = vst [vmem:[%s4545_s17 + $0x38] sm:$0xff] %v2771_v36  ;;  %v2724_v35 = vadd.f32 1.0, %v3477_v63  ;;  %3486 = verf.f32 %v1999_v57  ;;  %v5188_v62 = vadd.f32 %v5104_v13, %v1737_v18  ;;  %v2369_v39 = vpop.f32.mrb[108].mxu1  ;;  %v1739_v55 = vpop.f32.mrb[109].mxu0 }
 0x264   : > { %v2140_v38 = vmul.f32 %v2092_v45, %v1948_v17  ;;  %3488 = verf.f32 %v2631_v61  ;;  %v5191_v12 = vadd.f32 %v5108_v3, %v2369_v39  ;;  %v2371_v10 = vpop.f32.mrb[109].mxu1 }
 0x265   : > { %v3479_v52 = vpop.eup %3478  ;;  %v2772_v44 = vmul.f32 %v2724_v35, %v2580_v22  ;;  %v2000_v2 = vmul.f32 0.70710677, %v5188_v62  ;;  %v1952_v47 = vmul.f32 0.5, %v5188_v62 }
 0x266   : > { %v3481_v49 = vpop.eup %3480  ;;  %2188 = vst [vmem:[%s4545_s17 + $0x50] sm:$0xff] %v2140_v38  ;;  %v2093_v9 = vadd.f32 1.0, %v3479_v52  ;;  %v2632_v59 = vmul.f32 0.70710677, %v5191_v12  ;;  %v1742_v27 = vpop.f32.mrb[110].mxu0  ;;  %v2584_v39 = vmul.f32 0.5, %v5191_v12 }
 0x267   : > { %2820 = vst [vmem:[%s4545_s17 + $0x58] sm:$0xff] %v2772_v44  ;;  %v2725_v37 = vadd.f32 1.0, %v3481_v49  ;;  %3490 = verf.f32 %v2000_v2  ;;  %v5200_v0 = vadd.f32 %v5104_v13, %v1742_v27  ;;  %v2374_v1 = vpop.f32.mrb[110].mxu1  ;;  %v1744_v53 = vpop.f32.mrb[111].mxu0 }
 0x268   : > { %v2141_v29 = vmul.f32 %v2093_v9, %v1949_v8  ;;  %3492 = verf.f32 %v2632_v59  ;;  %v5203_v51 = vadd.f32 %v5108_v3, %v2374_v1  ;;  %v2376_v54 = vpop.f32.mrb[111].mxu1 }
 0x269   : > { %v3483_v33 = vpop.eup %3482  ;;  %v2773_v41 = vmul.f32 %v2725_v37, %v2581_v42  ;;  %v2001_v30 = vmul.f32 0.70710677, %v5200_v0  ;;  %v1953_v12 = vmul.f32 0.5, %v5200_v0 }
 0x26a   : > { %v3485_v46 = vpop.eup %3484  ;;  %2189 = vst [vmem:[%s4545_s17 + $0x70] sm:$0xff] %v2141_v29  ;;  %v2094_v7 = vadd.f32 1.0, %v3483_v33  ;;  %v2633_v6 = vmul.f32 0.70710677, %v5203_v51  ;;  %v1747_v23 = vpop.f32.mrb[112].mxu0  ;;  %v2585_v1 = vmul.f32 0.5, %v5203_v51 }
 0x26b   : > { %2821 = vst [vmem:[%s4545_s17 + $0x78] sm:$0xff] %v2773_v41  ;;  %v2726_v32 = vadd.f32 1.0, %v3485_v46  ;;  %3494 = verf.f32 %v2001_v30  ;;  %v5212_v19 = vadd.f32 %v5104_v13, %v1747_v23  ;;  %v2379_v20 = vpop.f32.mrb[112].mxu1  ;;  %v1749_v31 = vpop.f32.mrb[113].mxu0 }
 0x26c   : > { %v2142_v4 = vmul.f32 %v2094_v7, %v1950_v40  ;;  %3496 = verf.f32 %v2633_v6  ;;  %v5215_v5 = vadd.f32 %v5108_v3, %v2379_v20  ;;  %v2381_v28 = vpop.f32.mrb[113].mxu1 }
 0x26d   : > { %v3487_v16 = vpop.eup %3486  ;;  %v2774_v43 = vmul.f32 %v2726_v32, %v2582_v34  ;;  %v2002_v50 = vmul.f32 0.70710677, %v5212_v19  ;;  %v1954_v51 = vmul.f32 0.5, %v5212_v19 }
 0x26e   : > { %v3489_v26 = vpop.eup %3488  ;;  %2190 = vst [vmem:[%s4545_s17 + $0x90] sm:$0xff] %v2142_v4  ;;  %v2095_v24 = vadd.f32 1.0, %v3487_v16  ;;  %v2634_v21 = vmul.f32 0.70710677, %v5215_v5  ;;  %v1752_v60 = vpop.f32.mrb[114].mxu0  ;;  %v2586_v20 = vmul.f32 0.5, %v5215_v5 }
 0x26f   : > { %2822 = vst [vmem:[%s4545_s17 + $0x98] sm:$0xff] %v2774_v43  ;;  %v2727_v48 = vadd.f32 1.0, %v3489_v26  ;;  %3498 = verf.f32 %v2002_v50  ;;  %v5224_v56 = vadd.f32 %v5104_v13, %v1752_v60  ;;  %v2384_v11 = vpop.f32.mrb[114].mxu1  ;;  %v1754_v25 = vpop.f32.mrb[115].mxu0 }
 0x270   : > { %v2143_v36 = vmul.f32 %v2095_v24, %v1951_v15  ;;  %3500 = verf.f32 %v2634_v21  ;;  %v5227_v58 = vadd.f32 %v5108_v3, %v2384_v11  ;;  %v2386_v57 = vpop.f32.mrb[115].mxu1 }
 0x271   : > { %v3491_v63 = vpop.eup %3490  ;;  %v2775_v17 = vmul.f32 %v2727_v48, %v2583_v14  ;;  %v2003_v45 = vmul.f32 0.70710677, %v5224_v56  ;;  %v1955_v5 = vmul.f32 0.5, %v5224_v56 }
 0x272   : > { %v3493_v61 = vpop.eup %3492  ;;  %2191 = vst [vmem:[%s4545_s17 + $0xb0] sm:$0xff] %v2143_v36  ;;  %v2096_v18 = vadd.f32 1.0, %v3491_v63  ;;  %v2635_v22 = vmul.f32 0.70710677, %v5227_v58  ;;  %v1757_v35 = vpop.f32.mrb[116].mxu0  ;;  %v2587_v11 = vmul.f32 0.5, %v5227_v58 }
 0x273   : > { %2823 = vst [vmem:[%s4545_s17 + $0xb8] sm:$0xff] %v2775_v17  ;;  %v2728_v55 = vadd.f32 1.0, %v3493_v61  ;;  %3502 = verf.f32 %v2003_v45  ;;  %v5236_v38 = vadd.f32 %v5104_v13, %v1757_v35  ;;  %v2389_v10 = vpop.f32.mrb[116].mxu1  ;;  %v1759_v52 = vpop.f32.mrb[117].mxu0 }
 0x274   : > { %v2144_v44 = vmul.f32 %v2096_v18, %v1952_v47  ;;  %3504 = verf.f32 %v2635_v22  ;;  %v5239_v62 = vadd.f32 %v5108_v3, %v2389_v10  ;;  %v2391_v2 = vpop.f32.mrb[117].mxu1 }
 0x275   : > { %v3495_v49 = vpop.eup %3494  ;;  %v2776_v8 = vmul.f32 %v2728_v55, %v2584_v39  ;;  %v2004_v9 = vmul.f32 0.70710677, %v5236_v38  ;;  %v1956_v58 = vmul.f32 0.5, %v5236_v38 }
 0x276   : > { %v3497_v59 = vpop.eup %3496  ;;  %2192 = vst [vmem:[%s4545_s17 + $0xd0] sm:$0xff] %v2144_v44  ;;  %v2097_v27 = vadd.f32 1.0, %v3495_v49  ;;  %v2636_v42 = vmul.f32 0.70710677, %v5239_v62  ;;  %v1762_v37 = vpop.f32.mrb[118].mxu0  ;;  %v2588_v10 = vmul.f32 0.5, %v5239_v62 }
 0x277   : > { %2824 = vst [vmem:[%s4545_s17 + $0xd8] sm:$0xff] %v2776_v8  ;;  %v2729_v53 = vadd.f32 1.0, %v3497_v59  ;;  %3506 = verf.f32 %v2004_v9  ;;  %v5248_v29 = vadd.f32 %v5104_v13, %v1762_v37  ;;  %v2394_v54 = vpop.f32.mrb[118].mxu1  ;;  %v1764_v33 = vpop.f32.mrb[119].mxu0 }
 0x278   : > { %v2145_v41 = vmul.f32 %v2097_v27, %v1953_v12  ;;  %3508 = verf.f32 %v2636_v42  ;;  %v5251_v0 = vadd.f32 %v5108_v3, %v2394_v54  ;;  %v2396_v30 = vpop.f32.mrb[119].mxu1 }
 0x279   : > { %v3499_v46 = vpop.eup %3498  ;;  %v2777_v40 = vmul.f32 %v2729_v53, %v2585_v1  ;;  %v2005_v7 = vmul.f32 0.70710677, %v5248_v29  ;;  %v1957_v62 = vmul.f32 0.5, %v5248_v29 }
 0x27a   : > { %v3501_v6 = vpop.eup %3500  ;;  %2193 = vst [vmem:[%s4545_s17 + $0xf0] sm:$0xff] %v2145_v41  ;;  %v2098_v23 = vadd.f32 1.0, %v3499_v46  ;;  %v2637_v34 = vmul.f32 0.70710677, %v5251_v0  ;;  %v1767_v32 = vpop.f32.mrb[120].mxu0  ;;  %v2589_v54 = vmul.f32 0.5, %v5251_v0 }
 0x27b   : > { %2825 = vst [vmem:[%s4545_s17 + $0xf8] sm:$0xff] %v2777_v40  ;;  %v2730_v31 = vadd.f32 1.0, %v3501_v6  ;;  %3510 = verf.f32 %v2005_v7  ;;  %v5260_v4 = vadd.f32 %v5104_v13, %v1767_v32  ;;  %v2399_v28 = vpop.f32.mrb[120].mxu1  ;;  %v1769_v16 = vpop.f32.mrb[121].mxu0 }
 0x27c   : > { %v2146_v43 = vmul.f32 %v2098_v23, %v1954_v51  ;;  %3512 = verf.f32 %v2637_v34  ;;  %v5263_v19 = vadd.f32 %v5108_v3, %v2399_v28  ;;  %v2401_v50 = vpop.f32.mrb[121].mxu1 }
 0x27d   : > { %v3503_v26 = vpop.eup %3502  ;;  %v2778_v15 = vmul.f32 %v2730_v31, %v2586_v20  ;;  %v2006_v24 = vmul.f32 0.70710677, %v5260_v4  ;;  %v1958_v0 = vmul.f32 0.5, %v5260_v4 }
 0x27e   : > { %v3505_v21 = vpop.eup %3504  ;;  %2194 = vst [vmem:[%s4545_s17 + $0x110] sm:$0xff] %v2146_v43  ;;  %v2099_v60 = vadd.f32 1.0, %v3503_v26  ;;  %v2638_v14 = vmul.f32 0.70710677, %v5263_v19  ;;  %v1772_v48 = vpop.f32.mrb[122].mxu0  ;;  %v2590_v28 = vmul.f32 0.5, %v5263_v19 }
 0x27f   : > { %2826 = vst [vmem:[%s4545_s17 + $0x118] sm:$0xff] %v2778_v15  ;;  %v2731_v25 = vadd.f32 1.0, %v3505_v21  ;;  %3514 = verf.f32 %v2006_v24  ;;  %v5272_v36 = vadd.f32 %v5104_v13, %v1772_v48  ;;  %v2404_v57 = vpop.f32.mrb[122].mxu1  ;;  %v1774_v63 = vpop.f32.mrb[123].mxu0 }
 0x280   : > { %v2147_v17 = vmul.f32 %v2099_v60, %v1955_v5  ;;  %3516 = verf.f32 %v2638_v14  ;;  %v5275_v56 = vadd.f32 %v5108_v3, %v2404_v57  ;;  %v2406_v45 = vpop.f32.mrb[123].mxu1 }
 0x281   : > { %v3507_v61 = vpop.eup %3506  ;;  %v2779_v47 = vmul.f32 %v2731_v25, %v2587_v11  ;;  %v2007_v18 = vmul.f32 0.70710677, %v5272_v36  ;;  %v1959_v19 = vmul.f32 0.5, %v5272_v36 }
 0x282   : > { %v3509_v22 = vpop.eup %3508  ;;  %2195 = vst [vmem:[%s4545_s17 + $0x130] sm:$0xff] %v2147_v17  ;;  %v2100_v35 = vadd.f32 1.0, %v3507_v61  ;;  %v2639_v39 = vmul.f32 0.70710677, %v5275_v56  ;;  %v1777_v55 = vpop.f32.mrb[124].mxu0  ;;  %v2591_v57 = vmul.f32 0.5, %v5275_v56 }
 0x283   : > { %2827 = vst [vmem:[%s4545_s17 + $0x138] sm:$0xff] %v2779_v47  ;;  %v2732_v52 = vadd.f32 1.0, %v3509_v22  ;;  %3518 = verf.f32 %v2007_v18  ;;  %v5284_v44 = vadd.f32 %v5104_v13, %v1777_v55  ;;  %v2409_v2 = vpop.f32.mrb[124].mxu1  ;;  %v1779_v49 = vpop.f32.mrb[125].mxu0 }
 0x284   : > { %v2148_v8 = vmul.f32 %v2100_v35, %v1956_v58  ;;  %3520 = verf.f32 %v2639_v39  ;;  %v5287_v38 = vadd.f32 %v5108_v3, %v2409_v2  ;;  %v2411_v9 = vpop.f32.mrb[125].mxu1 }
 0x285   : > { %v3511_v59 = vpop.eup %3510  ;;  %v2780_v12 = vmul.f32 %v2732_v52, %v2588_v10  ;;  %v2008_v27 = vmul.f32 0.70710677, %v5284_v44  ;;  %v1960_v56 = vmul.f32 0.5, %v5284_v44 }
 0x286   : > { %v3513_v42 = vpop.eup %3512  ;;  %2196 = vst [vmem:[%s4545_s17 + $0x150] sm:$0xff] %v2148_v8  ;;  %v2101_v37 = vadd.f32 1.0, %v3511_v59  ;;  %v2640_v1 = vmul.f32 0.70710677, %v5287_v38  ;;  %v1782_v53 = vpop.f32.mrb[126].mxu0  ;;  %v2592_v2 = vmul.f32 0.5, %v5287_v38 }
 0x287   : > { %2828 = vst [vmem:[%s4545_s17 + $0x158] sm:$0xff] %v2780_v12  ;;  %v2733_v33 = vadd.f32 1.0, %v3513_v42  ;;  %3522 = verf.f32 %v2008_v27  ;;  %v5296_v41 = vadd.f32 %v5104_v13, %v1782_v53  ;;  %v2414_v30 = vpop.f32.mrb[126].mxu1  ;;  %v1784_v46 = vpop.f32.mrb[127].mxu0 }
 0x288   : > { %v2149_v40 = vmul.f32 %v2101_v37, %v1957_v62  ;;  %3524 = verf.f32 %v2640_v1  ;;  %v5299_v29 = vadd.f32 %v5108_v3, %v2414_v30  ;;  %v2416_v7 = vpop.f32.mrb[127].mxu1 }
 0x289   : > { %v3515_v6 = vpop.eup %3514  ;;  %v2781_v51 = vmul.f32 %v2733_v33, %v2589_v54  ;;  %v2009_v23 = vmul.f32 0.70710677, %v5296_v41  ;;  %v1961_v38 = vmul.f32 0.5, %v5296_v41 }
 0x28a   : > { %v3517_v34 = vpop.eup %3516  ;;  %2197 = vst [vmem:[%s4545_s17 + $0x170] sm:$0xff] %v2149_v40  ;;  %v2102_v32 = vadd.f32 1.0, %v3515_v6  ;;  %v2641_v20 = vmul.f32 0.70710677, %v5299_v29  ;;  %v1787_v31 = vpop.f32.mrb[128].mxu0  ;;  %v2593_v30 = vmul.f32 0.5, %v5299_v29 }
 0x28b   : > { %2829 = vst [vmem:[%s4545_s17 + $0x178] sm:$0xff] %v2781_v51  ;;  %v2734_v16 = vadd.f32 1.0, %v3517_v34  ;;  %3526 = verf.f32 %v2009_v23  ;;  %v5308_v43 = vadd.f32 %v5104_v13, %v1787_v31  ;;  %v2419_v50 = vpop.f32.mrb[128].mxu1  ;;  %v1789_v26 = vpop.f32.mrb[129].mxu0 }
 0x28c   : > { %v2150_v15 = vmul.f32 %v2102_v32, %v1958_v0  ;;  %3528 = verf.f32 %v2641_v20  ;;  %v5311_v4 = vadd.f32 %v5108_v3, %v2419_v50  ;;  %v2421_v24 = vpop.f32.mrb[129].mxu1 }
 0x28d   : > { %v3519_v21 = vpop.eup %3518  ;;  %v2782_v5 = vmul.f32 %v2734_v16, %v2590_v28  ;;  %v2010_v60 = vmul.f32 0.70710677, %v5308_v43  ;;  %v1962_v29 = vmul.f32 0.5, %v5308_v43 }
 0x28e   : > { %v3521_v14 = vpop.eup %3520  ;;  %2198 = vst [vmem:[%s4545_s17 + $0x190] sm:$0xff] %v2150_v15  ;;  %v2103_v48 = vadd.f32 1.0, %v3519_v21  ;;  %v2642_v11 = vmul.f32 0.70710677, %v5311_v4  ;;  %v1792_v25 = vpop.f32.mrb[130].mxu0  ;;  %v2594_v50 = vmul.f32 0.5, %v5311_v4 }
 0x28f   : > { %2830 = vst [vmem:[%s4545_s17 + $0x198] sm:$0xff] %v2782_v5  ;;  %v2735_v63 = vadd.f32 1.0, %v3521_v14  ;;  %3530 = verf.f32 %v2010_v60  ;;  %v5320_v17 = vadd.f32 %v5104_v13, %v1792_v25  ;;  %v2424_v45 = vpop.f32.mrb[130].mxu1  ;;  %v1794_v61 = vpop.f32.mrb[131].mxu0 }
 0x290   : > { %v2151_v47 = vmul.f32 %v2103_v48, %v1959_v19  ;;  %3532 = verf.f32 %v2642_v11  ;;  %v5323_v36 = vadd.f32 %v5108_v3, %v2424_v45  ;;  %v2426_v18 = vpop.f32.mrb[131].mxu1 }
 0x291   : > { %v3523_v22 = vpop.eup %3522  ;;  %v2783_v58 = vmul.f32 %v2735_v63, %v2591_v57  ;;  %v2011_v35 = vmul.f32 0.70710677, %v5320_v17  ;;  %v1963_v4 = vmul.f32 0.5, %v5320_v17 }
 0x292   : > { %v3525_v39 = vpop.eup %3524  ;;  %2199 = vst [vmem:[%s4545_s17 + $0x1b0] sm:$0xff] %v2151_v47  ;;  %v2104_v55 = vadd.f32 1.0, %v3523_v22  ;;  %v2643_v10 = vmul.f32 0.70710677, %v5323_v36  ;;  %v1797_v52 = vpop.f32.mrb[132].mxu0  ;;  %v2595_v45 = vmul.f32 0.5, %v5323_v36 }
 0x293   : > { %2831 = vst [vmem:[%s4545_s17 + $0x1b8] sm:$0xff] %v2783_v58  ;;  %v2736_v49 = vadd.f32 1.0, %v3525_v39  ;;  %3534 = verf.f32 %v2011_v35  ;;  %v5332_v8 = vadd.f32 %v5104_v13, %v1797_v52  ;;  %v2429_v9 = vpop.f32.mrb[132].mxu1  ;;  %v1799_v59 = vpop.f32.mrb[133].mxu0 }
 0x294   : > { %v2152_v12 = vmul.f32 %v2104_v55, %v1960_v56  ;;  %3536 = verf.f32 %v2643_v10  ;;  %v5335_v44 = vadd.f32 %v5108_v3, %v2429_v9  ;;  %v2431_v27 = vpop.f32.mrb[133].mxu1 }
 0x295   : > { %v3527_v42 = vpop.eup %3526  ;;  %v2784_v62 = vmul.f32 %v2736_v49, %v2592_v2  ;;  %v2012_v37 = vmul.f32 0.70710677, %v5332_v8  ;;  %v1964_v36 = vmul.f32 0.5, %v5332_v8 }
 0x296   : > { %v3529_v1 = vpop.eup %3528  ;;  %2200 = vst [vmem:[%s4545_s17 + $0x1d0] sm:$0xff] %v2152_v12  ;;  %v2105_v53 = vadd.f32 1.0, %v3527_v42  ;;  %v2644_v54 = vmul.f32 0.70710677, %v5335_v44  ;;  %v1802_v33 = vpop.f32.mrb[134].mxu0  ;;  %v2596_v9 = vmul.f32 0.5, %v5335_v44 }
 0x297   : > { %2832 = vst [vmem:[%s4545_s17 + $0x1d8] sm:$0xff] %v2784_v62  ;;  %v2737_v46 = vadd.f32 1.0, %v3529_v1  ;;  %3538 = verf.f32 %v2012_v37  ;;  %v5344_v40 = vadd.f32 %v5104_v13, %v1802_v33  ;;  %v2434_v7 = vpop.f32.mrb[134].mxu1  ;;  %v1804_v6 = vpop.f32.mrb[135].mxu0 }
 0x298   : > { %v2153_v51 = vmul.f32 %v2105_v53, %v1961_v38  ;;  %3540 = verf.f32 %v2644_v54  ;;  %v5347_v41 = vadd.f32 %v5108_v3, %v2434_v7  ;;  %v2436_v23 = vpop.f32.mrb[135].mxu1 }
 0x299   : > { %v3531_v34 = vpop.eup %3530  ;;  %v2785_v0 = vmul.f32 %v2737_v46, %v2593_v30  ;;  %v2013_v32 = vmul.f32 0.70710677, %v5344_v40  ;;  %v1965_v44 = vmul.f32 0.5, %v5344_v40 }
 0x29a   : > { %v3533_v20 = vpop.eup %3532  ;;  %2201 = vst [vmem:[%s4545_s17 + $0x1f0] sm:$0xff] %v2153_v51  ;;  %v2106_v31 = vadd.f32 1.0, %v3531_v34  ;;  %v2645_v28 = vmul.f32 0.70710677, %v5347_v41  ;;  %v1807_v16 = vpop.f32.mrb[136].mxu0  ;;  %v2597_v7 = vmul.f32 0.5, %v5347_v41 }
 0x29b   : > { %2833 = vst [vmem:[%s4545_s17 + $0x1f8] sm:$0xff] %v2785_v0  ;;  %v2738_v26 = vadd.f32 1.0, %v3533_v20  ;;  %3542 = verf.f32 %v2013_v32  ;;  %v5356_v15 = vadd.f32 %v5104_v13, %v1807_v16  ;;  %v2439_v24 = vpop.f32.mrb[136].mxu1  ;;  %v1809_v21 = vpop.f32.mrb[137].mxu0 }
 0x29c   : > { %v2154_v5 = vmul.f32 %v2106_v31, %v1962_v29  ;;  %3544 = verf.f32 %v2645_v28  ;;  %v5359_v43 = vadd.f32 %v5108_v3, %v2439_v24  ;;  %v2441_v60 = vpop.f32.mrb[137].mxu1 }
 0x29d   : > { %v3535_v14 = vpop.eup %3534  ;;  %v2786_v19 = vmul.f32 %v2738_v26, %v2594_v50  ;;  %v2014_v48 = vmul.f32 0.70710677, %v5356_v15  ;;  %v1966_v41 = vmul.f32 0.5, %v5356_v15 }
 0x29e   : > { %v3537_v11 = vpop.eup %3536  ;;  %2202 = vst [vmem:[%s4545_s17 + $0x210] sm:$0xff] %v2154_v5  ;;  %v2107_v25 = vadd.f32 1.0, %v3535_v14  ;;  %v2646_v57 = vmul.f32 0.70710677, %v5359_v43  ;;  %v1812_v63 = vpop.f32.mrb[138].mxu0  ;;  %v2598_v24 = vmul.f32 0.5, %v5359_v43 }
 0x29f   : > { %2834 = vst [vmem:[%s4545_s17 + $0x218] sm:$0xff] %v2786_v19  ;;  %v2739_v61 = vadd.f32 1.0, %v3537_v11  ;;  %3546 = verf.f32 %v2014_v48  ;;  %v5368_v47 = vadd.f32 %v5104_v13, %v1812_v63  ;;  %v2444_v18 = vpop.f32.mrb[138].mxu1  ;;  %v1814_v22 = vpop.f32.mrb[139].mxu0 }
 0x2a0   : > { %v2155_v58 = vmul.f32 %v2107_v25, %v1963_v4  ;;  %3548 = verf.f32 %v2646_v57  ;;  %v5371_v17 = vadd.f32 %v5108_v3, %v2444_v18  ;;  %v2446_v35 = vpop.f32.mrb[139].mxu1  ;;  %v5416_v18 = vld [vmem:[%s4479_s27 + $0x2] ss:$0 sm:$0xff] }
 0x2a1   : > { %v3539_v39 = vpop.eup %3538  ;;  %v2787_v56 = vmul.f32 %v2739_v61, %v2595_v45  ;;  %v2015_v55 = vmul.f32 0.70710677, %v5368_v47 }
 0x2a2   : > { %v3541_v10 = vpop.eup %3540  ;;  %2203 = vst [vmem:[%s4545_s17 + $0x230] sm:$0xff] %v2155_v58  ;;  %v2108_v52 = vadd.f32 1.0, %v3539_v39  ;;  %v2647_v2 = vmul.f32 0.70710677, %v5371_v17  ;;  %v1817_v49 = vpop.f32.mrb[140].mxu0  ;;  %v2599_v61 = vmul.f32 0.5, %v5371_v17 }
 0x2a3   : > { %2835 = vst [vmem:[%s4545_s17 + $0x238] sm:$0xff] %v2787_v56  ;;  %v2740_v59 = vadd.f32 1.0, %v3541_v10  ;;  %3550 = verf.f32 %v2015_v55  ;;  %v5380_v12 = vadd.f32 %v5104_v13, %v1817_v49  ;;  %v2449_v27 = vpop.f32.mrb[140].mxu1  ;;  %v1819_v42 = vpop.f32.mrb[141].mxu0 }
 0x2a4   : > { %v2156_v62 = vmul.f32 %v2108_v52, %v1964_v36  ;;  %3552 = verf.f32 %v2647_v2  ;;  %v5383_v8 = vadd.f32 %v5108_v3, %v2449_v27  ;;  %v2451_v37 = vpop.f32.mrb[141].mxu1 }
 0x2a5   : > { %v3543_v1 = vpop.eup %3542  ;;  %v2788_v38 = vmul.f32 %v2740_v59, %v2596_v9  ;;  %v2016_v53 = vmul.f32 0.70710677, %v5380_v12  ;;  %v1968_v2 = vmul.f32 0.5, %v5380_v12 }
 0x2a6   : > { %v3545_v54 = vpop.eup %3544  ;;  %2204 = vst [vmem:[%s4545_s17 + $0x250] sm:$0xff] %v2156_v62  ;;  %v2109_v33 = vadd.f32 1.0, %v3543_v1  ;;  %v2648_v30 = vmul.f32 0.70710677, %v5383_v8  ;;  %v1822_v46 = vpop.f32.mrb[142].mxu0  ;;  %v2600_v27 = vmul.f32 0.5, %v5383_v8 }
 0x2a7   : > { %2836 = vst [vmem:[%s4545_s17 + $0x258] sm:$0xff] %v2788_v38  ;;  %v2741_v6 = vadd.f32 1.0, %v3545_v54  ;;  %3554 = verf.f32 %v2016_v53  ;;  %v5392_v51 = vadd.f32 %v5104_v13, %v1822_v46  ;;  %v2454_v23 = vpop.f32.mrb[142].mxu1  ;;  %v1824_v34 = vpop.f32.mrb[143].mxu0 }
 0x2a8   : > { %v2157_v0 = vmul.f32 %v2109_v33, %v1965_v44  ;;  %3556 = verf.f32 %v2648_v30  ;;  %v5395_v40 = vadd.f32 %v5108_v3, %v2454_v23  ;;  %v2456_v32 = vpop.f32.mrb[143].mxu1 }
 0x2a9   : > { %v3547_v20 = vpop.eup %3546  ;;  %v2789_v29 = vmul.f32 %v2741_v6, %v2597_v7  ;;  %v2017_v31 = vmul.f32 0.70710677, %v5392_v51  ;;  %v1969_v8 = vmul.f32 0.5, %v5392_v51 }
 0x2aa   : > { %v3549_v28 = vpop.eup %3548  ;;  %2205 = vst [vmem:[%s4545_s17 + $0x270] sm:$0xff] %v2157_v0  ;;  %v2110_v16 = vadd.f32 1.0, %v3547_v20  ;;  %v2649_v50 = vmul.f32 0.70710677, %v5395_v40  ;;  %v1827_v26 = vpop.f32.mrb[144].mxu0  ;;  %v2601_v23 = vmul.f32 0.5, %v5395_v40 }
 0x2ab   : > { %2837 = vst [vmem:[%s4545_s17 + $0x278] sm:$0xff] %v2789_v29  ;;  %v2742_v21 = vadd.f32 1.0, %v3549_v28  ;;  %3558 = verf.f32 %v2017_v31  ;;  %v5404_v5 = vadd.f32 %v5104_v13, %v1827_v26  ;;  %v2459_v60 = vpop.f32.mrb[144].mxu1  ;;  %v1829_v14 = vpop.f32.mrb[145].mxu0  ;;  %v1967_v13 = vmul.f32 0.5, %v5368_v47 }
 0x2ac   : > { %v2158_v19 = vmul.f32 %v2110_v16, %v1966_v41  ;;  %3560 = verf.f32 %v2649_v50  ;;  %v5407_v15 = vadd.f32 %v5108_v3, %v2459_v60  ;;  %v2461_v48 = vpop.f32.mrb[145].mxu1  ;;  %v5422_v47 = vld [vmem:[%s4479_s27 + $0x3] ss:$0 sm:$0xff] }
 0x2ad   : > { %v3551_v11 = vpop.eup %3550  ;;  %v2790_v4 = vmul.f32 %v2742_v21, %v2598_v24  ;;  %v2018_v25 = vmul.f32 0.70710677, %v5404_v5  ;;  %v1970_v40 = vmul.f32 0.5, %v5404_v5 }
 0x2ae   : > { %v3553_v43 = vpop.eup %3552  ;;  %2206 = vst [vmem:[%s4545_s17 + $0x290] sm:$0xff] %v2158_v19  ;;  %v2111_v57 = vadd.f32 1.0, %v3551_v11  ;;  %v2650_v63 = vmul.f32 0.70710677, %v5407_v15  ;;  %v1832_v45 = vpop.f32.mrb[146].mxu0  ;;  %v2602_v60 = vmul.f32 0.5, %v5407_v15 }
 0x2af   : > { %2838 = vst [vmem:[%s4545_s17 + $0x298] sm:$0xff] %v2790_v4  ;;  %v2743_v3 = vadd.f32 1.0, %v3553_v43  ;;  %3562 = verf.f32 %v2018_v25  ;;  %v5419_v22 = vadd.f32 %v5416_v18, %v1832_v45  ;;  %v2464_v58 = vpop.f32.mrb[146].mxu1  ;;  %v1834_v35 = vpop.f32.mrb[147].mxu0 }
 0x2b0   : > { %v2159_v39 = vmul.f32 %v2111_v57, %v1967_v13  ;;  %3564 = verf.f32 %v2650_v63  ;;  %v5425_v56 = vadd.f32 %v5422_v47, %v2464_v58  ;;  %v2466_v55 = vpop.f32.mrb[147].mxu1 }
 0x2b1   : > { %v3555_v17 = vpop.eup %3554  ;;  %v2791_v10 = vmul.f32 %v2743_v3, %v2599_v61  ;;  %v2019_v36 = vmul.f32 0.70710677, %v5419_v22  ;;  %v1971_v15 = vmul.f32 0.5, %v5419_v22 }
 0x2b2   : > { %v3557_v52 = vpop.eup %3556  ;;  %2207 = vst [vmem:[%s4545_s17 + $0x2b0] sm:$0xff] %v2159_v39  ;;  %v2112_v49 = vadd.f32 1.0, %v3555_v17  ;;  %v2651_v9 = vmul.f32 0.70710677, %v5425_v56  ;;  %v1837_v59 = vpop.f32.mrb[148].mxu0  ;;  %v2603_v58 = vmul.f32 0.5, %v5425_v56 }
 0x2b3   : > { %2839 = vst [vmem:[%s4545_s17 + $0x2b8] sm:$0xff] %v2791_v10  ;;  %v2744_v42 = vadd.f32 1.0, %v3557_v52  ;;  %3566 = verf.f32 %v2019_v36  ;;  %v5434_v62 = vadd.f32 %v5416_v18, %v1837_v59  ;;  %v2469_v37 = vpop.f32.mrb[148].mxu1  ;;  %v1839_v1 = vpop.f32.mrb[149].mxu0 }
 0x2b4   : > { %v2160_v38 = vmul.f32 %v2112_v49, %v1968_v2  ;;  %3568 = verf.f32 %v2651_v9  ;;  %v5437_v12 = vadd.f32 %v5422_v47, %v2469_v37  ;;  %v2471_v53 = vpop.f32.mrb[149].mxu1 }
 0x2b5   : > { %v3559_v54 = vpop.eup %3558  ;;  %v2792_v44 = vmul.f32 %v2744_v42, %v2600_v27  ;;  %v2020_v33 = vmul.f32 0.70710677, %v5434_v62  ;;  %v1972_v56 = vmul.f32 0.5, %v5434_v62 }
 0x2b6   : > { %v3561_v30 = vpop.eup %3560  ;;  %2208 = vst [vmem:[%s4545_s17 + $0x2d0] sm:$0xff] %v2160_v38  ;;  %v2113_v46 = vadd.f32 1.0, %v3559_v54  ;;  %v2652_v7 = vmul.f32 0.70710677, %v5437_v12  ;;  %v1842_v6 = vpop.f32.mrb[150].mxu0  ;;  %v2604_v37 = vmul.f32 0.5, %v5437_v12 }
 0x2b7   : > { %2840 = vst [vmem:[%s4545_s17 + $0x2d8] sm:$0xff] %v2792_v44  ;;  %v2745_v34 = vadd.f32 1.0, %v3561_v30  ;;  %3570 = verf.f32 %v2020_v33  ;;  %v5446_v0 = vadd.f32 %v5416_v18, %v1842_v6  ;;  %v2474_v32 = vpop.f32.mrb[150].mxu1  ;;  %v1844_v20 = vpop.f32.mrb[151].mxu0 }
 0x2b8   : > { %v2161_v29 = vmul.f32 %v2113_v46, %v1969_v8  ;;  %3572 = verf.f32 %v2652_v7  ;;  %v5449_v51 = vadd.f32 %v5422_v47, %v2474_v32  ;;  %v2476_v31 = vpop.f32.mrb[151].mxu1 }
 0x2b9   : > { %v3563_v28 = vpop.eup %3562  ;;  %v2793_v41 = vmul.f32 %v2745_v34, %v2601_v23  ;;  %v2021_v16 = vmul.f32 0.70710677, %v5446_v0  ;;  %v1973_v12 = vmul.f32 0.5, %v5446_v0 }
 0x2ba   : > { %v3565_v50 = vpop.eup %3564  ;;  %2209 = vst [vmem:[%s4545_s17 + $0x2f0] sm:$0xff] %v2161_v29  ;;  %v2114_v26 = vadd.f32 1.0, %v3563_v28  ;;  %v2653_v24 = vmul.f32 0.70710677, %v5449_v51  ;;  %v1847_v21 = vpop.f32.mrb[152].mxu0  ;;  %v2605_v32 = vmul.f32 0.5, %v5449_v51 }
 0x2bb   : > { %2841 = vst [vmem:[%s4545_s17 + $0x2f8] sm:$0xff] %v2793_v41  ;;  %v2746_v14 = vadd.f32 1.0, %v3565_v50  ;;  %3574 = verf.f32 %v2021_v16  ;;  %v5458_v19 = vadd.f32 %v5416_v18, %v1847_v21  ;;  %v2479_v48 = vpop.f32.mrb[152].mxu1  ;;  %v1849_v11 = vpop.f32.mrb[153].mxu0 }
 0x2bc   : > { %v2162_v4 = vmul.f32 %v2114_v26, %v1970_v40  ;;  %3576 = verf.f32 %v2653_v24  ;;  %v5461_v5 = vadd.f32 %v5422_v47, %v2479_v48  ;;  %v2481_v25 = vpop.f32.mrb[153].mxu1 }
 0x2bd   : > { %v3567_v43 = vpop.eup %3566  ;;  %v2794_v13 = vmul.f32 %v2746_v14, %v2602_v60  ;;  %v2022_v57 = vmul.f32 0.70710677, %v5458_v19  ;;  %v1974_v51 = vmul.f32 0.5, %v5458_v19 }
 0x2be   : > { %v3569_v63 = vpop.eup %3568  ;;  %2210 = vst [vmem:[%s4545_s17 + $0x310] sm:$0xff] %v2162_v4  ;;  %v2115_v45 = vadd.f32 1.0, %v3567_v43  ;;  %v2654_v61 = vmul.f32 0.70710677, %v5461_v5  ;;  %v1852_v3 = vpop.f32.mrb[154].mxu0  ;;  %v2606_v48 = vmul.f32 0.5, %v5461_v5 }
 0x2bf   : > { %2842 = vst [vmem:[%s4545_s17 + $0x318] sm:$0xff] %v2794_v13  ;;  %v2747_v35 = vadd.f32 1.0, %v3569_v63  ;;  %3578 = verf.f32 %v2022_v57  ;;  %v5470_v39 = vadd.f32 %v5416_v18, %v1852_v3  ;;  %v2484_v55 = vpop.f32.mrb[154].mxu1  ;;  %v1854_v17 = vpop.f32.mrb[155].mxu0 }
 0x2c0   : > { %v2163_v10 = vmul.f32 %v2115_v45, %v1971_v15  ;;  %3580 = verf.f32 %v2654_v61  ;;  %v5473_v22 = vadd.f32 %v5422_v47, %v2484_v55  ;;  %v2486_v36 = vpop.f32.mrb[155].mxu1 }
 0x2c1   : > { %v3571_v52 = vpop.eup %3570  ;;  %v2795_v2 = vmul.f32 %v2747_v35, %v2603_v58  ;;  %v2023_v49 = vmul.f32 0.70710677, %v5470_v39  ;;  %v1975_v5 = vmul.f32 0.5, %v5470_v39 }
 0x2c2   : > { %v3573_v9 = vpop.eup %3572  ;;  %2211 = vst [vmem:[%s4545_s17 + $0x330] sm:$0xff] %v2163_v10  ;;  %v2116_v59 = vadd.f32 1.0, %v3571_v52  ;;  %v2655_v27 = vmul.f32 0.70710677, %v5473_v22  ;;  %v1857_v42 = vpop.f32.mrb[156].mxu0  ;;  %v2607_v55 = vmul.f32 0.5, %v5473_v22 }
 0x2c3   : > { %2843 = vst [vmem:[%s4545_s17 + $0x338] sm:$0xff] %v2795_v2  ;;  %v2748_v1 = vadd.f32 1.0, %v3573_v9  ;;  %3582 = verf.f32 %v2023_v49  ;;  %v5482_v38 = vadd.f32 %v5416_v18, %v1857_v42  ;;  %v2489_v53 = vpop.f32.mrb[156].mxu1  ;;  %v1859_v54 = vpop.f32.mrb[157].mxu0 }
 0x2c4   : > { %v2164_v44 = vmul.f32 %v2116_v59, %v1972_v56  ;;  %3584 = verf.f32 %v2655_v27  ;;  %v5485_v62 = vadd.f32 %v5422_v47, %v2489_v53  ;;  %v2491_v33 = vpop.f32.mrb[157].mxu1 }
 0x2c5   : > { %v3575_v30 = vpop.eup %3574  ;;  %v2796_v8 = vmul.f32 %v2748_v1, %v2604_v37  ;;  %v2024_v46 = vmul.f32 0.70710677, %v5482_v38  ;;  %v1976_v22 = vmul.f32 0.5, %v5482_v38 }
 0x2c6   : > { %v3577_v7 = vpop.eup %3576  ;;  %2212 = vst [vmem:[%s4545_s17 + $0x350] sm:$0xff] %v2164_v44  ;;  %v2117_v6 = vadd.f32 1.0, %v3575_v30  ;;  %v2656_v23 = vmul.f32 0.70710677, %v5485_v62  ;;  %v1862_v34 = vpop.f32.mrb[158].mxu0  ;;  %v2608_v53 = vmul.f32 0.5, %v5485_v62 }
 0x2c7   : > { %2844 = vst [vmem:[%s4545_s17 + $0x358] sm:$0xff] %v2796_v8  ;;  %v2749_v20 = vadd.f32 1.0, %v3577_v7  ;;  %3586 = verf.f32 %v2024_v46  ;;  %v5494_v29 = vadd.f32 %v5416_v18, %v1862_v34  ;;  %v2494_v31 = vpop.f32.mrb[158].mxu1  ;;  %v1864_v28 = vpop.f32.mrb[159].mxu0 }
 0x2c8   : > { %v2165_v41 = vmul.f32 %v2117_v6, %v1973_v12  ;;  %3588 = verf.f32 %v2656_v23  ;;  %v5497_v0 = vadd.f32 %v5422_v47, %v2494_v31  ;;  %v2496_v16 = vpop.f32.mrb[159].mxu1 }
 0x2c9   : > { %v3579_v50 = vpop.eup %3578  ;;  %v2797_v40 = vmul.f32 %v2749_v20, %v2605_v32  ;;  %v2025_v26 = vmul.f32 0.70710677, %v5494_v29  ;;  %v1977_v62 = vmul.f32 0.5, %v5494_v29 }
 0x2ca   : > { %v3581_v24 = vpop.eup %3580  ;;  %2213 = vst [vmem:[%s4545_s17 + $0x370] sm:$0xff] %v2165_v41  ;;  %v2118_v21 = vadd.f32 1.0, %v3579_v50  ;;  %v2657_v60 = vmul.f32 0.70710677, %v5497_v0  ;;  %v1867_v14 = vpop.f32.mrb[160].mxu0  ;;  %v2609_v31 = vmul.f32 0.5, %v5497_v0 }
 0x2cb   : > { %2845 = vst [vmem:[%s4545_s17 + $0x378] sm:$0xff] %v2797_v40  ;;  %v2750_v11 = vadd.f32 1.0, %v3581_v24  ;;  %3590 = verf.f32 %v2025_v26  ;;  %v5506_v4 = vadd.f32 %v5416_v18, %v1867_v14  ;;  %v2499_v25 = vpop.f32.mrb[160].mxu1  ;;  %v1869_v43 = vpop.f32.mrb[161].mxu0 }
 0x2cc   : > { %v2166_v13 = vmul.f32 %v2118_v21, %v1974_v51  ;;  %3592 = verf.f32 %v2657_v60  ;;  %v5509_v19 = vadd.f32 %v5422_v47, %v2499_v25  ;;  %v2501_v57 = vpop.f32.mrb[161].mxu1 }
 0x2cd   : > { %v3583_v63 = vpop.eup %3582  ;;  %v2798_v15 = vmul.f32 %v2750_v11, %v2606_v48  ;;  %v2026_v45 = vmul.f32 0.70710677, %v5506_v4  ;;  %v1978_v0 = vmul.f32 0.5, %v5506_v4 }
 0x2ce   : > { %v3585_v61 = vpop.eup %3584  ;;  %2214 = vst [vmem:[%s4545_s17 + $0x390] sm:$0xff] %v2166_v13  ;;  %v2119_v3 = vadd.f32 1.0, %v3583_v63  ;;  %v2658_v58 = vmul.f32 0.70710677, %v5509_v19  ;;  %v1872_v35 = vpop.f32.mrb[162].mxu0  ;;  %v2610_v25 = vmul.f32 0.5, %v5509_v19 }
 0x2cf   : > { %2846 = vst [vmem:[%s4545_s17 + $0x398] sm:$0xff] %v2798_v15  ;;  %v2751_v17 = vadd.f32 1.0, %v3585_v61  ;;  %3594 = verf.f32 %v2026_v45  ;;  %v5518_v10 = vadd.f32 %v5416_v18, %v1872_v35  ;;  %v2504_v36 = vpop.f32.mrb[162].mxu1  ;;  %v1874_v52 = vpop.f32.mrb[163].mxu0 }
 0x2d0   : > { %v2167_v2 = vmul.f32 %v2119_v3, %v1975_v5  ;;  %3596 = verf.f32 %v2658_v58  ;;  %v5521_v39 = vadd.f32 %v5422_v47, %v2504_v36  ;;  %v2506_v49 = vpop.f32.mrb[163].mxu1 }
 0x2d1   : > { %v3587_v9 = vpop.eup %3586  ;;  %v2799_v56 = vmul.f32 %v2751_v17, %v2607_v55  ;;  %v2027_v59 = vmul.f32 0.70710677, %v5518_v10  ;;  %v1979_v19 = vmul.f32 0.5, %v5518_v10 }
 0x2d2   : > { %v3589_v27 = vpop.eup %3588  ;;  %2215 = vst [vmem:[%s4545_s17 + $0x3b0] sm:$0xff] %v2167_v2  ;;  %v2120_v42 = vadd.f32 1.0, %v3587_v9  ;;  %v2659_v37 = vmul.f32 0.70710677, %v5521_v39  ;;  %v1877_v1 = vpop.f32.mrb[164].mxu0  ;;  %v2611_v36 = vmul.f32 0.5, %v5521_v39 }
 0x2d3   : > { %2847 = vst [vmem:[%s4545_s17 + $0x3b8] sm:$0xff] %v2799_v56  ;;  %v2752_v54 = vadd.f32 1.0, %v3589_v27  ;;  %3598 = verf.f32 %v2027_v59  ;;  %v5530_v44 = vadd.f32 %v5416_v18, %v1877_v1  ;;  %v2509_v33 = vpop.f32.mrb[164].mxu1  ;;  %v1879_v30 = vpop.f32.mrb[165].mxu0 }
 0x2d4   : > { %v2168_v8 = vmul.f32 %v2120_v42, %v1976_v22  ;;  %3600 = verf.f32 %v2659_v37  ;;  %v5533_v38 = vadd.f32 %v5422_v47, %v2509_v33  ;;  %v2511_v46 = vpop.f32.mrb[165].mxu1 }
 0x2d5   : > { %v3591_v7 = vpop.eup %3590  ;;  %v2800_v12 = vmul.f32 %v2752_v54, %v2608_v53  ;;  %v2028_v6 = vmul.f32 0.70710677, %v5530_v44  ;;  %v1980_v39 = vmul.f32 0.5, %v5530_v44 }
 0x2d6   : > { %v3593_v23 = vpop.eup %3592  ;;  %2216 = vst [vmem:[%s4545_s17 + $0x3d0] sm:$0xff] %v2168_v8  ;;  %v2121_v34 = vadd.f32 1.0, %v3591_v7  ;;  %v2660_v32 = vmul.f32 0.70710677, %v5533_v38  ;;  %v1882_v20 = vpop.f32.mrb[166].mxu0  ;;  %v2612_v33 = vmul.f32 0.5, %v5533_v38 }
 0x2d7   : > { %2848 = vst [vmem:[%s4545_s17 + $0x3d8] sm:$0xff] %v2800_v12  ;;  %v2753_v28 = vadd.f32 1.0, %v3593_v23  ;;  %3602 = verf.f32 %v2028_v6  ;;  %v5542_v41 = vadd.f32 %v5416_v18, %v1882_v20  ;;  %v2514_v16 = vpop.f32.mrb[166].mxu1  ;;  %v1884_v50 = vpop.f32.mrb[167].mxu0 }
 0x2d8   : > { %v2169_v40 = vmul.f32 %v2121_v34, %v1977_v62  ;;  %3604 = verf.f32 %v2660_v32  ;;  %v5545_v29 = vadd.f32 %v5422_v47, %v2514_v16  ;;  %v2516_v26 = vpop.f32.mrb[167].mxu1 }
 0x2d9   : > { %v3595_v24 = vpop.eup %3594  ;;  %v2801_v51 = vmul.f32 %v2753_v28, %v2609_v31  ;;  %v2029_v21 = vmul.f32 0.70710677, %v5542_v41  ;;  %v1981_v38 = vmul.f32 0.5, %v5542_v41 }
 0x2da   : > { %v3597_v60 = vpop.eup %3596  ;;  %2217 = vst [vmem:[%s4545_s17 + $0x3f0] sm:$0xff] %v2169_v40  ;;  %v2122_v14 = vadd.f32 1.0, %v3595_v24  ;;  %v2661_v48 = vmul.f32 0.70710677, %v5545_v29  ;;  %v1887_v11 = vpop.f32.mrb[168].mxu0  ;;  %v2613_v16 = vmul.f32 0.5, %v5545_v29 }
 0x2db   : > { %2849 = vst [vmem:[%s4545_s17 + $0x3f8] sm:$0xff] %v2801_v51  ;;  %v2754_v43 = vadd.f32 1.0, %v3597_v60  ;;  %3606 = verf.f32 %v2029_v21  ;;  %v5554_v13 = vadd.f32 %v5416_v18, %v1887_v11  ;;  %v2519_v57 = vpop.f32.mrb[168].mxu1  ;;  %v1889_v63 = vpop.f32.mrb[169].mxu0 }
 0x2dc   : > { %v2170_v15 = vmul.f32 %v2122_v14, %v1978_v0  ;;  %3608 = verf.f32 %v2661_v48  ;;  %v5557_v4 = vadd.f32 %v5422_v47, %v2519_v57  ;;  %v2521_v45 = vpop.f32.mrb[169].mxu1 }
 0x2dd   : > { %v3599_v61 = vpop.eup %3598  ;;  %v2802_v5 = vmul.f32 %v2754_v43, %v2610_v25  ;;  %v2030_v3 = vmul.f32 0.70710677, %v5554_v13  ;;  %v1982_v29 = vmul.f32 0.5, %v5554_v13 }
 0x2de   : > { %v3601_v58 = vpop.eup %3600  ;;  %2218 = vst [vmem:[%s4545_s17 + $0x410] sm:$0xff] %v2170_v15  ;;  %v2123_v35 = vadd.f32 1.0, %v3599_v61  ;;  %v2662_v55 = vmul.f32 0.70710677, %v5557_v4  ;;  %v1892_v17 = vpop.f32.mrb[170].mxu0  ;;  %v2614_v57 = vmul.f32 0.5, %v5557_v4 }
 0x2df   : > { %2850 = vst [vmem:[%s4545_s17 + $0x418] sm:$0xff] %v2802_v5  ;;  %v2755_v52 = vadd.f32 1.0, %v3601_v58  ;;  %3610 = verf.f32 %v2030_v3  ;;  %v5566_v2 = vadd.f32 %v5416_v18, %v1892_v17  ;;  %v2524_v49 = vpop.f32.mrb[170].mxu1  ;;  %v1894_v9 = vpop.f32.mrb[171].mxu0 }
 0x2e0   : > { %v2171_v56 = vmul.f32 %v2123_v35, %v1979_v19  ;;  %3612 = verf.f32 %v2662_v55  ;;  %v5569_v10 = vadd.f32 %v5422_v47, %v2524_v49  ;;  %v2526_v59 = vpop.f32.mrb[171].mxu1 }
 0x2e1   : > { %v3603_v27 = vpop.eup %3602  ;;  %v2803_v22 = vmul.f32 %v2755_v52, %v2611_v36  ;;  %v2031_v42 = vmul.f32 0.70710677, %v5566_v2  ;;  %v1983_v4 = vmul.f32 0.5, %v5566_v2 }
 0x2e2   : > { %v3605_v37 = vpop.eup %3604  ;;  %2219 = vst [vmem:[%s4545_s17 + $0x430] sm:$0xff] %v2171_v56  ;;  %v2124_v1 = vadd.f32 1.0, %v3603_v27  ;;  %v2663_v53 = vmul.f32 0.70710677, %v5569_v10  ;;  %v1897_v54 = vpop.f32.mrb[172].mxu0  ;;  %v2615_v49 = vmul.f32 0.5, %v5569_v10 }
 0x2e3   : > { %2851 = vst [vmem:[%s4545_s17 + $0x438] sm:$0xff] %v2803_v22  ;;  %v2756_v30 = vadd.f32 1.0, %v3605_v37  ;;  %3614 = verf.f32 %v2031_v42  ;;  %v5578_v8 = vadd.f32 %v5416_v18, %v1897_v54  ;;  %v2529_v46 = vpop.f32.mrb[172].mxu1  ;;  %v1899_v7 = vpop.f32.mrb[173].mxu0 }
 0x2e4   : > { %v2172_v12 = vmul.f32 %v2124_v1, %v1980_v39  ;;  %3616 = verf.f32 %v2663_v53  ;;  %v5581_v44 = vadd.f32 %v5422_v47, %v2529_v46  ;;  %v2531_v6 = vpop.f32.mrb[173].mxu1 }
 0x2e5   : > { %v3607_v23 = vpop.eup %3606  ;;  %v2804_v62 = vmul.f32 %v2756_v30, %v2612_v33  ;;  %v2032_v34 = vmul.f32 0.70710677, %v5578_v8  ;;  %v1984_v10 = vmul.f32 0.5, %v5578_v8 }
 0x2e6   : > { %v3609_v32 = vpop.eup %3608  ;;  %2220 = vst [vmem:[%s4545_s17 + $0x450] sm:$0xff] %v2172_v12  ;;  %v2125_v20 = vadd.f32 1.0, %v3607_v23  ;;  %v2664_v31 = vmul.f32 0.70710677, %v5581_v44  ;;  %v1902_v28 = vpop.f32.mrb[174].mxu0  ;;  %v2616_v46 = vmul.f32 0.5, %v5581_v44 }
 0x2e7   : > { %2852 = vst [vmem:[%s4545_s17 + $0x458] sm:$0xff] %v2804_v62  ;;  %v2757_v50 = vadd.f32 1.0, %v3609_v32  ;;  %3618 = verf.f32 %v2032_v34  ;;  %v5590_v40 = vadd.f32 %v5416_v18, %v1902_v28  ;;  %v2534_v26 = vpop.f32.mrb[174].mxu1  ;;  %v1904_v24 = vpop.f32.mrb[175].mxu0 }
 0x2e8   : > { %v2173_v51 = vmul.f32 %v2125_v20, %v1981_v38  ;;  %3620 = verf.f32 %v2664_v31  ;;  %v5593_v41 = vadd.f32 %v5422_v47, %v2534_v26  ;;  %v2536_v21 = vpop.f32.mrb[175].mxu1 }
 0x2e9   : > { %v3611_v60 = vpop.eup %3610  ;;  %v2805_v0 = vmul.f32 %v2757_v50, %v2613_v16  ;;  %v2033_v14 = vmul.f32 0.70710677, %v5590_v40  ;;  %v1985_v44 = vmul.f32 0.5, %v5590_v40 }
 0x2ea   : > { %v3613_v48 = vpop.eup %3612  ;;  %2221 = vst [vmem:[%s4545_s17 + $0x470] sm:$0xff] %v2173_v51  ;;  %v2126_v11 = vadd.f32 1.0, %v3611_v60  ;;  %v2665_v25 = vmul.f32 0.70710677, %v5593_v41  ;;  %v1907_v43 = vpop.f32.mrb[176].mxu0  ;;  %v2617_v26 = vmul.f32 0.5, %v5593_v41 }
 0x2eb   : > { %2853 = vst [vmem:[%s4545_s17 + $0x478] sm:$0xff] %v2805_v0  ;;  %v2758_v63 = vadd.f32 1.0, %v3613_v48  ;;  %3622 = verf.f32 %v2033_v14  ;;  %v5602_v15 = vadd.f32 %v5416_v18, %v1907_v43  ;;  %v2539_v45 = vpop.f32.mrb[176].mxu1  ;;  %v1909_v61 = vpop.f32.mrb[177].mxu0 }
 0x2ec   : > { %v2174_v5 = vmul.f32 %v2126_v11, %v1982_v29  ;;  %3624 = verf.f32 %v2665_v25  ;;  %v5605_v13 = vadd.f32 %v5422_v47, %v2539_v45  ;;  %v2541_v3 = vpop.f32.mrb[177].mxu1 }
 0x2ed   : > { %v3615_v58 = vpop.eup %3614  ;;  %v2806_v19 = vmul.f32 %v2758_v63, %v2614_v57  ;;  %v2034_v35 = vmul.f32 0.70710677, %v5602_v15  ;;  %v1986_v41 = vmul.f32 0.5, %v5602_v15 }
 0x2ee   : > { %v3617_v55 = vpop.eup %3616  ;;  %2222 = vst [vmem:[%s4545_s17 + $0x490] sm:$0xff] %v2174_v5  ;;  %v2127_v17 = vadd.f32 1.0, %v3615_v58  ;;  %v2666_v36 = vmul.f32 0.70710677, %v5605_v13  ;;  %v1912_v52 = vpop.f32.mrb[178].mxu0  ;;  %v2618_v45 = vmul.f32 0.5, %v5605_v13 }
 0x2ef   : > { %2854 = vst [vmem:[%s4545_s17 + $0x498] sm:$0xff] %v2806_v19  ;;  %v2759_v9 = vadd.f32 1.0, %v3617_v55  ;;  %3626 = verf.f32 %v2034_v35  ;;  %v5614_v56 = vadd.f32 %v5416_v18, %v1912_v52  ;;  %v2544_v59 = vpop.f32.mrb[178].mxu1  ;;  %v1914_v27 = vpop.f32.mrb[179].mxu0 }
 0x2f0   : > { %v2175_v22 = vmul.f32 %v2127_v17, %v1983_v4  ;;  %3628 = verf.f32 %v2666_v36  ;;  %v5617_v2 = vadd.f32 %v5422_v47, %v2544_v59  ;;  %v2546_v42 = vpop.f32.mrb[179].mxu1 }
 0x2f1   : > { %v3619_v37 = vpop.eup %3618  ;;  %v2807_v39 = vmul.f32 %v2759_v9, %v2615_v49  ;;  %v2035_v1 = vmul.f32 0.70710677, %v5614_v56  ;;  %v1987_v13 = vmul.f32 0.5, %v5614_v56 }
 0x2f2   : > { %v3621_v53 = vpop.eup %3620  ;;  %2223 = vst [vmem:[%s4545_s17 + $0x4b0] sm:$0xff] %v2175_v22  ;;  %v2128_v54 = vadd.f32 1.0, %v3619_v37  ;;  %v2667_v33 = vmul.f32 0.70710677, %v5617_v2  ;;  %v1917_v30 = vpop.f32.mrb[180].mxu0  ;;  %v2619_v59 = vmul.f32 0.5, %v5617_v2 }
 0x2f3   : > { %2855 = vst [vmem:[%s4545_s17 + $0x4b8] sm:$0xff] %v2807_v39  ;;  %v2760_v7 = vadd.f32 1.0, %v3621_v53  ;;  %3630 = verf.f32 %v2035_v1  ;;  %v5626_v12 = vadd.f32 %v5416_v18, %v1917_v30  ;;  %v2549_v6 = vpop.f32.mrb[180].mxu1  ;;  %v1919_v23 = vpop.f32.mrb[181].mxu0 }
 0x2f4   : > { %v2176_v62 = vmul.f32 %v2128_v54, %v1984_v10  ;;  %3632 = verf.f32 %v2667_v33  ;;  %v5629_v8 = vadd.f32 %v5422_v47, %v2549_v6  ;;  %v2551_v34 = vpop.f32.mrb[181].mxu1 }
 0x2f5   : > { %v3623_v32 = vpop.eup %3622  ;;  %v2808_v38 = vmul.f32 %v2760_v7, %v2616_v46  ;;  %v2036_v20 = vmul.f32 0.70710677, %v5626_v12  ;;  %v1988_v2 = vmul.f32 0.5, %v5626_v12 }
 0x2f6   : > { %v3625_v31 = vpop.eup %3624  ;;  %2224 = vst [vmem:[%s4545_s17 + $0x4d0] sm:$0xff] %v2176_v62  ;;  %v2129_v28 = vadd.f32 1.0, %v3623_v32  ;;  %v2668_v16 = vmul.f32 0.70710677, %v5629_v8  ;;  %v1922_v50 = vpop.f32.mrb[182].mxu0  ;;  %v2620_v6 = vmul.f32 0.5, %v5629_v8 }
 0x2f7   : > { %2856 = vst [vmem:[%s4545_s17 + $0x4d8] sm:$0xff] %v2808_v38  ;;  %v2761_v24 = vadd.f32 1.0, %v3625_v31  ;;  %3634 = verf.f32 %v2036_v20  ;;  %v5638_v51 = vadd.f32 %v5416_v18, %v1922_v50  ;;  %v2554_v21 = vpop.f32.mrb[182].mxu1  ;;  %v1924_v60 = vpop.f32.mrb[183].mxu0 }
 0x2f8   : > { %v2177_v0 = vmul.f32 %v2129_v28, %v1985_v44  ;;  %3636 = verf.f32 %v2668_v16  ;;  %v5641_v40 = vadd.f32 %v5422_v47, %v2554_v21  ;;  %v2556_v14 = vpop.f32.mrb[183].mxu1 }
 0x2f9   : > { %v3627_v48 = vpop.eup %3626  ;;  %v2809_v29 = vmul.f32 %v2761_v24, %v2617_v26  ;;  %v2037_v11 = vmul.f32 0.70710677, %v5638_v51  ;;  %v1989_v50 = vmul.f32 0.5, %v5638_v51 }
 0x2fa   : > { %v3629_v25 = vpop.eup %3628  ;;  %2225 = vst [vmem:[%s4545_s17 + $0x4f0] sm:$0xff] %v2177_v0  ;;  %v2130_v43 = vadd.f32 1.0, %v3627_v48  ;;  %v2669_v57 = vmul.f32 0.70710677, %v5641_v40  ;;  %v1927_v63 = vpop.f32.mrb[184].mxu0  ;;  %v2621_v21 = vmul.f32 0.5, %v5641_v40 }
 0x2fb   : > { %2857 = vst [vmem:[%s4545_s17 + $0x4f8] sm:$0xff] %v2809_v29  ;;  %v2762_v61 = vadd.f32 1.0, %v3629_v25  ;;  %3638 = verf.f32 %v2037_v11  ;;  %v5650_v5 = vadd.f32 %v5416_v18, %v1927_v63  ;;  %v2559_v3 = vpop.f32.mrb[184].mxu1  ;;  %v1929_v58 = vpop.f32.mrb[185].mxu0 }
 0x2fc   : > { %v2178_v19 = vmul.f32 %v2130_v43, %v1986_v41  ;;  %3640 = verf.f32 %v2669_v57  ;;  %v5653_v15 = vadd.f32 %v5422_v47, %v2559_v3  ;;  %v2561_v35 = vpop.f32.mrb[185].mxu1 }
 0x2fd   : > { %v3631_v55 = vpop.eup %3630  ;;  %v2810_v4 = vmul.f32 %v2762_v61, %v2618_v45  ;;  %v2038_v17 = vmul.f32 0.70710677, %v5650_v5  ;;  %v1990_v40 = vmul.f32 0.5, %v5650_v5 }
 0x2fe   : > { %v3633_v36 = vpop.eup %3632  ;;  %2226 = vst [vmem:[%s4545_s17 + $0x510] sm:$0xff] %v2178_v19  ;;  %v2131_v52 = vadd.f32 1.0, %v3631_v55  ;;  %v2670_v49 = vmul.f32 0.70710677, %v5653_v15  ;;  %v1932_v9 = vpop.f32.mrb[186].mxu0 }
 0x2ff   : > { %2858 = vst [vmem:[%s4545_s17 + $0x518] sm:$0xff] %v2810_v4  ;;  %v2763_v27 = vadd.f32 1.0, %v3633_v36  ;;  %3642 = verf.f32 %v2038_v17  ;;  %v5662_v22 = vadd.f32 %v5416_v18, %v1932_v9  ;;  %v2564_v42 = vpop.f32.mrb[186].mxu1  ;;  %v1934_v37 = vpop.f32.mrb[187].mxu0 }
 0x300   : > { %v2179_v39 = vmul.f32 %v2131_v52, %v1987_v13  ;;  %3644 = verf.f32 %v2670_v49  ;;  %v2565_v56 = vadd.f32 %v5422_v47, %v2564_v42  ;;  %v2566_v1 = vpop.f32.mrb[187].mxu1 }
 0x301   : > { %v3635_v53 = vpop.eup %3634  ;;  %v2811_v10 = vmul.f32 %v2763_v27, %v2619_v59  ;;  %v2039_v54 = vmul.f32 0.70710677, %v5662_v22  ;;  %v1991_v35 = vmul.f32 0.5, %v5662_v22 }
 0x302   : > { %v3637_v33 = vpop.eup %3636  ;;  %2227 = vst [vmem:[%s4545_s17 + $0x530] sm:$0xff] %v2179_v39  ;;  %v2132_v30 = vadd.f32 1.0, %v3635_v53  ;;  %v2671_v46 = vmul.f32 0.70710677, %v2565_v56  ;;  %v1937_v7 = vpop.f32.mrb[188].mxu0  ;;  %v2623_v5 = vmul.f32 0.5, %v2565_v56 }
 0x303   : > { %2859 = vst [vmem:[%s4545_s17 + $0x538] sm:$0xff] %v2811_v10  ;;  %v2764_v23 = vadd.f32 1.0, %v3637_v33  ;;  %3646 = verf.f32 %v2039_v54  ;;  %v1938_v62 = vadd.f32 %v5416_v18, %v1937_v7  ;;  %v2569_v34 = vpop.f32.mrb[188].mxu1  ;;  %v1939_v32 = vpop.f32.mrb[189].mxu0 }
 0x304   : > { %v2180_v38 = vmul.f32 %v2132_v30, %v1988_v2  ;;  %3648 = verf.f32 %v2671_v46  ;;  %v2570_v20 = vadd.f32 %v5422_v47, %v2569_v34  ;;  %v2571_v31 = vpop.f32.mrb[189].mxu1 }
 0x305   : > { %v3639_v12 = vpop.eup %3638  ;;  %v2812_v44 = vmul.f32 %v2764_v23, %v2620_v6  ;;  %v2040_v28 = vmul.f32 0.70710677, %v1938_v62  ;;  %v1992_v52 = vmul.f32 0.5, %v1938_v62 }
 0x306   : > { %v3641_v16 = vpop.eup %3640  ;;  %2228 = vst [vmem:[%s4545_s17 + $0x550] sm:$0xff] %v2180_v38  ;;  %v2133_v8 = vadd.f32 1.0, %v3639_v12  ;;  %v2672_v26 = vmul.f32 0.70710677, %v2570_v20  ;;  %v1942_v24 = vpop.f32.mrb[190].mxu0  ;;  %v2624_v9 = vmul.f32 0.5, %v2570_v20 }
 0x307   : > { %2860 = vst [vmem:[%s4545_s17 + $0x558] sm:$0xff] %v2812_v44  ;;  %v2765_v60 = vadd.f32 1.0, %v3641_v16  ;;  %3650 = verf.f32 %v2040_v28  ;;  %v1943_v0 = vadd.f32 %v5416_v18, %v1942_v24  ;;  %v2574_v14 = vpop.f32.mrb[190].mxu1  ;;  %v1944_v48 = vpop.f32.mrb[191].mxu0  ;;  %v2622_v18 = vmul.f32 0.5, %v5653_v15 }
 0x308   : > { %v2181_v29 = vmul.f32 %v2133_v8, %v1989_v50  ;;  %3652 = verf.f32 %v2672_v26  ;;  %v2575_v11 = vadd.f32 %v5422_v47, %v2574_v14  ;;  %v2576_v25 = vpop.f32.mrb[191].mxu1 }
 0x309   : > { %v3643_v51 = vpop.eup %3642  ;;  %v2813_v41 = vmul.f32 %v2765_v60, %v2621_v21  ;;  %v2041_v43 = vmul.f32 0.70710677, %v1943_v0  ;;  %v1993_v39 = vmul.f32 0.5, %v1943_v0 }
 0x30a   : > { %v3645_v57 = vpop.eup %3644  ;;  %2229 = vst [vmem:[%s4545_s17 + $0x570] sm:$0xff] %v2181_v29  ;;  %v2134_v63 = vadd.f32 1.0, %v3643_v51  ;;  %v2673_v45 = vmul.f32 0.70710677, %v2575_v11  ;;  %v2625_v1 = vmul.f32 0.5, %v2575_v11 }
 0x30b   : > { %2861 = vst [vmem:[%s4545_s17 + $0x578] sm:$0xff] %v2813_v41  ;;  %v2766_v61 = vadd.f32 1.0, %v3645_v57  ;;  %3654 = verf.f32 %v2041_v43 }
 0x30c   : > { %v2182_v3 = vmul.f32 %v2134_v63, %v1990_v40  ;;  %3656 = verf.f32 %v2673_v45 }
 0x30d   : > { %v3647_v47 = vpop.eup %3646  ;;  %v2814_v58 = vmul.f32 %v2766_v61, %v2622_v18 }
 0x30e   : > { %v3649_v19 = vpop.eup %3648  ;;  %2230 = vst [vmem:[%s4545_s17 + $0x590] sm:$0xff] %v2182_v3  ;;  %v2135_v55 = vadd.f32 1.0, %v3647_v47 }
 0x30f   : > { %2862 = vst [vmem:[%s4545_s17 + $0x598] sm:$0xff] %v2814_v58  ;;  %v2767_v4 = vadd.f32 1.0, %v3649_v19 }
 0x310   : > { %v2183_v17 = vmul.f32 %v2135_v55, %v1991_v35 }
 0x311   : > { %v3651_v15 = vpop.eup %3650  ;;  %v2815_v36 = vmul.f32 %v2767_v4, %v2623_v5 }
 0x312   : > { %v3653_v13 = vpop.eup %3652  ;;  %2231 = vst [vmem:[%s4545_s17 + $0x5b0] sm:$0xff] %v2183_v17  ;;  %v2136_v49 = vadd.f32 1.0, %v3651_v15 }
 0x313   : > { %2863 = vst [vmem:[%s4545_s17 + $0x5b8] sm:$0xff] %v2815_v36  ;;  %v2768_v59 = vadd.f32 1.0, %v3653_v13 }
 0x314   : > { %v2184_v27 = vmul.f32 %v2136_v49, %v1992_v52 }
 0x315   : > { %v3655_v22 = vpop.eup %3654  ;;  %v2816_v42 = vmul.f32 %v2768_v59, %v2624_v9 }
 0x316   : > { %v3657_v37 = vpop.eup %3656  ;;  %2232 = vst [vmem:[%s4545_s17 + $0x5d0] sm:$0xff] %v2184_v27  ;;  %v2137_v56 = vadd.f32 1.0, %v3655_v22 }
 0x317   : > { %2864 = vst [vmem:[%s4545_s17 + $0x5d8] sm:$0xff] %v2816_v42  ;;  %v2769_v53 = vadd.f32 1.0, %v3657_v37 }
 0x318   : > { %v2185_v10 = vmul.f32 %v2137_v56, %v1993_v39 }
 0x319   : > { %v2817_v54 = vmul.f32 %v2769_v53, %v2625_v1 }
 0x31a   : > { %2233 = vst [vmem:[%s4545_s17 + $0x5f0] sm:$0xff] %v2185_v10 }
 0x31b   : > { %2865 = vst [vmem:[%s4545_s17 + $0x5f8] sm:$0xff] %v2817_v54 }
 0x31c   : > { %3822 = shalt.err (!%p3819_p7)
}
 0x31d   : > { %s3823_s22 = scalar_lea.hbm %s5694_s7, 24576  ;;  %s3827_s25 = scalar_lea.hbm %s5745_s3, 49152 }
 0x31e   : > { %p3824_p9 = scmp.ne.s32.totalorder %s5694_s7, %s3823_s22  ;;  %p3828_p3 = scmp.lt.u32.totalorder %s5694_s7, %s5745_s3 }
 0x31f   : > { %p3829_p1 = scmp.lt.u32.totalorder %s3827_s25, %s3823_s22  ;;  %p3831_p2 = scmp.lt.u32.totalorder %s3823_s22, %s5694_s7 }
 0x320   : > { %p3825_p12 = pnand %p3824_p9, %p5766_p4 }
 0x321   : > { %p3830_p10 = por %p3829_p1, %p3828_p3 }
 0x322   : > { %p3826_p6 = pneg %p3825_p12 }
 0x323   : > { %p3832_p0 = por %p3831_p2, %p3830_p10 }
 0x325   : > { %p3833_p11 = pnand %p3832_p0, %p3826_p6 }
 0x327   : > { %3836 = shalt.err (!%p3833_p11)
}
 0x328   : > { %s3891_s4 = smov 512   ;;  %s3892_s17 = smov 1024  }
 0x329   : > { %s3893_s20 = smov 32  }
 0x32a   : > { %3211 = dma.vmem_to_hbm [thread:$0]  (%p5766_p4), %s5696_s5, 24576, %s5694_s7, %s2867_s24, %s3891_s4, %s3892_s17, %s3893_s20  }
 0x32b PF: > { %s2895_s10 = sand.u32 1, %s3867_s12   ;;  %p5767_p13 = scmp.ne.s32.totalorder %s5756_s28, 0 }
 0x32c   : > { %p5768_p8 = scmp.ge.s32.totalorder %s3879_s15, 2  ;;  %s2896_s11 = scalar_lea.sflag [#allocation4], %s2895_s10 }
 0x32e   : > { %p3225_p5 = pnand %p5768_p8, %p5767_p13 }
 0x330   : > { %3862 = dma.done.wait (!%p3225_p5), %s2896_s11, 24576  }
 0x331   : > { %3864 = vsyncadd (!%p3225_p5), %s2896_s11, 4294942720  ;;  %p17_p7 = scmp.ge.s32.totalorder %s3935_s16, 4   ;;  %s5769_s12 = smov %s3871_s13 }
 0x332   : > { %s5770_s13 = smov %s3875_s14  ;;  %s5771_s14 = smov %s3946_s19 }
 0x333   : > { %s5772_s15 = smov %s3935_s16  ;;  %19 = sbr.rel (!%p17_p7) target bundleno = 6 (0x6), region = 93 }
 0x33a   :  { %2901 = vsyncpa [#allocation3], 1 }
 0x33b   :  { %2903 = vsyncpa [#allocation3 + $0x1], 1 }
 0x33c   :  { %2904 = vsyncpa [#allocation6], 1 }
 0x33d   :  { %2906 = vsyncpa [#allocation6 + $0x1], 1 }
 0x33e   :  { %2907 = vsyncpa [#allocation4], 1 }
 0x33f   :  { %2909 = vsyncpa [#allocation4 + $0x1], 1 }

</bundles_post_ra>
